<compile_context>
chip_gen: v6e
topology: v6e:2x2x1
jax: 0.10.0
libtpu: 0.0.40
codegen_flags: <defaults>
</compile_context>

<pallas_src>
import functools

import jax
import jax.numpy as jnp
from jax import lax
from jax.experimental import pallas as pl
from jax.experimental.pallas import tpu as pltpu

LEAKY_SLOPE = 0.1
BN_EPS = 1e-5


def _ds(start, size, stride):
    if stride == 1:
        return pl.ds(start, size)
    return pl.ds(start, size, stride=stride)


def _conv_tile(x_ref, w_ref, tile_idx, *, th, ow, kh, kw, stride, c, oc_p):
    """f32 conv accumulator for one tile of `th` output rows (one batch elem).

    x_ref: [Hp, Wp, C]      bf16 zero-padded NHWC image
    w_ref: [KH*KW, C, OCp]  bf16 weights, kernel-position major
    returns [th*ow, oc_p] f32
    """
    tm = th * ow
    row0 = pl.multiple_of(tile_idx * (th * stride), th * stride)
    acc = None
    for k in range(kh * kw):
        di, dj = divmod(k, kw)
        patch = x_ref[_ds(row0 + di, th, stride), _ds(dj, ow, stride), :]
        patch = patch.reshape(tm, c)          # minor dim (C) unchanged
        part = jnp.dot(patch, w_ref[k], preferred_element_type=jnp.float32)
        acc = part if acc is None else acc + part
    return acc


# ---------------------------------------------------------------------------
# Pass 1: stats only — per-tile channel sum / sum-of-squares of the conv.
# ---------------------------------------------------------------------------
def _stats_kernel(x_ref, w_ref, sum_ref, sq_ref, *, th, ow, kh, kw, stride, c,
                  oc_p):
    t = pl.program_id(1)
    acc = _conv_tile(x_ref, w_ref, t, th=th, ow=ow, kh=kh, kw=kw,
                     stride=stride, c=c, oc_p=oc_p)
    # Exact f32 reductions (no bf16 MXU pass for statistics). Padded output
    # rows / padded channels are exact zeros (no bias), so no masking needed.
    sum_ref[...] = jnp.sum(acc, axis=0, keepdims=True)
    sq_ref[...] = jnp.sum(acc * acc, axis=0, keepdims=True)


# ---------------------------------------------------------------------------
# Pass 2: conv recompute + folded BN (scale/shift) + LeakyReLU, fused.
# ---------------------------------------------------------------------------
def _conv_bn_act_kernel(x_ref, w_ref, scale_ref, shift_ref, o_ref, *, th, ow,
                        kh, kw, stride, c, oc_p):
    t = pl.program_id(1)
    acc = _conv_tile(x_ref, w_ref, t, th=th, ow=ow, kh=kh, kw=kw,
                     stride=stride, c=c, oc_p=oc_p)
    y = acc * scale_ref[...] + shift_ref[...]
    o_ref[...] = jnp.where(y > 0, y, LEAKY_SLOPE * y).astype(o_ref.dtype)


def _pick_tile_rows(oh, ow, target_m=512):
    th = max(1, min(oh, max(1, target_m // max(ow, 1))))
    while (th * ow) % 8 != 0:   # keep the M tile sublane-aligned
        th += 1
    return th


@functools.partial(jax.jit, static_argnames=("stride", "padding", "tile_rows"))
def conv_block(x, weight, bias, gamma, beta, *, stride, padding,
               tile_rows=None):
    # x: [N, C, H, W] (NCHW, matching PyTorch); weight: [OC, C, KH, KW]
    del bias  # training-mode BN subtracts the batch mean -> bias cancels exactly
    n, c, h, w = x.shape
    oc, _, kh, kw = weight.shape
    oh = (h + 2 * padding - kh) // stride + 1
    ow = (w + 2 * padding - kw) // stride + 1

    th = tile_rows if tile_rows is not None else _pick_tile_rows(oh, ow)
    oh_p = ((oh + th - 1) // th) * th          # pad output rows to tile mult.
    num_row_tiles = oh_p // th
    tm = th * ow
    oc_p = ((oc + 127) // 128) * 128           # lane-dense output channels

    # NCHW -> zero-padded NHWC bf16 (single layout pass; no im2col inflation).
    extra_h = (oh_p - oh) * stride             # rows feeding padded out-rows
    x_nhwc = jnp.transpose(x, (0, 2, 3, 1))
    x_nhwc = jnp.pad(
        x_nhwc,
        ((0, 0), (padding, padding + extra_h), (padding, padding), (0, 0)),
    ).astype(jnp.bfloat16)
    hp = h + 2 * padding + extra_h
    wp = w + 2 * padding

    # [OC, C, KH, KW] -> [KH*KW, C, OCp] (kernel-position-major shifted matmuls)
    w_k = jnp.transpose(weight, (2, 3, 1, 0)).reshape(kh * kw, c, oc)
    w_k = jnp.pad(w_k, ((0, 0), (0, 0), (0, oc_p - oc))).astype(jnp.bfloat16)

    gamma_p = jnp.pad(gamma, (0, oc_p - oc)).astype(jnp.float32)
    beta_p = jnp.pad(beta, (0, oc_p - oc)).astype(jnp.float32)

    grid = (n, num_row_tiles)
    x_spec = pl.BlockSpec((None, hp, wp, c), lambda i, t: (i, 0, 0, 0))
    w_spec = pl.BlockSpec((kh * kw, c, oc_p), lambda i, t: (0, 0, 0),
                          pipeline_mode=pl.Buffered(1))   # constant -> 1 buffer
    cparams = pltpu.CompilerParams(
        dimension_semantics=("parallel", "parallel"),
        vmem_limit_bytes=64 * 1024 * 1024,
    )
    common = dict(th=th, ow=ow, kh=kh, kw=kw, stride=stride, c=c, oc_p=oc_p)

    # ---- pass 1: tile-local channel sums / sums-of-squares --------------
    part_sum, part_sq = pl.pallas_call(
        functools.partial(_stats_kernel, **common),
        out_shape=(
            jax.ShapeDtypeStruct((n, num_row_tiles, 1, oc_p), jnp.float32),
            jax.ShapeDtypeStruct((n, num_row_tiles, 1, oc_p), jnp.float32),
        ),
        grid=grid,
        in_specs=[x_spec, w_spec],
        out_specs=(
            pl.BlockSpec((None, None, 1, oc_p), lambda i, t: (i, t, 0, 0)),
            pl.BlockSpec((None, None, 1, oc_p), lambda i, t: (i, t, 0, 0)),
        ),
        compiler_params=cparams,
    )(x_nhwc, w_k)

    # ---- fold training-mode BN into per-channel scale/shift (tiny, f32) --
    m_true = n * oh * ow                       # padded rows contribute zeros
    ch_sum = part_sum.sum(axis=(0, 1, 2))
    ch_sq = part_sq.sum(axis=(0, 1, 2))
    mean = ch_sum / m_true
    var = jnp.maximum(ch_sq / m_true - mean * mean, 0.0)
    inv_std = lax.rsqrt(var + BN_EPS)
    scale = (gamma_p * inv_std).reshape(1, oc_p)
    shift = (beta_p - mean * gamma_p * inv_std).reshape(1, oc_p)

    # ---- pass 2: conv recompute + BN + LeakyReLU, fused ------------------
    out_flat = pl.pallas_call(
        functools.partial(_conv_bn_act_kernel, **common),
        out_shape=jax.ShapeDtypeStruct((n, oh_p * ow, oc_p), jnp.float32),
        grid=grid,
        in_specs=[
            x_spec,
            w_spec,
            pl.BlockSpec((1, oc_p), lambda i, t: (0, 0)),
            pl.BlockSpec((1, oc_p), lambda i, t: (0, 0)),
        ],
        out_specs=pl.BlockSpec((None, tm, oc_p), lambda i, t: (i, t, 0)),
        compiler_params=cparams,
    )(x_nhwc, w_k, scale, shift)

    # [N, OHp*OW, OCp] -> slice real rows/channels -> NCHW (PyTorch layout).
    out = out_flat.reshape(n, oh_p, ow, oc_p)[:, :oh, :, :oc]
    return jnp.transpose(out, (0, 3, 1, 2))


def _reference(x, weight, bias, gamma, beta, stride, padding):
    conv = lax.conv_general_dilated(
        x, weight, (stride, stride),
        [(padding, padding), (padding, padding)],
        dimension_numbers=("NCHW", "OIHW", "NCHW"),
    ) + bias[None, :, None, None]
    mean = conv.mean(axis=(0, 2, 3), keepdims=True)
    var = ((conv - mean) ** 2).mean(axis=(0, 2, 3), keepdims=True)
    y = (conv - mean) * lax.rsqrt(var + BN_EPS)
    y = y * gamma[None, :, None, None] + beta[None, :, None, None]
    return jnp.where(y > 0, y, LEAKY_SLOPE * y)


if __name__ == "__main__":
    # Small YOLOv1-style block: in_channels=4, out_channels=8, k=3, s=1, p=1
    N, C, H, W = 2, 4, 16, 16
    OC, K, STRIDE, PAD = 8, 3, 1, 1

    key = jax.random.PRNGKey(0)
    kx, kw_, kb, kg, kbt = jax.random.split(key, 5)

    x = jax.random.normal(kx, (N, C, H, W), dtype=jnp.float32)
    fan_in = C * K * K
    weight = jax.random.normal(kw_, (OC, C, K, K), dtype=jnp.float32) / jnp.sqrt(fan_in)
    bias = jax.random.normal(kb, (OC,), dtype=jnp.float32) * 0.1
    gamma = 1.0 + 0.1 * jax.random.normal(kg, (OC,), dtype=jnp.float32)
    beta = 0.1 * jax.random.normal(kbt, (OC,), dtype=jnp.float32)

    out = conv_block(x, weight, bias, gamma, beta, stride=STRIDE, padding=PAD)
    out = jax.block_until_ready(out)

    ref = _reference(x, weight, bias, gamma, beta, STRIDE, PAD)
    assert out.shape == (N, OC, H, W), out.shape
    # bf16 matmul inputs (f32 accumulation) => slightly looser tolerance vs f32 ref
    assert jnp.allclose(out, ref, atol=2e-2, rtol=2e-2), float(
        jnp.max(jnp.abs(out - ref))
    )

    print("KERNEL_OK")
</pallas_src>

<mosaic_0001>
module attributes {stable_mosaic.version = 11 : i64} {
  func.func @_stats_kernel(%arg0: i32, %arg1: i32, %arg2: memref<1x18x18x4xbf16, #tpu.memory_space<vmem>>, %arg3: memref<9x4x128xbf16, #tpu.memory_space<vmem>>, %arg4: memref<1x1x1x128xf32, #tpu.memory_space<vmem>>, %arg5: memref<1x1x1x128xf32, #tpu.memory_space<vmem>>) attributes {dimension_semantics = [#tpu.dimension_semantics<parallel>, #tpu.dimension_semantics<parallel>], iteration_bounds = array<i64: 2, 1>, scalar_prefetch = 0 : i64, scratch_operands = 0 : i64, tpu.core_type = #tpu.core_type<tc>, window_params = [{transform_indices = @transform_0, window_bounds = array<i64: 1, 18, 18, 4>}, {pipeline_mode = #tpu.pipeline_mode<synchronous>, transform_indices = @transform_1, window_bounds = array<i64: 9, 4, 128>}, {transform_indices = @transform_2, window_bounds = array<i64: 1, 1, 1, 128>}, {transform_indices = @transform_3, window_bounds = array<i64: 1, 1, 1, 128>}]} {
    %c16_i32 = arith.constant 16 : i32
    %0 = arith.muli %arg1, %c16_i32 : i32
    %1 = tpu.assume_multiple %0, 16 : i32
    %c0_i32 = arith.constant 0 : i32
    %2 = arith.addi %1, %c0_i32 : i32
    %c0 = arith.constant 0 : index
    %3 = arith.index_cast %2 : i32 to index
    %c0_0 = arith.constant 0 : index
    %c0_1 = arith.constant 0 : index
    %4 = vector.load %arg2[%c0, %3, %c0_0, %c0_1] : memref<1x18x18x4xbf16, #tpu.memory_space<vmem>>, vector<1x16x16x4xbf16>
    %5 = vector.shape_cast %4 : vector<1x16x16x4xbf16> to vector<16x16x4xbf16>
    %6 = vector.shape_cast %5 : vector<16x16x4xbf16> to vector<256x4xbf16>
    %c0_2 = arith.constant 0 : index
    %c0_3 = arith.constant 0 : index
    %c0_4 = arith.constant 0 : index
    %7 = vector.load %arg3[%c0_2, %c0_3, %c0_4] : memref<9x4x128xbf16, #tpu.memory_space<vmem>>, vector<1x4x128xbf16>
    %8 = vector.shape_cast %7 : vector<1x4x128xbf16> to vector<4x128xbf16>
    %cst = arith.constant dense<0.000000e+00> : vector<256x128xf32>
    %9 = tpu.matmul %6, %8, %cst {dimension_numbers = #tpu.dot_dimension_numbers<[1], [0], [0], [1], [0, 0, 1, 1], [], []>} : vector<256x4xbf16>, vector<4x128xbf16>, vector<256x128xf32> -> vector<256x128xf32>
    %c0_i32_5 = arith.constant 0 : i32
    %10 = arith.addi %1, %c0_i32_5 : i32
    %c0_6 = arith.constant 0 : index
    %11 = arith.index_cast %10 : i32 to index
    %c1 = arith.constant 1 : index
    %c0_7 = arith.constant 0 : index
    %12 = vector.load %arg2[%c0_6, %11, %c1, %c0_7] : memref<1x18x18x4xbf16, #tpu.memory_space<vmem>>, vector<1x16x16x4xbf16>
    %13 = vector.shape_cast %12 : vector<1x16x16x4xbf16> to vector<16x16x4xbf16>
    %14 = vector.shape_cast %13 : vector<16x16x4xbf16> to vector<256x4xbf16>
    %c1_8 = arith.constant 1 : index
    %c0_9 = arith.constant 0 : index
    %c0_10 = arith.constant 0 : index
    %15 = vector.load %arg3[%c1_8, %c0_9, %c0_10] : memref<9x4x128xbf16, #tpu.memory_space<vmem>>, vector<1x4x128xbf16>
    %16 = vector.shape_cast %15 : vector<1x4x128xbf16> to vector<4x128xbf16>
    %cst_11 = arith.constant dense<0.000000e+00> : vector<256x128xf32>
    %17 = tpu.matmul %14, %16, %cst_11 {dimension_numbers = #tpu.dot_dimension_numbers<[1], [0], [0], [1], [0, 0, 1, 1], [], []>} : vector<256x4xbf16>, vector<4x128xbf16>, vector<256x128xf32> -> vector<256x128xf32>
    %18 = arith.addf %9, %17 : vector<256x128xf32>
    %c0_i32_12 = arith.constant 0 : i32
    %19 = arith.addi %1, %c0_i32_12 : i32
    %c0_13 = arith.constant 0 : index
    %20 = arith.index_cast %19 : i32 to index
    %c2 = arith.constant 2 : index
    %c0_14 = arith.constant 0 : index
    %21 = vector.load %arg2[%c0_13, %20, %c2, %c0_14] : memref<1x18x18x4xbf16, #tpu.memory_space<vmem>>, vector<1x16x16x4xbf16>
    %22 = vector.shape_cast %21 : vector<1x16x16x4xbf16> to vector<16x16x4xbf16>
    %23 = vector.shape_cast %22 : vector<16x16x4xbf16> to vector<256x4xbf16>
    %c2_15 = arith.constant 2 : index
    %c0_16 = arith.constant 0 : index
    %c0_17 = arith.constant 0 : index
    %24 = vector.load %arg3[%c2_15, %c0_16, %c0_17] : memref<9x4x128xbf16, #tpu.memory_space<vmem>>, vector<1x4x128xbf16>
    %25 = vector.shape_cast %24 : vector<1x4x128xbf16> to vector<4x128xbf16>
    %cst_18 = arith.constant dense<0.000000e+00> : vector<256x128xf32>
    %26 = tpu.matmul %23, %25, %cst_18 {dimension_numbers = #tpu.dot_dimension_numbers<[1], [0], [0], [1], [0, 0, 1, 1], [], []>} : vector<256x4xbf16>, vector<4x128xbf16>, vector<256x128xf32> -> vector<256x128xf32>
    %27 = arith.addf %18, %26 : vector<256x128xf32>
    %c1_i32 = arith.constant 1 : i32
    %28 = arith.addi %1, %c1_i32 : i32
    %c0_19 = arith.constant 0 : index
    %29 = arith.index_cast %28 : i32 to index
    %c0_20 = arith.constant 0 : index
    %c0_21 = arith.constant 0 : index
    %30 = vector.load %arg2[%c0_19, %29, %c0_20, %c0_21] : memref<1x18x18x4xbf16, #tpu.memory_space<vmem>>, vector<1x16x16x4xbf16>
    %31 = vector.shape_cast %30 : vector<1x16x16x4xbf16> to vector<16x16x4xbf16>
    %32 = vector.shape_cast %31 : vector<16x16x4xbf16> to vector<256x4xbf16>
    %c3 = arith.constant 3 : index
    %c0_22 = arith.constant 0 : index
    %c0_23 = arith.constant 0 : index
    %33 = vector.load %arg3[%c3, %c0_22, %c0_23] : memref<9x4x128xbf16, #tpu.memory_space<vmem>>, vector<1x4x128xbf16>
    %34 = vector.shape_cast %33 : vector<1x4x128xbf16> to vector<4x128xbf16>
    %cst_24 = arith.constant dense<0.000000e+00> : vector<256x128xf32>
    %35 = tpu.matmul %32, %34, %cst_24 {dimension_numbers = #tpu.dot_dimension_numbers<[1], [0], [0], [1], [0, 0, 1, 1], [], []>} : vector<256x4xbf16>, vector<4x128xbf16>, vector<256x128xf32> -> vector<256x128xf32>
    %36 = arith.addf %27, %35 : vector<256x128xf32>
    %c1_i32_25 = arith.constant 1 : i32
    %37 = arith.addi %1, %c1_i32_25 : i32
    %c0_26 = arith.constant 0 : index
    %38 = arith.index_cast %37 : i32 to index
    %c1_27 = arith.constant 1 : index
    %c0_28 = arith.constant 0 : index
    %39 = vector.load %arg2[%c0_26, %38, %c1_27, %c0_28] : memref<1x18x18x4xbf16, #tpu.memory_space<vmem>>, vector<1x16x16x4xbf16>
    %40 = vector.shape_cast %39 : vector<1x16x16x4xbf16> to vector<16x16x4xbf16>
    %41 = vector.shape_cast %40 : vector<16x16x4xbf16> to vector<256x4xbf16>
    %c4 = arith.constant 4 : index
    %c0_29 = arith.constant 0 : index
    %c0_30 = arith.constant 0 : index
    %42 = vector.load %arg3[%c4, %c0_29, %c0_30] : memref<9x4x128xbf16, #tpu.memory_space<vmem>>, vector<1x4x128xbf16>
    %43 = vector.shape_cast %42 : vector<1x4x128xbf16> to vector<4x128xbf16>
    %cst_31 = arith.constant dense<0.000000e+00> : vector<256x128xf32>
    %44 = tpu.matmul %41, %43, %cst_31 {dimension_numbers = #tpu.dot_dimension_numbers<[1], [0], [0], [1], [0, 0, 1, 1], [], []>} : vector<256x4xbf16>, vector<4x128xbf16>, vector<256x128xf32> -> vector<256x128xf32>
    %45 = arith.addf %36, %44 : vector<256x128xf32>
    %c1_i32_32 = arith.constant 1 : i32
    %46 = arith.addi %1, %c1_i32_32 : i32
    %c0_33 = arith.constant 0 : index
    %47 = arith.index_cast %46 : i32 to index
    %c2_34 = arith.constant 2 : index
    %c0_35 = arith.constant 0 : index
    %48 = vector.load %arg2[%c0_33, %47, %c2_34, %c0_35] : memref<1x18x18x4xbf16, #tpu.memory_space<vmem>>, vector<1x16x16x4xbf16>
    %49 = vector.shape_cast %48 : vector<1x16x16x4xbf16> to vector<16x16x4xbf16>
    %50 = vector.shape_cast %49 : vector<16x16x4xbf16> to vector<256x4xbf16>
    %c5 = arith.constant 5 : index
    %c0_36 = arith.constant 0 : index
    %c0_37 = arith.constant 0 : index
    %51 = vector.load %arg3[%c5, %c0_36, %c0_37] : memref<9x4x128xbf16, #tpu.memory_space<vmem>>, vector<1x4x128xbf16>
    %52 = vector.shape_cast %51 : vector<1x4x128xbf16> to vector<4x128xbf16>
    %cst_38 = arith.constant dense<0.000000e+00> : vector<256x128xf32>
    %53 = tpu.matmul %50, %52, %cst_38 {dimension_numbers = #tpu.dot_dimension_numbers<[1], [0], [0], [1], [0, 0, 1, 1], [], []>} : vector<256x4xbf16>, vector<4x128xbf16>, vector<256x128xf32> -> vector<256x128xf32>
    %54 = arith.addf %45, %53 : vector<256x128xf32>
    %c2_i32 = arith.constant 2 : i32
    %55 = arith.addi %1, %c2_i32 : i32
    %c0_39 = arith.constant 0 : index
    %56 = arith.index_cast %55 : i32 to index
    %c0_40 = arith.constant 0 : index
    %c0_41 = arith.constant 0 : index
    %57 = vector.load %arg2[%c0_39, %56, %c0_40, %c0_41] : memref<1x18x18x4xbf16, #tpu.memory_space<vmem>>, vector<1x16x16x4xbf16>
    %58 = vector.shape_cast %57 : vector<1x16x16x4xbf16> to vector<16x16x4xbf16>
    %59 = vector.shape_cast %58 : vector<16x16x4xbf16> to vector<256x4xbf16>
    %c6 = arith.constant 6 : index
    %c0_42 = arith.constant 0 : index
    %c0_43 = arith.constant 0 : index
    %60 = vector.load %arg3[%c6, %c0_42, %c0_43] : memref<9x4x128xbf16, #tpu.memory_space<vmem>>, vector<1x4x128xbf16>
    %61 = vector.shape_cast %60 : vector<1x4x128xbf16> to vector<4x128xbf16>
    %cst_44 = arith.constant dense<0.000000e+00> : vector<256x128xf32>
    %62 = tpu.matmul %59, %61, %cst_44 {dimension_numbers = #tpu.dot_dimension_numbers<[1], [0], [0], [1], [0, 0, 1, 1], [], []>} : vector<256x4xbf16>, vector<4x128xbf16>, vector<256x128xf32> -> vector<256x128xf32>
    %63 = arith.addf %54, %62 : vector<256x128xf32>
    %c2_i32_45 = arith.constant 2 : i32
    %64 = arith.addi %1, %c2_i32_45 : i32
    %c0_46 = arith.constant 0 : index
    %65 = arith.index_cast %64 : i32 to index
    %c1_47 = arith.constant 1 : index
    %c0_48 = arith.constant 0 : index
    %66 = vector.load %arg2[%c0_46, %65, %c1_47, %c0_48] : memref<1x18x18x4xbf16, #tpu.memory_space<vmem>>, vector<1x16x16x4xbf16>
    %67 = vector.shape_cast %66 : vector<1x16x16x4xbf16> to vector<16x16x4xbf16>
    %68 = vector.shape_cast %67 : vector<16x16x4xbf16> to vector<256x4xbf16>
    %c7 = arith.constant 7 : index
    %c0_49 = arith.constant 0 : index
    %c0_50 = arith.constant 0 : index
    %69 = vector.load %arg3[%c7, %c0_49, %c0_50] : memref<9x4x128xbf16, #tpu.memory_space<vmem>>, vector<1x4x128xbf16>
    %70 = vector.shape_cast %69 : vector<1x4x128xbf16> to vector<4x128xbf16>
    %cst_51 = arith.constant dense<0.000000e+00> : vector<256x128xf32>
    %71 = tpu.matmul %68, %70, %cst_51 {dimension_numbers = #tpu.dot_dimension_numbers<[1], [0], [0], [1], [0, 0, 1, 1], [], []>} : vector<256x4xbf16>, vector<4x128xbf16>, vector<256x128xf32> -> vector<256x128xf32>
    %72 = arith.addf %63, %71 : vector<256x128xf32>
    %c2_i32_52 = arith.constant 2 : i32
    %73 = arith.addi %1, %c2_i32_52 : i32
    %c0_53 = arith.constant 0 : index
    %74 = arith.index_cast %73 : i32 to index
    %c2_54 = arith.constant 2 : index
    %c0_55 = arith.constant 0 : index
    %75 = vector.load %arg2[%c0_53, %74, %c2_54, %c0_55] : memref<1x18x18x4xbf16, #tpu.memory_space<vmem>>, vector<1x16x16x4xbf16>
    %76 = vector.shape_cast %75 : vector<1x16x16x4xbf16> to vector<16x16x4xbf16>
    %77 = vector.shape_cast %76 : vector<16x16x4xbf16> to vector<256x4xbf16>
    %c8 = arith.constant 8 : index
    %c0_56 = arith.constant 0 : index
    %c0_57 = arith.constant 0 : index
    %78 = vector.load %arg3[%c8, %c0_56, %c0_57] : memref<9x4x128xbf16, #tpu.memory_space<vmem>>, vector<1x4x128xbf16>
    %79 = vector.shape_cast %78 : vector<1x4x128xbf16> to vector<4x128xbf16>
    %cst_58 = arith.constant dense<0.000000e+00> : vector<256x128xf32>
    %80 = tpu.matmul %77, %79, %cst_58 {dimension_numbers = #tpu.dot_dimension_numbers<[1], [0], [0], [1], [0, 0, 1, 1], [], []>} : vector<256x4xbf16>, vector<4x128xbf16>, vector<256x128xf32> -> vector<256x128xf32>
    %81 = arith.addf %72, %80 : vector<256x128xf32>
    %cst_59 = arith.constant dense<0.000000e+00> : vector<128xf32>
    %82 = vector.multi_reduction <add>, %81, %cst_59 [0] : vector<256x128xf32> to vector<128xf32>
    %83 = vector.shape_cast %82 : vector<128xf32> to vector<1x128xf32>
    %c0_60 = arith.constant 0 : index
    %c0_61 = arith.constant 0 : index
    %c0_62 = arith.constant 0 : index
    %c0_63 = arith.constant 0 : index
    %84 = vector.load %arg4[%c0_60, %c0_61, %c0_62, %c0_63] : memref<1x1x1x128xf32, #tpu.memory_space<vmem>>, vector<1x1x1x128xf32>
    %85 = vector.shape_cast %84 : vector<1x1x1x128xf32> to vector<1x128xf32>
    %86 = vector.shape_cast %83 : vector<1x128xf32> to vector<1x1x1x128xf32>
    tpu.vector_store %arg4[%c0_60, %c0_61, %c0_62, %c0_63], %86 {strides = array<i32>} : memref<1x1x1x128xf32, #tpu.memory_space<vmem>>, vector<1x1x1x128xf32>,
    %87 = arith.mulf %81, %81 : vector<256x128xf32>
    %cst_64 = arith.constant dense<0.000000e+00> : vector<128xf32>
    %88 = vector.multi_reduction <add>, %87, %cst_64 [0] : vector<256x128xf32> to vector<128xf32>
    %89 = vector.shape_cast %88 : vector<128xf32> to vector<1x128xf32>
    %c0_65 = arith.constant 0 : index
    %c0_66 = arith.constant 0 : index
    %c0_67 = arith.constant 0 : index
    %c0_68 = arith.constant 0 : index
    %90 = vector.load %arg5[%c0_65, %c0_66, %c0_67, %c0_68] : memref<1x1x1x128xf32, #tpu.memory_space<vmem>>, vector<1x1x1x128xf32>
    %91 = vector.shape_cast %90 : vector<1x1x1x128xf32> to vector<1x128xf32>
    %92 = vector.shape_cast %89 : vector<1x128xf32> to vector<1x1x1x128xf32>
    tpu.vector_store %arg5[%c0_65, %c0_66, %c0_67, %c0_68], %92 {strides = array<i32>} : memref<1x1x1x128xf32, #tpu.memory_space<vmem>>, vector<1x1x1x128xf32>,
    return
  }
  func.func @transform_0(%arg0: i32, %arg1: i32) -> (i32, i32, i32, i32) {
    %c0_i32 = arith.constant 0 : i32
    %c0_i32_0 = arith.constant 0 : i32
    %c0_i32_1 = arith.constant 0 : i32
    %c0_i32_2 = arith.constant 0 : i32
    return %arg0, %c0_i32, %c0_i32_0, %c0_i32_1 : i32, i32, i32, i32
  }
  func.func @transform_1(%arg0: i32, %arg1: i32) -> (i32, i32, i32) {
    %c0_i32 = arith.constant 0 : i32
    %c0_i32_0 = arith.constant 0 : i32
    %c0_i32_1 = arith.constant 0 : i32
    %c0_i32_2 = arith.constant 0 : i32
    return %c0_i32, %c0_i32_0, %c0_i32_1 : i32, i32, i32
  }
  func.func @transform_2(%arg0: i32, %arg1: i32) -> (i32, i32, i32, i32) {
    %c0_i32 = arith.constant 0 : i32
    %c0_i32_0 = arith.constant 0 : i32
    %c0_i32_1 = arith.constant 0 : i32
    return %arg0, %arg1, %c0_i32, %c0_i32_0 : i32, i32, i32, i32
  }
  func.func @transform_3(%arg0: i32, %arg1: i32) -> (i32, i32, i32, i32) {
    %c0_i32 = arith.constant 0 : i32
    %c0_i32_0 = arith.constant 0 : i32
    %c0_i32_1 = arith.constant 0 : i32
    return %arg0, %arg1, %c0_i32, %c0_i32_0 : i32, i32, i32, i32
  }
}

module attributes {stable_mosaic.version = 11 : i64} {
  func.func @_conv_bn_act_kernel(%arg0: i32, %arg1: i32, %arg2: memref<1x18x18x4xbf16, #tpu.memory_space<vmem>>, %arg3: memref<9x4x128xbf16, #tpu.memory_space<vmem>>, %arg4: memref<1x128xf32, #tpu.memory_space<vmem>>, %arg5: memref<1x128xf32, #tpu.memory_space<vmem>>, %arg6: memref<1x256x128xf32, #tpu.memory_space<vmem>>) attributes {dimension_semantics = [#tpu.dimension_semantics<parallel>, #tpu.dimension_semantics<parallel>], iteration_bounds = array<i64: 2, 1>, scalar_prefetch = 0 : i64, scratch_operands = 0 : i64, tpu.core_type = #tpu.core_type<tc>, window_params = [{transform_indices = @transform_0, window_bounds = array<i64: 1, 18, 18, 4>}, {pipeline_mode = #tpu.pipeline_mode<synchronous>, transform_indices = @transform_1, window_bounds = array<i64: 9, 4, 128>}, {pipeline_mode = #tpu.pipeline_mode<synchronous>, transform_indices = @transform_2, window_bounds = array<i64: 1, 128>}, {pipeline_mode = #tpu.pipeline_mode<synchronous>, transform_indices = @transform_3, window_bounds = array<i64: 1, 128>}, {transform_indices = @transform_4, window_bounds = array<i64: 1, 256, 128>}]} {
    %c16_i32 = arith.constant 16 : i32
    %0 = arith.muli %arg1, %c16_i32 : i32
    %1 = tpu.assume_multiple %0, 16 : i32
    %c0_i32 = arith.constant 0 : i32
    %2 = arith.addi %1, %c0_i32 : i32
    %c0 = arith.constant 0 : index
    %3 = arith.index_cast %2 : i32 to index
    %c0_0 = arith.constant 0 : index
    %c0_1 = arith.constant 0 : index
    %4 = vector.load %arg2[%c0, %3, %c0_0, %c0_1] : memref<1x18x18x4xbf16, #tpu.memory_space<vmem>>, vector<1x16x16x4xbf16>
    %5 = vector.shape_cast %4 : vector<1x16x16x4xbf16> to vector<16x16x4xbf16>
    %6 = vector.shape_cast %5 : vector<16x16x4xbf16> to vector<256x4xbf16>
    %c0_2 = arith.constant 0 : index
    %c0_3 = arith.constant 0 : index
    %c0_4 = arith.constant 0 : index
    %7 = vector.load %arg3[%c0_2, %c0_3, %c0_4] : memref<9x4x128xbf16, #tpu.memory_space<vmem>>, vector<1x4x128xbf16>
    %8 = vector.shape_cast %7 : vector<1x4x128xbf16> to vector<4x128xbf16>
    %cst = arith.constant dense<0.000000e+00> : vector<256x128xf32>
    %9 = tpu.matmul %6, %8, %cst {dimension_numbers = #tpu.dot_dimension_numbers<[1], [0], [0], [1], [0, 0, 1, 1], [], []>} : vector<256x4xbf16>, vector<4x128xbf16>, vector<256x128xf32> -> vector<256x128xf32>
    %c0_i32_5 = arith.constant 0 : i32
    %10 = arith.addi %1, %c0_i32_5 : i32
    %c0_6 = arith.constant 0 : index
    %11 = arith.index_cast %10 : i32 to index
    %c1 = arith.constant 1 : index
    %c0_7 = arith.constant 0 : index
    %12 = vector.load %arg2[%c0_6, %11, %c1, %c0_7] : memref<1x18x18x4xbf16, #tpu.memory_space<vmem>>, vector<1x16x16x4xbf16>
    %13 = vector.shape_cast %12 : vector<1x16x16x4xbf16> to vector<16x16x4xbf16>
    %14 = vector.shape_cast %13 : vector<16x16x4xbf16> to vector<256x4xbf16>
    %c1_8 = arith.constant 1 : index
    %c0_9 = arith.constant 0 : index
    %c0_10 = arith.constant 0 : index
    %15 = vector.load %arg3[%c1_8, %c0_9, %c0_10] : memref<9x4x128xbf16, #tpu.memory_space<vmem>>, vector<1x4x128xbf16>
    %16 = vector.shape_cast %15 : vector<1x4x128xbf16> to vector<4x128xbf16>
    %cst_11 = arith.constant dense<0.000000e+00> : vector<256x128xf32>
    %17 = tpu.matmul %14, %16, %cst_11 {dimension_numbers = #tpu.dot_dimension_numbers<[1], [0], [0], [1], [0, 0, 1, 1], [], []>} : vector<256x4xbf16>, vector<4x128xbf16>, vector<256x128xf32> -> vector<256x128xf32>
    %18 = arith.addf %9, %17 : vector<256x128xf32>
    %c0_i32_12 = arith.constant 0 : i32
    %19 = arith.addi %1, %c0_i32_12 : i32
    %c0_13 = arith.constant 0 : index
    %20 = arith.index_cast %19 : i32 to index
    %c2 = arith.constant 2 : index
    %c0_14 = arith.constant 0 : index
    %21 = vector.load %arg2[%c0_13, %20, %c2, %c0_14] : memref<1x18x18x4xbf16, #tpu.memory_space<vmem>>, vector<1x16x16x4xbf16>
    %22 = vector.shape_cast %21 : vector<1x16x16x4xbf16> to vector<16x16x4xbf16>
    %23 = vector.shape_cast %22 : vector<16x16x4xbf16> to vector<256x4xbf16>
    %c2_15 = arith.constant 2 : index
    %c0_16 = arith.constant 0 : index
    %c0_17 = arith.constant 0 : index
    %24 = vector.load %arg3[%c2_15, %c0_16, %c0_17] : memref<9x4x128xbf16, #tpu.memory_space<vmem>>, vector<1x4x128xbf16>
    %25 = vector.shape_cast %24 : vector<1x4x128xbf16> to vector<4x128xbf16>
    %cst_18 = arith.constant dense<0.000000e+00> : vector<256x128xf32>
    %26 = tpu.matmul %23, %25, %cst_18 {dimension_numbers = #tpu.dot_dimension_numbers<[1], [0], [0], [1], [0, 0, 1, 1], [], []>} : vector<256x4xbf16>, vector<4x128xbf16>, vector<256x128xf32> -> vector<256x128xf32>
    %27 = arith.addf %18, %26 : vector<256x128xf32>
    %c1_i32 = arith.constant 1 : i32
    %28 = arith.addi %1, %c1_i32 : i32
    %c0_19 = arith.constant 0 : index
    %29 = arith.index_cast %28 : i32 to index
    %c0_20 = arith.constant 0 : index
    %c0_21 = arith.constant 0 : index
    %30 = vector.load %arg2[%c0_19, %29, %c0_20, %c0_21] : memref<1x18x18x4xbf16, #tpu.memory_space<vmem>>, vector<1x16x16x4xbf16>
    %31 = vector.shape_cast %30 : vector<1x16x16x4xbf16> to vector<16x16x4xbf16>
    %32 = vector.shape_cast %31 : vector<16x16x4xbf16> to vector<256x4xbf16>
    %c3 = arith.constant 3 : index
    %c0_22 = arith.constant 0 : index
    %c0_23 = arith.constant 0 : index
    %33 = vector.load %arg3[%c3, %c0_22, %c0_23] : memref<9x4x128xbf16, #tpu.memory_space<vmem>>, vector<1x4x128xbf16>
    %34 = vector.shape_cast %33 : vector<1x4x128xbf16> to vector<4x128xbf16>
    %cst_24 = arith.constant dense<0.000000e+00> : vector<256x128xf32>
    %35 = tpu.matmul %32, %34, %cst_24 {dimension_numbers = #tpu.dot_dimension_numbers<[1], [0], [0], [1], [0, 0, 1, 1], [], []>} : vector<256x4xbf16>, vector<4x128xbf16>, vector<256x128xf32> -> vector<256x128xf32>
    %36 = arith.addf %27, %35 : vector<256x128xf32>
    %c1_i32_25 = arith.constant 1 : i32
    %37 = arith.addi %1, %c1_i32_25 : i32
    %c0_26 = arith.constant 0 : index
    %38 = arith.index_cast %37 : i32 to index
    %c1_27 = arith.constant 1 : index
    %c0_28 = arith.constant 0 : index
    %39 = vector.load %arg2[%c0_26, %38, %c1_27, %c0_28] : memref<1x18x18x4xbf16, #tpu.memory_space<vmem>>, vector<1x16x16x4xbf16>
    %40 = vector.shape_cast %39 : vector<1x16x16x4xbf16> to vector<16x16x4xbf16>
    %41 = vector.shape_cast %40 : vector<16x16x4xbf16> to vector<256x4xbf16>
    %c4 = arith.constant 4 : index
    %c0_29 = arith.constant 0 : index
    %c0_30 = arith.constant 0 : index
    %42 = vector.load %arg3[%c4, %c0_29, %c0_30] : memref<9x4x128xbf16, #tpu.memory_space<vmem>>, vector<1x4x128xbf16>
    %43 = vector.shape_cast %42 : vector<1x4x128xbf16> to vector<4x128xbf16>
    %cst_31 = arith.constant dense<0.000000e+00> : vector<256x128xf32>
    %44 = tpu.matmul %41, %43, %cst_31 {dimension_numbers = #tpu.dot_dimension_numbers<[1], [0], [0], [1], [0, 0, 1, 1], [], []>} : vector<256x4xbf16>, vector<4x128xbf16>, vector<256x128xf32> -> vector<256x128xf32>
    %45 = arith.addf %36, %44 : vector<256x128xf32>
    %c1_i32_32 = arith.constant 1 : i32
    %46 = arith.addi %1, %c1_i32_32 : i32
    %c0_33 = arith.constant 0 : index
    %47 = arith.index_cast %46 : i32 to index
    %c2_34 = arith.constant 2 : index
    %c0_35 = arith.constant 0 : index
    %48 = vector.load %arg2[%c0_33, %47, %c2_34, %c0_35] : memref<1x18x18x4xbf16, #tpu.memory_space<vmem>>, vector<1x16x16x4xbf16>
    %49 = vector.shape_cast %48 : vector<1x16x16x4xbf16> to vector<16x16x4xbf16>
    %50 = vector.shape_cast %49 : vector<16x16x4xbf16> to vector<256x4xbf16>
    %c5 = arith.constant 5 : index
    %c0_36 = arith.constant 0 : index
    %c0_37 = arith.constant 0 : index
    %51 = vector.load %arg3[%c5, %c0_36, %c0_37] : memref<9x4x128xbf16, #tpu.memory_space<vmem>>, vector<1x4x128xbf16>
    %52 = vector.shape_cast %51 : vector<1x4x128xbf16> to vector<4x128xbf16>
    %cst_38 = arith.constant dense<0.000000e+00> : vector<256x128xf32>
    %53 = tpu.matmul %50, %52, %cst_38 {dimension_numbers = #tpu.dot_dimension_numbers<[1], [0], [0], [1], [0, 0, 1, 1], [], []>} : vector<256x4xbf16>, vector<4x128xbf16>, vector<256x128xf32> -> vector<256x128xf32>
    %54 = arith.addf %45, %53 : vector<256x128xf32>
    %c2_i32 = arith.constant 2 : i32
    %55 = arith.addi %1, %c2_i32 : i32
    %c0_39 = arith.constant 0 : index
    %56 = arith.index_cast %55 : i32 to index
    %c0_40 = arith.constant 0 : index
    %c0_41 = arith.constant 0 : index
    %57 = vector.load %arg2[%c0_39, %56, %c0_40, %c0_41] : memref<1x18x18x4xbf16, #tpu.memory_space<vmem>>, vector<1x16x16x4xbf16>
    %58 = vector.shape_cast %57 : vector<1x16x16x4xbf16> to vector<16x16x4xbf16>
    %59 = vector.shape_cast %58 : vector<16x16x4xbf16> to vector<256x4xbf16>
    %c6 = arith.constant 6 : index
    %c0_42 = arith.constant 0 : index
    %c0_43 = arith.constant 0 : index
    %60 = vector.load %arg3[%c6, %c0_42, %c0_43] : memref<9x4x128xbf16, #tpu.memory_space<vmem>>, vector<1x4x128xbf16>
    %61 = vector.shape_cast %60 : vector<1x4x128xbf16> to vector<4x128xbf16>
    %cst_44 = arith.constant dense<0.000000e+00> : vector<256x128xf32>
    %62 = tpu.matmul %59, %61, %cst_44 {dimension_numbers = #tpu.dot_dimension_numbers<[1], [0], [0], [1], [0, 0, 1, 1], [], []>} : vector<256x4xbf16>, vector<4x128xbf16>, vector<256x128xf32> -> vector<256x128xf32>
    %63 = arith.addf %54, %62 : vector<256x128xf32>
    %c2_i32_45 = arith.constant 2 : i32
    %64 = arith.addi %1, %c2_i32_45 : i32
    %c0_46 = arith.constant 0 : index
    %65 = arith.index_cast %64 : i32 to index
    %c1_47 = arith.constant 1 : index
    %c0_48 = arith.constant 0 : index
    %66 = vector.load %arg2[%c0_46, %65, %c1_47, %c0_48] : memref<1x18x18x4xbf16, #tpu.memory_space<vmem>>, vector<1x16x16x4xbf16>
    %67 = vector.shape_cast %66 : vector<1x16x16x4xbf16> to vector<16x16x4xbf16>
    %68 = vector.shape_cast %67 : vector<16x16x4xbf16> to vector<256x4xbf16>
    %c7 = arith.constant 7 : index
    %c0_49 = arith.constant 0 : index
    %c0_50 = arith.constant 0 : index
    %69 = vector.load %arg3[%c7, %c0_49, %c0_50] : memref<9x4x128xbf16, #tpu.memory_space<vmem>>, vector<1x4x128xbf16>
    %70 = vector.shape_cast %69 : vector<1x4x128xbf16> to vector<4x128xbf16>
    %cst_51 = arith.constant dense<0.000000e+00> : vector<256x128xf32>
    %71 = tpu.matmul %68, %70, %cst_51 {dimension_numbers = #tpu.dot_dimension_numbers<[1], [0], [0], [1], [0, 0, 1, 1], [], []>} : vector<256x4xbf16>, vector<4x128xbf16>, vector<256x128xf32> -> vector<256x128xf32>
    %72 = arith.addf %63, %71 : vector<256x128xf32>
    %c2_i32_52 = arith.constant 2 : i32
    %73 = arith.addi %1, %c2_i32_52 : i32
    %c0_53 = arith.constant 0 : index
    %74 = arith.index_cast %73 : i32 to index
    %c2_54 = arith.constant 2 : index
    %c0_55 = arith.constant 0 : index
    %75 = vector.load %arg2[%c0_53, %74, %c2_54, %c0_55] : memref<1x18x18x4xbf16, #tpu.memory_space<vmem>>, vector<1x16x16x4xbf16>
    %76 = vector.shape_cast %75 : vector<1x16x16x4xbf16> to vector<16x16x4xbf16>
    %77 = vector.shape_cast %76 : vector<16x16x4xbf16> to vector<256x4xbf16>
    %c8 = arith.constant 8 : index
    %c0_56 = arith.constant 0 : index
    %c0_57 = arith.constant 0 : index
    %78 = vector.load %arg3[%c8, %c0_56, %c0_57] : memref<9x4x128xbf16, #tpu.memory_space<vmem>>, vector<1x4x128xbf16>
    %79 = vector.shape_cast %78 : vector<1x4x128xbf16> to vector<4x128xbf16>
    %cst_58 = arith.constant dense<0.000000e+00> : vector<256x128xf32>
    %80 = tpu.matmul %77, %79, %cst_58 {dimension_numbers = #tpu.dot_dimension_numbers<[1], [0], [0], [1], [0, 0, 1, 1], [], []>} : vector<256x4xbf16>, vector<4x128xbf16>, vector<256x128xf32> -> vector<256x128xf32>
    %81 = arith.addf %72, %80 : vector<256x128xf32>
    %c0_59 = arith.constant 0 : index
    %c0_60 = arith.constant 0 : index
    %82 = vector.load %arg4[%c0_59, %c0_60] : memref<1x128xf32, #tpu.memory_space<vmem>>, vector<1x128xf32>
    %83 = vector.broadcast %82 : vector<1x128xf32> to vector<256x128xf32>
    %84 = arith.mulf %81, %83 : vector<256x128xf32>
    %c0_61 = arith.constant 0 : index
    %c0_62 = arith.constant 0 : index
    %85 = vector.load %arg5[%c0_61, %c0_62] : memref<1x128xf32, #tpu.memory_space<vmem>>, vector<1x128xf32>
    %86 = vector.broadcast %85 : vector<1x128xf32> to vector<256x128xf32>
    %87 = arith.addf %84, %86 : vector<256x128xf32>
    %cst_63 = arith.constant 0.000000e+00 : f32
    %88 = vector.broadcast %cst_63 : f32 to vector<256x128xf32>
    %89 = arith.cmpf ogt, %87, %88 : vector<256x128xf32>
    %cst_64 = arith.constant 1.000000e-01 : f32
    %90 = vector.broadcast %cst_64 : f32 to vector<256x128xf32>
    %91 = arith.mulf %90, %87 : vector<256x128xf32>
    %92 = arith.select %89, %87, %91 : vector<256x128xi1>, vector<256x128xf32>
    %c0_65 = arith.constant 0 : index
    %c0_66 = arith.constant 0 : index
    %c0_67 = arith.constant 0 : index
    %93 = vector.load %arg6[%c0_65, %c0_66, %c0_67] : memref<1x256x128xf32, #tpu.memory_space<vmem>>, vector<1x256x128xf32>
    %94 = vector.shape_cast %93 : vector<1x256x128xf32> to vector<256x128xf32>
    %95 = vector.shape_cast %92 : vector<256x128xf32> to vector<1x256x128xf32>
    tpu.vector_store %arg6[%c0_65, %c0_66, %c0_67], %95 {strides = array<i32>} : memref<1x256x128xf32, #tpu.memory_space<vmem>>, vector<1x256x128xf32>,
    return
  }
  func.func @transform_0(%arg0: i32, %arg1: i32) -> (i32, i32, i32, i32) {
    %c0_i32 = arith.constant 0 : i32
    %c0_i32_0 = arith.constant 0 : i32
    %c0_i32_1 = arith.constant 0 : i32
    %c0_i32_2 = arith.constant 0 : i32
    return %arg0, %c0_i32, %c0_i32_0, %c0_i32_1 : i32, i32, i32, i32
  }
  func.func @transform_1(%arg0: i32, %arg1: i32) -> (i32, i32, i32) {
    %c0_i32 = arith.constant 0 : i32
    %c0_i32_0 = arith.constant 0 : i32
    %c0_i32_1 = arith.constant 0 : i32
    %c0_i32_2 = arith.constant 0 : i32
    return %c0_i32, %c0_i32_0, %c0_i32_1 : i32, i32, i32
  }
  func.func @transform_2(%arg0: i32, %arg1: i32) -> (i32, i32) {
    %c0_i32 = arith.constant 0 : i32
    %c0_i32_0 = arith.constant 0 : i32
    %c0_i32_1 = arith.constant 0 : i32
    return %c0_i32, %c0_i32_0 : i32, i32
  }
  func.func @transform_3(%arg0: i32, %arg1: i32) -> (i32, i32) {
    %c0_i32 = arith.constant 0 : i32
    %c0_i32_0 = arith.constant 0 : i32
    %c0_i32_1 = arith.constant 0 : i32
    return %c0_i32, %c0_i32_0 : i32, i32
  }
  func.func @transform_4(%arg0: i32, %arg1: i32) -> (i32, i32, i32) {
    %c0_i32 = arith.constant 0 : i32
    %c0_i32_0 = arith.constant 0 : i32
    return %arg0, %arg1, %c0_i32 : i32, i32, i32
  }
}

</mosaic_0001>

<bundles_post_ra>
// kernel: conv_block.2
= control target key start
LH: loop header
LB: loop body
LE: loop exit
PB: predicated region body
PF: predicated region fallthrough
CT: control target
= control target key end

     0   :  { %s6126_s12 = smov 0   ;;  %s6128_s13 = smov 0   ;;  %s8678_s0 = inlined_call_operand.vmem [shape: bf16[2,18,18,4], index: 0, kind: input, shape index: {}]   ;;  %s8679_s1 = inlined_call_operand.vmem [shape: bf16[9,4,128], index: 1, kind: input, shape index: {}]   ;;  %s8680_s2 = inlined_call_operand.vmem [shape: f32[2,1,1,128], index: 2, kind: output, shape index: {0}]   ;;  %s8681_s3 = inlined_call_operand.vmem [shape: f32[2,1,1,128], index: 3, kind: output, shape index: {1}]  }
   0x1   :  { %s6130_s14 = smov 0  }
   0x2 LB: > { %s26_s15 = sadd.s32 1, %s6100_s13  ;;  %p4996_p0 = scmp.ge.s32.totalorder %s6104_s14, 1  ;;  %s6104_s14 = sphi %s6130_s14, %s14_s14   ;;  %s6100_s13 = sphi %s6128_s13, %s8909_s13   ;;  %s6096_s12 = sphi %s6126_s12, %s8908_s12  }
   0x3   : > { %p28_p1 = scmp.ge.s32.totalorder %s26_s15, 2  ;;  %p156_p2 = scmp.lt.s32.totalorder %s6104_s14, 3 }
   0x5   : > { %s8911_s15 = smov (%p28_p1, %s26_s15), 0  ;;  %p157_p3 = pnand %p4996_p0, %p156_p2 }
   0x7   : > { %160 = sbr.rel (%p157_p3) target bundleno = 573 (0x23d), region = 28 }
   0xc   : > { %v4998_v0 = vld [vmem:[%s8679_s1 + $0x2] sm:$0x3]  ;;  %vm744_vm0 = vcmask 1041408   ;;  %p187_p4 = scmp.lt.s32.totalorder %s6096_s12, 1  ;;  %v241_v2 = vld [vmem:[%s8679_s1] sm:$0x3] }
   0xd   : > { %5998 = vmatprep.subr.msk.bf16.mxu1 %vm744_vm0, %v4998_v0  ;;  %5997 = vmatprep.subr.msk.bf16.mxu0 %vm744_vm0, %v4998_v0  ;;  %v746_v1 = vsel %vm744_vm0, %v4998_v0, 0  ;;  %v5079_v3 = vld [vmem:[%s8679_s1 + $0x4] sm:$0x3]  ;;  %vm258_vm1 = vsmask.f32 3328  ;;  %v6167_v4 = vsel %vm744_vm0, %v241_v2, 0 }
   0xe   : > { %5996 = vmatpush3.bf16.msra.mxu1 %v746_v1  ;;  %5690 = vmatpush3.bf16.msra.mxu0 %v746_v1  ;;  %s8913_s12 = smov (!%p187_p4, %s6096_s12), 1  ;;  %vm259_vm2 = vsmask.f32 7440  ;;  %vm695_vm3 = vcmask 31744   ;;  %v6193_v16 = vsel %vm744_vm0, %v5079_v3, 0  ;;  %vm1249_vm5 = vcmask 1042432  }
   0xf   : > { %5999 = vmatprep.subr.msk.bf16.mxu1 %vm744_vm0, %v241_v2  ;;  %6000 = vmatprep.subr.msk.bf16.mxu0 %vm744_vm0, %v5079_v3  ;;  %s6007_s22 = smul.u32 216, %s8913_s12  ;;  %vm6208_vm4 = vmor %vm258_vm1, %vm259_vm2  ;;  %vm1250_vm6 = vcmask 1046532   ;;  %s197_s17 = scalar_lea.vmem %s8680_s2, %s8913_s12 }
  0x10   : > { %vm6494_vm7 = vmor %vm1249_vm5, %vm1250_vm6  ;;  %s203_s20 = scalar_lea.vmem %s8681_s3, %s8913_s12 }
  0x11   : > { %s6164_s25 = scalar_lea.vmem %s8678_s0, %s6007_s22 }
  0x12   : > { %v6170_v5 = vld [vmem:[%s6164_s25] sm:$0xf]  ;;  %v6173_v6 = vld [vmem:[%s6164_s25 + $0x4] sm:$0xf]  ;;  %v6176_v7 = vld [vmem:[%s6164_s25 + $0x8] sm:$0x1] }
  0x13   : > { %v262_v8 = vshrl.u32 %v6170_v5, 16  ;;  %v265_v9 = vshll.u32 %v6170_v5, 16  ;;  %v271_v10 = vshll.u32 %v6173_v6, 16  ;;  %v275_v11 = vshrl.u32 %v6173_v6, 16  ;;  %v6183_v12 = vld [vmem:[%s6164_s25 + $0x60] sm:$0xf] }
  0x14   : > { %v281_v13 = vshll.u32 %v6176_v7, 16  ;;  %v6187_v14 = vld [vmem:[%s6164_s25 + $0x64] sm:$0xf]  ;;  %v6190_v15 = vld [vmem:[%s6164_s25 + $0x68] sm:$0x1]  ;;  %v454_v22 = vshrl.u32 %v6183_v12, 16 }
  0x15   : > { %v264_v17 = vrot.slane %v262_v8, 4  ;;  %v267_v18 = vrot.slane %v265_v9, 5  ;;  %v273_v19 = vrot.slane %v271_v10, 5  ;;  %v277_v20 = vrot.slane %v275_v11, 4  ;;  %v6201_v29 = vld [vmem:[%s6164_s25 + $0xc] sm:$0xf] }
  0x16   : > { %v283_v21 = vrot.slane %v281_v13, 5  ;;  %v457_v23 = vshll.u32 %v6183_v12, 16  ;;  %v463_v24 = vshll.u32 %v6187_v14, 16  ;;  %v467_v27 = vshrl.u32 %v6187_v14, 16  ;;  %v6204_v30 = vld [vmem:[%s6164_s25 + $0x10] sm:$0xf] }
  0x17   : > { %v268_v25 = vor.u32 %v267_v18, %v264_v17  ;;  %v278_v26 = vor.u32 %v277_v20, %v273_v19  ;;  %v473_v28 = vshll.u32 %v6190_v15, 16  ;;  %v456_v33 = vrot.slane %v454_v22, 4  ;;  %v6214_v41 = vld [vmem:[%s6164_s25 + $0x14] sm:$0x1]  ;;  %v6225_v53 = vld [vmem:[%s6164_s25 + $0x6c] sm:$0xf] }
  0x18   : > { %v459_v34 = vrot.slane %v457_v23, 5  ;;  %v465_v35 = vrot.slane %v463_v24, 5  ;;  %v469_v38 = vrot.slane %v467_v27, 4  ;;  %v286_v42 = vshrl.u32 %v6201_v29, 16  ;;  %v6229_v58 = vld [vmem:[%s6164_s25 + $0x70] sm:$0xf] }
  0x19   : > { %v269_v36 = vrot.slane %v268_v25, 4  ;;  %v279_v37 = vrot.slane %v278_v26, 4  ;;  %v475_v39 = vrot.slane %v473_v28, 5  ;;  %v289_v43 = vshll.u32 %v6201_v29, 16  ;;  %v6237_v63 = vld [vmem:[%s6164_s25 + $0x74] sm:$0x1] }
  0x1a   : > { %v460_v40 = vor.u32 %v459_v34, %v456_v33  ;;  %v295_v44 = vshll.u32 %v6204_v30, 16  ;;  %v470_v47 = vor.u32 %v469_v38, %v465_v35  ;;  %v299_v48 = vshrl.u32 %v6204_v30, 16  ;;  %v6243_v8 = vld [vmem:[%s6164_s25 + $0x18] sm:$0xf]  ;;  %v6256_v25 = vld [vmem:[%s6164_s25 + $0x20] sm:$0x1] }
  0x1b   : > { %v274_v45 = vsel %vm6208_vm4, %v269_v36, %v273_v19  ;;  %v284_v46 = vsel %vm6208_vm4, %v279_v37, %v283_v21  ;;  %v288_v51 = vrot.slane %v286_v42, 4  ;;  %v291_v52 = vrot.slane %v289_v43, 5  ;;  %v6250_v21 = vld [vmem:[%s6164_s25 + $0x1c] sm:$0xf] }
  0x1c   : > { %v4999_v49 = vcombine.low %v274_v45, %v284_v46  ;;  %v461_v50 = vrot.slane %v460_v40, 4  ;;  %v471_v54 = vrot.slane %v470_v47, 4  ;;  %v297_v55 = vrot.slane %v295_v44, 5  ;;  %v6269_v40 = vld [vmem:[%s8679_s1 + $0x8] sm:$0x3] }
  0x1d   : > { %v301_v56 = vrot.slane %v299_v48, 4  ;;  %v305_v57 = vshll.u32 %v6214_v41, 16  ;;  %v292_v60 = vor.u32 %v291_v52, %v288_v51  ;;  %v478_v3 = vshrl.u32 %v6225_v53, 16  ;;  %v6274_v46 = vld [vmem:[%s6164_s25 + $0x7c] sm:$0xf] }
  0x1e   : > { %5691 = vmatprep.mubr.msk.bf16.mxu0 %vm695_vm3, %v4999_v49  ;;  %v466_v59 = vsel %vm6208_vm4, %v461_v50, %v465_v35  ;;  %v476_v0 = vsel %vm6208_vm4, %v471_v54, %v475_v39  ;;  %v481_v11 = vshll.u32 %v6225_v53, 16  ;;  %v487_v13 = vshll.u32 %v6229_v58, 16  ;;  %v6263_v35 = vld [vmem:[%s6164_s25 + $0x78] sm:$0xf] }
  0x1f   : > { %v302_v1 = vor.u32 %v301_v56, %v297_v55  ;;  %v307_v2 = vrot.slane %v305_v57, 5  ;;  %v5007_v9 = vcombine.low %v466_v59, %v476_v0  ;;  %v293_v10 = vrot.slane %v292_v60, 4  ;;  %v6281_v56 = vld [vmem:[%s6164_s25 + $0x80] sm:$0x1] }
  0x20   : > { %v480_v18 = vrot.slane %v478_v3, 4  ;;  %v491_v19 = vshrl.u32 %v6229_v58, 16  ;;  %v497_v20 = vshll.u32 %v6237_v63, 16  ;;  %v483_v23 = vrot.slane %v481_v11, 5  ;;  %8717 = vst [vmem:[#allocation2_spill] sm:$0xff] %v6281_v56 }
  0x21   : > { %v303_v17 = vrot.slane %v302_v1, 4  ;;  %5707 = vmatprep.mubr.msk.bf16.mxu1 %vm695_vm3, %v5007_v9  ;;  %v298_v22 = vsel %vm6208_vm4, %v293_v10, %v297_v55  ;;  %v489_v24 = vrot.slane %v487_v13, 5  ;;  %v310_v26 = vshrl.u32 %v6243_v8, 16  ;;  %v6287_v1 = vld [vmem:[%s6164_s25 + $0x24] sm:$0xf] }
  0x22   : > { %v493_v28 = vrot.slane %v491_v19, 4  ;;  %v499_v33 = vrot.slane %v497_v20, 5  ;;  %v313_v34 = vshll.u32 %v6243_v8, 16  ;;  %v484_v37 = vor.u32 %v483_v23, %v480_v18  ;;  %v6295_v10 = vld [vmem:[%s6164_s25 + $0x28] sm:$0xf] }
  0x23   : > { %v308_v27 = vsel %vm6208_vm4, %v303_v17, %v307_v2  ;;  %v312_v38 = vrot.slane %v310_v26, 4  ;;  %v319_v39 = vshll.u32 %v6250_v21, 16  ;;  %v323_v44 = vshrl.u32 %v6250_v21, 16  ;;  %v6301_v19 = vld [vmem:[%s8679_s1 + $0x6] sm:$0x3] }
  0x24   : > { %v5000_v36 = vcombine.low %v298_v22, %v308_v27  ;;  %v494_v42 = vor.u32 %v493_v28, %v489_v24  ;;  %v315_v43 = vrot.slane %v313_v34, 5  ;;  %v329_v45 = vshll.u32 %v6256_v25, 16 }
  0x25   : > { %v485_v47 = vrot.slane %v484_v37, 4  ;;  %v321_v48 = vrot.slane %v319_v39, 5  ;;  %v502_v49 = vshrl.u32 %v6263_v35, 16  ;;  %v505_v50 = vshll.u32 %v6263_v35, 16 }
  0x26   : > { %5692 = vmatmul.mubr.msk.bf16.vlgmr.msra.gmra.mxu0 %vm695_vm3, %v5000_v36  ;;  %v495_v51 = vrot.slane %v494_v42, 4  ;;  %v316_v52 = vor.u32 %v315_v43, %v312_v38  ;;  %v325_v54 = vrot.slane %v323_v44, 4  ;;  %v331_v55 = vrot.slane %v329_v45, 5  ;;  %v6313_v36 = vld [vmem:[%s6164_s25 + $0x84] sm:$0xf] }
  0x27   : > { %5758 = vmatpush3.bf16.msra.mxu0 %v6193_v16  ;;  %v490_v57 = vsel %vm6208_vm4, %v485_v47, %v489_v24  ;;  %v504_v59 = vrot.slane %v502_v49, 4  ;;  %v507_v60 = vrot.slane %v505_v50, 5  ;;  %v511_v0 = vshll.u32 %v6274_v46, 16  ;;  %v6306_v24 = vld [vmem:[%s6164_s25 + $0x2c] sm:$0x1] }
  0x28   : > { %6002 = vmatprep.subr.msk.bf16.mxu0 %vm744_vm0, %v6269_v40  ;;  %v500_v16 = vsel %vm6208_vm4, %v495_v51, %v499_v33  ;;  %v317_v2 = vrot.slane %v316_v52, 4  ;;  %v326_v3 = vor.u32 %v325_v54, %v321_v48  ;;  %v515_v9 = vshrl.u32 %v6274_v46, 16  ;;  %v6320_v43 = vld [vmem:[%s6164_s25 + $0x88] sm:$0xf]  ;;  %v6328_v51 = vld [vmem:[%s6164_s25 + $0x8c] sm:$0x1] }
  0x29   : > { %v5008_v11 = vcombine.low %v490_v57, %v500_v16  ;;  %v508_v13 = vor.u32 %v507_v60, %v504_v59  ;;  %v513_v17 = vrot.slane %v511_v0, 5  ;;  %v521_v18 = vshll.u32 %v6281_v56, 16  ;;  %8718 = vst [vmem:[#allocation3_spill] sm:$0xff] %v6328_v51  ;;  %v6336_v60 = vld [vmem:[%s6164_s25 + $0x30] sm:$0xf] }
  0x2a   : > { %v322_v20 = vsel %vm6208_vm4, %v317_v2, %v321_v48  ;;  %v327_v22 = vrot.slane %v326_v3, 4  ;;  %v517_v23 = vrot.slane %v515_v9, 4  ;;  %v334_v26 = vshrl.u32 %v6287_v1, 16  ;;  %v6341_v9 = vld [vmem:[%s6164_s25 + $0x34] sm:$0xf] }
  0x2b   : > { %5708 = vmatmul.mubr.msk.bf16.vlgmr.msra.gmra.mxu1 %vm695_vm3, %v5008_v11  ;;  %v509_v27 = vrot.slane %v508_v13, 4  ;;  %v523_v28 = vrot.slane %v521_v18, 5  ;;  %v337_v33 = vshll.u32 %v6287_v1, 16  ;;  %v343_v34 = vshll.u32 %v6295_v10, 16 }
  0x2c   : > { %5724 = vmatpush3.bf16.msra.mxu1 %v6167_v4  ;;  %v332_v37 = vsel %vm6208_vm4, %v327_v22, %v331_v55  ;;  %v518_v38 = vor.u32 %v517_v23, %v513_v17  ;;  %v336_v39 = vrot.slane %v334_v26, 4  ;;  %v347_v42 = vshrl.u32 %v6295_v10, 16 }
  0x2d   : > { %v5001_v44 = vcombine.low %v322_v20, %v332_v37  ;;  %v514_v45 = vsel %vm6208_vm4, %v509_v27, %v513_v17  ;;  %v339_v47 = vrot.slane %v337_v33, 5  ;;  %v345_v48 = vrot.slane %v343_v34, 5  ;;  %6001 = vmatprep.subr.msk.bf16.mxu1 %vm744_vm0, %v6301_v19  ;;  %v6349_v33 = vld [vmem:[%s6164_s25 + $0x38] sm:$0x1] }
  0x2e   : > { %v519_v4 = vrot.slane %v518_v38, 4  ;;  %v349_v49 = vrot.slane %v347_v42, 4  ;;  %v353_v50 = vshll.u32 %v6306_v24, 16  ;;  %v526_v52 = vshrl.u32 %v6313_v36, 16  ;;  %v6354_v38 = vld [vmem:[%s6164_s25 + $0x90] sm:$0xf] }
  0x2f   : > { %5695 = vmatprep.mubr.msk.bf16.mxu0 %vm695_vm3, %v5001_v44  ;;  %v340_v54 = vor.u32 %v339_v47, %v336_v39  ;;  %v529_v55 = vshll.u32 %v6313_v36, 16  ;;  %v535_v57 = vshll.u32 %v6320_v43, 16  ;;  %v539_v59 = vshrl.u32 %v6320_v43, 16  ;;  %8719 = vst [vmem:[#allocation4_spill] sm:$0xff] %v6354_v38  ;;  %v6359_v47 = vld [vmem:[%s6164_s25 + $0x94] sm:$0xf] }
  0x30   : > { %v524_v0 = vsel %vm6208_vm4, %v519_v4, %v523_v28  ;;  %v350_v16 = vor.u32 %v349_v49, %v345_v48  ;;  %v355_v2 = vrot.slane %v353_v50, 5  ;;  %v528_v3 = vrot.slane %v526_v52, 4  ;;  %8720 = vst [vmem:[#allocation5_spill] sm:$0xff] %v6359_v47 }
  0x31   : > { %v5009_v11 = vcombine.low %v514_v45, %v524_v0  ;;  %v341_v13 = vrot.slane %v340_v54, 4  ;;  %v531_v17 = vrot.slane %v529_v55, 5  ;;  %v537_v18 = vrot.slane %v535_v57, 5 }
  0x32   : > { %v351_v20 = vrot.slane %v350_v16, 4  ;;  %v541_v22 = vrot.slane %v539_v59, 4  ;;  %v545_v23 = vshll.u32 %v6328_v51, 16  ;;  %v358_v26 = vshrl.u32 %v6336_v60, 16  ;;  %v6368_v16 = vld [vmem:[%s6164_s25 + $0x98] sm:$0x1] }
  0x33   : > { %5711 = vmatprep.mubr.msk.bf16.mxu1 %vm695_vm3, %v5009_v11  ;;  %v346_v27 = vsel %vm6208_vm4, %v341_v13, %v345_v48  ;;  %v532_v28 = vor.u32 %v531_v17, %v528_v3  ;;  %v361_v34 = vshll.u32 %v6336_v60, 16  ;;  %v367_v37 = vshll.u32 %v6341_v9, 16  ;;  %8721 = vst [vmem:[#allocation6_spill] sm:$0xff] %v6368_v16  ;;  %v6373_v11 = vld [vmem:[%s6164_s25 + $0x3c] sm:$0xf] }
  0x34   : > { %v356_v39 = vsel %vm6208_vm4, %v351_v20, %v355_v2  ;;  %v542_v42 = vor.u32 %v541_v22, %v537_v18  ;;  %v547_v44 = vrot.slane %v545_v23, 5  ;;  %v360_v45 = vrot.slane %v358_v26, 4  ;;  %v6378_v23 = vld [vmem:[%s6164_s25 + $0x40] sm:$0xf]  ;;  %v1202_v51 = vld [vmem:[%s6164_s25 + $0xc] sm:$0xe] }
  0x35   : > { %v5002_v48 = vcombine.low %v346_v27, %v356_v39  ;;  %v533_v4 = vrot.slane %v532_v28, 4  ;;  %v363_v49 = vrot.slane %v361_v34, 5  ;;  %v369_v50 = vrot.slane %v367_v37, 5 }
  0x36   : > { %v543_v52 = vrot.slane %v542_v42, 4  ;;  %v371_v54 = vshrl.u32 %v6341_v9, 16  ;;  %v377_v55 = vshll.u32 %v6349_v33, 16  ;;  %v550_v57 = vshrl.u32 %v6354_v38, 16 }
  0x37   : > { %5696 = vmatmul.mubr.msk.bf16.gmra.mxu0 %vm695_vm3, %v5002_v48  ;;  %v538_v59 = vsel %vm6208_vm4, %v533_v4, %v537_v18  ;;  %v364_v0 = vor.u32 %v363_v49, %v360_v45  ;;  %v553_v2 = vshll.u32 %v6354_v38, 16  ;;  %v559_v3 = vshll.u32 %v6359_v47, 16  ;;  %v6387_v48 = vld [vmem:[%s6164_s25 + $0x44] sm:$0x1] }
  0x38   : > { %v548_v13 = vsel %vm6208_vm4, %v543_v52, %v547_v44  ;;  %v373_v17 = vrot.slane %v371_v54, 4  ;;  %v379_v20 = vrot.slane %v377_v55, 5  ;;  %v552_v22 = vrot.slane %v550_v57, 4  ;;  %v6392_v52 = vld [vmem:[%s6164_s25 + $0x9c] sm:$0xf] }
  0x39   : > { %v5010_v18 = vcombine.low %v538_v59, %v548_v13  ;;  %v365_v26 = vrot.slane %v364_v0, 4  ;;  %v555_v27 = vrot.slane %v553_v2, 5  ;;  %v561_v28 = vrot.slane %v559_v3, 5  ;;  %8722 = vst [vmem:[#allocation7_spill] sm:$0xff] %v6392_v52  ;;  %v6396_v13 = vld [vmem:[%s6164_s25 + $0xa0] sm:$0xf] }
  0x3a   : > { %v374_v34 = vor.u32 %v373_v17, %v369_v50  ;;  %v563_v37 = vshrl.u32 %v6359_v47, 16  ;;  %v569_v39 = vshll.u32 %v6368_v16, 16  ;;  %v382_v42 = vshrl.u32 %v6373_v11, 16  ;;  %8723 = vst [vmem:[#allocation8_spill] sm:$0xff] %v6396_v13 }
  0x3b   : > { %5712 = vmatmul.mubr.msk.bf16.gmra.mxu1 %vm695_vm3, %v5010_v18  ;;  %v370_v44 = vsel %vm6208_vm4, %v365_v26, %v369_v50  ;;  %v556_v45 = vor.u32 %v555_v27, %v552_v22  ;;  %v385_v4 = vshll.u32 %v6373_v11, 16  ;;  %v391_v49 = vshll.u32 %v6378_v23, 16  ;;  %v6402_v26 = vld [vmem:[%s6164_s25 + $0xa4] sm:$0x1] }
  0x3c   : > { %v375_v54 = vrot.slane %v374_v34, 4  ;;  %v565_v55 = vrot.slane %v563_v37, 4  ;;  %v571_v57 = vrot.slane %v569_v39, 5  ;;  %v384_v59 = vrot.slane %v382_v42, 4  ;;  %8724 = vst [vmem:[#allocation9_spill] sm:$0xff] %v6402_v26 }
  0x3d   : > { %v557_v0 = vrot.slane %v556_v45, 4  ;;  %v387_v2 = vrot.slane %v385_v4, 5  ;;  %v393_v3 = vrot.slane %v391_v49, 5  ;;  %v395_v50 = vshrl.u32 %v6378_v23, 16  ;;  %v6406_v34 = vld [vmem:[%s6164_s25 + $0x48] sm:$0xf] }
  0x3e   : > { %v380_v17 = vsel %vm6208_vm4, %v375_v54, %v379_v20  ;;  %v566_v22 = vor.u32 %v565_v55, %v561_v28  ;;  %v401_v18 = vshll.u32 %v6387_v48, 16  ;;  %v574_v27 = vshrl.u32 %v6392_v52, 16 }
  0x3f   : > { %v5003_v37 = vcombine.low %v370_v44, %v380_v17  ;;  %v562_v39 = vsel %vm6208_vm4, %v557_v0, %v561_v28  ;;  %v388_v42 = vor.u32 %v387_v2, %v384_v59  ;;  %v397_v45 = vrot.slane %v395_v50, 4  ;;  %v6415_v17 = vld [vmem:[%s6164_s25 + $0x4c] sm:$0xf]  ;;  %v6421_v2 = vld [vmem:[%s6164_s25 + $0x50] sm:$0x1] }
  0x40   : > { %v567_v4 = vrot.slane %v566_v22, 4  ;;  %v403_v49 = vrot.slane %v401_v18, 5  ;;  %v576_v20 = vrot.slane %v574_v27, 4  ;;  %v577_v54 = vshll.u32 %v6392_v52, 16 }
  0x41   : > { %5699 = vmatprep.mubr.msk.bf16.mxu0 %vm695_vm3, %v5003_v37  ;;  %v389_v55 = vrot.slane %v388_v42, 4  ;;  %v398_v62 = vor.u32 %v397_v45, %v393_v3  ;;  %v583_v32 = vshll.u32 %v6396_v13, 16  ;;  %v587_v44 = vshrl.u32 %v6396_v13, 16  ;;  %v6427_v42 = vld [vmem:[%s6164_s25 + $0xa8] sm:$0xf] }
  0x42   : > { %v572_v28 = vsel %vm6208_vm4, %v567_v4, %v571_v57  ;;  %v579_v59 = vrot.slane %v577_v54, 5  ;;  %v593_v0 = vshll.u32 %v6402_v26, 16  ;;  %v406_v50 = vshrl.u32 %v6406_v34, 16  ;;  %8725 = vst [vmem:[#allocation10_spill] sm:$0xff] %v6427_v42 }
  0x43   : > { %v5011_v22 = vcombine.low %v562_v39, %v572_v28  ;;  %v394_v18 = vsel %vm6208_vm4, %v389_v55, %v393_v3  ;;  %v399_v27 = vrot.slane %v398_v62, 4  ;;  %v585_v37 = vrot.slane %v583_v32, 5 }
  0x44   : > { %v580_v45 = vor.u32 %v579_v59, %v576_v20  ;;  %v589_v61 = vrot.slane %v587_v44, 4  ;;  %v595_v57 = vrot.slane %v593_v0, 5  ;;  %v408_v4 = vrot.slane %v406_v50, 4  ;;  %v6437_v44 = vld [vmem:[%s6164_s25 + $0xac] sm:$0xf] }
  0x45   : > { %5715 = vmatprep.mubr.msk.bf16.mxu1 %vm695_vm3, %v5011_v22  ;;  %v404_v54 = vsel %vm6208_vm4, %v399_v27, %v403_v49  ;;  %v409_v39 = vshll.u32 %v6406_v34, 16  ;;  %v415_v28 = vshll.u32 %v6415_v17, 16  ;;  %v419_v62 = vshrl.u32 %v6415_v17, 16  ;;  %8726 = vst [vmem:[#allocation11_spill] sm:$0xff] %v6437_v44  ;;  %v6440_v22 = vld [vmem:[%s6164_s25 + $0xb0] sm:$0x1] }
  0x46   : > { %v5004_v3 = vcombine.low %v394_v18, %v404_v54  ;;  %v581_v32 = vrot.slane %v580_v45, 4  ;;  %v590_v55 = vor.u32 %v589_v61, %v585_v37  ;;  %v425_v20 = vshll.u32 %v6421_v2, 16  ;;  %8727 = vst [vmem:[#allocation12_spill] sm:$0xff] %v6440_v22 }
  0x47   : > { %v411_v59 = vrot.slane %v409_v39, 5  ;;  %v417_v0 = vrot.slane %v415_v28, 5  ;;  %v421_v50 = vrot.slane %v419_v62, 4  ;;  %v598_v49 = vshrl.u32 %v6427_v42, 16  ;;  %v6449_v62 = vld [vmem:[%s6164_s25 + $0x54] sm:$0xf] }
  0x48   : > { %5700 = vmatmul.mubr.msk.bf16.gmra.mxu0 %vm695_vm3, %v5004_v3  ;;  %v586_v18 = vsel %vm6208_vm4, %v581_v32, %v585_v37  ;;  %v591_v27 = vrot.slane %v590_v55, 4  ;;  %v427_v61 = vrot.slane %v425_v20, 5  ;;  %v601_v45 = vshll.u32 %v6427_v42, 16  ;;  %v6456_v55 = vld [vmem:[%s6164_s25 + $0x58] sm:$0xf] }
  0x49   : > { %v412_v54 = vor.u32 %v411_v59, %v408_v4  ;;  %v422_v56 = vor.u32 %v421_v50, %v417_v0  ;;  %v600_v39 = vrot.slane %v598_v49, 4  ;;  %v607_v28 = vshll.u32 %v6437_v44, 16  ;;  %v6459_v49 = vld [vmem:[%s6164_s25 + $0x5c] sm:$0x1] }
  0x4a   : > { %v596_v3 = vsel %vm6208_vm4, %v591_v27, %v595_v57  ;;  %v603_v26 = vrot.slane %v601_v45, 5  ;;  %v611_v37 = vshrl.u32 %v6437_v44, 16  ;;  %v617_v32 = vshll.u32 %v6440_v22, 16  ;;  %v1201_v22 = vld [vmem:[%s6164_s25] sm:$0xe] }
  0x4b   : > { %v5012_v4 = vcombine.low %v586_v18, %v596_v3  ;;  %v413_v20 = vrot.slane %v412_v54, 4  ;;  %v423_v59 = vrot.slane %v422_v56, 4  ;;  %v609_v50 = vrot.slane %v607_v28, 5  ;;  %v6470_v54 = vld [vmem:[%s6164_s25 + $0xb4] sm:$0xf] }
  0x4c   : > { %v604_v42 = vor.u32 %v603_v26, %v600_v39  ;;  %v613_v52 = vrot.slane %v611_v37, 4  ;;  %v619_v13 = vrot.slane %v617_v32, 5  ;;  %v430_v57 = vshrl.u32 %v6449_v62, 16  ;;  %8728 = vst [vmem:[#allocation13_spill] sm:$0xff] %v6470_v54  ;;  %v6473_v37 = vld [vmem:[%s6164_s25 + $0xb8] sm:$0xf] }
  0x4d   : > { %5716 = vmatmul.mubr.msk.bf16.gmra.mxu1 %vm695_vm3, %v5012_v4  ;;  %v418_v27 = vsel %vm6208_vm4, %v413_v20, %v417_v0  ;;  %v428_v18 = vsel %vm6208_vm4, %v423_v59, %v427_v61  ;;  %v433_v56 = vshll.u32 %v6449_v62, 16  ;;  %v439_v45 = vshll.u32 %v6456_v55, 16  ;;  %v6478_v61 = vld [vmem:[%s6164_s25 + $0xbc] sm:$0x1] }
  0x4e   : > { %v5005_v26 = vcombine.low %v418_v27, %v428_v18  ;;  %v605_v39 = vrot.slane %v604_v42, 4  ;;  %v614_v28 = vor.u32 %v613_v52, %v609_v50  ;;  %v432_v3 = vrot.slane %v430_v57, 4 }
  0x4f   : > { %v435_v32 = vrot.slane %v433_v56, 5  ;;  %v441_v4 = vrot.slane %v439_v45, 5  ;;  %v443_v0 = vshrl.u32 %v6456_v55, 16  ;;  %v449_v20 = vshll.u32 %v6459_v49, 16 }
  0x50   : > { %5703 = vmatprep.mubr.msk.bf16.mxu0 %vm695_vm3, %v5005_v26  ;;  %v610_v59 = vsel %vm6208_vm4, %v605_v39, %v609_v50  ;;  %v615_v27 = vrot.slane %v614_v28, 4  ;;  %v622_v52 = vshrl.u32 %v6470_v54, 16  ;;  %v625_v42 = vshll.u32 %v6470_v54, 16 }
  0x51   : > { %v436_v57 = vor.u32 %v435_v32, %v432_v3  ;;  %v445_v18 = vrot.slane %v443_v0, 4  ;;  %v451_v56 = vrot.slane %v449_v20, 5  ;;  %v631_v45 = vshll.u32 %v6473_v37, 16 }
  0x52   : > { %v620_v44 = vsel %vm6208_vm4, %v615_v27, %v619_v13  ;;  %v624_v16 = vrot.slane %v622_v52, 4  ;;  %v627_v26 = vrot.slane %v625_v42, 5  ;;  %v635_v38 = vshrl.u32 %v6473_v37, 16 }
  0x53   : > { %v5013_v50 = vcombine.low %v610_v59, %v620_v44  ;;  %v437_v39 = vrot.slane %v436_v57, 4  ;;  %v446_v28 = vor.u32 %v445_v18, %v441_v4  ;;  %v633_v47 = vrot.slane %v631_v45, 5  ;;  %v1203_v57 = vld [vmem:[%s6164_s25 + $0x18] sm:$0xe] }
  0x54   : > { %v628_v54 = vor.u32 %v627_v26, %v624_v16  ;;  %v637_v3 = vrot.slane %v635_v38, 4  ;;  %v641_v32 = vshll.u32 %v6478_v61, 16  ;;  %v5063_v13 = vrot.slane %v1201_v22, 9 }
  0x55   : > { %5719 = vmatprep.mubr.msk.bf16.mxu1 %vm695_vm3, %v5013_v50  ;;  %v442_v44 = vsel %vm6208_vm4, %v437_v39, %v441_v4  ;;  %v447_v20 = vrot.slane %v446_v28, 4  ;;  %v1254_v59 = vrot.slane %v6173_v6, 5  ;;  %v5032_v38 = vcombine.low %v6201_v29, %v6204_v30 }
  0x56   : > { %v629_v16 = vrot.slane %v628_v54, 4  ;;  %v638_v27 = vor.u32 %v637_v3, %v633_v47  ;;  %v643_v52 = vrot.slane %v641_v32, 5  ;;  %v5064_v42 = vrot.slane %v1202_v51, 9 }
  0x57   : > { %v452_v18 = vsel %vm6208_vm4, %v447_v20, %v451_v56  ;;  %v1255_v22 = vsel %vm6494_vm7, %v5063_v13, %v1254_v59  ;;  %v1256_v45 = vrot.slane %v1254_v59, 4  ;;  %v8731_v4 = vrot.slane %v6204_v30, 5 }
  0x58   : > { %v5006_v50 = vcombine.low %v442_v44, %v452_v18  ;;  %v634_v54 = vsel %vm6208_vm4, %v629_v16, %v633_v47  ;;  %v639_v39 = vrot.slane %v638_v27, 4  ;;  %v5031_v51 = vcombine.low %v6170_v5, %v6173_v6  ;;  %v1204_v27 = vld [vmem:[%s6164_s25 + $0x24] sm:$0xe] }
  0x59   : > { %v1263_v26 = vrot.slane %v8731_v4, 4  ;;  %v8732_v28 = vrot.slane %v6176_v7, 5  ;;  %v8733_v3 = vmov %v8731_v4  ;;  %v5033_v13 = vcombine.low %v6243_v8, %v6250_v21  ;;  %v1206_v4 = vld [vmem:[%s6164_s25 + $0x3c] sm:$0xe] }
  0x5a   : > { %v1262_v32 = vsel %vm6494_vm7, %v5064_v42, %v8733_v3  ;;  %v5065_v44 = vrot.slane %v1203_v57, 9  ;;  %5704 = vmatmul.mubr.msk.bf16.gmra.mxu0 %vm695_vm3, %v5006_v50  ;;  %v644_v47 = vsel %vm6208_vm4, %v639_v39, %v643_v52  ;;  %v8734_v6 = vrot.slane %v6214_v41, 5  ;;  %v1205_v42 = vld [vmem:[%s6164_s25 + $0x30] sm:$0xe]  ;;  %v1207_v39 = vld [vmem:[%s6164_s25 + $0x48] sm:$0xe] }
  0x5b   : > { %v1258_v56 = vsel %vm6494_vm7, %v1256_v45, %v8732_v28  ;;  %v1268_v20 = vrot.slane %v6250_v21, 5  ;;  %v5014_v59 = vcombine.low %v634_v54, %v644_v47  ;;  %v1271_v16 = vrot.slane %v6256_v25, 5  ;;  %v1208_v47 = vld [vmem:[%s6164_s25 + $0x54] sm:$0xe]  ;;  %v6789_v21 = vld [vmem:[%s6164_s25 + $0x2c] sm:$0x1] }
  0x5c   : > { %v5080_v5 = vcombine.low %v1255_v22, %v1258_v56  ;;  %v1265_v7 = vsel %vm6494_vm7, %v1263_v26, %v8734_v6  ;;  %v1825_v52 = vsel %vm744_vm0, %v6301_v19, 0  ;;  %v1275_v18 = vrot.slane %v6295_v10, 5 }
  0x5d   : > { %v1269_v41 = vsel %vm6494_vm7, %v5065_v44, %v1268_v20  ;;  %v1270_v57 = vrot.slane %v1268_v20, 4  ;;  %5720 = vmatmul.mubr.msk.bf16.gmra.mxu1 %vm695_vm3, %v5014_v59  ;;  %v5081_v22 = vcombine.low %v1262_v32, %v1265_v7  ;;  %v2551_v25 = vsel %vm744_vm0, %v6269_v40, 0 }
  0x5e   : > { %5759 = vmatprep.mubr.msk.bf16.mxu0 %vm695_vm3, %v5080_v5  ;;  %v1282_v45 = vrot.slane %v6341_v9, 5  ;;  %5725 = vmatprep.mubr.msk.bf16.mxu1 %vm695_vm3, %v5031_v51  ;;  %v5066_v26 = vrot.slane %v1204_v27, 9  ;;  %v1278_v50 = vrot.slane %v6306_v24, 5  ;;  %v5067_v54 = vrot.slane %v1205_v42, 9  ;;  %v6561_v24 = vld [vmem:[%s8679_s1 + $0xc] sm:$0x3] }
  0x5f   : > { %v1272_v19 = vsel %vm6494_vm7, %v1270_v57, %v1271_v16  ;;  %v1277_v56 = vrot.slane %v1275_v18, 4  ;;  %v1285_v32 = vrot.slane %v6349_v33, 5  ;;  %v5068_v44 = vrot.slane %v1206_v4, 9 }
  0x60   : > { %v5082_v28 = vcombine.low %v1269_v41, %v1272_v19  ;;  %v1284_v3 = vrot.slane %v1282_v45, 4  ;;  %v1289_v40 = vrot.slane %v6378_v23, 5  ;;  %v1313_v5 = vrot.slane %v6190_v15, 5 }
  0x61   : > { %v1292_v51 = vrot.slane %v6387_v48, 5  ;;  %v5069_v6 = vrot.slane %v1207_v39, 9  ;;  %v1296_v7 = vrot.slane %v6415_v17, 5  ;;  %v5034_v33 = vcombine.low %v6287_v1, %v6295_v10  ;;  %v1209_v1 = vld [vmem:[%s6164_s25 + $0x60] sm:$0xe] }
  0x62   : > { %5760 = vmatmul.mubr.msk.bf16.vlgmr.msra.gmra.mxu0 %vm695_vm3, %v5081_v22  ;;  %v1276_v20 = vsel %vm6494_vm7, %v5066_v26, %v1275_v18  ;;  %v1291_v59 = vrot.slane %v1289_v40, 4  ;;  %v1299_v16 = vrot.slane %v6421_v2, 5  ;;  %v1279_v48 = vsel %vm6494_vm7, %v1277_v56, %v1278_v50  ;;  %v6589_v22 = vld [vmem:[%s8679_s1 + $0xa] sm:$0x3]  ;;  %v6614_v50 = vld [vmem:[%s6164_s25 + $0x6c] sm:$0xe] }
  0x63   : > { %5826 = vmatpush3.bf16.msra.mxu0 %v2551_v25  ;;  %5763 = vmatprep.mubr.msk.bf16.mxu0 %vm695_vm3, %v5082_v28  ;;  %v1283_v27 = vsel %vm6494_vm7, %v5067_v54, %v1282_v45  ;;  %v1286_v42 = vsel %vm6494_vm7, %v1284_v3, %v1285_v32  ;;  %v1298_v41 = vrot.slane %v1296_v7, 4  ;;  %v6579_v10 = vsel %vm6494_vm7, %v5068_v44, %v1289_v40  ;;  %v1212_v39 = vld [vmem:[%s6164_s25 + $0x84] sm:$0xe]  ;;  %v6643_v44 = vld [vmem:[%s6164_s25 + $0x78] sm:$0xe] }
  0x64   : > { %v6583_v2 = vsel %vm6494_vm7, %v5069_v6, %v1296_v7  ;;  %v5070_v57 = vrot.slane %v1208_v47, 9  ;;  %v1303_v18 = vrot.slane %v6456_v55, 5  ;;  %6004 = vmatprep.subr.msk.bf16.mxu0 %vm744_vm0, %v6561_v24  ;;  %v6599_v25 = vsel %vm6494_vm7, %v1291_v59, %v1292_v51  ;;  %v1213_v40 = vld [vmem:[%s6164_s25 + $0x90] sm:$0xe] }
  0x65   : > { %5726 = vmatmul.mubr.msk.bf16.vlgmr.msra.gmra.mxu1 %vm695_vm3, %v5032_v38  ;;  %v6603_v45 = vsel %vm6494_vm7, %v1298_v41, %v1299_v16  ;;  %v1306_v4 = vrot.slane %v6459_v49, 5  ;;  %v1310_v19 = vrot.slane %v6187_v14, 5  ;;  %v5083_v29 = vcombine.low %v1276_v20, %v1279_v48  ;;  %v8735_v48 = vld [vmem:[#allocation3_spill] sm:$0xff] }
  0x66   : > { %5792 = vmatpush3.bf16.msra.mxu1 %v1825_v52  ;;  %5729 = vmatprep.mubr.msk.bf16.mxu1 %vm695_vm3, %v5033_v13  ;;  %v5035_v30 = vcombine.low %v6336_v60, %v6341_v9  ;;  %v1305_v38 = vrot.slane %v1303_v18, 4  ;;  %v5071_v26 = vrot.slane %v1209_v1, 9  ;;  %v5084_v49 = vcombine.low %v1283_v27, %v1286_v42  ;;  %v1214_v42 = vld [vmem:[%s6164_s25 + $0x9c] sm:$0xe] }
  0x67   : > { %v5036_v52 = vcombine.low %v6373_v11, %v6378_v23  ;;  %v5037_v8 = vcombine.low %v6406_v34, %v6415_v17  ;;  %6003 = vmatprep.subr.msk.bf16.mxu1 %vm744_vm0, %v6589_v22  ;;  %v5085_v60 = vcombine.low %v6579_v10, %v6599_v25  ;;  %v5086_v9 = vcombine.low %v6583_v2, %v6603_v45  ;;  %v8736_v10 = vld [vmem:[#allocation5_spill] sm:$0xff]  ;;  %v8737_v2 = vld [vmem:[#allocation4_spill] sm:$0xff] }
  0x68   : > { %v1312_v54 = vrot.slane %v1310_v19, 4  ;;  %v6633_v28 = vsel %vm6494_vm7, %v5070_v57, %v1303_v18  ;;  %v6637_v56 = vsel %vm6494_vm7, %v1305_v38, %v1306_v4  ;;  %v5072_v32 = vrot.slane %v6614_v50, 9  ;;  %v1215_v18 = vld [vmem:[%s6164_s25 + $0xa8] sm:$0xe]  ;;  %v8739_v38 = vld [vmem:[#allocation8_spill] sm:$0xff] }
  0x69   : > { %v6649_v47 = vsel %vm6494_vm7, %v5071_v26, %v1310_v19  ;;  %v1317_v51 = vrot.slane %v6229_v58, 5  ;;  %v1320_v6 = vrot.slane %v6237_v63, 5  ;;  %v5074_v59 = vrot.slane %v1212_v39, 9  ;;  %v8738_v19 = vld [vmem:[#allocation6_spill] sm:$0xff]  ;;  %v8740_v26 = vld [vmem:[#allocation7_spill] sm:$0xff] }
  0x6a   : > { %5764 = vmatmul.mubr.msk.bf16.gmra.mxu0 %vm695_vm3, %v5083_v29  ;;  %v1331_v16 = vrot.slane %v6320_v43, 5  ;;  %v1334_v27 = vrot.slane %v8735_v48, 5  ;;  %v5087_v41 = vcombine.low %v6633_v28, %v6637_v56  ;;  %v6667_v63 = vsel %vm6494_vm7, %v1312_v54, %v1313_v5  ;;  %v8742_v48 = vld [vmem:[#allocation11_spill] sm:$0xff] }
  0x6b   : > { %5767 = vmatprep.mubr.msk.bf16.mxu0 %vm695_vm3, %v5084_v49  ;;  %v5073_v1 = vrot.slane %v6643_v44, 9  ;;  %v5075_v4 = vrot.slane %v1213_v40, 9  ;;  %v1338_v15 = vrot.slane %v8736_v10, 5  ;;  %v1319_v5 = vrot.slane %v1317_v51, 4  ;;  %v5177_v57 = vld [vmem:[%s6164_s25 + $0xc] sm:$0xf] }
  0x6c   : > { %v6676_v25 = vsel %vm6494_vm7, %v5074_v59, %v1331_v16  ;;  %v1333_v45 = vrot.slane %v1331_v16, 4  ;;  %v1341_v29 = vrot.slane %v8738_v19, 5  ;;  %v5076_v49 = vrot.slane %v1214_v42, 9  ;;  %v8741_v59 = vld [vmem:[#allocation9_spill] sm:$0xff]  ;;  %v8743_v42 = vld [vmem:[#allocation10_spill] sm:$0xff] }
  0x6d   : > { %5730 = vmatmul.mubr.msk.bf16.gmra.mxu1 %vm695_vm3, %v5034_v33  ;;  %v1324_v33 = vrot.slane %v6274_v46, 5  ;;  %v6690_v39 = vsel %vm6494_vm7, %v5075_v4, %v1338_v15  ;;  %v1340_v44 = vrot.slane %v1338_v15, 4  ;;  %v1345_v40 = vrot.slane %v8739_v38, 5  ;;  %v8744_v15 = vld [vmem:[#allocation12_spill] sm:$0xff] }
  0x6e   : > { %5733 = vmatprep.mubr.msk.bf16.mxu1 %vm695_vm3, %v5035_v30  ;;  %v6686_v54 = vsel %vm6494_vm7, %v1333_v45, %v1334_v27  ;;  %v1348_v16 = vrot.slane %v8741_v59, 5  ;;  %v5077_v45 = vrot.slane %v1215_v18, 9  ;;  %v1352_v4 = vrot.slane %v8742_v48, 5 }
  0x6f   : > { %v6700_v27 = vsel %vm6494_vm7, %v1340_v44, %v1341_v29  ;;  %v1355_v50 = vrot.slane %v8744_v15, 5  ;;  %v6710_v19 = vsel %vm6494_vm7, %v5076_v49, %v1345_v40  ;;  %v1347_v7 = vrot.slane %v1345_v40, 4  ;;  %v8745_v29 = vld [vmem:[#allocation13_spill] sm:$0xff]  ;;  %v8746_v15 = vld [vmem:[#allocation2_spill] sm:$0xff]  ;;  %v6725_v49 = vld [vmem:[%s6164_s25 + $0x10] sm:$0xf] }
  0x70   : > { %v6717_v18 = vsel %vm6494_vm7, %v5072_v32, %v1317_v51  ;;  %v6722_v59 = vsel %vm6494_vm7, %v5077_v45, %v1352_v4  ;;  %v1354_v30 = vrot.slane %v1352_v4, 4  ;;  %v5180_v40 = vld [vmem:[%s6164_s25 + $0x18] sm:$0xf]  ;;  %v1326_v20 = vrot.slane %v1324_v33, 4 }
  0x71   : > { %v2069_v44 = vshrl.u32 %v5177_v57, 16  ;;  %v2072_v32 = vshll.u32 %v5177_v57, 16  ;;  %v5088_v51 = vcombine.low %v6649_v47, %v6667_v63  ;;  %v6740_v45 = vsel %vm6494_vm7, %v1319_v5, %v1320_v6  ;;  %v1216_v57 = vld [vmem:[%s6164_s25 + $0xb4] sm:$0xe]  ;;  %v6761_v47 = vld [vmem:[%s6164_s25 + $0x14] sm:$0x1] }
  0x72   : > { %5768 = vmatmul.mubr.msk.bf16.gmra.mxu0 %vm695_vm3, %v5085_v60  ;;  %v1327_v60 = vrot.slane %v8746_v15, 5  ;;  %v6755_v11 = vsel %vm6494_vm7, %v5073_v1, %v1324_v33  ;;  %v2078_v6 = vshll.u32 %v6725_v49, 16  ;;  %v5181_v63 = vld [vmem:[%s6164_s25 + $0x1c] sm:$0xf]  ;;  %v2082_v17 = vshrl.u32 %v6725_v49, 16 }
  0x73   : > { %5771 = vmatprep.mubr.msk.bf16.mxu0 %vm695_vm3, %v5086_v9  ;;  %v6730_v9 = vsel %vm6494_vm7, %v1347_v7, %v1348_v16  ;;  %v6746_v7 = vsel %vm6494_vm7, %v1354_v30, %v1355_v50  ;;  %v2071_v5 = vrot.slane %v2069_v44, 4  ;;  %v2074_v34 = vrot.slane %v2072_v32, 5  ;;  %v5183_v15 = vld [vmem:[%s6164_s25 + $0x24] sm:$0xf]  ;;  %v6774_v44 = vld [vmem:[%s6164_s25 + $0x28] sm:$0xf] }
  0x74   : > { %v2093_v50 = vshrl.u32 %v5180_v40, 16  ;;  %v1328_v1 = vsel %vm6494_vm7, %v1326_v20, %v1327_v60  ;;  %v5078_v33 = vrot.slane %v1216_v57, 9  ;;  %v6769_v30 = vrot.slane %v2078_v6, 5 }
  0x75   : > { %5734 = vmatmul.mubr.msk.bf16.gmra.mxu1 %vm695_vm3, %v5036_v52  ;;  %v1359_v52 = vrot.slane %v6473_v37, 5  ;;  %v2096_v16 = vshll.u32 %v5180_v40, 16  ;;  %v1362_v23 = vrot.slane %v6478_v61, 5  ;;  %v2084_v4 = vrot.slane %v2082_v17, 4 }
  0x76   : > { %5737 = vmatprep.mubr.msk.bf16.mxu1 %vm695_vm3, %v5037_v8  ;;  %v5182_v8 = vld [vmem:[%s6164_s25 + $0x20] sm:$0x1]  ;;  %v2095_v3 = vrot.slane %v2093_v50, 4  ;;  %v2102_v13 = vshll.u32 %v5181_v63, 16  ;;  %v2088_v20 = vshll.u32 %v6761_v47, 16  ;;  %v2106_v57 = vshrl.u32 %v5181_v63, 16 }
  0x77   : > { %v1361_v32 = vrot.slane %v1359_v52, 4  ;;  %v2098_v60 = vrot.slane %v2096_v16, 5  ;;  %v5089_v61 = vcombine.low %v6717_v18, %v6740_v45  ;;  %v5090_v40 = vcombine.low %v6755_v11, %v1328_v1 }
  0x78   : > { %v2075_v6 = vor.u32 %v2074_v34, %v2071_v5  ;;  %v6785_v17 = vrot.slane %v2102_v13, 5  ;;  %v2085_v28 = vor.u32 %v2084_v4, %v6769_v30  ;;  %v2112_v50 = vshll.u32 %v5182_v8, 16  ;;  %v6812_v5 = vld [vmem:[%s6164_s25 + $0x34] sm:$0xf] }
  0x79   : > { %v2099_v56 = vor.u32 %v2098_v60, %v2095_v3  ;;  %v6797_v18 = vsel %vm6494_vm7, %v5078_v33, %v1359_v52  ;;  %v2117_v13 = vshrl.u32 %v5183_v15, 16  ;;  %v2120_v45 = vshll.u32 %v5183_v15, 16  ;;  %v5186_v52 = vld [vmem:[%s6164_s25 + $0x30] sm:$0xf] }
  0x7a   : > { %5772 = vmatmul.mubr.msk.bf16.gmra.mxu0 %vm695_vm3, %v5087_v41  ;;  %v2108_v41 = vrot.slane %v2106_v57, 4  ;;  %v2126_v11 = vshll.u32 %v6774_v44, 16  ;;  %v8748_v3 = vcombine.low %v6183_v12, %v6187_v14  ;;  %v6806_v4 = vsel %vm6494_vm7, %v1361_v32, %v1362_v23 }
  0x7b   : > { %5775 = vmatprep.mubr.msk.bf16.mxu0 %vm695_vm3, %v5088_v51  ;;  %v8747_v51 = vcombine.low %v6449_v62, %v6456_v55  ;;  %v2090_v62 = vrot.slane %v2088_v20, 5  ;;  %v2130_v63 = vshrl.u32 %v6774_v44, 16  ;;  %v2076_v34 = vrot.slane %v2075_v6, 4 }
  0x7c   : > { %v2109_v55 = vor.u32 %v2108_v41, %v6785_v17  ;;  %v2119_v8 = vrot.slane %v2117_v13, 4  ;;  %v2122_v1 = vrot.slane %v2120_v45, 5  ;;  %v6814_v33 = vrot.slane %v2126_v11, 5  ;;  %v6820_v41 = vld [vmem:[%s6164_s25 + $0x38] sm:$0x1] }
  0x7d   : > { %5738 = vmatmul.mubr.msk.bf16.gmra.mxu1 %vm695_vm3, %v8747_v51  ;;  %v2086_v12 = vrot.slane %v2085_v28, 4  ;;  %v2100_v14 = vrot.slane %v2099_v56, 4  ;;  %v2114_v16 = vrot.slane %v2112_v50, 5  ;;  %v2132_v23 = vrot.slane %v2130_v63, 4  ;;  %v5189_v13 = vld [vmem:[%s6164_s25 + $0x3c] sm:$0xf] }
  0x7e   : > { %5741 = vmatprep.mubr.msk.bf16.mxu1 %vm695_vm3, %v8748_v3  ;;  %v2110_v15 = vrot.slane %v2109_v55, 4  ;;  %v2136_v32 = vshll.u32 %v6789_v21, 16  ;;  %v2141_v20 = vshrl.u32 %v5186_v52, 16  ;;  %v2144_v60 = vshll.u32 %v5186_v52, 16 }
  0x7f   : > { %v2123_v57 = vor.u32 %v2122_v1, %v2119_v8  ;;  %v2133_v6 = vor.u32 %v2132_v23, %v6814_v33  ;;  %v2150_v28 = vshll.u32 %v6812_v5, 16  ;;  %v2154_v56 = vshrl.u32 %v6812_v5, 16  ;;  %v5192_v8 = vld [vmem:[%s6164_s25 + $0x48] sm:$0xf]  ;;  %v6847_v1 = vld [vmem:[%s6164_s25 + $0x4c] sm:$0xf] }
  0x80   : > { %v2143_v50 = vrot.slane %v2141_v20, 4  ;;  %v2146_v51 = vrot.slane %v2144_v60, 5  ;;  %v8749_v3 = vcombine.low %v6225_v53, %v6229_v58  ;;  %v5095_v55 = vcombine.low %v6797_v18, %v6806_v4 }
  0x81   : > { %v6826_v45 = vrot.slane %v2150_v28, 5  ;;  %v2156_v11 = vrot.slane %v2154_v56, 4  ;;  %v2091_v63 = vsel %vm6208_vm4, %v2086_v12, %v2090_v62  ;;  %v2105_v52 = vsel %vm6208_vm4, %v2100_v14, %v6785_v17 }
  0x82   : > { %5776 = vmatmul.mubr.msk.bf16.gmra.mxu0 %vm695_vm3, %v5089_v61  ;;  %v6829_v61 = vld [vmem:[%s6164_s25 + $0x40] sm:$0xf]  ;;  %v8750_v53 = vcombine.low %v6263_v35, %v6274_v46  ;;  %v2115_v58 = vsel %vm6208_vm4, %v2110_v15, %v2114_v16  ;;  %v2124_v23 = vrot.slane %v2123_v57, 4  ;;  %v2147_v20 = vor.u32 %v2146_v51, %v2143_v50  ;;  %v6881_v50 = vld [vmem:[%s6164_s25 + $0x44] sm:$0x1] }
  0x83   : > { %5779 = vmatprep.mubr.msk.bf16.mxu0 %vm695_vm3, %v5090_v40  ;;  %v2081_v40 = vsel %vm6208_vm4, %v2076_v34, %v6769_v30  ;;  %v2134_v30 = vrot.slane %v2133_v6, 4  ;;  %v2138_v34 = vrot.slane %v2136_v32, 5  ;;  %v2160_v62 = vshll.u32 %v6820_v41, 16  ;;  %v5195_v51 = vld [vmem:[%s6164_s25 + $0x54] sm:$0xf] }
  0x84   : > { %v2165_v12 = vshrl.u32 %v5189_v13, 16  ;;  %v2168_v17 = vshll.u32 %v5189_v13, 16  ;;  %v6858_v14 = vsel %vm744_vm0, %v6589_v22, 0  ;;  %v2157_v35 = vor.u32 %v2156_v11, %v6826_v45 }
  0x85   : > { %5742 = vmatmul.mubr.msk.bf16.gmra.mxu1 %vm695_vm3, %v8749_v3  ;;  %v2174_v46 = vshll.u32 %v6829_v61, 16  ;;  %v2178_v16 = vshrl.u32 %v6829_v61, 16  ;;  %v6863_v15 = vcombine.low %v2081_v40, %v2091_v63  ;;  %v6867_v32 = vsel %vm744_vm0, %v6561_v24, 0  ;;  %v6890_v40 = vld [vmem:[%s6164_s25 + $0x58] sm:$0xf] }
  0x86   : > { %5745 = vmatprep.mubr.msk.bf16.mxu1 %vm695_vm3, %v8750_v53  ;;  %v2189_v60 = vshrl.u32 %v5192_v8, 16  ;;  %v2192_v57 = vshll.u32 %v5192_v8, 16  ;;  %v8751_v6 = vcombine.low %v6676_v25, %v6686_v54  ;;  %v6873_v22 = vcombine.low %v2105_v52, %v2115_v58  ;;  %v6895_v8 = vld [vmem:[%s6164_s25 + $0x50] sm:$0x1] }
  0x87   : > { %v2129_v28 = vsel %vm6208_vm4, %v2124_v23, %v6814_v33  ;;  %v2139_v56 = vsel %vm6208_vm4, %v2134_v30, %v2138_v34  ;;  %v2198_v24 = vshll.u32 %v6847_v1, 16  ;;  %v8752_v25 = vcombine.low %v6690_v39, %v6700_v27  ;;  %v5198_v34 = vld [vmem:[%s6164_s25 + $0x60] sm:$0xf] }
  0x88   : > { %v2148_v54 = vrot.slane %v2147_v20, 4  ;;  %v2162_v13 = vrot.slane %v2160_v62, 5  ;;  %v2167_v11 = vrot.slane %v2165_v12, 4  ;;  %v2170_v3 = vrot.slane %v2168_v17, 5 }
  0x89   : > { %v2158_v33 = vrot.slane %v2157_v35, 4  ;;  %v6892_v63 = vrot.slane %v2174_v46, 5  ;;  %v2180_v52 = vrot.slane %v2178_v16, 4  ;;  %v2202_v53 = vshrl.u32 %v6847_v1, 16  ;;  %v6912_v35 = vld [vmem:[%s6164_s25 + $0x5c] sm:$0x1] }
  0x8a   : > { %5780 = vmatmul.mubr.msk.bf16.gmra.mxu0 %vm695_vm3, %v8751_v6  ;;  %v8753_v39 = vcombine.low %v6313_v36, %v6320_v43  ;;  %v2191_v27 = vrot.slane %v2189_v60, 4  ;;  %v2194_v58 = vrot.slane %v2192_v57, 5  ;;  %v2213_v23 = vshrl.u32 %v5195_v51, 16 }
  0x8b   : > { %5783 = vmatprep.mubr.msk.bf16.mxu0 %vm695_vm3, %v8752_v25  ;;  %v2216_v30 = vshll.u32 %v5195_v51, 16  ;;  %v8754_v20 = vcombine.low %v8737_v2, %v8736_v10  ;;  %v6907_v62 = vcombine.low %v2129_v28, %v2139_v56  ;;  %v6909_v12 = vrot.slane %v2198_v24, 5  ;;  %v6925_v28 = vld [vmem:[%s6164_s25 + $0x64] sm:$0xf] }
  0x8c   : > { %v2204_v17 = vrot.slane %v2202_v53, 4  ;;  %v2222_v36 = vshll.u32 %v6890_v40, 16  ;;  %v2184_v43 = vshll.u32 %v6881_v50, 16  ;;  %v2215_v46 = vrot.slane %v2213_v23, 4 }
  0x8d   : > { %5746 = vmatmul.mubr.msk.bf16.gmra.mxu1 %vm695_vm3, %v8753_v39  ;;  %v2218_v16 = vrot.slane %v2216_v30, 5  ;;  %v2226_v60 = vshrl.u32 %v6890_v40, 16  ;;  %v2153_v10 = vsel %vm6208_vm4, %v2148_v54, %v6826_v45  ;;  %v2163_v2 = vsel %vm6208_vm4, %v2158_v33, %v2162_v13  ;;  %v6947_v30 = vld [vmem:[%s6164_s25 + $0x68] sm:$0x1] }
  0x8e   : > { %5749 = vmatprep.mubr.msk.bf16.mxu1 %vm695_vm3, %v8754_v20  ;;  %v2171_v57 = vor.u32 %v2170_v3, %v2167_v11  ;;  %v6922_v6 = vrot.slane %v2222_v36, 5  ;;  %v2181_v56 = vor.u32 %v2180_v52, %v6892_v63  ;;  %v2195_v24 = vor.u32 %v2194_v58, %v2191_v27  ;;  %v5201_v3 = vld [vmem:[%s6164_s25 + $0x6c] sm:$0xf]  ;;  %v6944_v27 = vld [vmem:[%s6164_s25 + $0x70] sm:$0xf] }
  0x8f   : > { %v2208_v51 = vshll.u32 %v6895_v8, 16  ;;  %v2228_v25 = vrot.slane %v2226_v60, 4  ;;  %v8755_v53 = vcombine.low %v6710_v19, %v6730_v9  ;;  %v2205_v45 = vor.u32 %v2204_v17, %v6909_v12 }
  0x90   : > { %v2219_v54 = vor.u32 %v2218_v16, %v2215_v46  ;;  %v2237_v13 = vshrl.u32 %v5198_v34, 16  ;;  %v2240_v11 = vshll.u32 %v5198_v34, 16  ;;  %v8756_v33 = vcombine.low %v6722_v59, %v6746_v7  ;;  %v5204_v16 = vld [vmem:[%s6164_s25 + $0x78] sm:$0xf] }
  0x91   : > { %v2229_v52 = vor.u32 %v2228_v25, %v6922_v6  ;;  %v2232_v39 = vshll.u32 %v6912_v35, 16  ;;  %v2246_v19 = vshll.u32 %v6925_v28, 16  ;;  %v2250_v9 = vshrl.u32 %v6925_v28, 16 }
  0x92   : > { %5784 = vmatmul.mubr.msk.bf16.gmra.mxu0 %vm695_vm3, %v8755_v53  ;;  %v2172_v58 = vrot.slane %v2171_v57, 4  ;;  %v2186_v23 = vrot.slane %v2184_v43, 5  ;;  %v2239_v34 = vrot.slane %v2237_v13, 4  ;;  %v2242_v20 = vrot.slane %v2240_v11, 5 }
  0x93   : > { %5787 = vmatprep.mubr.msk.bf16.mxu0 %vm695_vm3, %v8756_v33  ;;  %v8757_v59 = vcombine.low %v8740_v26, %v8739_v38  ;;  %v6953_v7 = vcombine.low %v2153_v10, %v2163_v2  ;;  %v2182_v17 = vrot.slane %v2181_v56, 4  ;;  %v2196_v36 = vrot.slane %v2195_v24, 4  ;;  %v6963_v2 = vld [vmem:[%s6164_s25 + $0x7c] sm:$0xf] }
  0x94   : > { %v6955_v46 = vrot.slane %v2246_v19, 5  ;;  %v8758_v43 = vcombine.low %v8743_v42, %v8742_v48  ;;  %v2206_v60 = vrot.slane %v2205_v45, 4  ;;  %v2210_v57 = vrot.slane %v2208_v51, 5  ;;  %8759 = vst [vmem:[#allocation3_spill] sm:$0xff] %v6963_v2  ;;  %v5207_v19 = vld [vmem:[%s6164_s25 + $0x84] sm:$0xf] }
  0x95   : > { %5750 = vmatmul.mubr.msk.bf16.gmra.mxu1 %vm695_vm3, %v8757_v59  ;;  %v2220_v25 = vrot.slane %v2219_v54, 4  ;;  %v2252_v38 = vrot.slane %v2250_v9, 4  ;;  %v2230_v26 = vrot.slane %v2229_v52, 4  ;;  %v2234_v53 = vrot.slane %v2232_v39, 5 }
  0x96   : > { %5753 = vmatprep.mubr.msk.bf16.mxu1 %vm695_vm3, %v8758_v43  ;;  %v2243_v13 = vor.u32 %v2242_v20, %v2239_v34  ;;  %v2261_v10 = vshrl.u32 %v5201_v3, 16  ;;  %v2177_v56 = vsel %vm6208_vm4, %v2172_v58, %v6892_v63  ;;  %v2264_v24 = vshll.u32 %v5201_v3, 16  ;;  %v6048_v63 = vld [vmem:[%s6164_s25 + $0xc] sm:$0xff]   ;;  %v6997_v34 = vld [vmem:[%s6164_s25 + $0x88] sm:$0xf] }
  0x97   : > { %v2270_v48 = vshll.u32 %v6944_v27, 16  ;;  %v2274_v42 = vshrl.u32 %v6944_v27, 16  ;;  %v2187_v51 = vsel %vm6208_vm4, %v2182_v17, %v2186_v23  ;;  %v2201_v45 = vsel %vm6208_vm4, %v2196_v36, %v6909_v12  ;;  %8760 = vst [vmem:[#allocation5_spill] sm:$0xff] %v6997_v34  ;;  %v7006_v36 = vld [vmem:[%s6164_s25 + $0x74] sm:$0x1] }
  0x98   : > { %v2253_v54 = vor.u32 %v2252_v38, %v6955_v46  ;;  %v2256_v11 = vshll.u32 %v6947_v30, 16  ;;  %v2211_v3 = vsel %vm6208_vm4, %v2206_v60, %v2210_v57  ;;  %v2225_v33 = vsel %vm6208_vm4, %v2220_v25, %v6922_v6  ;;  %8762 = vst [vmem:[#allocation4_spill] sm:$0xff] %v7006_v36  ;;  %v7016_v38 = vld [vmem:[%s6164_s25 + $0x80] sm:$0x1] }
  0x99   : > { %v2285_v52 = vshrl.u32 %v5204_v16, 16  ;;  %v2288_v12 = vshll.u32 %v5204_v16, 16  ;;  %v2235_v18 = vsel %vm6208_vm4, %v2230_v26, %v2234_v53  ;;  %v2244_v4 = vrot.slane %v2243_v13, 4  ;;  %8763 = vst [vmem:[#allocation6_spill] sm:$0xff] %v7016_v38  ;;  %v7019_v26 = vld [vmem:[%s6164_s25 + $0x8c] sm:$0x1] }
  0x9a   : > { %5788 = vmatmul.mubr.msk.bf16.gmra.mxu0 %vm695_vm3, %v5095_v55  ;;  %v2263_v55 = vrot.slane %v2261_v10, 4  ;;  %v2294_v39 = vshll.u32 %v6963_v2, 16  ;;  %v2266_v9 = vrot.slane %v2264_v24, 5  ;;  %v6993_v58 = vrot.slane %v2270_v48, 5  ;;  %8764 = vst [vmem:[#allocation8_spill] sm:$0xff] %v7019_v26  ;;  %v6049_v10 = vld [vmem:[%s6164_s25 + $0x18] sm:$0xff]  }
  0x9b   : > { %5827 = vmatprep.mubr.msk.bf16.mxu0 %vm695_vm3, %v6863_v15  ;;  %v2276_v23 = vrot.slane %v2274_v42, 4  ;;  %v2298_v6 = vshrl.u32 %v6963_v2, 16  ;;  %v8761_v15 = vcombine.low %v8745_v29, %v6473_v37  ;;  %v7003_v20 = vcombine.low %v2177_v56, %v2187_v51  ;;  %v5210_v51 = vld [vmem:[%s6164_s25 + $0x90] sm:$0xf] }
  0x9c   : > { %v2254_v59 = vrot.slane %v2253_v54, 4  ;;  %v2258_v17 = vrot.slane %v2256_v11, 5  ;;  %v2287_v16 = vrot.slane %v2285_v52, 4  ;;  %v2290_v43 = vrot.slane %v2288_v12, 5 }
  0x9d   : > { %5754 = vmatmul.mubr.msk.bf16.gmra.mxu1 %vm695_vm3, %v8761_v15  ;;  %v7009_v60 = vrot.slane %v2294_v39, 5  ;;  %v2300_v57 = vrot.slane %v2298_v6, 4  ;;  %v2309_v25 = vshrl.u32 %v5207_v19, 16  ;;  %v7011_v37 = vcombine.low %v2201_v45, %v2211_v3  ;;  %v7030_v45 = vld [vmem:[%s6164_s25 + $0x94] sm:$0xf] }
  0x9e   : > { %5793 = vmatprep.mubr.msk.bf16.mxu1 %vm695_vm3, %v6048_v63  ;;  %v7013_v29 = vcombine.low %v2225_v33, %v2235_v18  ;;  %v2312_v53 = vshll.u32 %v5207_v19, 16  ;;  %v2318_v13 = vshll.u32 %v6997_v34, 16  ;;  %v2249_v56 = vsel %vm6208_vm4, %v2244_v4, %v6955_v46  ;;  %8765 = vst [vmem:[#allocation7_spill] sm:$0xff] %v7030_v45  ;;  %v7038_v33 = vld [vmem:[%s8679_s1 + $0x10] sm:$0x3]  ;;  %v6050_v46 = vld [vmem:[%s6164_s25 + $0x24] sm:$0xff]  }
  0x9f   : > { %v2267_v24 = vor.u32 %v2266_v9, %v2263_v55  ;;  %v2277_v48 = vor.u32 %v2276_v23, %v6993_v58  ;;  %v2280_v42 = vshll.u32 %v7006_v36, 16  ;;  %v2311_v54 = vrot.slane %v2309_v25, 4  ;;  %8766 = vst [vmem:[#allocation9_spill] sm:$0xff] %v7038_v33 }
  0xa0   : > { %v2314_v11 = vrot.slane %v2312_v53, 5  ;;  %v7032_v63 = vrot.slane %v2318_v13, 5  ;;  %v2322_v3 = vshrl.u32 %v6997_v34, 16  ;;  %v2259_v52 = vsel %vm6208_vm4, %v2254_v59, %v2258_v17 }
  0xa1   : > { %v2291_v12 = vor.u32 %v2290_v43, %v2287_v16  ;;  %v2301_v18 = vor.u32 %v2300_v57, %v7009_v60  ;;  %v2304_v4 = vshll.u32 %v7016_v38, 16  ;;  %v2333_v19 = vshrl.u32 %v5210_v51, 16  ;;  %v7072_v57 = vld [vmem:[%s6164_s25 + $0xa0] sm:$0xf] }
  0xa2   : > { %5828 = vmatmul.mubr.msk.bf16.vlgmr.msra.gmra.mxu0 %vm695_vm3, %v6873_v22  ;;  %v2315_v55 = vor.u32 %v2314_v11, %v2311_v54  ;;  %v2324_v39 = vrot.slane %v2322_v3, 4  ;;  %v2336_v9 = vshll.u32 %v5210_v51, 16  ;;  %v5213_v22 = vld [vmem:[%s6164_s25 + $0x9c] sm:$0xf]  ;;  %v7051_v23 = vrot.slane %v2267_v24, 4  ;;  %8768 = vst [vmem:[#allocation10_spill] sm:$0xff] %v7072_v57 }
  0xa3   : > { %5894 = vmatpush3.bf16.msra.mxu0 %v6867_v32  ;;  %5831 = vmatprep.mubr.msk.bf16.mxu0 %vm695_vm3, %v6907_v62  ;;  %v7053_v6 = vrot.slane %v2280_v42, 5  ;;  %v2328_v15 = vshll.u32 %v7019_v26, 16  ;;  %v2342_v59 = vshll.u32 %v7030_v45, 16  ;;  %v7060_v32 = vld [vmem:[%s8679_s1 + $0xe] sm:$0x3]  ;;  %v7065_v62 = vcombine.low %v2249_v56, %v2259_v52 }
  0xa4   : > { %8767 = vst [vmem:[#allocation11_spill] sm:$0xff] %v7060_v32  ;;  %6006 = vmatprep.subr.msk.bf16.mxu0 %vm744_vm0, %v7038_v33  ;;  %v7067_v17 = vrot.slane %v2277_v48, 4  ;;  %v2325_v16 = vor.u32 %v2324_v39, %v7032_v63  ;;  %v2346_v43 = vshrl.u32 %v7030_v45, 16  ;;  %v7076_v25 = vrot.slane %v2291_v12, 4  ;;  %v7085_v56 = vld [vmem:[%s6164_s25 + $0x98] sm:$0x1] }
  0xa5   : > { %5794 = vmatmul.mubr.msk.bf16.vlgmr.msra.gmra.mxu1 %vm695_vm3, %v6049_v10  ;;  %v7078_v53 = vrot.slane %v2301_v18, 4  ;;  %v7080_v13 = vrot.slane %v2304_v4, 5  ;;  %v7082_v10 = vrot.slane %v2315_v55, 4  ;;  %8769 = vst [vmem:[#allocation12_spill] sm:$0xff] %v7085_v56  ;;  %v2335_v24 = vrot.slane %v2333_v19, 4  ;;  %v6052_v19 = vld [vmem:[%s6164_s25 + $0x3c] sm:$0xff]  }
  0xa6   : > { %5860 = vmatpush3.bf16.msra.mxu1 %v6858_v14  ;;  %5797 = vmatprep.mubr.msk.bf16.mxu1 %vm695_vm3, %v6050_v46  ;;  %v2338_v48 = vrot.slane %v2336_v9, 5  ;;  %v2357_v42 = vshrl.u32 %v5213_v22, 16  ;;  %v2360_v51 = vshll.u32 %v5213_v22, 16  ;;  %v6051_v14 = vld [vmem:[%s6164_s25 + $0x30] sm:$0xff]   ;;  %v7094_v11 = vrot.slane %v2328_v15, 5 }
  0xa7   : > { %6005 = vmatprep.subr.msk.bf16.mxu1 %vm744_vm0, %v7060_v32  ;;  %v7096_v3 = vrot.slane %v2342_v59, 5  ;;  %v2366_v46 = vshll.u32 %v7072_v57, 16  ;;  %v5216_v52 = vld [vmem:[%s6164_s25 + $0xa8] sm:$0xf]  ;;  %v7100_v12 = vrot.slane %v2325_v16, 4  ;;  %v2348_v18 = vrot.slane %v2346_v43, 4 }
  0xa8   : > { %v2352_v4 = vshll.u32 %v7085_v56, 16  ;;  %v2370_v55 = vshrl.u32 %v7072_v57, 16  ;;  %v7105_v39 = vld [vmem:[%s6164_s25 + $0xac] sm:$0xf]  ;;  %v2339_v59 = vor.u32 %v2338_v48, %v2335_v24  ;;  %v7129_v16 = vld [vmem:[%s6164_s25 + $0xa4] sm:$0x1] }
  0xa9   : > { %8770 = vst [vmem:[#allocation13_spill] sm:$0xff] %v7105_v39  ;;  %8771 = vst [vmem:[#allocation2_spill] sm:$0xff] %v7129_v16  ;;  %v2359_v43 = vrot.slane %v2357_v42, 4  ;;  %v2362_v22 = vrot.slane %v2360_v51, 5  ;;  %v2381_v54 = vshrl.u32 %v5216_v52, 16  ;;  %v7131_v9 = vrot.slane %v2366_v46, 5 }
  0xaa   : > { %5832 = vmatmul.mubr.msk.bf16.gmra.mxu0 %vm695_vm3, %v6953_v7  ;;  %v2372_v32 = vrot.slane %v2370_v55, 4  ;;  %v2384_v15 = vshll.u32 %v5216_v52, 16  ;;  %v2390_v33 = vshll.u32 %v7105_v39, 16  ;;  %v5219_v57 = vld [vmem:[%s6164_s25 + $0xb4] sm:$0xf]  ;;  %v2349_v24 = vor.u32 %v2348_v18, %v7096_v3 }
  0xab   : > { %5835 = vmatprep.mubr.msk.bf16.mxu0 %vm695_vm3, %v7003_v20  ;;  %v2331_v20 = vsel %vm6208_vm4, %v7100_v12, %v7094_v11  ;;  %v7141_v48 = vrot.slane %v2352_v4, 5  ;;  %v7144_v42 = vld [vmem:[%s6164_s25 + $0xb0] sm:$0x1]  ;;  %v2383_v51 = vrot.slane %v2381_v54, 4  ;;  %v7147_v46 = vld [vmem:[%s6164_s25 + $0xb8] sm:$0xf]  ;;  %v2363_v18 = vor.u32 %v2362_v22, %v2359_v43 }
  0xac   : > { %8772 = vst [vmem:[#allocation14_spill] sm:$0xff] %v7144_v42  ;;  %8773 = vst [vmem:[#allocation15_spill] sm:$0xff] %v7147_v46  ;;  %v2386_v52 = vrot.slane %v2384_v15, 5  ;;  %v7151_v55 = vrot.slane %v2390_v33, 5  ;;  %v2394_v11 = vshrl.u32 %v7105_v39, 16  ;;  %v7154_v12 = vrot.slane %v2339_v59, 4 }
  0xad   : > { %5798 = vmatmul.mubr.msk.bf16.gmra.mxu1 %vm695_vm3, %v6051_v14  ;;  %v2376_v14 = vshll.u32 %v7129_v16, 16  ;;  %v7157_v4 = vld [vmem:[%s6164_s25 + $0xbc] sm:$0x1]  ;;  %v2405_v54 = vshrl.u32 %v5219_v57, 16  ;;  %v2408_v7 = vshll.u32 %v5219_v57, 16  ;;  %v2373_v56 = vor.u32 %v2372_v32, %v7131_v9  ;;  %v6053_v16 = vld [vmem:[%s6164_s25 + $0x48] sm:$0xff]  }
  0xae   : > { %5801 = vmatprep.mubr.msk.bf16.mxu1 %vm695_vm3, %v6052_v19  ;;  %v2396_v45 = vrot.slane %v2394_v11, 4  ;;  %v2400_v19 = vshll.u32 %v7144_v42, 16  ;;  %v2414_v15 = vshll.u32 %v7147_v46, 16  ;;  %v5222_v33 = vld [vmem:[%s6164_s25 + $0xc0] sm:$0xf]  ;;  %v2387_v26 = vor.u32 %v2386_v52, %v2383_v51  ;;  %v6054_v57 = vld [vmem:[%s6164_s25 + $0x54] sm:$0xff]  }
  0xaf   : > { %v2407_v39 = vrot.slane %v2405_v54, 4  ;;  %v2410_v34 = vrot.slane %v2408_v7, 5  ;;  %v2418_v59 = vshrl.u32 %v7147_v46, 16  ;;  %v7166_v22 = vld [vmem:[%s6164_s25 + $0xc4] sm:$0xf]  ;;  %v2350_v43 = vrot.slane %v2349_v24, 4 }
  0xb0   : > { %v2378_v32 = vrot.slane %v2376_v14, 5  ;;  %v2397_v11 = vor.u32 %v2396_v45, %v7151_v55  ;;  %v2416_v42 = vrot.slane %v2414_v15, 5  ;;  %v2424_v7 = vshll.u32 %v7157_v4, 16  ;;  %v7178_v45 = vld [vmem:[%s6164_s25 + $0xc8] sm:$0x1] }
  0xb1   : > { %v2411_v51 = vor.u32 %v2410_v34, %v2407_v39  ;;  %v2420_v52 = vrot.slane %v2418_v59, 4  ;;  %v2429_v54 = vshrl.u32 %v5222_v33, 16  ;;  %v2364_v46 = vrot.slane %v2363_v18, 4 }
  0xb2   : > { %5836 = vmatmul.mubr.msk.bf16.gmra.mxu0 %vm695_vm3, %v7011_v37  ;;  %v2374_v38 = vrot.slane %v2373_v56, 4  ;;  %v2432_v2 = vshll.u32 %v5222_v33, 16  ;;  %v2438_v37 = vshll.u32 %v7166_v22, 16  ;;  %v2388_v24 = vrot.slane %v2387_v26, 4 }
  0xb3   : > { %5839 = vmatprep.mubr.msk.bf16.mxu0 %vm695_vm3, %v7013_v29  ;;  %v2402_v14 = vrot.slane %v2400_v19, 5  ;;  %v2421_v36 = vor.u32 %v2420_v52, %v2416_v42  ;;  %v2431_v15 = vrot.slane %v2429_v54, 4  ;;  %v2398_v34 = vrot.slane %v2397_v11, 4 }
  0xb4   : > { %v2434_v29 = vrot.slane %v2432_v2, 5  ;;  %v7181_v39 = vrot.slane %v2438_v37, 5  ;;  %v2442_v56 = vshrl.u32 %v7166_v22, 16  ;;  %v8774_v26 = vsel %vm6208_vm4, %v7067_v17, %v7053_v6 }
  0xb5   : > { %5802 = vmatmul.mubr.msk.bf16.gmra.mxu1 %vm695_vm3, %v6053_v16  ;;  %v8775_v16 = vsel %vm6208_vm4, %v7051_v23, %v6993_v58  ;;  %v2412_v19 = vrot.slane %v2411_v51, 4  ;;  %v2422_v33 = vrot.slane %v2421_v36, 4  ;;  %v2426_v2 = vrot.slane %v2424_v7, 5  ;;  %v6055_v23 = vld [vmem:[%s6164_s25 + $0x60] sm:$0xff]  }
  0xb6   : > { %5805 = vmatprep.mubr.msk.bf16.mxu1 %vm695_vm3, %v6054_v57  ;;  %v5234_v18 = vcombine.low %v8775_v16, %v8774_v26  ;;  %v8776_v59 = vsel %vm6208_vm4, %v7078_v53, %v7080_v13  ;;  %v8777_v6 = vsel %vm6208_vm4, %v7076_v25, %v7009_v60  ;;  %v2435_v57 = vor.u32 %v2434_v29, %v2431_v15  ;;  %v5260_v13 = vld [vmem:[%s6164_s25 + $0x24] sm:$0xe]  ;;  %v5263_v26 = vld [vmem:[%s6164_s25 + $0x48] sm:$0xe] }
  0xb7   : > { %v5235_v17 = vcombine.low %v8777_v6, %v8776_v59  ;;  %v2444_v11 = vrot.slane %v2442_v56, 4  ;;  %v2448_v58 = vshll.u32 %v7178_v45, 16  ;;  %v8778_v36 = vsel %vm6208_vm4, %v7082_v10, %v7032_v63  ;;  %v6056_v63 = vld [vmem:[%s6164_s25 + $0x6c] sm:$0xff]   ;;  %v5264_v6 = vld [vmem:[%s6164_s25 + $0x54] sm:$0xe] }
  0xb8   : > { %v5236_v51 = vcombine.low %v8778_v36, %v2331_v20  ;;  %v2345_v53 = vsel %vm6208_vm4, %v7154_v12, %v7096_v3  ;;  %v2355_v60 = vsel %vm6208_vm4, %v2350_v43, %v7141_v48  ;;  %v2369_v25 = vsel %vm6208_vm4, %v2364_v46, %v7131_v9  ;;  %v7234_v12 = vld [vmem:[%s6164_s25 + $0xc] sm:$0xe] }
  0xb9   : > { %v2379_v10 = vsel %vm6208_vm4, %v2374_v38, %v2378_v32  ;;  %v2393_v3 = vsel %vm6208_vm4, %v2388_v24, %v7151_v55  ;;  %v2403_v20 = vsel %vm6208_vm4, %v2398_v34, %v2402_v14  ;;  %v2445_v48 = vor.u32 %v2444_v11, %v7181_v39  ;;  %v5261_v55 = vld [vmem:[%s6164_s25 + $0x30] sm:$0xe]  ;;  %v5262_v14 = vld [vmem:[%s6164_s25 + $0x3c] sm:$0xe] }
  0xba   : > { %5840 = vmatmul.mubr.msk.bf16.gmra.mxu0 %vm695_vm3, %v7065_v62  ;;  %v2417_v62 = vsel %vm6208_vm4, %v2412_v19, %v2416_v42  ;;  %v2427_v38 = vsel %vm6208_vm4, %v2422_v33, %v2426_v2  ;;  %v7241_v9 = vrot.slane %v2435_v57, 4  ;;  %v2812_v46 = vrot.slane %v6725_v49, 5  ;;  %v6057_v57 = vld [vmem:[%s6164_s25 + $0x78] sm:$0xff]  }
  0xbb   : > { %5843 = vmatprep.mubr.msk.bf16.mxu0 %vm695_vm3, %v5234_v18  ;;  %v7245_v43 = vcombine.low %v2345_v53, %v2355_v60  ;;  %v7247_v32 = vrot.slane %v2445_v48, 4  ;;  %v7249_v52 = vrot.slane %v2448_v58, 5  ;;  %v5276_v7 = vrot.slane %v5260_v13, 9  ;;  %v6058_v53 = vld [vmem:[%s6164_s25 + $0x84] sm:$0xff]   ;;  %v5265_v13 = vld [vmem:[%s6164_s25 + $0x60] sm:$0xe] }
  0xbc   : > { %v7252_v54 = vcombine.low %v2369_v25, %v2379_v10  ;;  %v7254_v42 = vcombine.low %v2393_v3, %v2403_v20  ;;  %v5274_v37 = vrot.slane %v7234_v12, 9  ;;  %v2826_v24 = vrot.slane %v6774_v44, 5  ;;  %v6064_v49 = vld [vmem:[%s6164_s25 + $0x18] sm:$0xff]  }
  0xbd   : > { %5806 = vmatmul.mubr.msk.bf16.gmra.mxu1 %vm695_vm3, %v6055_v23  ;;  %v7260_v15 = vcombine.low %v2417_v62, %v2427_v38  ;;  %v2815_v34 = vrot.slane %v6761_v47, 5  ;;  %v2829_v29 = vrot.slane %v6789_v21, 5  ;;  %v5277_v56 = vrot.slane %v5261_v55, 9  ;;  %v5267_v55 = vld [vmem:[%s6164_s25 + $0x78] sm:$0xe] }
  0xbe   : > { %5809 = vmatprep.mubr.msk.bf16.mxu1 %vm695_vm3, %v6056_v63  ;;  %v2441_v16 = vsel %vm6208_vm4, %v7241_v9, %v7181_v39  ;;  %v7271_v44 = vrot.slane %v2812_v46, 4  ;;  %v7275_v18 = vsel %vm6494_vm7, %v5276_v7, %v2826_v24  ;;  %v2828_v19 = vrot.slane %v2826_v24, 4 }
  0xbf   : > { %v2451_v21 = vsel %vm6208_vm4, %v7247_v32, %v7249_v52  ;;  %v2833_v33 = vrot.slane %v6812_v5, 5  ;;  %v2836_v2 = vrot.slane %v6820_v41, 5  ;;  %v5278_v59 = vrot.slane %v5262_v14, 9  ;;  %v6063_v52 = vld [vmem:[%s6164_s25 + $0xc0] sm:$0xff]  }
  0xc0   : > { %v7287_v11 = vsel %vm6494_vm7, %v2828_v19, %v2829_v29  ;;  %v2840_v58 = vrot.slane %v6829_v61, 5  ;;  %v2843_v23 = vrot.slane %v6881_v50, 5  ;;  %v5279_v36 = vrot.slane %v5263_v26, 9  ;;  %v5268_v19 = vld [vmem:[%s6164_s25 + $0x84] sm:$0xe] }
  0xc1   : > { %v5293_v5 = vcombine.low %v7275_v18, %v7287_v11  ;;  %v7297_v41 = vsel %vm6494_vm7, %v5277_v56, %v2833_v33  ;;  %v2835_v60 = vrot.slane %v2833_v33, 4  ;;  %v2847_v25 = vrot.slane %v6847_v1, 5 }
  0xc2   : > { %5844 = vmatmul.mubr.msk.bf16.gmra.mxu0 %vm695_vm3, %v5235_v17  ;;  %v7304_v61 = vsel %vm6494_vm7, %v5278_v59, %v2840_v58  ;;  %v2842_v50 = vrot.slane %v2840_v58, 4  ;;  %v2850_v17 = vrot.slane %v6895_v8, 5  ;;  %v5280_v63 = vrot.slane %v5264_v6, 9  ;;  %v8779_v59 = vld [vmem:[#allocation4_spill] sm:$0xff] }
  0xc3   : > { %5847 = vmatprep.mubr.msk.bf16.mxu0 %vm695_vm3, %v5236_v51  ;;  %v7309_v10 = vsel %vm6494_vm7, %v2835_v60, %v2836_v2  ;;  %v7313_v3 = vsel %vm6494_vm7, %v5279_v36, %v2847_v25  ;;  %v2849_v1 = vrot.slane %v2847_v25, 4  ;;  %v2854_v20 = vrot.slane %v6890_v40, 5  ;;  %v5266_v51 = vld [vmem:[%s6164_s25 + $0x6c] sm:$0xe]  ;;  %v6059_v58 = vld [vmem:[%s6164_s25 + $0x90] sm:$0xff]  }
  0xc4   : > { %v5294_v48 = vcombine.low %v7297_v41, %v7309_v10  ;;  %v7322_v8 = vsel %vm6494_vm7, %v2842_v50, %v2843_v23  ;;  %v2857_v62 = vrot.slane %v6912_v35, 5  ;;  %v5281_v38 = vrot.slane %v5265_v13, 9  ;;  %v8780_v36 = vld [vmem:[#allocation3_spill] sm:$0xff]  ;;  %v5269_v60 = vld [vmem:[%s6164_s25 + $0x90] sm:$0xe]  ;;  %v8781_v50 = vld [vmem:[#allocation6_spill] sm:$0xff] }
  0xc5   : > { %5810 = vmatmul.mubr.msk.bf16.gmra.mxu1 %vm695_vm3, %v6057_v57  ;;  %v5295_v40 = vcombine.low %v7304_v61, %v7322_v8  ;;  %v7331_v7 = vsel %vm6494_vm7, %v2849_v1, %v2850_v17  ;;  %v7335_v24 = vsel %vm6494_vm7, %v5280_v63, %v2854_v20  ;;  %v2856_v14 = vrot.slane %v2854_v20, 4 }
  0xc6   : > { %5813 = vmatprep.mubr.msk.bf16.mxu1 %vm695_vm3, %v6058_v53  ;;  %v5296_v35 = vcombine.low %v7313_v3, %v7331_v7  ;;  %v2861_v29 = vrot.slane %v6925_v28, 5  ;;  %v2864_v56 = vrot.slane %v6947_v30, 5  ;;  %v5282_v26 = vrot.slane %v5266_v51, 9  ;;  %v8782_v51 = vld [vmem:[#allocation5_spill] sm:$0xff]  ;;  %v5400_v3 = vld [vmem:[%s6164_s25 + $0x48] sm:$0xf] }
  0xc7   : > { %v7344_v33 = vsel %vm6494_vm7, %v2856_v14, %v2857_v62  ;;  %v2868_v2 = vrot.slane %v6944_v27, 5  ;;  %v2871_v6 = vrot.slane %v8779_v59, 5  ;;  %v5283_v57 = vrot.slane %v5267_v55, 9  ;;  %v6060_v27 = vld [vmem:[%s6164_s25 + $0x9c] sm:$0xff]   ;;  %v8790_v55 = vld [vmem:[#allocation15_spill] sm:$0xff] }
  0xc8   : > { %v5297_v23 = vcombine.low %v7335_v24, %v7344_v33  ;;  %v7353_v28 = vsel %vm6494_vm7, %v5281_v38, %v2861_v29  ;;  %v2863_v30 = vrot.slane %v2861_v29, 4  ;;  %v2875_v53 = vrot.slane %v8780_v36, 5  ;;  %v5270_v38 = vld [vmem:[%s6164_s25 + $0x9c] sm:$0xe]  ;;  %v8785_v36 = vld [vmem:[#allocation12_spill] sm:$0xff] }
  0xc9   : > { %v7362_v25 = vsel %vm6494_vm7, %v5282_v26, %v2868_v2  ;;  %v2870_v13 = vrot.slane %v2868_v2, 4  ;;  %v2878_v17 = vrot.slane %v8781_v50, 5  ;;  %v5284_v63 = vrot.slane %v5268_v19, 9  ;;  %v5271_v26 = vld [vmem:[%s6164_s25 + $0xa8] sm:$0xe] }
  0xca   : > { %5848 = vmatmul.mubr.msk.bf16.gmra.mxu0 %vm695_vm3, %v7245_v43  ;;  %v7369_v1 = vsel %vm6494_vm7, %v2863_v30, %v2864_v56  ;;  %v7373_v43 = vsel %vm6494_vm7, %v5283_v57, %v2875_v53  ;;  %v2877_v20 = vrot.slane %v2875_v53, 4  ;;  %v2882_v62 = vrot.slane %v8782_v51, 5  ;;  %v5273_v57 = vld [vmem:[%s6164_s25 + $0xc0] sm:$0xe]  ;;  %v6061_v19 = vld [vmem:[%s6164_s25 + $0xa8] sm:$0xff]  }
  0xcb   : > { %5851 = vmatprep.mubr.msk.bf16.mxu0 %vm695_vm3, %v7252_v54  ;;  %v7381_v14 = vsel %vm6494_vm7, %v2870_v13, %v2871_v6  ;;  %v8783_v54 = vld [vmem:[#allocation8_spill] sm:$0xff]  ;;  %v5285_v56 = vrot.slane %v5269_v60, 9  ;;  %v2892_v53 = vrot.slane %v8785_v36, 5  ;;  %v5286_v60 = vrot.slane %v5270_v38, 9  ;;  %v8788_v38 = vld [vmem:[#allocation13_spill] sm:$0xff] }
  0xcc   : > { %v2885_v29 = vrot.slane %v8783_v54, 5  ;;  %v7390_v2 = vsel %vm6494_vm7, %v2877_v20, %v2878_v17  ;;  %v7394_v59 = vsel %vm6494_vm7, %v5284_v63, %v2882_v62  ;;  %v2884_v6 = vrot.slane %v2882_v62, 4  ;;  %v5272_v13 = vld [vmem:[%s6164_s25 + $0xb4] sm:$0xe]  ;;  %v8786_v17 = vld [vmem:[#allocation10_spill] sm:$0xff] }
  0xcd   : > { %5814 = vmatmul.mubr.msk.bf16.gmra.mxu1 %vm695_vm3, %v6059_v58  ;;  %v8784_v58 = vld [vmem:[#allocation7_spill] sm:$0xff]  ;;  %v2896_v63 = vrot.slane %v8786_v17, 5  ;;  %v8787_v20 = vld [vmem:[#allocation2_spill] sm:$0xff]  ;;  %v5287_v62 = vrot.slane %v5271_v26, 9  ;;  %v2903_v36 = vrot.slane %v8788_v38, 5  ;;  %v5288_v26 = vrot.slane %v5272_v13, 9 }
  0xce   : > { %5817 = vmatprep.mubr.msk.bf16.mxu1 %vm695_vm3, %v6060_v27  ;;  %v2889_v30 = vrot.slane %v8784_v58, 5  ;;  %v7404_v50 = vsel %vm6494_vm7, %v2884_v6, %v2885_v29  ;;  %v2899_v51 = vrot.slane %v8787_v20, 5  ;;  %v8789_v17 = vld [vmem:[#allocation14_spill] sm:$0xff]  ;;  %v6062_v27 = vld [vmem:[%s6164_s25 + $0xb4] sm:$0xff]   ;;  %v2816_v39 = vsel %vm6494_vm7, %v7271_v44, %v2815_v34  ;;  %v7621_v7 = vld [vmem:[%s6164_s25 + $0x4c] sm:$0xf] }
  0xcf   : > { %v7419_v29 = vsel %vm6494_vm7, %v5286_v60, %v2896_v63  ;;  %v2898_v6 = vrot.slane %v2896_v63, 4  ;;  %v2906_v20 = vrot.slane %v8789_v17, 5  ;;  %v2905_v38 = vrot.slane %v2903_v36, 4  ;;  %v6081_v44 = vld [vmem:[%s6164_s25 + $0x20] sm:$0x1] }
  0xd0   : > { %v7412_v54 = vsel %vm6494_vm7, %v5285_v56, %v2889_v30  ;;  %v2891_v58 = vrot.slane %v2889_v30, 4  ;;  %v7431_v30 = vsel %vm6494_vm7, %v5287_v62, %v2903_v36  ;;  %v2910_v60 = vrot.slane %v8790_v55, 5 }
  0xd1   : > { %v5289_v63 = vrot.slane %v5273_v57, 9  ;;  %v7447_v55 = vsel %vm6494_vm7, %v2905_v38, %v2906_v20  ;;  %v2917_v57 = vrot.slane %v7166_v22, 5  ;;  %v2813_v22 = vsel %vm6494_vm7, %v5274_v37, %v2812_v46  ;;  %v6066_v38 = vld [vmem:[%s6164_s25 + $0x30] sm:$0xff]  }
  0xd2   : > { %5852 = vmatmul.mubr.msk.bf16.gmra.mxu0 %vm695_vm3, %v7254_v42  ;;  %v7427_v56 = vsel %vm6494_vm7, %v2891_v58, %v2892_v53  ;;  %v7440_v42 = vsel %vm6494_vm7, %v2898_v6, %v2899_v51  ;;  %v2913_v53 = vrot.slane %v7157_v4, 5  ;;  %v2912_v58 = vrot.slane %v2910_v60, 4 }
  0xd3   : > { %5855 = vmatprep.mubr.msk.bf16.mxu0 %vm695_vm3, %v7260_v15  ;;  %v7451_v15 = vsel %vm6494_vm7, %v5288_v26, %v2910_v60  ;;  %v2920_v51 = vrot.slane %v7178_v45, 5  ;;  %v5259_v45 = vld [vmem:[%s6164_s25 + $0x18] sm:$0xe]  ;;  %v7491_v9 = vsel %vm6494_vm7, %v5289_v63, %v2917_v57  ;;  %v2919_v46 = vrot.slane %v2917_v57, 4  ;;  %v6065_v26 = vld [vmem:[%s6164_s25 + $0x24] sm:$0xff]  }
  0xd4   : > { %v7479_v32 = vsel %vm6494_vm7, %v2912_v58, %v2913_v53  ;;  %v5275_v37 = vrot.slane %v5259_v45, 9  ;;  %v5291_v34 = vcombine.low %v2813_v22, %v2816_v39  ;;  %v8791_v60 = vld [vmem:[#allocation9_spill] sm:$0xff] }
  0xd5   : > { %5818 = vmatmul.mubr.msk.bf16.gmra.mxu1 %vm695_vm3, %v6061_v19  ;;  %v5241_v19 = vcombine.low %v2441_v16, %v2451_v21  ;;  %v7496_v47 = vsel %vm6494_vm7, %v2919_v46, %v2920_v51  ;;  %v2822_v21 = vrot.slane %v6081_v44, 5  ;;  %v4579_v53 = vsel %vm744_vm0, %v8791_v60, 0  ;;  %v5388_v63 = vld [vmem:[%s6164_s25 + $0x18] sm:$0xf]  ;;  %v5389_v57 = vld [vmem:[%s6164_s25 + $0x1c] sm:$0xf] }
  0xd6   : > { %5821 = vmatprep.mubr.msk.bf16.mxu1 %vm695_vm3, %v6062_v27  ;;  %v6080_v27 = vld [vmem:[%s6164_s25 + $0x1c] sm:$0xf]  ;;  %v5391_v51 = vld [vmem:[%s6164_s25 + $0x24] sm:$0xf]  ;;  %v3627_v45 = vshrl.u32 %v5388_v63, 16  ;;  %v3636_v39 = vshll.u32 %v5389_v57, 16 }
  0xd7   : > { %v2819_v36 = vrot.slane %v6080_v27, 5  ;;  %v3630_v27 = vshll.u32 %v5388_v63, 16  ;;  %v3651_v46 = vshrl.u32 %v5391_v51, 16  ;;  %v6068_v44 = vld [vmem:[%s6164_s25 + $0x48] sm:$0xff]   ;;  %v5469_v60 = vld [vmem:[%s6164_s25 + $0x18] sm:$0xe] }
  0xd8   : > { %v7537_v63 = vld [vmem:[%s6164_s25 + $0x2c] sm:$0x1] }
  0xd9   : > { %v2821_v16 = vrot.slane %v2819_v36, 4  ;;  %v2820_v17 = vsel %vm6494_vm7, %v5275_v37, %v2819_v36  ;;  %v7521_v36 = vld [vmem:[%s6164_s25 + $0x28] sm:$0xf]  ;;  %v6067_v37 = vld [vmem:[%s6164_s25 + $0x3c] sm:$0xff]   ;;  %v3653_v18 = vrot.slane %v3651_v46, 4 }
  0xda   : > { %5856 = vmatmul.mubr.msk.bf16.gmra.mxu0 %vm695_vm3, %v5241_v19  ;;  %v8792_v19 = vld [vmem:[#allocation11_spill] sm:$0xff] }
  0xdb   : > { %5895 = vmatprep.mubr.msk.bf16.mxu0 %vm695_vm3, %v6064_v49  ;;  %v2823_v20 = vsel %vm6494_vm7, %v2821_v16, %v2822_v21  ;;  %v4109_v22 = vsel %vm744_vm0, %v8792_v19, 0  ;;  %v3640_v49 = vshrl.u32 %v5389_v57, 16  ;;  %v3664_v16 = vshrl.u32 %v7521_v36, 16  ;;  %v5390_v21 = vld [vmem:[%s6164_s25 + $0x20] sm:$0x1] }
  0xdc   : > { %v5292_v58 = vcombine.low %v2820_v17, %v2823_v20  ;;  %v3629_v17 = vrot.slane %v3627_v45, 4  ;;  %v3632_v20 = vrot.slane %v3630_v27, 5  ;;  %v5394_v19 = vld [vmem:[%s6164_s25 + $0x30] sm:$0xf]  ;;  %v3646_v45 = vshll.u32 %v5390_v21, 16 }
  0xdd   : > { %5822 = vmatmul.mubr.msk.bf16.gmra.mxu1 %vm695_vm3, %v6063_v52  ;;  %v3654_v52 = vshll.u32 %v5391_v51, 16  ;;  %v3666_v51 = vrot.slane %v3664_v16, 4  ;;  %v5485_v27 = vrot.slane %v5469_v60, 9  ;;  %v4373_v46 = vrot.slane %v5390_v21, 5  ;;  %v5470_v16 = vld [vmem:[%s6164_s25 + $0x24] sm:$0xe] }
  0xde   : > { %5861 = vmatprep.mubr.msk.bf16.mxu1 %vm695_vm3, %v5291_v34  ;;  %v3660_v34 = vshll.u32 %v7521_v36, 16  ;;  %v6069_v21 = vld [vmem:[%s6164_s25 + $0x54] sm:$0xff]   ;;  %v3678_v10 = vshll.u32 %v5394_v19, 16  ;;  %v6070_v60 = vld [vmem:[%s6164_s25 + $0x60] sm:$0xff]  }
  0xdf   : > { %v3656_v11 = vrot.slane %v3654_v52, 5  ;;  %v3670_v52 = vshll.u32 %v7537_v63, 16 }
  0xe2   : > { %5896 = vmatmul.mubr.msk.bf16.vlgmr.msra.gmra.mxu0 %vm695_vm3, %v6065_v26  ;;  %v7533_v26 = vrot.slane %v3636_v39, 5 }
  0xe3   : > { %5962 = vmatpush3.bf16.msra.mxu0 %v4579_v53  ;;  %5899 = vmatprep.mubr.msk.bf16.mxu0 %vm695_vm3, %v6066_v38  ;;  %v3642_v38 = vrot.slane %v3640_v49, 4  ;;  %v4370_v53 = vrot.slane %v5389_v57, 5  ;;  %v7547_v57 = vld [vmem:[%s6164_s25 + $0x34] sm:$0xf] }
  0xe5   : > { %5862 = vmatmul.mubr.msk.bf16.vlgmr.msra.gmra.mxu1 %vm695_vm3, %v5292_v58  ;;  %v7542_v58 = vrot.slane %v3660_v34, 5  ;;  %v3643_v39 = vor.u32 %v3642_v38, %v7533_v26  ;;  %v4372_v49 = vrot.slane %v4370_v53, 4  ;;  %v3657_v34 = vor.u32 %v3656_v11, %v3653_v18 }
  0xe6   : > { %5928 = vmatpush3.bf16.msra.mxu1 %v4109_v22  ;;  %5865 = vmatprep.mubr.msk.bf16.mxu1 %vm695_vm3, %v5293_v5  ;;  %v7540_v5 = vpop.f32.mrf.mxu0  ;;  %v3633_v22 = vor.u32 %v3632_v20, %v3629_v17  ;;  %v3675_v17 = vshrl.u32 %v5394_v19, 16  ;;  %v3688_v38 = vshrl.u32 %v7547_v57, 16  ;;  %v7572_v61 = vsel %vm6494_vm7, %v5485_v27, %v4370_v53  ;;  %v5397_v19 = vld [vmem:[%s6164_s25 + $0x3c] sm:$0xf] }
  0xe7   : > { %v3667_v41 = vor.u32 %v3666_v51, %v7542_v58  ;;  %v3644_v8 = vrot.slane %v3643_v39, 4  ;;  %v3672_v11 = vrot.slane %v3670_v52, 5  ;;  %v5486_v51 = vrot.slane %v5470_v16, 9  ;;  %v7586_v39 = vld [vmem:[%s6164_s25 + $0x38] sm:$0x1] }
  0xe8   : > { %v7564_v20 = vpop.f32.mrf.mxu0  ;;  %v3634_v18 = vrot.slane %v3633_v22, 4  ;;  %v3658_v12 = vrot.slane %v3657_v34, 4  ;;  %v4380_v22 = vrot.slane %v7537_v63, 5  ;;  %v3690_v52 = vrot.slane %v3688_v38, 4 }
  0xe9   : > { %v3668_v27 = vrot.slane %v3667_v41, 4  ;;  %v3699_v34 = vshrl.u32 %v5397_v19, 16  ;;  %v3702_v16 = vshll.u32 %v5397_v19, 16  ;;  %v7599_v41 = vld [vmem:[%s6164_s25 + $0x40] sm:$0xf] }
  0xea   : > { %5900 = vmatmul.mubr.msk.bf16.gmra.mxu0 %vm695_vm3, %v6067_v37  ;;  %v7583_v53 = vpop.f32.mrf.mxu0  ;;  %v3639_v63 = vsel %vm6208_vm4, %v3634_v18, %v7533_v26  ;;  %v3663_v26 = vsel %vm6208_vm4, %v3658_v12, %v7542_v58  ;;  %v5471_v18 = vld [vmem:[%s6164_s25 + $0x30] sm:$0xe]  ;;  %v3708_v24 = vshll.u32 %v7599_v41, 16  ;;  %v3712_v33 = vshrl.u32 %v7599_v41, 16 }
  0xeb   : > { %5903 = vmatprep.mubr.msk.bf16.mxu0 %vm695_vm3, %v6068_v44  ;;  %v7555_v37 = vpop.f32.mrf.mxu1  ;;  %v4377_v44 = vrot.slane %v7521_v36, 5  ;;  %v3648_v36 = vrot.slane %v3646_v45, 5  ;;  %v3677_v45 = vrot.slane %v3675_v17, 4  ;;  %v3673_v58 = vsel %vm6208_vm4, %v3668_v27, %v3672_v11 }
  0xec   : > { %8793 = vst [vmem:[#allocation4_spill] sm:$0xff] %v7555_v37  ;;  %v7628_v12 = vpop.f32.mrf.mxu0  ;;  %v3704_v19 = vrot.slane %v3702_v16, 5  ;;  %v3736_v11 = vshrl.u32 %v7621_v7, 16 }
  0xed   : > { %5866 = vmatmul.mubr.msk.bf16.gmra.mxu1 %vm695_vm3, %v5294_v48  ;;  %v3684_v48 = vshll.u32 %v7547_v57, 16  ;;  %v7579_v6 = vpop.f32.mrf.mxu1  ;;  %v4379_v4 = vrot.slane %v4377_v44, 4  ;;  %v3649_v17 = vsel %vm6208_vm4, %v3644_v8, %v3648_v36  ;;  %v4384_v36 = vrot.slane %v7547_v57, 5  ;;  %v6072_v8 = vld [vmem:[%s6164_s25 + $0x78] sm:$0xff]  }
  0xee   : > { %5869 = vmatprep.mubr.msk.bf16.mxu1 %vm695_vm3, %v5295_v40  ;;  %v7576_v40 = vsel %vm6494_vm7, %v4372_v49, %v4373_v46  ;;  %8794 = vst [vmem:[#allocation3_spill] sm:$0xff] %v7579_v6  ;;  %v3680_v49 = vrot.slane %v3678_v10, 5  ;;  %v7642_v27 = vcombine.low %v3639_v63, %v3649_v17  ;;  %v7644_v57 = vcombine.low %v3663_v26, %v3673_v58  ;;  %v7658_v17 = vld [vmem:[%s6164_s25 + $0x58] sm:$0xf]  ;;  %v7664_v58 = vld [vmem:[%s6164_s25 + $0x44] sm:$0x1] }
  0xef   : > { %v7588_v46 = vrot.slane %v3684_v48, 5  ;;  %v7605_v10 = vpop.f32.mrf.mxu1  ;;  %v7612_v48 = vsel %vm6494_vm7, %v5486_v51, %v4377_v44  ;;  %v7616_v38 = vsel %vm6494_vm7, %v4379_v4, %v4380_v22  ;;  %v3701_v51 = vrot.slane %v3699_v34, 4  ;;  %v5403_v34 = vld [vmem:[%s6164_s25 + $0x54] sm:$0xf] }
  0xf0   : > { %8795 = vst [vmem:[#allocation6_spill] sm:$0xff] %v7605_v10  ;;  %v3681_v44 = vor.u32 %v3680_v49, %v3677_v45  ;;  %v3726_v22 = vshll.u32 %v5400_v3, 16  ;;  %v4386_v13 = vrot.slane %v4384_v36, 4  ;;  %v4387_v63 = vrot.slane %v7586_v39, 5  ;;  %v5472_v49 = vld [vmem:[%s6164_s25 + $0x3c] sm:$0xe] }
  0xf1   : > { %v3691_v4 = vor.u32 %v3690_v52, %v7588_v46  ;;  %v7640_v45 = vpop.f32.mrf.mxu1  ;;  %v5487_v52 = vrot.slane %v5471_v18, 9  ;;  %v3705_v18 = vor.u32 %v3704_v19, %v3701_v51  ;;  %v8798_v6 = vcombine.low %v7353_v28, %v7369_v1 }
  0xf2   : > { %5904 = vmatmul.mubr.msk.bf16.gmra.mxu0 %vm695_vm3, %v6069_v21  ;;  %v3732_v21 = vshll.u32 %v7621_v7, 16  ;;  %8796 = vst [vmem:[#allocation5_spill] sm:$0xff] %v7640_v45  ;;  %v3728_v45 = vrot.slane %v3726_v22, 5  ;;  %v3747_v51 = vshrl.u32 %v5403_v34, 16  ;;  %v3750_v19 = vshll.u32 %v5403_v34, 16 }
  0xf3   : > { %5907 = vmatprep.mubr.msk.bf16.mxu0 %vm695_vm3, %v6070_v60  ;;  %v3694_v60 = vshll.u32 %v7586_v39, 16  ;;  %v7661_v26 = vrot.slane %v3691_v4, 4  ;;  %v3738_v39 = vrot.slane %v3736_v11, 4  ;;  %v7699_v22 = vsel %vm6494_vm7, %v4386_v13, %v4387_v63 }
  0xf4   : > { %v7669_v10 = vrot.slane %v3732_v21, 5  ;;  %v8800_v21 = vcombine.low %v7362_v25, %v7381_v14  ;;  %v4391_v25 = vrot.slane %v7599_v41, 5  ;;  %v6074_v14 = vld [vmem:[%s6164_s25 + $0x90] sm:$0xff]   ;;  %v5488_v1 = vrot.slane %v5472_v49, 9  ;;  %v5406_v41 = vld [vmem:[%s6164_s25 + $0x60] sm:$0xf] }
  0xf5   : > { %5870 = vmatmul.mubr.msk.bf16.gmra.mxu1 %vm695_vm3, %v5296_v35  ;;  %v6071_v35 = vld [vmem:[%s6164_s25 + $0x6c] sm:$0xff]   ;;  %v7654_v62 = vrot.slane %v3694_v60, 5  ;;  %v3749_v37 = vrot.slane %v3747_v51, 4 }
  0xf6   : > { %5873 = vmatprep.mubr.msk.bf16.mxu1 %vm695_vm3, %v5297_v23  ;;  %v3723_v23 = vshrl.u32 %v5400_v3, 16  ;;  %v7652_v3 = vrot.slane %v3681_v44, 4  ;;  %v3714_v44 = vrot.slane %v3712_v33, 4  ;;  %v3760_v33 = vshrl.u32 %v7658_v17, 16 }
  0xf7   : > { %v7650_v16 = vpop.f32.mrf.mxu0  ;;  %v3739_v13 = vor.u32 %v3738_v39, %v7669_v10  ;;  %v4398_v39 = vrot.slane %v7621_v7, 5  ;;  %v8804_v7 = vcombine.low %v7373_v43, %v7390_v2  ;;  %v8806_v43 = vcombine.low %v7394_v59, %v7404_v50  ;;  %v6075_v2 = vld [vmem:[%s6164_s25 + $0x9c] sm:$0xff]  }
  0xf8   : > { %8797 = vst [vmem:[#allocation8_spill] sm:$0xff] %v7650_v16  ;;  %v3725_v60 = vrot.slane %v3723_v23, 4  ;;  %v6073_v23 = vld [vmem:[%s6164_s25 + $0x84] sm:$0xff]   ;;  %v7726_v16 = vld [vmem:[%s6164_s25 + $0x5c] sm:$0x1]  ;;  %v4405_v59 = vrot.slane %v7658_v17, 5 }
  0xf9   : > { %v7687_v28 = vpop.f32.mrf.mxu0 }
  0xfa   : > { %5908 = vmatmul.mubr.msk.bf16.gmra.mxu0 %vm695_vm3, %v6071_v35  ;;  %v7666_v35 = vrot.slane %v3708_v24, 5  ;;  %v3756_v24 = vshll.u32 %v7658_v17, 16  ;;  %8801 = vst [vmem:[#allocation12_spill] sm:$0xff] %v7687_v28  ;;  %v3752_v28 = vrot.slane %v3750_v19, 5 }
  0xfb   : > { %5911 = vmatprep.mubr.msk.bf16.mxu0 %vm695_vm3, %v6072_v8  ;;  %v7675_v4 = vpop.f32.mrf.mxu1  ;;  %v7678_v8 = vld [vmem:[%s6164_s25 + $0x50] sm:$0x1]  ;;  %v7719_v49 = vpop.f32.mrf.mxu0 }
  0xfc   : > { %8799 = vst [vmem:[#allocation7_spill] sm:$0xff] %v7675_v4  ;;  %v3715_v34 = vor.u32 %v3714_v44, %v7666_v35  ;;  %v7709_v4 = vrot.slane %v3705_v18, 4  ;;  %v7716_v11 = vrot.slane %v3756_v24, 5  ;;  %v3762_v44 = vrot.slane %v3760_v33, 4  ;;  %8803 = vst [vmem:[#allocation2_spill] sm:$0xff] %v7719_v49 }
  0xfd   : > { %5874 = vmatmul.mubr.msk.bf16.gmra.mxu1 %vm695_vm3, %v8798_v6  ;;  %v7695_v6 = vsel %vm6494_vm7, %v5487_v52, %v4384_v36  ;;  %v3729_v36 = vor.u32 %v3728_v45, %v3725_v60  ;;  %v3742_v52 = vshll.u32 %v7678_v8, 16  ;;  %v7714_v63 = vpop.f32.mrf.mxu1  ;;  %v4393_v18 = vrot.slane %v4391_v25, 4  ;;  %v5473_v24 = vld [vmem:[%s6164_s25 + $0x48] sm:$0xe] }
  0xfe   : > { %5877 = vmatprep.mubr.msk.bf16.mxu1 %vm695_vm3, %v8800_v21  ;;  %v3718_v21 = vshll.u32 %v7664_v58, 16  ;;  %8802 = vst [vmem:[#allocation10_spill] sm:$0xff] %v7714_v63  ;;  %v4394_v60 = vrot.slane %v7664_v58, 5  ;;  %v3716_v51 = vrot.slane %v3715_v34, 4  ;;  %v3771_v33 = vshrl.u32 %v5406_v41, 16 }
  0xff   : > { %v7732_v63 = vsel %vm6494_vm7, %v5488_v1, %v4391_v25  ;;  %v3730_v45 = vrot.slane %v3729_v36, 4  ;;  %v3740_v49 = vrot.slane %v3739_v13, 4  ;;  %v3744_v58 = vrot.slane %v3742_v52, 5  ;;  %v7747_v36 = vld [vmem:[%s6164_s25 + $0x64] sm:$0xf]  ;;  %v7754_v13 = vpop.f32.mrf.mxu0 }
 0x100   : > { %v3720_v19 = vrot.slane %v3718_v21, 5  ;;  %v3711_v34 = vsel %vm6208_vm4, %v7709_v4, %v7666_v35  ;;  %v3753_v21 = vor.u32 %v3752_v28, %v3749_v37  ;;  %v3763_v1 = vor.u32 %v3762_v44, %v7716_v11  ;;  %8807 = vst [vmem:[#allocation14_spill] sm:$0xff] %v7754_v13  ;;  %v5474_v28 = vld [vmem:[%s6164_s25 + $0x54] sm:$0xe]  ;;  %v6079_v13 = vld [vmem:[%s6164_s25 + $0xcc] sm:$0xff]  }
 0x101   : > { %v3766_v25 = vshll.u32 %v7726_v16, 16  ;;  %v7758_v52 = vsel %vm6494_vm7, %v4393_v18, %v4394_v60  ;;  %v5489_v35 = vrot.slane %v5473_v24, 9  ;;  %v4400_v37 = vrot.slane %v4398_v39, 4 }
 0x102   : > { %5912 = vmatmul.mubr.msk.bf16.gmra.mxu0 %vm695_vm3, %v6073_v23  ;;  %v3774_v23 = vshll.u32 %v5406_v41, 16  ;;  %v4401_v4 = vrot.slane %v7678_v8, 5  ;;  %v6076_v41 = vld [vmem:[%s6164_s25 + $0xa8] sm:$0xff]   ;;  %v3721_v44 = vsel %vm6208_vm4, %v3716_v51, %v3720_v19  ;;  %v3773_v50 = vrot.slane %v3771_v33, 4 }
 0x103   : > { %5915 = vmatprep.mubr.msk.bf16.mxu0 %vm695_vm3, %v6074_v14  ;;  %v7738_v14 = vpop.f32.mrf.mxu1  ;;  %v3745_v18 = vsel %vm6208_vm4, %v3740_v49, %v3744_v58  ;;  %v3780_v60 = vshll.u32 %v7747_v36, 16  ;;  %v3784_v8 = vshrl.u32 %v7747_v36, 16  ;;  %v3764_v51 = vrot.slane %v3763_v1, 4  ;;  %v7776_v33 = vld [vmem:[%s6164_s25 + $0x68] sm:$0x1] }
 0x104   : > { %8805 = vst [vmem:[#allocation13_spill] sm:$0xff] %v7738_v14  ;;  %v3754_v14 = vrot.slane %v3753_v21, 4  ;;  %v3768_v17 = vrot.slane %v3766_v25, 5  ;;  %v5490_v19 = vrot.slane %v5474_v28, 9  ;;  %v8810_v49 = vsel %vm6208_vm4, %v7661_v26, %v7654_v62  ;;  %v5409_v25 = vld [vmem:[%s6164_s25 + $0x6c] sm:$0xf] }
 0x105   : > { %5878 = vmatmul.mubr.msk.bf16.gmra.mxu1 %vm695_vm3, %v8804_v7  ;;  %v3776_v7 = vrot.slane %v3774_v23, 5  ;;  %v7773_v24 = vpop.f32.mrf.mxu1  ;;  %v7797_v21 = vsel %vm6494_vm7, %v5489_v35, %v4398_v39  ;;  %v7801_v1 = vsel %vm6494_vm7, %v4400_v37, %v4401_v4  ;;  %v7804_v62 = vcombine.low %v3711_v34, %v3721_v44  ;;  %v5475_v4 = vld [vmem:[%s6164_s25 + $0x60] sm:$0xe]  ;;  %v5415_v44 = vld [vmem:[%s6164_s25 + $0x84] sm:$0xf] }
 0x106   : > { %5881 = vmatprep.mubr.msk.bf16.mxu1 %vm695_vm3, %v8806_v43  ;;  %v3735_v43 = vsel %vm6208_vm4, %v3730_v45, %v7669_v10  ;;  %8808 = vst [vmem:[#allocation15_spill] sm:$0xff] %v7773_v24  ;;  %v8811_v45 = vsel %vm6208_vm4, %v7652_v3, %v7588_v46  ;;  %v4407_v46 = vrot.slane %v4405_v59, 4  ;;  %v4408_v3 = vrot.slane %v7726_v16, 5 }
 0x107   : > { %v7791_v23 = vcombine.low %v8811_v45, %v8810_v49  ;;  %8812 = vst [vmem:[#allocation11_spill] sm:$0xff] %v7804_v62  ;;  %v3777_v26 = vor.u32 %v3776_v7, %v3773_v50  ;;  %v7811_v28 = vcombine.low %v3735_v43, %v3745_v18  ;;  %v7813_v39 = vrot.slane %v3780_v60, 5 }
 0x108   : > { %v7779_v10 = vpop.f32.mrf.mxu0  ;;  %v7815_v35 = vrot.slane %v3784_v8, 4  ;;  %v3790_v37 = vshll.u32 %v7776_v33, 16  ;;  %v8814_v34 = vcombine.low %v7412_v54, %v7427_v56  ;;  %v3759_v50 = vsel %vm6208_vm4, %v3754_v14, %v7716_v11  ;;  %v5412_v54 = vld [vmem:[%s6164_s25 + $0x78] sm:$0xf] }
 0x109   : > { %8809 = vst [vmem:[#allocation9_spill] sm:$0xff] %v7779_v10  ;;  %8813 = vst [vmem:[#allocation16_spill] sm:$0xff] %v7811_v28  ;;  %v3769_v7 = vsel %vm6208_vm4, %v3764_v51, %v3768_v17  ;;  %v7835_v43 = vsel %vm6494_vm7, %v5490_v19, %v4405_v59  ;;  %v8816_v56 = vcombine.low %v7419_v29, %v7440_v42  ;;  %v3795_v60 = vshrl.u32 %v5409_v25, 16  ;;  %v7847_v51 = vld [vmem:[%s6164_s25 + $0x7c] sm:$0xf]  ;;  %v6078_v59 = vld [vmem:[%s6164_s25 + $0xc0] sm:$0xff]  }
 0x10a   : > { %5916 = vmatmul.mubr.msk.bf16.gmra.mxu0 %vm695_vm3, %v6075_v2  ;;  %v7809_v2 = vld [vmem:[%s6164_s25 + $0x70] sm:$0xf]  ;;  %v7842_v18 = vpop.f32.mrf.mxu0  ;;  %v3798_v8 = vshll.u32 %v5409_v25, 16  ;;  %v7852_v17 = vsel %vm6494_vm7, %v4407_v46, %v4408_v3  ;;  %v7854_v29 = vrot.slane %v3777_v26, 4  ;;  %v5491_v42 = vrot.slane %v5475_v4, 9 }
 0x10b   : > { %5919 = vmatprep.mubr.msk.bf16.mxu0 %vm695_vm3, %v6076_v41  ;;  %v6077_v41 = vld [vmem:[%s6164_s25 + $0xb4] sm:$0xff]   ;;  %8817 = vst [vmem:[#allocation18_spill] sm:$0xff] %v7842_v18  ;;  %v3804_v11 = vshll.u32 %v7809_v2, 16  ;;  %v3808_v14 = vshrl.u32 %v7809_v2, 16  ;;  %v4412_v19 = vrot.slane %v7747_v36, 5  ;;  %v7857_v49 = vcombine.low %v3759_v50, %v3769_v7 }
 0x10c   : > { %v3787_v45 = vor.u32 %v7815_v35, %v7813_v39  ;;  %v7861_v25 = vrot.slane %v3790_v37, 5  ;;  %v3819_v46 = vshrl.u32 %v5412_v54, 16  ;;  %v3822_v3 = vshll.u32 %v5412_v54, 16  ;;  %v7873_v4 = vld [vmem:[%s6164_s25 + $0x88] sm:$0xf]  ;;  %v7876_v35 = vpop.f32.mrf.mxu0 }
 0x10d   : > { %5882 = vmatmul.mubr.msk.bf16.gmra.mxu1 %vm695_vm3, %v8814_v34  ;;  %v7823_v16 = vpop.f32.mrf.mxu1  ;;  %8818 = vst [vmem:[#allocation19_spill] sm:$0xff] %v7857_v49  ;;  %v4415_v34 = vrot.slane %v7776_v33, 5  ;;  %v3828_v36 = vshll.u32 %v7847_v51, 16  ;;  %v3832_v26 = vshrl.u32 %v7847_v51, 16  ;;  %8820 = vst [vmem:[#allocation21_spill] sm:$0xff] %v7876_v35  ;;  %v3797_v33 = vrot.slane %v3795_v60, 4 }
 0x10e   : > { %8815 = vst [vmem:[#allocation17_spill] sm:$0xff] %v7823_v16  ;;  %5885 = vmatprep.mubr.msk.bf16.mxu1 %vm695_vm3, %v8816_v56  ;;  %v7865_v56 = vld [vmem:[%s6164_s25 + $0x74] sm:$0x1]  ;;  %v3800_v37 = vrot.slane %v3798_v8, 5  ;;  %v7878_v50 = vrot.slane %v3804_v11, 5  ;;  %v3810_v7 = vrot.slane %v3808_v14, 4  ;;  %v8821_v54 = vcombine.low %v7431_v30, %v7447_v55  ;;  %v7906_v49 = vpop.f32.mrf.mxu0 }
 0x10f   : > { %v7868_v58 = vpop.f32.mrf.mxu1  ;;  %v4414_v16 = vrot.slane %v4412_v19, 4  ;;  %v7891_v60 = vld [vmem:[%s6164_s25 + $0x80] sm:$0x1]  ;;  %v7894_v8 = vld [vmem:[%s6164_s25 + $0x6c] sm:$0xe]  ;;  %v3843_v11 = vshrl.u32 %v5415_v44, 16 }
 0x110   : > { %8819 = vst [vmem:[#allocation20_spill] sm:$0xff] %v7868_v58  ;;  %v7887_v58 = vsel %vm6494_vm7, %v5491_v42, %v4412_v19  ;;  %v3846_v14 = vshll.u32 %v5415_v44, 16  ;;  %v3856_v24 = vshrl.u32 %v7873_v4, 16  ;;  %v3821_v19 = vrot.slane %v3819_v46, 4  ;;  %8823 = vst [vmem:[#allocation23_spill] sm:$0xff] %v7906_v49 }
 0x111   : > { %v7902_v42 = vpop.f32.mrf.mxu1  ;;  %v3824_v35 = vrot.slane %v3822_v3, 5  ;;  %v7904_v18 = vrot.slane %v3828_v36, 5  ;;  %v3834_v10 = vrot.slane %v3832_v26, 4  ;;  %v8824_v44 = vcombine.low %v7451_v15, %v7479_v32  ;;  %v7925_v32 = vld [vmem:[%s6164_s25 + $0x8c] sm:$0x1] }
 0x112   : > { %5920 = vmatmul.mubr.msk.bf16.gmra.mxu0 %vm695_vm3, %v6077_v41  ;;  %v3814_v41 = vshll.u32 %v7865_v56, 16  ;;  %8822 = vst [vmem:[#allocation22_spill] sm:$0xff] %v7902_v42  ;;  %v3801_v30 = vor.u32 %v3800_v37, %v3797_v33  ;;  %v3811_v55 = vor.u32 %v3810_v7, %v7878_v50  ;;  %v3838_v46 = vshll.u32 %v7891_v60, 16  ;;  %v5477_v33 = vld [vmem:[%s6164_s25 + $0x78] sm:$0xe] }
 0x113   : > { %5923 = vmatprep.mubr.msk.bf16.mxu0 %vm695_vm3, %v6078_v59  ;;  %v3852_v59 = vshll.u32 %v7873_v4, 16  ;;  %v7916_v3 = vrot.slane %v3787_v45, 4  ;;  %v7920_v36 = vsel %vm6494_vm7, %v4414_v16, %v4415_v34  ;;  %v5492_v26 = vrot.slane %v7894_v8, 9  ;;  %v7930_v42 = vpop.f32.mrf.mxu1  ;;  %v5418_v8 = vld [vmem:[%s6164_s25 + $0x90] sm:$0xf] }
 0x114   : > { %v4426_v15 = vrot.slane %v7847_v51, 5  ;;  %v3845_v37 = vrot.slane %v3843_v11, 4  ;;  %v3848_v7 = vrot.slane %v3846_v14, 5  ;;  %8825 = vst [vmem:[#allocation24_spill] sm:$0xff] %v7930_v42  ;;  %v3816_v45 = vrot.slane %v3814_v41, 5 }
 0x115   : > { %5886 = vmatmul.mubr.msk.bf16.gmra.mxu1 %vm695_vm3, %v8821_v54  ;;  %v4419_v54 = vrot.slane %v7809_v2, 5  ;;  %v7928_v2 = vrot.slane %v3852_v59, 5  ;;  %v4422_v49 = vrot.slane %v7865_v56, 5  ;;  %v3825_v16 = vor.u32 %v3824_v35, %v3821_v19  ;;  %v7939_v59 = vld [vmem:[%s6164_s25 + $0x94] sm:$0xf] }
 0x116   : > { %5889 = vmatprep.mubr.msk.bf16.mxu1 %vm695_vm3, %v8824_v44  ;;  %v3858_v44 = vrot.slane %v3856_v24, 4  ;;  %v3835_v34 = vor.u32 %v3834_v10, %v7904_v18  ;;  %v3802_v51 = vrot.slane %v3801_v30, 4  ;;  %v3812_v11 = vrot.slane %v3811_v55, 4 }
 0x117   : > { %v4421_v62 = vrot.slane %v4419_v54, 4  ;;  %v3840_v14 = vrot.slane %v3838_v46, 5  ;;  %v8826_v24 = vcombine.low %v7572_v61, %v7576_v40  ;;  %v5493_v56 = vrot.slane %v5477_v33, 9 }
 0x118   : > { %v4428_v35 = vrot.slane %v4426_v15, 4  ;;  %v4429_v10 = vrot.slane %v7891_v60, 5  ;;  %v3862_v41 = vshll.u32 %v7925_v32, 16  ;;  %v3859_v30 = vor.u32 %v3858_v44, %v7928_v2 }
 0x119   : > { %v3867_v55 = vshrl.u32 %v5418_v8, 16  ;;  %v3870_v46 = vshll.u32 %v5418_v8, 16  ;;  %v8828_v61 = vcombine.low %v7491_v9, %v7496_v47  ;;  %v3826_v40 = vrot.slane %v3825_v16, 4 }
 0x11a   : > { %v7935_v28 = vpop.f32.mrf.mxu0  ;;  %5924 = vmatmul.mubr.msk.bf16.gmra.mxu0 %vm695_vm3, %v6079_v13  ;;  %v3849_v13 = vor.u32 %v3848_v7, %v3845_v37  ;;  %v3836_v33 = vrot.slane %v3835_v34, 4  ;;  %v3876_v60 = vshll.u32 %v7939_v59, 16  ;;  %v3793_v37 = vsel %vm6208_vm4, %v7916_v3, %v7861_v25 }
 0x11b   : > { %5963 = vmatprep.mubr.msk.bf16.mxu0 %vm695_vm3, %v8826_v24  ;;  %v3880_v24 = vshrl.u32 %v7939_v59, 16  ;;  %v3807_v9 = vsel %vm6208_vm4, %v3802_v51, %v7878_v50  ;;  %v7971_v47 = vsel %vm6494_vm7, %v5492_v26, %v4419_v54  ;;  %v7975_v7 = vsel %vm6494_vm7, %v4421_v62, %v4422_v49  ;;  %v5478_v54 = vld [vmem:[%s6164_s25 + $0x84] sm:$0xe]  ;;  %v8867_v31 = vld [vmem:[#allocation24_spill] sm:$0xff] }
 0x11c   : > { %v7947_v19 = vpop.f32.mrf.mxu0  ;;  %v7983_v25 = vsel %vm6494_vm7, %v5493_v56, %v4426_v15  ;;  %v7987_v50 = vsel %vm6494_vm7, %v4428_v35, %v4429_v10  ;;  %v3864_v3 = vrot.slane %v3862_v41, 5  ;;  %v3850_v62 = vrot.slane %v3849_v13, 4  ;;  %v8011_v13 = vld [vmem:[%s6164_s25 + $0x98] sm:$0x1] }
 0x11d   : > { %8827 = vst [vmem:[#allocation25_spill] sm:$0xff] %v7947_v19  ;;  %v7950_v42 = vpop.f32.mrf.mxu1  ;;  %5890 = vmatmul.mubr.msk.bf16.gmra.mxu1 %vm695_vm3, %v8828_v61  ;;  %v3860_v49 = vrot.slane %v3859_v30, 4  ;;  %v3869_v16 = vrot.slane %v3867_v55, 4  ;;  %v3872_v34 = vrot.slane %v3870_v46, 5  ;;  %v3831_v15 = vsel %vm6208_vm4, %v3826_v40, %v7904_v18  ;;  %v5421_v30 = vld [vmem:[%s6164_s25 + $0x9c] sm:$0xf] }
 0x11e   : > { %v7958_v19 = vpop.f32.mrf.mxu0  ;;  %5929 = vmatprep.mubr.msk.bf16.mxu1 %vm695_vm3, %v7642_v27  ;;  %v3817_v27 = vsel %vm6208_vm4, %v3812_v11, %v3816_v45  ;;  %v3841_v45 = vsel %vm6208_vm4, %v3836_v33, %v3840_v14  ;;  %v7999_v51 = vrot.slane %v3876_v60, 5  ;;  %v3882_v11 = vrot.slane %v3880_v24, 4  ;;  %v8042_v24 = vld [vmem:[%s6164_s25 + $0xa0] sm:$0xf] }
 0x11f   : > { %v7977_v44 = vpop.f32.mrf.mxu1  ;;  %v8829_v35 = vcombine.low %v7612_v48, %v7616_v38  ;;  %v5507_v10 = vcombine.low %v7835_v43, %v7852_v17  ;;  %v5508_v41 = vcombine.low %v7887_v58, %v7920_v36  ;;  %v5494_v18 = vrot.slane %v5478_v54, 9 }
 0x120   : > { %v7990_v26 = vpop.f32.mrf.mxu0  ;;  %v4433_v14 = vrot.slane %v7873_v4, 5  ;;  %v8830_v48 = vcombine.low %v7695_v6, %v7699_v22  ;;  %v8831_v38 = vsel %vm6208_vm4, %v7854_v29, %v7813_v39  ;;  %v8027_v61 = vcombine.low %v3807_v9, %v3817_v27  ;;  %v5479_v29 = vld [vmem:[%s6164_s25 + $0x90] sm:$0xe]  ;;  %v8838_v4 = vld [vmem:[#allocation2_spill] sm:$0xff] }
 0x121   : > { %v7992_v8 = vpop.f32.mrf.mxu1  ;;  %v8025_v46 = vcombine.low %v8831_v38, %v3793_v37  ;;  %v8033_v60 = vcombine.low %v3831_v15, %v3841_v45  ;;  %v3855_v6 = vsel %vm6208_vm4, %v3850_v62, %v7928_v2  ;;  %v3865_v22 = vsel %vm6208_vm4, %v3860_v49, %v3864_v3 }
 0x122   : > { %v5761_v56 = vpop.f32.mrf.mxu0  ;;  %5964 = vmatmul.mubr.msk.bf16.vlgmr.msra.gmra.mxu0 %vm695_vm3, %v8829_v35  ;;  %v3873_v39 = vor.u32 %v3872_v34, %v3869_v16  ;;  %v3883_v9 = vor.u32 %v3882_v11, %v7999_v51  ;;  %v3886_v27 = vshll.u32 %v8011_v13, 16  ;;  %v3891_v54 = vshrl.u32 %v5421_v30, 16 }
 0x123   : > { %v8014_v55 = vpop.f32.mrf.mxu1  ;;  %5967 = vmatprep.mubr.msk.bf16.mxu0 %vm695_vm3, %v8830_v48  ;;  %v3894_v15 = vshll.u32 %v5421_v30, 16  ;;  %v8053_v3 = vsel %vm6494_vm7, %v5494_v18, %v4433_v14  ;;  %v4435_v62 = vrot.slane %v4433_v14, 4  ;;  %v4436_v49 = vrot.slane %v7925_v32, 5 }
 0x124   : > { %v1499_v33 = vpop.f32.mrf.mxu0  ;;  %v5495_v16 = vrot.slane %v5479_v29, 9  ;;  %v4440_v34 = vrot.slane %v7939_v59, 5  ;;  %v3900_v11 = vshll.u32 %v8042_v24, 16  ;;  %v3904_v35 = vshrl.u32 %v8042_v24, 16 }
 0x125   : > { %v5727_v37 = vpop.f32.mrf.mxu1  ;;  %5930 = vmatmul.mubr.msk.bf16.vlgmr.msra.gmra.mxu1 %vm695_vm3, %v7644_v57  ;;  %v8062_v48 = vcombine.low %v3855_v6, %v3865_v22  ;;  %v8064_v18 = vrot.slane %v3873_v39, 4  ;;  %v3884_v32 = vrot.slane %v3883_v9, 4  ;;  %v3888_v38 = vrot.slane %v3886_v27, 5  ;;  %v5424_v22 = vld [vmem:[%s6164_s25 + $0xa8] sm:$0xf] }
 0x126   : > { %v1083_v45 = vadd.f32 %v5727_v37, %v7540_v5  ;;  %v5762_v2 = vpop.f32.mrf.mxu0  ;;  %5933 = vmatprep.mubr.msk.bf16.mxu1 %vm695_vm3, %v7791_v23  ;;  %v3893_v29 = vrot.slane %v3891_v54, 4  ;;  %v3896_v59 = vrot.slane %v3894_v15, 5  ;;  %v4443_v6 = vrot.slane %v8011_v13, 5  ;;  %v8090_v27 = vld [vmem:[%s6164_s25 + $0xac] sm:$0xf] }
 0x127   : > { %v1074_v57 = vpop.f32.mrf.mxu1  ;;  %v3906_v9 = vrot.slane %v3904_v35, 4  ;;  %v8835_v35 = vld [vmem:[#allocation8_spill] sm:$0xff] }
 0x128   : > { %v8059_v5 = vadd.f32 %v5761_v56, %v1083_v45  ;;  %v1075_v23 = vadd.f32 %v1074_v57, %v7564_v20  ;;  %v1502_v30 = vpop.f32.mrf.mxu0  ;;  %v8832_v45 = vcombine.low %v7732_v63, %v7758_v52  ;;  %v8075_v20 = vsel %vm6494_vm7, %v4435_v62, %v4436_v49  ;;  %v5480_v62 = vld [vmem:[%s6164_s25 + $0x9c] sm:$0xe] }
 0x129   : > { %v5728_v14 = vpop.f32.mrf.mxu1  ;;  %v4442_v63 = vrot.slane %v4440_v34, 4  ;;  %v8087_v52 = vrot.slane %v3900_v11, 5  ;;  %v4447_v49 = vrot.slane %v8042_v24, 5  ;;  %v3924_v24 = vshll.u32 %v8090_v27, 16 }
 0x12a   : > { %v8066_v37 = vadd.f32 %v1499_v33, %v1075_v23  ;;  %v1086_v40 = vadd.f32 %v5728_v14, %v7583_v53  ;;  %v5765_v56 = vpop.f32.mrf.mxu0  ;;  %5968 = vmatmul.mubr.msk.bf16.gmra.mxu0 %vm695_vm3, %v8832_v45  ;;  %v8833_v33 = vcombine.low %v7797_v21, %v7801_v1  ;;  %v8085_v53 = vsel %vm6494_vm7, %v5495_v16, %v4440_v34  ;;  %v5423_v1 = vld [vmem:[%s6164_s25 + $0xa4] sm:$0x1]  ;;  %v8834_v16 = vld [vmem:[#allocation11_spill] sm:$0xff] }
 0x12b   : > { %v1077_v39 = vpop.f32.mrf.mxu1  ;;  %v3879_v21 = vsel %vm6208_vm4, %v8064_v18, %v7999_v51  ;;  %v3915_v34 = vshrl.u32 %v5424_v22, 16  ;;  %v8836_v51 = vld [vmem:[#allocation16_spill] sm:$0xff]  ;;  %v3928_v18 = vshrl.u32 %v8090_v27, 16 }
 0x12c   : > { %5971 = vmatprep.mubr.msk.bf16.mxu0 %vm695_vm3, %v8833_v33  ;;  %v8092_v54 = vadd.f32 %v5762_v2, %v1086_v40  ;;  %v1078_v13 = vadd.f32 %v1077_v39, %v7628_v12  ;;  %v1515_v15 = vpop.f32.mrf.mxu0  ;;  %v3889_v40 = vsel %vm6208_vm4, %v3884_v32, %v3888_v38  ;;  %v3897_v2 = vor.u32 %v3896_v59, %v3893_v29  ;;  %v8837_v59 = vld [vmem:[#allocation12_spill] sm:$0xff] }
 0x12d   : > { %v5731_v57 = vpop.f32.mrf.mxu1  ;;  %5934 = vmatmul.mubr.msk.bf16.gmra.mxu1 %vm695_vm3, %v8834_v16  ;;  %v3918_v12 = vshll.u32 %v5424_v22, 16  ;;  %v8115_v39 = vsel %vm6494_vm7, %v4442_v63, %v4443_v6  ;;  %v3907_v32 = vor.u32 %v3906_v9, %v8087_v52  ;;  %v3910_v38 = vshll.u32 %v5423_v1, 16 }
 0x12e   : > { %v8106_v11 = vadd.f32 %v1502_v30, %v1078_v13  ;;  %v1099_v23 = vadd.f32 %v5731_v57, %v8835_v35  ;;  %v5766_v14 = vpop.f32.mrf.mxu0  ;;  %5937 = vmatprep.mubr.msk.bf16.mxu1 %vm695_vm3, %v8836_v51  ;;  %v5496_v30 = vrot.slane %v5480_v62, 9  ;;  %v4449_v13 = vrot.slane %v4447_v49, 4 }
 0x12f   : > { %v1090_v45 = vpop.f32.mrf.mxu1  ;;  %v4450_v57 = vrot.slane %v5423_v1, 5  ;;  %v8123_v51 = vrot.slane %v3897_v2, 4  ;;  %v3917_v6 = vrot.slane %v3915_v34, 4  ;;  %v3920_v63 = vrot.slane %v3918_v12, 5  ;;  %v8133_v1 = vld [vmem:[%s6164_s25 + $0xb0] sm:$0x1] }
 0x130   : > { %v8118_v29 = vadd.f32 %v5765_v56, %v1099_v23  ;;  %v1091_v22 = vadd.f32 %v1090_v45, %v8837_v59  ;;  %v1518_v33 = vpop.f32.mrf.mxu0  ;;  %v8135_v23 = vrot.slane %v3924_v24, 5  ;;  %v3930_v2 = vrot.slane %v3928_v18, 4  ;;  %v8839_v12 = vld [vmem:[#allocation14_spill] sm:$0xff] }
 0x131   : > { %v5732_v16 = vpop.f32.mrf.mxu1  ;;  %v8145_v43 = vrot.slane %v3907_v32, 4  ;;  %v8147_v17 = vrot.slane %v3910_v38, 5  ;;  %v8155_v58 = vsel %vm6494_vm7, %v5496_v30, %v4447_v49  ;;  %v8159_v36 = vsel %vm6494_vm7, %v4449_v13, %v4450_v57  ;;  %v8171_v30 = vld [vmem:[%s6164_s25 + $0xb8] sm:$0xf] }
 0x132   : > { %v8125_v9 = vadd.f32 %v1515_v15, %v1091_v22  ;;  %v1102_v62 = vadd.f32 %v5732_v16, %v8838_v4  ;;  %v5769_v56 = vpop.f32.mrf.mxu0  ;;  %5972 = vmatmul.mubr.msk.bf16.gmra.mxu0 %vm695_vm3, %v5507_v10  ;;  %v8141_v15 = vcombine.low %v3879_v21, %v3889_v40  ;;  %v5481_v10 = vld [vmem:[%s6164_s25 + $0xa8] sm:$0xe]  ;;  %v3921_v32 = vor.u32 %v3920_v63, %v3917_v6  ;;  %v8841_v22 = vld [vmem:[#allocation9_spill] sm:$0xff] }
 0x133   : > { %v1093_v45 = vpop.f32.mrf.mxu1  ;;  %5975 = vmatprep.mubr.msk.bf16.mxu0 %vm695_vm3, %v5508_v41  ;;  %v5427_v41 = vld [vmem:[%s6164_s25 + $0xb4] sm:$0xf]  ;;  %v8840_v40 = vld [vmem:[#allocation19_spill] sm:$0xff]  ;;  %v3934_v38 = vshll.u32 %v8133_v1, 16  ;;  %v4454_v49 = vrot.slane %v8090_v27, 5  ;;  %v3931_v16 = vor.u32 %v3930_v2, %v8135_v23  ;;  %v3913_v27 = vsel %vm6208_vm4, %v8145_v43, %v8147_v17 }
 0x134   : > { %v8150_v34 = vadd.f32 %v5766_v14, %v1102_v62  ;;  %v1094_v24 = vadd.f32 %v1093_v45, %v8839_v12  ;;  %v1531_v18 = vpop.f32.mrf.mxu0  ;;  %v5497_v62 = vrot.slane %v5481_v10, 9  ;;  %v3939_v6 = vshrl.u32 %v5427_v41, 16 }
 0x135   : > { %v5735_v21 = vpop.f32.mrf.mxu1  ;;  %5938 = vmatmul.mubr.msk.bf16.gmra.mxu1 %vm695_vm3, %v8840_v40  ;;  %v3942_v63 = vshll.u32 %v5427_v41, 16  ;;  %v3948_v2 = vshll.u32 %v8171_v30, 16  ;;  %v3952_v10 = vshrl.u32 %v8171_v30, 16  ;;  %v5430_v40 = vld [vmem:[%s6164_s25 + $0xc0] sm:$0xf]  ;;  %v3922_v4 = vrot.slane %v3921_v32, 4 }
 0x136   : > { %v8173_v59 = vadd.f32 %v1518_v33, %v1094_v24  ;;  %v1115_v13 = vadd.f32 %v5735_v21, %v8841_v22  ;;  %v5770_v57 = vpop.f32.mrf.mxu0  ;;  %5941 = vmatprep.mubr.msk.bf16.mxu1 %vm695_vm3, %v8025_v46  ;;  %v8843_v24 = vld [vmem:[#allocation18_spill] sm:$0xff]  ;;  %v3936_v43 = vrot.slane %v3934_v38, 5  ;;  %v4456_v17 = vrot.slane %v4454_v49, 4 }
 0x137   : > { %v1106_v45 = vpop.f32.mrf.mxu1  ;;  %v4457_v33 = vrot.slane %v8133_v1, 5  ;;  %v8201_v14 = vsel %vm6494_vm7, %v5497_v62, %v4454_v49  ;;  %v8204_v32 = vld [vmem:[%s6164_s25 + $0xc4] sm:$0xf]  ;;  %v8847_v1 = vcombine.low %v7983_v25, %v7987_v50  ;;  %v8216_v62 = vrot.slane %v3948_v2, 5 }
 0x138   : > { %v8185_v12 = vadd.f32 %v5769_v56, %v1115_v13  ;;  %v1107_v21 = vadd.f32 %v1106_v45, %v8843_v24  ;;  %v1534_v46 = vpop.f32.mrf.mxu0  ;;  %v8845_v56 = vld [vmem:[#allocation21_spill] sm:$0xff]  ;;  %v8846_v45 = vcombine.low %v7971_v47, %v7975_v7  ;;  %v3932_v24 = vrot.slane %v3931_v16, 4  ;;  %v8848_v16 = vld [vmem:[#allocation23_spill] sm:$0xff] }
 0x139   : > { %v5736_v22 = vpop.f32.mrf.mxu1  ;;  %v3963_v47 = vshrl.u32 %v5430_v40, 16  ;;  %v3966_v7 = vshll.u32 %v5430_v40, 16  ;;  %v3927_v25 = vsel %vm6208_vm4, %v3922_v4, %v8135_v23  ;;  %v8225_v50 = vsel %vm6494_vm7, %v4456_v17, %v4457_v33  ;;  %v5482_v40 = vld [vmem:[%s6164_s25 + $0xb4] sm:$0xe] }
 0x13a   : > { %8842 = vst [vmem:[#allocation11_spill] sm:$0xff] %v8185_v12  ;;  %v8192_v35 = vadd.f32 %v1531_v18, %v1107_v21  ;;  %v1118_v41 = vadd.f32 %v5736_v22, %v8845_v56  ;;  %v5773_v13 = vpop.f32.mrf.mxu0  ;;  %5976 = vmatmul.mubr.msk.bf16.gmra.mxu0 %vm695_vm3, %v8846_v45  ;;  %v8211_v18 = vld [vmem:[%s6164_s25 + $0xbc] sm:$0x1]  ;;  %v3941_v21 = vrot.slane %v3939_v6, 4  ;;  %v3944_v22 = vrot.slane %v3942_v63, 5 }
 0x13b   : > { %v1109_v38 = vpop.f32.mrf.mxu1  ;;  %5979 = vmatprep.mubr.msk.bf16.mxu0 %vm695_vm3, %v8847_v1  ;;  %v3976_v6 = vshrl.u32 %v8204_v32, 16  ;;  %v3958_v23 = vshll.u32 %v8211_v18, 16  ;;  %v4461_v17 = vrot.slane %v8171_v30, 5  ;;  %v8849_v1 = vld [vmem:[#allocation25_spill] sm:$0xff] }
 0x13c   : > { %8844 = vst [vmem:[#allocation8_spill] sm:$0xff] %v8192_v35  ;;  %v8213_v56 = vadd.f32 %v5770_v57, %v1118_v41  ;;  %v1110_v45 = vadd.f32 %v1109_v38, %v8848_v16  ;;  %v1547_v49 = vpop.f32.mrf.mxu0  ;;  %v3954_v35 = vrot.slane %v3952_v10, 4  ;;  %v3972_v57 = vshll.u32 %v8204_v32, 16 }
 0x13d   : > { %v5739_v12 = vpop.f32.mrf.mxu1  ;;  %5942 = vmatmul.mubr.msk.bf16.gmra.mxu1 %vm695_vm3, %v8027_v61  ;;  %v3937_v61 = vsel %vm6208_vm4, %v3932_v24, %v3936_v43  ;;  %v3945_v33 = vor.u32 %v3944_v22, %v3941_v21  ;;  %v3965_v41 = vrot.slane %v3963_v47, 4  ;;  %v3968_v38 = vrot.slane %v3966_v7, 5 }
 0x13e   : > { %v8229_v63 = vadd.f32 %v1534_v46, %v1110_v45  ;;  %v1131_v2 = vadd.f32 %v5739_v12, %v7935_v28  ;;  %v5774_v10 = vpop.f32.mrf.mxu0  ;;  %5945 = vmatprep.mubr.msk.bf16.mxu1 %vm695_vm3, %v8033_v60  ;;  %v8850_v60 = vsel %vm6208_vm4, %v8123_v51, %v8087_v52  ;;  %v3955_v24 = vor.u32 %v3954_v35, %v8216_v62 }
 0x13f   : > { %v1122_v4 = vpop.f32.mrf.mxu1  ;;  %v8247_v43 = vcombine.low %v8850_v60, %v3913_v27  ;;  %v8250_v30 = vcombine.low %v3927_v25, %v3937_v61  ;;  %v8254_v22 = vrot.slane %v3972_v57, 5  ;;  %v3978_v47 = vrot.slane %v3976_v6, 4  ;;  %v5432_v27 = vld [vmem:[%s6164_s25 + $0xc8] sm:$0x1] }
 0x140   : > { %v8239_v46 = vadd.f32 %v5773_v13, %v1131_v2  ;;  %v1123_v28 = vadd.f32 %v1122_v4, %v8849_v1  ;;  %v1550_v12 = vpop.f32.mrf.mxu0  ;;  %v5514_v13 = vcombine.low %v8201_v14, %v8225_v50  ;;  %v8851_v52 = vcombine.low %v8053_v3, %v8075_v20  ;;  %v5433_v14 = vld [vmem:[%s6164_s25 + $0xcc] sm:$0xf]  ;;  %v8275_v20 = vld [vmem:[%s6164_s25 + $0xd0] sm:$0xf]  ;;  %v5483_v4 = vld [vmem:[%s6164_s25 + $0xc0] sm:$0xe] }
 0x141   : > { %v5740_v21 = vpop.f32.mrf.mxu1  ;;  %v8263_v35 = vrot.slane %v3958_v23, 5  ;;  %v5498_v51 = vrot.slane %v5482_v40, 9  ;;  %v8852_v50 = vcombine.low %v8085_v53, %v8115_v39  ;;  %v4464_v57 = vrot.slane %v8211_v18, 5 }
 0x142   : > { %v8256_v7 = vadd.f32 %v1547_v49, %v1123_v28  ;;  %v1134_v16 = vadd.f32 %v5740_v21, %v7958_v19  ;;  %v5777_v45 = vpop.f32.mrf.mxu0  ;;  %5980 = vmatmul.mubr.msk.bf16.gmra.mxu0 %vm695_vm3, %v8851_v52  ;;  %v8271_v49 = vrot.slane %v3945_v33, 4  ;;  %v4463_v19 = vrot.slane %v4461_v17, 4 }
 0x143   : > { %v1125_v25 = vpop.f32.mrf.mxu1  ;;  %5983 = vmatprep.mubr.msk.bf16.mxu0 %vm695_vm3, %v8852_v50  ;;  %v3969_v3 = vor.u32 %v3968_v38, %v3965_v41  ;;  %v8280_v23 = vrot.slane %v3955_v24, 4  ;;  %v4468_v53 = vrot.slane %v8204_v32, 5  ;;  %v3979_v33 = vor.u32 %v3978_v47, %v8254_v22 }
 0x144   : > { %v8277_v6 = vadd.f32 %v5774_v10, %v1134_v16  ;;  %v1126_v2 = vadd.f32 %v1125_v25, %v7990_v26  ;;  %v1563_v61 = vpop.f32.mrf.mxu0  ;;  %v3982_v18 = vshll.u32 %v5432_v27, 16  ;;  %v3987_v40 = vshrl.u32 %v5433_v14, 16  ;;  %v8855_v10 = vld [vmem:[#allocation4_spill] sm:$0xff]  ;;  %v8856_v16 = vld [vmem:[#allocation3_spill] sm:$0xff] }
 0x145   : > { %v5743_v39 = vpop.f32.mrf.mxu1  ;;  %5946 = vmatmul.mubr.msk.bf16.gmra.mxu1 %vm695_vm3, %v8062_v48  ;;  %v3990_v41 = vshll.u32 %v5433_v14, 16  ;;  %v3996_v28 = vshll.u32 %v8275_v20, 16  ;;  %v4000_v32 = vshrl.u32 %v8275_v20, 16  ;;  %v4462_v48 = vsel %vm6494_vm7, %v5498_v51, %v4461_v17  ;;  %v8857_v17 = vld [vmem:[#allocation6_spill] sm:$0xff] }
 0x146   : > { %8853 = vst [vmem:[#allocation16_spill] sm:$0xff] %v8277_v6  ;;  %v8287_v38 = vadd.f32 %v1550_v12, %v1126_v2  ;;  %v1147_v1 = vadd.f32 %v5743_v39, %v8855_v10  ;;  %v5778_v26 = vpop.f32.mrf.mxu0  ;;  %5949 = vmatprep.mubr.msk.bf16.mxu1 %vm695_vm3, %v8141_v15  ;;  %v4465_v24 = vsel %vm6494_vm7, %v4463_v19, %v4464_v57  ;;  %v3970_v21 = vrot.slane %v3969_v3, 4 }
 0x147   : > { %v1138_v60 = vpop.f32.mrf.mxu1  ;;  %v5499_v12 = vrot.slane %v5483_v4, 9  ;;  %v4470_v25 = vrot.slane %v4468_v53, 4  ;;  %v4471_v15 = vrot.slane %v5432_v27, 5  ;;  %v3980_v2 = vrot.slane %v3979_v33, 4  ;;  %v5435_v33 = vld [vmem:[%s6164_s25 + $0xd4] sm:$0x1] }
 0x148   : > { %8854 = vst [vmem:[#allocation12_spill] sm:$0xff] %v8287_v38  ;;  %v8298_v47 = vadd.f32 %v5777_v45, %v1147_v1  ;;  %v1139_v52 = vadd.f32 %v1138_v60, %v8856_v16  ;;  %v1566_v14 = vpop.f32.mrf.mxu0  ;;  %v3984_v39 = vrot.slane %v3982_v18, 5  ;;  %v3989_v10 = vrot.slane %v3987_v40, 4  ;;  %v8859_v18 = vld [vmem:[#allocation5_spill] sm:$0xff] }
 0x149   : > { %v5744_v50 = vpop.f32.mrf.mxu1  ;;  %v3992_v38 = vrot.slane %v3990_v41, 5  ;;  %v8858_v45 = vcombine.low %v8155_v58, %v8159_v36  ;;  %v8308_v57 = vrot.slane %v3996_v28, 5  ;;  %v4002_v27 = vrot.slane %v4000_v32, 4 }
 0x14a   : > { %v8301_v6 = vadd.f32 %v1563_v61, %v1139_v52  ;;  %v1150_v51 = vadd.f32 %v5744_v50, %v8857_v17  ;;  %v5781_v19 = vpop.f32.mrf.mxu0  ;;  %v3951_v61 = vsel %vm6208_vm4, %v8271_v49, %v8216_v62  ;;  %v3961_v4 = vsel %vm6208_vm4, %v8280_v23, %v8263_v35  ;;  %v5484_v62 = vld [vmem:[%s6164_s25 + $0xcc] sm:$0xe] }
 0x14b   : > { %5984 = vmatmul.mubr.msk.bf16.gmra.mxu0 %vm695_vm3, %v8858_v45  ;;  %v1141_v3 = vpop.f32.mrf.mxu1  ;;  %v4475_v58 = vrot.slane %v8275_v20, 5  ;;  %v4472_v1 = vsel %vm6494_vm7, %v4470_v25, %v4471_v15  ;;  %v5515_v35 = vcombine.low %v4462_v48, %v4465_v24  ;;  %v3975_v20 = vsel %vm6208_vm4, %v3970_v21, %v8254_v22  ;;  %v8861_v25 = vld [vmem:[#allocation10_spill] sm:$0xff] }
 0x14c   : > { %5987 = vmatprep.mubr.msk.bf16.mxu0 %vm695_vm3, %v5514_v13  ;;  %v8321_v36 = vadd.f32 %v5778_v26, %v1150_v51  ;;  %v1142_v40 = vadd.f32 %v1141_v3, %v8859_v18  ;;  %v1579_v41 = vpop.f32.mrf.mxu0  ;;  %v4469_v13 = vsel %vm6494_vm7, %v5499_v12, %v4468_v53  ;;  %v3985_v23 = vsel %vm6208_vm4, %v3980_v2, %v3984_v39  ;;  %v8860_v53 = vld [vmem:[#allocation7_spill] sm:$0xff] }
 0x14d   : > { %v5747_v49 = vpop.f32.mrf.mxu1  ;;  %5950 = vmatmul.mubr.msk.bf16.gmra.mxu1 %vm695_vm3, %v8247_v43  ;;  %v3993_v26 = vor.u32 %v3992_v38, %v3989_v10  ;;  %v4003_v12 = vor.u32 %v4002_v27, %v8308_v57  ;;  %v4006_v43 = vshll.u32 %v5435_v33, 16  ;;  %v5516_v24 = vcombine.low %v4469_v13, %v4472_v1 }
 0x14e   : > { %v8336_v28 = vadd.f32 %v1566_v14, %v1142_v40  ;;  %v1163_v32 = vadd.f32 %v5747_v49, %v8860_v53  ;;  %v5782_v60 = vpop.f32.mrf.mxu0  ;;  %5953 = vmatprep.mubr.msk.bf16.mxu1 %vm695_vm3, %v8250_v30  ;;  %v5500_v16 = vrot.slane %v5484_v62, 9  ;;  %v4477_v52 = vrot.slane %v4475_v58, 4  ;;  %v8862_v30 = vld [vmem:[#allocation13_spill] sm:$0xff] }
 0x14f   : > { %v1154_v48 = vpop.f32.mrf.mxu1  ;;  %v4478_v22 = vrot.slane %v5435_v33, 5  ;;  %v5450_v50 = vcombine.low %v3951_v61, %v3961_v4  ;;  %v5451_v2 = vcombine.low %v3975_v20, %v3985_v23  ;;  %v3994_v39 = vrot.slane %v3993_v26, 4  ;;  %v8863_v33 = vld [vmem:[#allocation15_spill] sm:$0xff]  ;;  %v8864_v62 = vld [vmem:[#allocation17_spill] sm:$0xff]  ;;  %v8865_v26 = vld [vmem:[#allocation20_spill] sm:$0xff] }
 0x150   : > { %v8342_v21 = vadd.f32 %v5781_v19, %v1163_v32  ;;  %v1155_v38 = vadd.f32 %v1154_v48, %v8861_v25  ;;  %v1582_v14 = vpop.f32.mrf.mxu0  ;;  %v4004_v45 = vrot.slane %v4003_v12, 4  ;;  %v4008_v27 = vrot.slane %v4006_v43, 5  ;;  %v8866_v43 = vld [vmem:[#allocation22_spill] sm:$0xff] }
 0x151   : > { %v5748_v15 = vpop.f32.mrf.mxu1  ;;  %v4476_v19 = vsel %vm6494_vm7, %v5500_v16, %v4475_v58  ;;  %v4479_v61 = vsel %vm6494_vm7, %v4477_v52, %v4478_v22  ;;  %v3999_v13 = vsel %vm6208_vm4, %v3994_v39, %v8308_v57 }
 0x152   : > { %v8345_v10 = vadd.f32 %v1579_v41, %v1155_v38  ;;  %v1166_v17 = vadd.f32 %v5748_v15, %v8862_v30  ;;  %v5785_v51 = vpop.f32.mrf.mxu0  ;;  %v4009_v0 = vsel %vm6208_vm4, %v4004_v45, %v4008_v27 }
 0x153   : > { %5988 = vmatmul.mubr.msk.bf16.gmra.mxu0 %vm695_vm3, %v5515_v35  ;;  %v1157_v3 = vpop.f32.mrf.mxu1  ;;  %v5517_v35 = vcombine.low %v4476_v19, %v4479_v61  ;;  %v5452_v12 = vcombine.low %v3999_v13, %v4009_v0 }
 0x154   : > { %5991 = vmatprep.mubr.msk.bf16.mxu0 %vm695_vm3, %v5516_v24  ;;  %v8354_v4 = vadd.f32 %v5782_v60, %v1166_v17  ;;  %v1158_v18 = vadd.f32 %v1157_v3, %v8863_v33  ;;  %v1595_v40 = vpop.f32.mrf.mxu0 }
 0x155   : > { %v5751_v41 = vpop.f32.mrf.mxu1  ;;  %5954 = vmatmul.mubr.msk.bf16.gmra.mxu1 %vm695_vm3, %v5450_v50 }
 0x156   : > { %v8361_v1 = vadd.f32 %v1582_v14, %v1158_v18  ;;  %v1179_v49 = vadd.f32 %v5751_v41, %v8864_v62  ;;  %v5786_v58 = vpop.f32.mrf.mxu0  ;;  %5957 = vmatprep.mubr.msk.bf16.mxu1 %vm695_vm3, %v5451_v2 }
 0x157   : > { %v1170_v20 = vpop.f32.mrf.mxu1 }
 0x158   : > { %v8367_v23 = vadd.f32 %v5785_v51, %v1179_v49  ;;  %v1171_v53 = vadd.f32 %v1170_v20, %v8865_v26  ;;  %v1598_v32 = vpop.f32.mrf.mxu0 }
 0x159   : > { %v5752_v60 = vpop.f32.mrf.mxu1 }
 0x15a   : > { %v8370_v57 = vadd.f32 %v1595_v40, %v1171_v53  ;;  %v1182_v48 = vadd.f32 %v5752_v60, %v8866_v43  ;;  %v5789_v24 = vpop.f32.mrf.mxu0 }
 0x15b   : > { %5992 = vmatmul.mubr.msk.bf16.gmra.mxu0 %vm695_vm3, %v5517_v35  ;;  %v1173_v16 = vpop.f32.mrf.mxu1 }
 0x15c   : > { %v8374_v52 = vadd.f32 %v5786_v58, %v1182_v48  ;;  %v1174_v22 = vadd.f32 %v1173_v16, %v8867_v31  ;;  %v1611_v25 = vpop.f32.mrf.mxu0 }
 0x15d   : > { %v5755_v38 = vpop.f32.mrf.mxu1  ;;  %5958 = vmatmul.mubr.msk.bf16.gmra.mxu1 %vm695_vm3, %v5452_v12 }
 0x15e   : > { %v8378_v14 = vadd.f32 %v1598_v32, %v1174_v22  ;;  %v1195_v15 = vadd.f32 %v5755_v38, %v7950_v42  ;;  %v5790_v50 = vpop.f32.mrf.mxu0 }
 0x15f   : > { %v1186_v2 = vpop.f32.mrf.mxu1 }
 0x160   : > { %v8381_v39 = vadd.f32 %v5789_v24, %v1195_v15  ;;  %v1187_v30 = vadd.f32 %v1186_v2, %v7977_v44  ;;  %v1614_v17 = vpop.f32.mrf.mxu0 }
 0x161   : > { %v5756_v51 = vpop.f32.mrf.mxu1 }
 0x162   : > { %v8384_v45 = vadd.f32 %v1611_v25, %v1187_v30  ;;  %v1198_v27 = vadd.f32 %v5756_v51, %v7992_v8  ;;  %v5829_v3 = vpop.f32.mrf.mxu0  ;;  %v8868_v30 = vld [vmem:[#allocation11_spill] sm:$0xff] }
 0x163   : > { %v1189_v19 = vpop.f32.mrf.mxu1 }
 0x164   : > { %v8387_v61 = vadd.f32 %v5790_v50, %v1198_v27  ;;  %v1190_v33 = vadd.f32 %v1189_v19, %v8014_v55  ;;  %v2587_v18 = vpop.f32.mrf.mxu0 }
 0x165   : > { %v5795_v42 = vpop.f32.mrf.mxu1 }
 0x166   : > { %v8390_v40 = vadd.f32 %v1614_v17, %v1190_v33  ;;  %v1990_v41 = vadd.f32 %v5795_v42, %v8059_v5  ;;  %v5830_v13 = vpop.f32.mrf.mxu0 }
 0x167   : > { %v1861_v44 = vpop.f32.mrf.mxu1 }
 0x168   : > { %v8393_v62 = vadd.f32 %v5829_v3, %v1990_v41  ;;  %v1988_v49 = vadd.f32 %v1861_v44, %v8066_v37  ;;  %v2590_v58 = vpop.f32.mrf.mxu0  ;;  %v8869_v3 = vld [vmem:[#allocation8_spill] sm:$0xff] }
 0x169   : > { %v5796_v8 = vpop.f32.mrf.mxu1 }
 0x16a   : > { %v8396_v0 = vadd.f32 %v2587_v18, %v1988_v49  ;;  %v1991_v35 = vadd.f32 %v5796_v8, %v8092_v54  ;;  %v5833_v20 = vpop.f32.mrf.mxu0 }
 0x16b   : > { %v1864_v55 = vpop.f32.mrf.mxu1 }
 0x16c   : > { %v8399_v26 = vadd.f32 %v5830_v13, %v1991_v35  ;;  %v1989_v53 = vadd.f32 %v1864_v55, %v8106_v11  ;;  %v2603_v32 = vpop.f32.mrf.mxu0 }
 0x16d   : > { %v5799_v5 = vpop.f32.mrf.mxu1 }
 0x16e   : > { %v8402_v60 = vadd.f32 %v2590_v58, %v1989_v53  ;;  %v1994_v12 = vadd.f32 %v5799_v5, %v8118_v29  ;;  %v5834_v43 = vpop.f32.mrf.mxu0 }
 0x16f   : > { %v1877_v37 = vpop.f32.mrf.mxu1 }
 0x170   : > { %v8405_v48 = vadd.f32 %v5833_v20, %v1994_v12  ;;  %v1992_v24 = vadd.f32 %v1877_v37, %v8125_v9  ;;  %v2606_v16 = vpop.f32.mrf.mxu0 }
 0x171   : > { %v5800_v54 = vpop.f32.mrf.mxu1 }
 0x172   : > { %v8408_v31 = vadd.f32 %v2603_v32, %v1992_v24  ;;  %v1995_v22 = vadd.f32 %v5800_v54, %v8150_v34  ;;  %v5837_v25 = vpop.f32.mrf.mxu0  ;;  %v8871_v54 = vld [vmem:[#allocation12_spill] sm:$0xff] }
 0x173   : > { %v1880_v11 = vpop.f32.mrf.mxu1 }
 0x174   : > { %v8411_v38 = vadd.f32 %v5834_v43, %v1995_v22  ;;  %v1993_v15 = vadd.f32 %v1880_v11, %v8173_v59  ;;  %v2619_v50 = vpop.f32.mrf.mxu0  ;;  %v8870_v43 = vld [vmem:[#allocation16_spill] sm:$0xff] }
 0x175   : > { %v5803_v29 = vpop.f32.mrf.mxu1 }
 0x176   : > { %v8414_v2 = vadd.f32 %v2606_v16, %v1993_v15  ;;  %v1998_v17 = vadd.f32 %v5803_v29, %v8868_v30  ;;  %v5838_v51 = vpop.f32.mrf.mxu0 }
 0x177   : > { %v1893_v9 = vpop.f32.mrf.mxu1 }
 0x178   : > { %v8417_v27 = vadd.f32 %v5837_v25, %v1998_v17  ;;  %v1996_v19 = vadd.f32 %v1893_v9, %v8869_v3  ;;  %v2622_v33 = vpop.f32.mrf.mxu0 }
 0x179   : > { %v5804_v34 = vpop.f32.mrf.mxu1 }
 0x17a   : > { %v8420_v18 = vadd.f32 %v2619_v50, %v1996_v19  ;;  %v1999_v42 = vadd.f32 %v5804_v34, %v8213_v56  ;;  %v5841_v41 = vpop.f32.mrf.mxu0 }
 0x17b   : > { %v1896_v59 = vpop.f32.mrf.mxu1 }
 0x17c   : > { %v8423_v13 = vadd.f32 %v5838_v51, %v1999_v42  ;;  %v1997_v44 = vadd.f32 %v1896_v59, %v8229_v63  ;;  %v2635_v49 = vpop.f32.mrf.mxu0 }
 0x17d   : > { %v5807_v58 = vpop.f32.mrf.mxu1 }
 0x17e   : > { %v8426_v8 = vadd.f32 %v2622_v33, %v1997_v44  ;;  %v2002_v35 = vadd.f32 %v5807_v58, %v8239_v46  ;;  %v5842_v20 = vpop.f32.mrf.mxu0 }
 0x17f   : > { %v1909_v55 = vpop.f32.mrf.mxu1 }
 0x180   : > { %v8429_v53 = vadd.f32 %v5841_v41, %v2002_v35  ;;  %v2000_v32 = vadd.f32 %v1909_v55, %v8256_v7  ;;  %v2638_v5 = vpop.f32.mrf.mxu0 }
 0x181   : > { %v5808_v56 = vpop.f32.mrf.mxu1 }
 0x182   : > { %v8432_v12 = vadd.f32 %v2635_v49, %v2000_v32  ;;  %v2003_v37 = vadd.f32 %v5808_v56, %v8870_v43  ;;  %v5845_v24 = vpop.f32.mrf.mxu0 }
 0x183   : > { %v1912_v63 = vpop.f32.mrf.mxu1 }
 0x184   : > { %v8435_v16 = vadd.f32 %v5842_v20, %v2003_v37  ;;  %v2001_v22 = vadd.f32 %v1912_v63, %v8871_v54  ;;  %v2651_v25 = vpop.f32.mrf.mxu0 }
 0x185   : > { %v5811_v46 = vpop.f32.mrf.mxu1 }
 0x186   : > { %v8438_v11 = vadd.f32 %v2638_v5, %v2001_v22  ;;  %v2006_v15 = vadd.f32 %v5811_v46, %v8298_v47  ;;  %v5846_v50 = vpop.f32.mrf.mxu0 }
 0x187   : > { %v1925_v7 = vpop.f32.mrf.mxu1 }
 0x188   : > { %v8441_v29 = vadd.f32 %v5845_v24, %v2006_v15  ;;  %v2004_v30 = vadd.f32 %v1925_v7, %v8301_v6  ;;  %v2654_v17 = vpop.f32.mrf.mxu0 }
 0x189   : > { %v5812_v51 = vpop.f32.mrf.mxu1 }
 0x18a   : > { %v8444_v9 = vadd.f32 %v2651_v25, %v2004_v30  ;;  %v2007_v3 = vadd.f32 %v5812_v51, %v8321_v36  ;;  %v5849_v19 = vpop.f32.mrf.mxu0 }
 0x18b   : > { %v1928_v33 = vpop.f32.mrf.mxu1 }
 0x18c   : > { %v8447_v34 = vadd.f32 %v5846_v50, %v2007_v3  ;;  %v2005_v42 = vadd.f32 %v1928_v33, %v8336_v28  ;;  %v2667_v41 = vpop.f32.mrf.mxu0 }
 0x18d   : > { %v5815_v47 = vpop.f32.mrf.mxu1 }
 0x18e   : > { %v8450_v59 = vadd.f32 %v2654_v17, %v2005_v42  ;;  %v2010_v44 = vadd.f32 %v5815_v47, %v8342_v21  ;;  %v5850_v49 = vpop.f32.mrf.mxu0 }
 0x18f   : > { %v1941_v6 = vpop.f32.mrf.mxu1 }
 0x190   : > { %v8453_v58 = vadd.f32 %v5849_v19, %v2010_v44  ;;  %v2008_v35 = vadd.f32 %v1941_v6, %v8345_v10  ;;  %v2670_v20 = vpop.f32.mrf.mxu0 }
 0x191   : > { %v5816_v36 = vpop.f32.mrf.mxu1 }
 0x192   : > { %v8456_v55 = vadd.f32 %v2667_v41, %v2008_v35  ;;  %v2011_v32 = vadd.f32 %v5816_v36, %v8354_v4  ;;  %v5853_v5 = vpop.f32.mrf.mxu0 }
 0x193   : > { %v1944_v28 = vpop.f32.mrf.mxu1 }
 0x194   : > { %v8459_v56 = vadd.f32 %v5850_v49, %v2011_v32  ;;  %v2009_v43 = vadd.f32 %v1944_v28, %v8361_v1  ;;  %v2683_v37 = vpop.f32.mrf.mxu0 }
 0x195   : > { %v5819_v21 = vpop.f32.mrf.mxu1 }
 0x196   : > { %v8462_v24 = vadd.f32 %v2670_v20, %v2009_v43  ;;  %v2014_v63 = vadd.f32 %v5819_v21, %v8367_v23  ;;  %v5854_v54 = vpop.f32.mrf.mxu0 }
 0x197   : > { %v1957_v10 = vpop.f32.mrf.mxu1 }
 0x198   : > { %v8465_v22 = vadd.f32 %v5853_v5, %v2014_v63  ;;  %v2012_v25 = vadd.f32 %v1957_v10, %v8370_v57  ;;  %v2686_v46 = vpop.f32.mrf.mxu0 }
 0x199   : > { %v5820_v4 = vpop.f32.mrf.mxu1 }
 0x19a   : > { %v8468_v15 = vadd.f32 %v2683_v37, %v2012_v25  ;;  %v2015_v50 = vadd.f32 %v5820_v4, %v8374_v52  ;;  %v5857_v7 = vpop.f32.mrf.mxu0 }
 0x19b   : > { %v1960_v1 = vpop.f32.mrf.mxu1 }
 0x19c   : > { %8872 = vst [vmem:[#allocation2_spill] sm:$0xff] %v8468_v15  ;;  %v8471_v30 = vadd.f32 %v5854_v54, %v2015_v50  ;;  %v2013_v17 = vadd.f32 %v1960_v1, %v8378_v14  ;;  %v2699_v51 = vpop.f32.mrf.mxu0 }
 0x19d   : > { %v5823_v23 = vpop.f32.mrf.mxu1 }
 0x19e   : > { %v8474_v3 = vadd.f32 %v2686_v46, %v2013_v17  ;;  %v2018_v19 = vadd.f32 %v5823_v23, %v8381_v39  ;;  %v5858_v33 = vpop.f32.mrf.mxu0 }
 0x19f   : > { %v1973_v57 = vpop.f32.mrf.mxu1 }
 0x1a0   : > { %8873 = vst [vmem:[#allocation14_spill] sm:$0xff] %v8474_v3  ;;  %v8477_v42 = vadd.f32 %v5857_v7, %v2018_v19  ;;  %v2016_v41 = vadd.f32 %v1973_v57, %v8384_v45  ;;  %v2702_v47 = vpop.f32.mrf.mxu0 }
 0x1a1   : > { %v5824_v52 = vpop.f32.mrf.mxu1 }
 0x1a2   : > { %v8480_v44 = vadd.f32 %v2699_v51, %v2016_v41  ;;  %v2019_v49 = vadd.f32 %v5824_v52, %v8387_v61  ;;  %v5897_v6 = vpop.f32.mrf.mxu0 }
 0x1a3   : > { %v1976_v14 = vpop.f32.mrf.mxu1 }
 0x1a4   : > { %8874 = vst [vmem:[#allocation19_spill] sm:$0xff] %v8480_v44  ;;  %v8483_v35 = vadd.f32 %v5858_v33, %v2019_v49  ;;  %v2017_v20 = vadd.f32 %v1976_v14, %v8390_v40  ;;  %v3419_v36 = vpop.f32.mrf.mxu0 }
 0x1a5   : > { %v5863_v39 = vpop.f32.mrf.mxu1 }
 0x1a6   : > { %v8486_v32 = vadd.f32 %v2702_v47, %v2017_v20  ;;  %v3186_v5 = vadd.f32 %v5863_v39, %v8393_v62  ;;  %v5898_v28 = vpop.f32.mrf.mxu0 }
 0x1a7   : > { %v3057_v45 = vpop.f32.mrf.mxu1 }
 0x1a8   : > { %8875 = vst [vmem:[#allocation9_spill] sm:$0xff] %v8486_v32  ;;  %v8489_v43 = vadd.f32 %v5897_v6, %v3186_v5  ;;  %v3184_v37 = vadd.f32 %v3057_v45, %v8396_v0  ;;  %v8492_v21 = vpop.f32.mrf.mxu0 }
 0x1a9   : > { %v5864_v61 = vpop.f32.mrf.mxu1 }
 0x1aa   : > { %v8494_v63 = vadd.f32 %v3419_v36, %v3184_v37  ;;  %v3187_v54 = vadd.f32 %v5864_v61, %v8399_v26  ;;  %v5901_v40 = vpop.f32.mrf.mxu0 }
 0x1ab   : > { %v8497_v10 = vpop.f32.mrf.mxu1 }
 0x1ac   : > { %v8499_v25 = vadd.f32 %v5898_v28, %v3187_v54  ;;  %v8501_v46 = vpop.f32.mrf.mxu0 }
 0x1ad   : > { %v5867_v62 = vpop.f32.mrf.mxu1 }
 0x1ae   : > { %v3190_v4 = vadd.f32 %v5867_v62, %v8405_v48  ;;  %v5902_v50 = vpop.f32.mrf.mxu0 }
 0x1af   : > { %v8504_v7 = vpop.f32.mrf.mxu1 }
 0x1b0   : > { %v8506_v0 = vadd.f32 %v5901_v40, %v3190_v4  ;;  %v8508_v1 = vpop.f32.mrf.mxu0 }
 0x1b1   : > { %v5868_v17 = vpop.f32.mrf.mxu1 }
 0x1b2   : > { %v3191_v26 = vadd.f32 %v5868_v17, %v8411_v38  ;;  %v5905_v51 = vpop.f32.mrf.mxu0 }
 0x1b3   : > { %v8511_v23 = vpop.f32.mrf.mxu1 }
 0x1b4   : > { %v8513_v19 = vadd.f32 %v5902_v50, %v3191_v26  ;;  %v8515_v33 = vpop.f32.mrf.mxu0 }
 0x1b5   : > { %v5871_v57 = vpop.f32.mrf.mxu1 }
 0x1b6   : > { %v3194_v48 = vadd.f32 %v5871_v57, %v8417_v27  ;;  %v5906_v41 = vpop.f32.mrf.mxu0 }
 0x1b7   : > { %v8518_v47 = vpop.f32.mrf.mxu1 }
 0x1b8   : > { %v8520_v52 = vadd.f32 %v5905_v51, %v3194_v48  ;;  %v8522_v49 = vpop.f32.mrf.mxu0 }
 0x1b9   : > { %v5872_v6 = vpop.f32.mrf.mxu1 }
 0x1ba   : > { %v3195_v38 = vadd.f32 %v5872_v6, %v8423_v13  ;;  %v5909_v14 = vpop.f32.mrf.mxu0 }
 0x1bb   : > { %v8525_v20 = vpop.f32.mrf.mxu1 }
 0x1bc   : > { %v8527_v36 = vadd.f32 %v5906_v41, %v3195_v38  ;;  %v8529_v39 = vpop.f32.mrf.mxu0 }
 0x1bd   : > { %v5875_v5 = vpop.f32.mrf.mxu1 }
 0x1be   : > { %v3198_v27 = vadd.f32 %v5875_v5, %v8429_v53  ;;  %v5910_v28 = vpop.f32.mrf.mxu0 }
 0x1bf   : > { %v8532_v45 = vpop.f32.mrf.mxu1 }
 0x1c0   : > { %v8534_v37 = vadd.f32 %v5909_v14, %v3198_v27  ;;  %v8536_v61 = vpop.f32.mrf.mxu0 }
 0x1c1   : > { %v5876_v54 = vpop.f32.mrf.mxu1 }
 0x1c2   : > { %v3199_v13 = vadd.f32 %v5876_v54, %v8435_v16  ;;  %v5913_v40 = vpop.f32.mrf.mxu0 }
 0x1c3   : > { %v8539_v62 = vpop.f32.mrf.mxu1 }
 0x1c4   : > { %v8541_v4 = vadd.f32 %v5910_v28, %v3199_v13  ;;  %v8543_v50 = vpop.f32.mrf.mxu0 }
 0x1c5   : > { %v5879_v17 = vpop.f32.mrf.mxu1 }
 0x1c6   : > { %v3202_v53 = vadd.f32 %v5879_v17, %v8441_v29  ;;  %v5914_v26 = vpop.f32.mrf.mxu0 }
 0x1c7   : > { %v8546_v51 = vpop.f32.mrf.mxu1 }
 0x1c8   : > { %v8548_v57 = vadd.f32 %v5913_v40, %v3202_v53  ;;  %v8550_v48 = vpop.f32.mrf.mxu0 }
 0x1c9   : > { %v5880_v41 = vpop.f32.mrf.mxu1 }
 0x1ca   : > { %v3203_v16 = vadd.f32 %v5880_v41, %v8447_v34  ;;  %v5917_v6 = vpop.f32.mrf.mxu0 }
 0x1cb   : > { %v8553_v38 = vpop.f32.mrf.mxu1 }
 0x1cc   : > { %v8555_v14 = vadd.f32 %v5914_v26, %v3203_v16  ;;  %v8557_v5 = vpop.f32.mrf.mxu0 }
 0x1cd   : > { %v5883_v27 = vpop.f32.mrf.mxu1 }
 0x1ce   : > { %v3206_v29 = vadd.f32 %v5883_v27, %v8453_v58  ;;  %v5918_v28 = vpop.f32.mrf.mxu0 }
 0x1cf   : > { %v8560_v54 = vpop.f32.mrf.mxu1 }
 0x1d0   : > { %v8562_v13 = vadd.f32 %v5917_v6, %v3206_v29  ;;  %v8564_v40 = vpop.f32.mrf.mxu0 }
 0x1d1   : > { %v5884_v17 = vpop.f32.mrf.mxu1 }
 0x1d2   : > { %8876 = vst [vmem:[#allocation18_spill] sm:$0xff] %v8562_v13  ;;  %v3207_v34 = vadd.f32 %v5884_v17, %v8459_v56  ;;  %v5921_v53 = vpop.f32.mrf.mxu0 }
 0x1d3   : > { %v8567_v41 = vpop.f32.mrf.mxu1 }
 0x1d4   : > { %v8569_v26 = vadd.f32 %v5918_v28, %v3207_v34  ;;  %v8571_v16 = vpop.f32.mrf.mxu0 }
 0x1d5   : > { %8878 = vst [vmem:[#allocation23_spill] sm:$0xff] %v8571_v16  ;;  %v5887_v32 = vpop.f32.mrf.mxu1 }
 0x1d6   : > { %8877 = vst [vmem:[#allocation21_spill] sm:$0xff] %v8569_v26  ;;  %v3210_v58 = vadd.f32 %v5887_v32, %v8465_v22  ;;  %v5922_v27 = vpop.f32.mrf.mxu0 }
 0x1d7   : > { %v8574_v44 = vpop.f32.mrf.mxu1 }
 0x1d8   : > { %8879 = vst [vmem:[#allocation25_spill] sm:$0xff] %v8574_v44  ;;  %v8576_v6 = vadd.f32 %v5921_v53, %v3210_v58  ;;  %v8578_v29 = vpop.f32.mrf.mxu0 }
 0x1d9   : > { %8881 = vst [vmem:[#allocation3_spill] sm:$0xff] %v8578_v29  ;;  %v5888_v3 = vpop.f32.mrf.mxu1 }
 0x1da   : > { %8880 = vst [vmem:[#allocation4_spill] sm:$0xff] %v8576_v6  ;;  %v3211_v56 = vadd.f32 %v5888_v3, %v8471_v30  ;;  %v5925_v17 = vpop.f32.mrf.mxu0 }
 0x1db   : > { %v8581_v13 = vpop.f32.mrf.mxu1 }
 0x1dc   : > { %8882 = vst [vmem:[#allocation6_spill] sm:$0xff] %v8581_v13  ;;  %v8583_v28 = vadd.f32 %v5922_v27, %v3211_v56  ;;  %v8585_v34 = vpop.f32.mrf.mxu0 }
 0x1dd   : > { %8884 = vst [vmem:[#allocation7_spill] sm:$0xff] %v8585_v34  ;;  %v5891_v16 = vpop.f32.mrf.mxu1 }
 0x1de   : > { %8883 = vst [vmem:[#allocation5_spill] sm:$0xff] %v8583_v28  ;;  %v3214_v22 = vadd.f32 %v5891_v16, %v8477_v42  ;;  %v5926_v32 = vpop.f32.mrf.mxu0  ;;  %v3185_v42 = vadd.f32 %v8497_v10, %v8402_v60  ;;  %v3189_v10 = vadd.f32 %v8511_v23, %v8414_v2 }
 0x1df   : > { %v8588_v26 = vpop.f32.mrf.mxu1 }
 0x1e0   : > { %8885 = vst [vmem:[#allocation10_spill] sm:$0xff] %v8588_v26  ;;  %v8590_v53 = vadd.f32 %v5925_v17, %v3214_v22  ;;  %v8592_v58 = vpop.f32.mrf.mxu0 }
 0x1e1   : > { %8887 = vst [vmem:[#allocation15_spill] sm:$0xff] %v8592_v58  ;;  %v5892_v6 = vpop.f32.mrf.mxu1  ;;  %v3547_v58 = vadd.f32 %v8492_v21, %v3185_v42 }
 0x1e2   : > { %8886 = vst [vmem:[#allocation13_spill] sm:$0xff] %v8590_v53  ;;  %v3215_v30 = vadd.f32 %v5892_v6, %v8483_v35  ;;  %v5965_v3 = vpop.f32.mrf.mxu0  ;;  %v3188_v35 = vadd.f32 %v8504_v7, %v8408_v31 }
 0x1e3   : > { %v8595_v29 = vpop.f32.mrf.mxu1 }
 0x1e4   : > { %8888 = vst [vmem:[#allocation17_spill] sm:$0xff] %v8595_v29  ;;  %v8597_v27 = vadd.f32 %v5926_v32, %v3215_v30  ;;  %v4615_v56 = vpop.f32.mrf.mxu0 }
 0x1e5   : > { %v5931_v34 = vpop.f32.mrf.mxu1 }
 0x1e6   : > { %8889 = vst [vmem:[#allocation20_spill] sm:$0xff] %v8597_v27  ;;  %v5966_v16 = vpop.f32.mrf.mxu0  ;;  %v4274_v6 = vadd.f32 %v5931_v34, %v8489_v43 }
 0x1e7   : > { %v4145_v28 = vpop.f32.mrf.mxu1 }
 0x1e8   : > { %v4272_v17 = vadd.f32 %v4145_v28, %v8494_v63  ;;  %v4618_v22 = vpop.f32.mrf.mxu0  ;;  %v3550_v28 = vadd.f32 %v8501_v46, %v3188_v35  ;;  %v4744_v13 = vadd.f32 %v5965_v3, %v4274_v6 }
 0x1e9   : > { %v5932_v53 = vpop.f32.mrf.mxu1 }
 0x1ea   : > { %v5969_v32 = vpop.f32.mrf.mxu0  ;;  %v4275_v30 = vadd.f32 %v5932_v53, %v8499_v25  ;;  %v4742_v29 = vadd.f32 %v4615_v56, %v4272_v17  ;;  %v3551_v53 = vadd.f32 %v8508_v1, %v3189_v10  ;;  %v4814_v56 = vmul.f32 %v4744_v13, %v4744_v13 }
 0x1eb   : > { %v4148_v27 = vpop.f32.mrf.mxu1 }
 0x1ec   : > { %v4273_v26 = vadd.f32 %v4148_v27, %v3547_v58  ;;  %v4631_v60 = vpop.f32.mrf.mxu0  ;;  %v4745_v44 = vadd.f32 %v5966_v16, %v4275_v30  ;;  %v4812_v7 = vmul.f32 %v4742_v29, %v4742_v29 }
 0x1ed   : > { %v5935_v63 = vpop.f32.mrf.mxu1 }
 0x1ee   : > { %v4743_v21 = vadd.f32 %v4618_v22, %v4273_v26  ;;  %v5970_v42 = vpop.f32.mrf.mxu0  ;;  %v4278_v58 = vadd.f32 %v5935_v63, %v8506_v0  ;;  %v3192_v26 = vadd.f32 %v8518_v47, %v8420_v18  ;;  %v4815_v3 = vmul.f32 %v4745_v44, %v4745_v44 }
 0x1ef   : > { %v4161_v31 = vpop.f32.mrf.mxu1  ;;  %v3193_v0 = vadd.f32 %v8525_v20, %v8426_v8 }
 0x1f0   : > { %v4774_v43 = vadd.f32 %v4743_v21, %v4742_v29  ;;  %v4813_v34 = vmul.f32 %v4743_v21, %v4743_v21  ;;  %v4276_v15 = vadd.f32 %v4161_v31, %v3550_v28  ;;  %v4634_v25 = vpop.f32.mrf.mxu0  ;;  %v4748_v1 = vadd.f32 %v5969_v32, %v4278_v58 }
 0x1f1   : > { %v5936_v27 = vpop.f32.mrf.mxu1  ;;  %v3554_v18 = vadd.f32 %v8515_v33, %v3192_v26 }
 0x1f2   : > { %v4775_v2 = vadd.f32 %v4774_v43, %v4744_v13  ;;  %v4844_v23 = vadd.f32 %v4813_v34, %v4812_v7  ;;  %v4746_v17 = vadd.f32 %v4631_v60, %v4276_v15  ;;  %v5973_v46 = vpop.f32.mrf.mxu0  ;;  %v4279_v35 = vadd.f32 %v5936_v27, %v8513_v19 }
 0x1f3   : > { %v4164_v16 = vpop.f32.mrf.mxu1  ;;  %v3196_v43 = vadd.f32 %v8532_v45, %v8432_v12  ;;  %v3555_v34 = vadd.f32 %v8522_v49, %v3193_v0 }
 0x1f4   : > { %v4845_v22 = vadd.f32 %v4844_v23, %v4814_v56  ;;  %v4776_v29 = vadd.f32 %v4775_v2, %v4745_v44  ;;  %v4277_v6 = vadd.f32 %v4164_v16, %v3551_v53  ;;  %v4647_v30 = vpop.f32.mrf.mxu0  ;;  %v4816_v63 = vmul.f32 %v4746_v17, %v4746_v17 }
 0x1f5   : > { %v5939_v10 = vpop.f32.mrf.mxu1  ;;  %v4749_v31 = vadd.f32 %v5970_v42, %v4279_v35  ;;  %v4818_v53 = vmul.f32 %v4748_v1, %v4748_v1  ;;  %v3558_v12 = vadd.f32 %v8529_v39, %v3196_v43  ;;  %v3200_v39 = vadd.f32 %v8546_v51, %v8444_v9 }
 0x1f6   : > { %v4777_v13 = vadd.f32 %v4776_v29, %v4746_v17  ;;  %v4846_v15 = vadd.f32 %v4845_v22, %v4815_v3  ;;  %v4747_v60 = vadd.f32 %v4634_v25, %v4277_v6  ;;  %v5974_v28 = vpop.f32.mrf.mxu0  ;;  %v4282_v8 = vadd.f32 %v5939_v10, %v8520_v52 }
 0x1f7   : > { %v4177_v47 = vpop.f32.mrf.mxu1  ;;  %v4819_v2 = vmul.f32 %v4749_v31, %v4749_v31  ;;  %v3197_v6 = vadd.f32 %v8539_v62, %v8438_v11  ;;  %v3562_v43 = vadd.f32 %v8543_v50, %v3200_v39 }
 0x1f8   : > { %v4847_v21 = vadd.f32 %v4846_v15, %v4816_v63  ;;  %v4778_v44 = vadd.f32 %v4777_v13, %v4747_v60  ;;  %v4817_v7 = vmul.f32 %v4747_v60, %v4747_v60  ;;  %v4650_v19 = vpop.f32.mrf.mxu0  ;;  %v4280_v20 = vadd.f32 %v4177_v47, %v3554_v18 }
 0x1f9   : > { %v5940_v32 = vpop.f32.mrf.mxu1  ;;  %v4752_v52 = vadd.f32 %v5973_v46, %v4282_v8 }
 0x1fa   : > { %v4779_v25 = vadd.f32 %v4778_v44, %v4748_v1  ;;  %v4848_v58 = vadd.f32 %v4847_v21, %v4817_v7  ;;  %v5977_v27 = vpop.f32.mrf.mxu0  ;;  %v4750_v33 = vadd.f32 %v4647_v30, %v4280_v20  ;;  %v4283_v56 = vadd.f32 %v5940_v32, %v8527_v36 }
 0x1fb   : > { %v4180_v42 = vpop.f32.mrf.mxu1  ;;  %v4822_v15 = vmul.f32 %v4752_v52, %v4752_v52  ;;  %v3201_v20 = vadd.f32 %v8553_v38, %v8450_v59 }
 0x1fc   : > { %v4849_v23 = vadd.f32 %v4848_v58, %v4818_v53  ;;  %v4780_v17 = vadd.f32 %v4779_v25, %v4749_v31  ;;  %v4281_v26 = vadd.f32 %v4180_v42, %v3555_v34  ;;  %v4663_v3 = vpop.f32.mrf.mxu0  ;;  %v4820_v22 = vmul.f32 %v4750_v33, %v4750_v33 }
 0x1fd   : > { %v5943_v45 = vpop.f32.mrf.mxu1  ;;  %v4753_v30 = vadd.f32 %v5974_v28, %v4283_v56  ;;  %v3559_v31 = vadd.f32 %v8536_v61, %v3197_v6 }
 0x1fe   : > { %v4781_v16 = vadd.f32 %v4780_v17, %v4750_v33  ;;  %v4850_v49 = vadd.f32 %v4849_v23, %v4819_v2  ;;  %v4751_v29 = vadd.f32 %v4650_v19, %v4281_v26  ;;  %v5978_v35 = vpop.f32.mrf.mxu0  ;;  %v4286_v11 = vadd.f32 %v5943_v45, %v8534_v37 }
 0x1ff   : > { %v4193_v36 = vpop.f32.mrf.mxu1  ;;  %v4823_v28 = vmul.f32 %v4753_v30, %v4753_v30  ;;  %v3204_v26 = vadd.f32 %v8560_v54, %v8456_v55  ;;  %v3205_v55 = vadd.f32 %v8567_v41, %v8462_v24 }
 0x200   : > { %v4851_v0 = vadd.f32 %v4850_v49, %v4820_v22  ;;  %v4782_v1 = vadd.f32 %v4781_v16, %v4751_v29  ;;  %v4821_v10 = vmul.f32 %v4751_v29, %v4751_v29  ;;  %v4284_v13 = vadd.f32 %v4193_v36, %v3558_v12  ;;  %v4666_v63 = vpop.f32.mrf.mxu0 }
 0x201   : > { %v5944_v46 = vpop.f32.mrf.mxu1  ;;  %v4756_v25 = vadd.f32 %v5977_v27, %v4286_v11 }
 0x202   : > { %v4783_v60 = vadd.f32 %v4782_v1, %v4752_v52  ;;  %v4852_v18 = vadd.f32 %v4851_v0, %v4821_v10  ;;  %v4754_v47 = vadd.f32 %v4663_v3, %v4284_v13  ;;  %v5981_v21 = vpop.f32.mrf.mxu0  ;;  %v4287_v8 = vadd.f32 %v5944_v46, %v8541_v4 }
 0x203   : > { %v4196_v62 = vpop.f32.mrf.mxu1  ;;  %v3563_v4 = vadd.f32 %v8550_v48, %v3201_v20  ;;  %v4826_v3 = vmul.f32 %v4756_v25, %v4756_v25  ;;  %v3566_v48 = vadd.f32 %v8557_v5, %v3204_v26  ;;  %v8890_v5 = vld [vmem:[#allocation2_spill] sm:$0xff] }
 0x204   : > { %v4853_v44 = vadd.f32 %v4852_v18, %v4822_v15  ;;  %v4784_v7 = vadd.f32 %v4783_v60, %v4753_v30  ;;  %v4679_v19 = vpop.f32.mrf.mxu0  ;;  %v4285_v9 = vadd.f32 %v4196_v62, %v3559_v31  ;;  %v4824_v34 = vmul.f32 %v4754_v47, %v4754_v47  ;;  %v8891_v31 = vld [vmem:[#allocation25_spill] sm:$0xff] }
 0x205   : > { %v5947_v51 = vpop.f32.mrf.mxu1  ;;  %v4757_v2 = vadd.f32 %v5978_v35, %v4287_v8  ;;  %v3208_v11 = vadd.f32 %v8891_v31, %v8890_v5 }
 0x206   : > { %v4785_v32 = vadd.f32 %v4784_v7, %v4754_v47  ;;  %v4854_v53 = vadd.f32 %v4853_v44, %v4823_v28  ;;  %v5982_v61 = vpop.f32.mrf.mxu0  ;;  %v4755_v37 = vadd.f32 %v4666_v63, %v4285_v9  ;;  %v4290_v59 = vadd.f32 %v5947_v51, %v8548_v57  ;;  %v8892_v28 = vld [vmem:[#allocation18_spill] sm:$0xff] }
 0x207   : > { %v4209_v58 = vpop.f32.mrf.mxu1  ;;  %v4827_v49 = vmul.f32 %v4757_v2, %v4757_v2  ;;  %v3567_v47 = vadd.f32 %v8564_v40, %v3205_v55  ;;  %v8894_v40 = vld [vmem:[#allocation23_spill] sm:$0xff] }
 0x208   : > { %v4855_v33 = vadd.f32 %v4854_v53, %v4824_v34  ;;  %v4288_v56 = vadd.f32 %v4209_v58, %v3562_v43  ;;  %v4682_v42 = vpop.f32.mrf.mxu0  ;;  %v4786_v23 = vadd.f32 %v4785_v32, %v4755_v37  ;;  %v4825_v50 = vmul.f32 %v4755_v37, %v4755_v37  ;;  %v8893_v32 = vld [vmem:[#allocation21_spill] sm:$0xff]  ;;  %v8896_v37 = vld [vmem:[#allocation6_spill] sm:$0xff] }
 0x209   : > { %v5948_v17 = vpop.f32.mrf.mxu1  ;;  %v4760_v57 = vadd.f32 %v5981_v21, %v4290_v59 }
 0x20a   : > { %v4787_v12 = vadd.f32 %v4786_v23, %v4756_v25  ;;  %v4856_v27 = vadd.f32 %v4855_v33, %v4825_v50  ;;  %v4758_v52 = vadd.f32 %v4679_v19, %v4288_v56  ;;  %v4291_v6 = vadd.f32 %v5948_v17, %v8555_v14  ;;  %v8895_v25 = vld [vmem:[#allocation14_spill] sm:$0xff] }
 0x20b   : > { %v5985_v38 = vpop.f32.mrf.mxu0  ;;  %v4212_v45 = vpop.f32.mrf.mxu1  ;;  %v4830_v24 = vmul.f32 %v4760_v57, %v4760_v57  ;;  %v3209_v58 = vadd.f32 %v8896_v37, %v8895_v25 }
 0x20c   : > { %v4289_v16 = vadd.f32 %v4212_v45, %v3563_v4  ;;  %v4857_v29 = vadd.f32 %v4856_v27, %v4826_v3  ;;  %v4788_v35 = vadd.f32 %v4787_v12, %v4757_v2  ;;  %v4828_v1 = vmul.f32 %v4758_v52, %v4758_v52  ;;  %v8897_v45 = vld [vmem:[#allocation3_spill] sm:$0xff] }
 0x20d   : > { %v4695_v22 = vpop.f32.mrf.mxu0  ;;  %v5951_v30 = vpop.f32.mrf.mxu1  ;;  %v4761_v60 = vadd.f32 %v5982_v61, %v4291_v6  ;;  %v3570_v61 = vadd.f32 %v8894_v40, %v3208_v11  ;;  %v8906_v40 = vld [vmem:[#allocation13_spill] sm:$0xff] }
 0x20e   : > { %v4759_v54 = vadd.f32 %v4682_v42, %v4289_v16  ;;  %v4789_v0 = vadd.f32 %v4788_v35, %v4758_v52  ;;  %v4858_v10 = vadd.f32 %v4857_v29, %v4827_v49  ;;  %v4294_v44 = vadd.f32 %v5951_v30, %v8892_v28  ;;  %v8899_v49 = vld [vmem:[#allocation10_spill] sm:$0xff]  ;;  %v8900_v35 = vld [vmem:[#allocation4_spill] sm:$0xff] }
 0x20f   : > { %v5986_v36 = vpop.f32.mrf.mxu0  ;;  %v4225_v13 = vpop.f32.mrf.mxu1  ;;  %v4831_v9 = vmul.f32 %v4761_v60, %v4761_v60  ;;  %v3571_v16 = vadd.f32 %v8897_v45, %v3209_v58 }
 0x210   : > { %v4829_v63 = vmul.f32 %v4759_v54, %v4759_v54  ;;  %v4292_v39 = vadd.f32 %v4225_v13, %v3566_v48  ;;  %v4859_v15 = vadd.f32 %v4858_v10, %v4828_v1  ;;  %v4790_v18 = vadd.f32 %v4789_v0, %v4759_v54 }
 0x211   : > { %v4698_v46 = vpop.f32.mrf.mxu0  ;;  %v5952_v14 = vpop.f32.mrf.mxu1  ;;  %v4764_v42 = vadd.f32 %v5985_v38, %v4294_v44 }
 0x212   : > { %v4791_v21 = vadd.f32 %v4790_v18, %v4760_v57  ;;  %v4860_v62 = vadd.f32 %v4859_v15, %v4829_v63  ;;  %v4762_v7 = vadd.f32 %v4695_v22, %v4292_v39  ;;  %v4295_v34 = vadd.f32 %v5952_v14, %v8893_v32  ;;  %v8898_v22 = vld [vmem:[#allocation19_spill] sm:$0xff]  ;;  %v8903_v18 = vld [vmem:[#allocation9_spill] sm:$0xff] }
 0x213   : > { %v5989_v41 = vpop.f32.mrf.mxu0  ;;  %v4228_v19 = vpop.f32.mrf.mxu1  ;;  %v3212_v29 = vadd.f32 %v8899_v49, %v8898_v22  ;;  %v4834_v38 = vmul.f32 %v4764_v42, %v4764_v42  ;;  %v8902_v15 = vld [vmem:[#allocation7_spill] sm:$0xff]  ;;  %v8904_v14 = vld [vmem:[#allocation17_spill] sm:$0xff] }
 0x214   : > { %v4293_v43 = vadd.f32 %v4228_v19, %v3567_v47  ;;  %v4861_v51 = vadd.f32 %v4860_v62, %v4830_v24  ;;  %v4792_v20 = vadd.f32 %v4791_v21, %v4761_v60  ;;  %v4832_v23 = vmul.f32 %v4762_v7, %v4762_v7 }
 0x215   : > { %v4711_v8 = vpop.f32.mrf.mxu0  ;;  %v5955_v53 = vpop.f32.mrf.mxu1  ;;  %v4765_v12 = vadd.f32 %v5986_v36, %v4295_v34  ;;  %v8901_v36 = vld [vmem:[#allocation5_spill] sm:$0xff]  ;;  %v3574_v60 = vadd.f32 %v8902_v15, %v3212_v29  ;;  %v3213_v47 = vadd.f32 %v8904_v14, %v8903_v18 }
 0x216   : > { %v4763_v33 = vadd.f32 %v4698_v46, %v4293_v43  ;;  %v4793_v2 = vadd.f32 %v4792_v20, %v4762_v7  ;;  %v4862_v50 = vadd.f32 %v4861_v51, %v4831_v9  ;;  %v4298_v6 = vadd.f32 %v5955_v53, %v8900_v35  ;;  %v8905_v51 = vld [vmem:[#allocation15_spill] sm:$0xff] }
 0x217   : > { %v5990_v56 = vpop.f32.mrf.mxu0  ;;  %v4241_v17 = vpop.f32.mrf.mxu1  ;;  %v4835_v1 = vmul.f32 %v4765_v12, %v4765_v12  ;;  %v3575_v20 = vadd.f32 %v8905_v51, %v3213_v47 }
 0x218   : > { %v4833_v4 = vmul.f32 %v4763_v33, %v4763_v33  ;;  %v4296_v26 = vadd.f32 %v4241_v17, %v3570_v61  ;;  %v4863_v3 = vadd.f32 %v4862_v50, %v4832_v23  ;;  %v4794_v27 = vadd.f32 %v4793_v2, %v4763_v33  ;;  %v8907_v2 = vld [vmem:[#allocation20_spill] sm:$0xff] }
 0x219   : > { %v4714_v59 = vpop.f32.mrf.mxu0  ;;  %v5956_v52 = vpop.f32.mrf.mxu1  ;;  %v4768_v5 = vadd.f32 %v5989_v41, %v4298_v6 }
 0x21a   : > { %v4795_v48 = vadd.f32 %v4794_v27, %v4764_v42  ;;  %v4864_v55 = vadd.f32 %v4863_v3, %v4833_v4  ;;  %v4766_v57 = vadd.f32 %v4711_v8, %v4296_v26  ;;  %v4299_v63 = vadd.f32 %v5956_v52, %v8901_v36 }
 0x21b   : > { %v5993_v30 = vpop.f32.mrf.mxu0  ;;  %v4244_v54 = vpop.f32.mrf.mxu1  ;;  %v4838_v32 = vmul.f32 %v4768_v5, %v4768_v5 }
 0x21c   : > { %v4297_v0 = vadd.f32 %v4244_v54, %v3571_v16  ;;  %v4865_v10 = vadd.f32 %v4864_v55, %v4834_v38  ;;  %v4796_v13 = vadd.f32 %v4795_v48, %v4765_v12  ;;  %v4836_v24 = vmul.f32 %v4766_v57, %v4766_v57 }
 0x21d   : > { %v5959_v39 = vpop.f32.mrf.mxu1  ;;  %v4727_v46 = vpop.f32.mrf.mxu0  ;;  %v4769_v19 = vadd.f32 %v5990_v56, %v4299_v63 }
 0x21e   : > { %v4767_v31 = vadd.f32 %v4714_v59, %v4297_v0  ;;  %v4797_v11 = vadd.f32 %v4796_v13, %v4766_v57  ;;  %v4866_v21 = vadd.f32 %v4865_v10, %v4835_v1  ;;  %v4302_v61 = vadd.f32 %v5959_v39, %v8906_v40 }
 0x21f   : > { %v4257_v62 = vpop.f32.mrf.mxu1  ;;  %v5994_v9 = vpop.f32.mrf.mxu0  ;;  %v4839_v58 = vmul.f32 %v4769_v19, %v4769_v19 }
 0x220   : > { %v4837_v28 = vmul.f32 %v4767_v31, %v4767_v31  ;;  %v4300_v44 = vadd.f32 %v4257_v62, %v3574_v60  ;;  %v4867_v7 = vadd.f32 %v4866_v21, %v4836_v24  ;;  %v4798_v43 = vadd.f32 %v4797_v11, %v4767_v31 }
 0x221   : > { %v5960_v8 = vpop.f32.mrf.mxu1  ;;  %v4730_v50 = vpop.f32.mrf.mxu0  ;;  %v4772_v17 = vadd.f32 %v5993_v30, %v4302_v61 }
 0x222   : > { %v4799_v34 = vadd.f32 %v4798_v43, %v4768_v5  ;;  %v4868_v53 = vadd.f32 %v4867_v7, %v4837_v28  ;;  %v4770_v41 = vadd.f32 %v4727_v46, %v4300_v44  ;;  %v4303_v23 = vadd.f32 %v5960_v8, %v8907_v2 }
 0x223   : > { %v4260_v25 = vpop.f32.mrf.mxu1  ;;  %v4842_v45 = vmul.f32 %v4772_v17, %v4772_v17 }
 0x224   : > { %v4301_v37 = vadd.f32 %v4260_v25, %v3575_v20  ;;  %v4869_v33 = vadd.f32 %v4868_v53, %v4838_v32  ;;  %v4800_v42 = vadd.f32 %v4799_v34, %v4769_v19  ;;  %v4840_v26 = vmul.f32 %v4770_v41, %v4770_v41 }
 0x225   : > { %v4773_v27 = vadd.f32 %v5994_v9, %v4303_v23 }
 0x226   : > { %v4771_v56 = vadd.f32 %v4730_v50, %v4301_v37  ;;  %v4801_v4 = vadd.f32 %v4800_v42, %v4770_v41  ;;  %v4870_v59 = vadd.f32 %v4869_v33, %v4839_v58 }
 0x227   : > { %v4843_v49 = vmul.f32 %v4773_v27, %v4773_v27 }
 0x228   : > { %v4841_v3 = vmul.f32 %v4771_v56, %v4771_v56  ;;  %v4871_v12 = vadd.f32 %v4870_v59, %v4840_v26  ;;  %v4802_v52 = vadd.f32 %v4801_v4, %v4771_v56 }
 0x22a   : > { %v4803_v16 = vadd.f32 %v4802_v52, %v4772_v17  ;;  %v4872_v22 = vadd.f32 %v4871_v12, %v4841_v3 }
 0x22c   : > { %v4804_v29 = vadd.f32 %v4803_v16, %v4773_v27  ;;  %v4873_v35 = vadd.f32 %v4872_v22, %v4842_v45 }
 0x22e   : > { %v4805_v6 = vrot.slane %v4804_v29, 4  ;;  %v4874_v38 = vadd.f32 %v4873_v35, %v4843_v49 }
 0x230   : > { %v4806_v48 = vadd.f32 %v4805_v6, %v4804_v29  ;;  %v4875_v55 = vrot.slane %v4874_v38, 4 }
 0x232   : > { %v4807_v30 = vrot.slane %v4806_v48, 2  ;;  %v4876_v57 = vadd.f32 %v4875_v55, %v4874_v38 }
 0x234   : > { %v4808_v54 = vadd.f32 %v4807_v30, %v4806_v48  ;;  %v4877_v0 = vrot.slane %v4876_v57, 2 }
 0x236   : > { %v4809_v1 = vrot.slane %v4808_v54, 1  ;;  %v4878_v10 = vadd.f32 %v4877_v0, %v4876_v57 }
 0x238   : > { %v4810_v13 = vadd.f32 %v4809_v1, %v4808_v54  ;;  %v4879_v36 = vrot.slane %v4878_v10, 1 }
 0x23a   : > { %4811 = vst [vmem:[%s197_s17] sm:$0x1] %v4810_v13  ;;  %v4880_v63 = vadd.f32 %v4879_v36, %v4878_v10 }
 0x23c   : > { %4881 = vst [vmem:[%s203_s20] sm:$0x1] %v4880_v63 }
 0x23d PF: > { %s14_s14 = sadd.s32 1, %s6104_s14   ;;  %s8908_s12 = smov %s6100_s13 }
 0x23e   : > { %p11_p5 = scmp.ge.s32.totalorder %s14_s14, 4   ;;  %s8909_s13 = smov %s8911_s15 }
 0x240   :  { %13 = sbr.rel (!%p11_p5) target bundleno = 2 (0x2), region = 81 }

// kernel: conv_block.3
= control target key start
LH: loop header
LB: loop body
LE: loop exit
PB: predicated region body
PF: predicated region fallthrough
CT: control target
= control target key end

     0   :  { %s6232_s15 = smov 0   ;;  %s6234_s16 = smov 0   ;;  %s8963_s0 = inlined_call_operand.vmem [shape: bf16[2,18,18,4], index: 0, kind: input, shape index: {}]   ;;  %s8964_s1 = inlined_call_operand.vmem [shape: bf16[9,4,128], index: 1, kind: input, shape index: {}]   ;;  %s8965_s2 = inlined_call_operand.vmem [shape: f32[1,128], index: 2, kind: input, shape index: {}]   ;;  %s8966_s3 = inlined_call_operand.vmem [shape: f32[1,128], index: 3, kind: input, shape index: {}]   ;;  %s8967_s4 = inlined_call_operand.vmem [shape: f32[2,256,128], index: 4, kind: output, shape index: {}]  }
   0x1   :  { %s6236_s17 = smov 0  }
   0x2 LB: > { %s26_s18 = sadd.s32 1, %s6201_s16  ;;  %p5092_p0 = scmp.ge.s32.totalorder %s6205_s17, 1  ;;  %s6205_s17 = sphi %s6236_s17, %s14_s17   ;;  %s6201_s16 = sphi %s6234_s16, %s9239_s16   ;;  %s6197_s15 = sphi %s6232_s15, %s9238_s15  }
   0x3   : > { %p28_p1 = scmp.ge.s32.totalorder %s26_s18, 2  ;;  %p176_p2 = scmp.lt.s32.totalorder %s6205_s17, 3 }
   0x5   : > { %s9241_s18 = smov (%p28_p1, %s26_s18), 0  ;;  %p177_p3 = pnand %p5092_p0, %p176_p2 }
   0x7   : > { %180 = sbr.rel (%p177_p3) target bundleno = 560 (0x230), region = 36 }
   0xc   : > { %v5096_v0 = vld [vmem:[%s8964_s1 + $0x2] sm:$0x3]  ;;  %vm761_vm0 = vcmask 1041408   ;;  %p206_p4 = scmp.lt.s32.totalorder %s6197_s15, 1  ;;  %v258_v2 = vld [vmem:[%s8964_s1] sm:$0x3] }
   0xd   : > { %6099 = vmatprep.subr.msk.bf16.mxu1 %vm761_vm0, %v5096_v0  ;;  %6098 = vmatprep.subr.msk.bf16.mxu0 %vm761_vm0, %v5096_v0  ;;  %v763_v1 = vsel %vm761_vm0, %v5096_v0, 0  ;;  %v5177_v3 = vld [vmem:[%s8964_s1 + $0x4] sm:$0x3]  ;;  %vm275_vm1 = vsmask.f32 3328  ;;  %v6273_v4 = vsel %vm761_vm0, %v258_v2, 0 }
   0xe   : > { %6097 = vmatpush3.bf16.msra.mxu1 %v763_v1  ;;  %5791 = vmatpush3.bf16.msra.mxu0 %v763_v1  ;;  %s9243_s15 = smov (!%p206_p4, %s6197_s15), 1  ;;  %vm276_vm2 = vsmask.f32 7440  ;;  %vm712_vm3 = vcmask 31744   ;;  %v6299_v16 = vsel %vm761_vm0, %v5177_v3, 0  ;;  %vm1266_vm5 = vcmask 1042432  }
   0xf   : > { %6100 = vmatprep.subr.msk.bf16.mxu1 %vm761_vm0, %v258_v2  ;;  %6101 = vmatprep.subr.msk.bf16.mxu0 %vm761_vm0, %v5177_v3  ;;  %s6108_s25 = smul.u32 216, %s9243_s15  ;;  %vm6314_vm4 = vmor %vm275_vm1, %vm276_vm2  ;;  %vm1267_vm6 = vcmask 1046532   ;;  %s5636_s23 = sshll.u32 %s9243_s15, 8 }
  0x10   : > { %vm6600_vm7 = vmor %vm1266_vm5, %vm1267_vm6 }
  0x11   : > { %s6270_s28 = scalar_lea.vmem %s8963_s0, %s6108_s25  ;;  %s8779_s25 = scalar_lea.vmem %s8967_s4, %s5636_s23 }
  0x12   : > { %v6276_v5 = vld [vmem:[%s6270_s28] sm:$0xf]  ;;  %v6279_v6 = vld [vmem:[%s6270_s28 + $0x4] sm:$0xf]  ;;  %v6282_v7 = vld [vmem:[%s6270_s28 + $0x8] sm:$0x1] }
  0x13   : > { %v279_v8 = vshrl.u32 %v6276_v5, 16  ;;  %v282_v9 = vshll.u32 %v6276_v5, 16  ;;  %v288_v10 = vshll.u32 %v6279_v6, 16  ;;  %v292_v11 = vshrl.u32 %v6279_v6, 16  ;;  %v6289_v12 = vld [vmem:[%s6270_s28 + $0x60] sm:$0xf] }
  0x14   : > { %v298_v13 = vshll.u32 %v6282_v7, 16  ;;  %v6293_v14 = vld [vmem:[%s6270_s28 + $0x64] sm:$0xf]  ;;  %v6296_v15 = vld [vmem:[%s6270_s28 + $0x68] sm:$0x1]  ;;  %v471_v22 = vshrl.u32 %v6289_v12, 16 }
  0x15   : > { %v281_v17 = vrot.slane %v279_v8, 4  ;;  %v284_v18 = vrot.slane %v282_v9, 5  ;;  %v290_v19 = vrot.slane %v288_v10, 5  ;;  %v294_v20 = vrot.slane %v292_v11, 4  ;;  %v6307_v29 = vld [vmem:[%s6270_s28 + $0xc] sm:$0xf] }
  0x16   : > { %v300_v21 = vrot.slane %v298_v13, 5  ;;  %v474_v23 = vshll.u32 %v6289_v12, 16  ;;  %v480_v24 = vshll.u32 %v6293_v14, 16  ;;  %v484_v27 = vshrl.u32 %v6293_v14, 16  ;;  %v6310_v30 = vld [vmem:[%s6270_s28 + $0x10] sm:$0xf] }
  0x17   : > { %v285_v25 = vor.u32 %v284_v18, %v281_v17  ;;  %v295_v26 = vor.u32 %v294_v20, %v290_v19  ;;  %v490_v28 = vshll.u32 %v6296_v15, 16  ;;  %v473_v33 = vrot.slane %v471_v22, 4  ;;  %v6320_v41 = vld [vmem:[%s6270_s28 + $0x14] sm:$0x1]  ;;  %v6331_v53 = vld [vmem:[%s6270_s28 + $0x6c] sm:$0xf] }
  0x18   : > { %v476_v34 = vrot.slane %v474_v23, 5  ;;  %v482_v35 = vrot.slane %v480_v24, 5  ;;  %v486_v38 = vrot.slane %v484_v27, 4  ;;  %v303_v42 = vshrl.u32 %v6307_v29, 16  ;;  %v6335_v58 = vld [vmem:[%s6270_s28 + $0x70] sm:$0xf] }
  0x19   : > { %v286_v36 = vrot.slane %v285_v25, 4  ;;  %v296_v37 = vrot.slane %v295_v26, 4  ;;  %v492_v39 = vrot.slane %v490_v28, 5  ;;  %v306_v43 = vshll.u32 %v6307_v29, 16  ;;  %v6343_v63 = vld [vmem:[%s6270_s28 + $0x74] sm:$0x1] }
  0x1a   : > { %v477_v40 = vor.u32 %v476_v34, %v473_v33  ;;  %v312_v44 = vshll.u32 %v6310_v30, 16  ;;  %v487_v47 = vor.u32 %v486_v38, %v482_v35  ;;  %v316_v48 = vshrl.u32 %v6310_v30, 16  ;;  %v6349_v8 = vld [vmem:[%s6270_s28 + $0x18] sm:$0xf]  ;;  %v6362_v25 = vld [vmem:[%s6270_s28 + $0x20] sm:$0x1] }
  0x1b   : > { %v291_v45 = vsel %vm6314_vm4, %v286_v36, %v290_v19  ;;  %v301_v46 = vsel %vm6314_vm4, %v296_v37, %v300_v21  ;;  %v305_v51 = vrot.slane %v303_v42, 4  ;;  %v308_v52 = vrot.slane %v306_v43, 5  ;;  %v6356_v21 = vld [vmem:[%s6270_s28 + $0x1c] sm:$0xf] }
  0x1c   : > { %v5097_v49 = vcombine.low %v291_v45, %v301_v46  ;;  %v478_v50 = vrot.slane %v477_v40, 4  ;;  %v488_v54 = vrot.slane %v487_v47, 4  ;;  %v314_v55 = vrot.slane %v312_v44, 5  ;;  %v6375_v40 = vld [vmem:[%s8964_s1 + $0x8] sm:$0x3] }
  0x1d   : > { %v318_v56 = vrot.slane %v316_v48, 4  ;;  %v322_v57 = vshll.u32 %v6320_v41, 16  ;;  %v309_v60 = vor.u32 %v308_v52, %v305_v51  ;;  %v495_v3 = vshrl.u32 %v6331_v53, 16  ;;  %v6380_v46 = vld [vmem:[%s6270_s28 + $0x7c] sm:$0xf] }
  0x1e   : > { %5792 = vmatprep.mubr.msk.bf16.mxu0 %vm712_vm3, %v5097_v49  ;;  %v483_v59 = vsel %vm6314_vm4, %v478_v50, %v482_v35  ;;  %v493_v0 = vsel %vm6314_vm4, %v488_v54, %v492_v39  ;;  %v498_v11 = vshll.u32 %v6331_v53, 16  ;;  %v504_v13 = vshll.u32 %v6335_v58, 16  ;;  %v6369_v35 = vld [vmem:[%s6270_s28 + $0x78] sm:$0xf] }
  0x1f   : > { %v319_v1 = vor.u32 %v318_v56, %v314_v55  ;;  %v324_v2 = vrot.slane %v322_v57, 5  ;;  %v5105_v9 = vcombine.low %v483_v59, %v493_v0  ;;  %v310_v10 = vrot.slane %v309_v60, 4  ;;  %v6387_v56 = vld [vmem:[%s6270_s28 + $0x80] sm:$0x1] }
  0x20   : > { %v497_v18 = vrot.slane %v495_v3, 4  ;;  %v508_v19 = vshrl.u32 %v6335_v58, 16  ;;  %v514_v20 = vshll.u32 %v6343_v63, 16  ;;  %v500_v23 = vrot.slane %v498_v11, 5  ;;  %9003 = vst [vmem:[#allocation2_spill] sm:$0xff] %v6387_v56 }
  0x21   : > { %v320_v17 = vrot.slane %v319_v1, 4  ;;  %5808 = vmatprep.mubr.msk.bf16.mxu1 %vm712_vm3, %v5105_v9  ;;  %v315_v22 = vsel %vm6314_vm4, %v310_v10, %v314_v55  ;;  %v506_v24 = vrot.slane %v504_v13, 5  ;;  %v327_v26 = vshrl.u32 %v6349_v8, 16  ;;  %v6393_v1 = vld [vmem:[%s6270_s28 + $0x24] sm:$0xf] }
  0x22   : > { %v510_v28 = vrot.slane %v508_v19, 4  ;;  %v516_v33 = vrot.slane %v514_v20, 5  ;;  %v330_v34 = vshll.u32 %v6349_v8, 16  ;;  %v501_v37 = vor.u32 %v500_v23, %v497_v18  ;;  %v6401_v10 = vld [vmem:[%s6270_s28 + $0x28] sm:$0xf] }
  0x23   : > { %v325_v27 = vsel %vm6314_vm4, %v320_v17, %v324_v2  ;;  %v329_v38 = vrot.slane %v327_v26, 4  ;;  %v336_v39 = vshll.u32 %v6356_v21, 16  ;;  %v340_v44 = vshrl.u32 %v6356_v21, 16  ;;  %v6407_v19 = vld [vmem:[%s8964_s1 + $0x6] sm:$0x3] }
  0x24   : > { %v5098_v36 = vcombine.low %v315_v22, %v325_v27  ;;  %v511_v42 = vor.u32 %v510_v28, %v506_v24  ;;  %v332_v43 = vrot.slane %v330_v34, 5  ;;  %v346_v45 = vshll.u32 %v6362_v25, 16 }
  0x25   : > { %v502_v47 = vrot.slane %v501_v37, 4  ;;  %v338_v48 = vrot.slane %v336_v39, 5  ;;  %v519_v49 = vshrl.u32 %v6369_v35, 16  ;;  %v522_v50 = vshll.u32 %v6369_v35, 16 }
  0x26   : > { %5793 = vmatmul.mubr.msk.bf16.vlgmr.msra.gmra.mxu0 %vm712_vm3, %v5098_v36  ;;  %v512_v51 = vrot.slane %v511_v42, 4  ;;  %v333_v52 = vor.u32 %v332_v43, %v329_v38  ;;  %v342_v54 = vrot.slane %v340_v44, 4  ;;  %v348_v55 = vrot.slane %v346_v45, 5  ;;  %v6419_v36 = vld [vmem:[%s6270_s28 + $0x84] sm:$0xf] }
  0x27   : > { %5859 = vmatpush3.bf16.msra.mxu0 %v6299_v16  ;;  %v507_v57 = vsel %vm6314_vm4, %v502_v47, %v506_v24  ;;  %v521_v59 = vrot.slane %v519_v49, 4  ;;  %v524_v60 = vrot.slane %v522_v50, 5  ;;  %v528_v0 = vshll.u32 %v6380_v46, 16  ;;  %v6412_v24 = vld [vmem:[%s6270_s28 + $0x2c] sm:$0x1] }
  0x28   : > { %6103 = vmatprep.subr.msk.bf16.mxu0 %vm761_vm0, %v6375_v40  ;;  %v517_v16 = vsel %vm6314_vm4, %v512_v51, %v516_v33  ;;  %v334_v2 = vrot.slane %v333_v52, 4  ;;  %v343_v3 = vor.u32 %v342_v54, %v338_v48  ;;  %v532_v9 = vshrl.u32 %v6380_v46, 16  ;;  %v6426_v43 = vld [vmem:[%s6270_s28 + $0x88] sm:$0xf]  ;;  %v6434_v51 = vld [vmem:[%s6270_s28 + $0x8c] sm:$0x1] }
  0x29   : > { %v5106_v11 = vcombine.low %v507_v57, %v517_v16  ;;  %v525_v13 = vor.u32 %v524_v60, %v521_v59  ;;  %v530_v17 = vrot.slane %v528_v0, 5  ;;  %v538_v18 = vshll.u32 %v6387_v56, 16  ;;  %9004 = vst [vmem:[#allocation3_spill] sm:$0xff] %v6434_v51  ;;  %v6442_v60 = vld [vmem:[%s6270_s28 + $0x30] sm:$0xf] }
  0x2a   : > { %v339_v20 = vsel %vm6314_vm4, %v334_v2, %v338_v48  ;;  %v344_v22 = vrot.slane %v343_v3, 4  ;;  %v534_v23 = vrot.slane %v532_v9, 4  ;;  %v351_v26 = vshrl.u32 %v6393_v1, 16  ;;  %v6447_v9 = vld [vmem:[%s6270_s28 + $0x34] sm:$0xf] }
  0x2b   : > { %5809 = vmatmul.mubr.msk.bf16.vlgmr.msra.gmra.mxu1 %vm712_vm3, %v5106_v11  ;;  %v526_v27 = vrot.slane %v525_v13, 4  ;;  %v540_v28 = vrot.slane %v538_v18, 5  ;;  %v354_v33 = vshll.u32 %v6393_v1, 16  ;;  %v360_v34 = vshll.u32 %v6401_v10, 16 }
  0x2c   : > { %5825 = vmatpush3.bf16.msra.mxu1 %v6273_v4  ;;  %v349_v37 = vsel %vm6314_vm4, %v344_v22, %v348_v55  ;;  %v535_v38 = vor.u32 %v534_v23, %v530_v17  ;;  %v353_v39 = vrot.slane %v351_v26, 4  ;;  %v364_v42 = vshrl.u32 %v6401_v10, 16 }
  0x2d   : > { %v5099_v44 = vcombine.low %v339_v20, %v349_v37  ;;  %v531_v45 = vsel %vm6314_vm4, %v526_v27, %v530_v17  ;;  %v356_v47 = vrot.slane %v354_v33, 5  ;;  %v362_v48 = vrot.slane %v360_v34, 5  ;;  %6102 = vmatprep.subr.msk.bf16.mxu1 %vm761_vm0, %v6407_v19  ;;  %v6455_v33 = vld [vmem:[%s6270_s28 + $0x38] sm:$0x1] }
  0x2e   : > { %v536_v4 = vrot.slane %v535_v38, 4  ;;  %v366_v49 = vrot.slane %v364_v42, 4  ;;  %v370_v50 = vshll.u32 %v6412_v24, 16  ;;  %v543_v52 = vshrl.u32 %v6419_v36, 16  ;;  %v6460_v38 = vld [vmem:[%s6270_s28 + $0x90] sm:$0xf] }
  0x2f   : > { %5796 = vmatprep.mubr.msk.bf16.mxu0 %vm712_vm3, %v5099_v44  ;;  %v357_v54 = vor.u32 %v356_v47, %v353_v39  ;;  %v546_v55 = vshll.u32 %v6419_v36, 16  ;;  %v552_v57 = vshll.u32 %v6426_v43, 16  ;;  %v556_v59 = vshrl.u32 %v6426_v43, 16  ;;  %9005 = vst [vmem:[#allocation4_spill] sm:$0xff] %v6460_v38  ;;  %v6465_v47 = vld [vmem:[%s6270_s28 + $0x94] sm:$0xf] }
  0x30   : > { %v541_v0 = vsel %vm6314_vm4, %v536_v4, %v540_v28  ;;  %v367_v16 = vor.u32 %v366_v49, %v362_v48  ;;  %v372_v2 = vrot.slane %v370_v50, 5  ;;  %v545_v3 = vrot.slane %v543_v52, 4  ;;  %9006 = vst [vmem:[#allocation5_spill] sm:$0xff] %v6465_v47 }
  0x31   : > { %v5107_v11 = vcombine.low %v531_v45, %v541_v0  ;;  %v358_v13 = vrot.slane %v357_v54, 4  ;;  %v548_v17 = vrot.slane %v546_v55, 5  ;;  %v554_v18 = vrot.slane %v552_v57, 5 }
  0x32   : > { %v368_v20 = vrot.slane %v367_v16, 4  ;;  %v558_v22 = vrot.slane %v556_v59, 4  ;;  %v562_v23 = vshll.u32 %v6434_v51, 16  ;;  %v375_v26 = vshrl.u32 %v6442_v60, 16  ;;  %v6474_v16 = vld [vmem:[%s6270_s28 + $0x98] sm:$0x1] }
  0x33   : > { %5812 = vmatprep.mubr.msk.bf16.mxu1 %vm712_vm3, %v5107_v11  ;;  %v363_v27 = vsel %vm6314_vm4, %v358_v13, %v362_v48  ;;  %v549_v28 = vor.u32 %v548_v17, %v545_v3  ;;  %v378_v34 = vshll.u32 %v6442_v60, 16  ;;  %v384_v37 = vshll.u32 %v6447_v9, 16  ;;  %9007 = vst [vmem:[#allocation6_spill] sm:$0xff] %v6474_v16  ;;  %v6479_v11 = vld [vmem:[%s6270_s28 + $0x3c] sm:$0xf] }
  0x34   : > { %v373_v39 = vsel %vm6314_vm4, %v368_v20, %v372_v2  ;;  %v559_v42 = vor.u32 %v558_v22, %v554_v18  ;;  %v564_v44 = vrot.slane %v562_v23, 5  ;;  %v377_v45 = vrot.slane %v375_v26, 4  ;;  %v6484_v23 = vld [vmem:[%s6270_s28 + $0x40] sm:$0xf]  ;;  %v1219_v51 = vld [vmem:[%s6270_s28 + $0xc] sm:$0xe] }
  0x35   : > { %v5100_v48 = vcombine.low %v363_v27, %v373_v39  ;;  %v550_v4 = vrot.slane %v549_v28, 4  ;;  %v380_v49 = vrot.slane %v378_v34, 5  ;;  %v386_v50 = vrot.slane %v384_v37, 5 }
  0x36   : > { %v560_v52 = vrot.slane %v559_v42, 4  ;;  %v388_v54 = vshrl.u32 %v6447_v9, 16  ;;  %v394_v55 = vshll.u32 %v6455_v33, 16  ;;  %v567_v57 = vshrl.u32 %v6460_v38, 16 }
  0x37   : > { %5797 = vmatmul.mubr.msk.bf16.gmra.mxu0 %vm712_vm3, %v5100_v48  ;;  %v555_v59 = vsel %vm6314_vm4, %v550_v4, %v554_v18  ;;  %v381_v0 = vor.u32 %v380_v49, %v377_v45  ;;  %v570_v2 = vshll.u32 %v6460_v38, 16  ;;  %v576_v3 = vshll.u32 %v6465_v47, 16  ;;  %v6493_v48 = vld [vmem:[%s6270_s28 + $0x44] sm:$0x1] }
  0x38   : > { %v565_v13 = vsel %vm6314_vm4, %v560_v52, %v564_v44  ;;  %v390_v17 = vrot.slane %v388_v54, 4  ;;  %v396_v20 = vrot.slane %v394_v55, 5  ;;  %v569_v22 = vrot.slane %v567_v57, 4  ;;  %v6498_v52 = vld [vmem:[%s6270_s28 + $0x9c] sm:$0xf] }
  0x39   : > { %v5108_v18 = vcombine.low %v555_v59, %v565_v13  ;;  %v382_v26 = vrot.slane %v381_v0, 4  ;;  %v572_v27 = vrot.slane %v570_v2, 5  ;;  %v578_v28 = vrot.slane %v576_v3, 5  ;;  %9008 = vst [vmem:[#allocation7_spill] sm:$0xff] %v6498_v52  ;;  %v6502_v13 = vld [vmem:[%s6270_s28 + $0xa0] sm:$0xf] }
  0x3a   : > { %v391_v34 = vor.u32 %v390_v17, %v386_v50  ;;  %v580_v37 = vshrl.u32 %v6465_v47, 16  ;;  %v586_v39 = vshll.u32 %v6474_v16, 16  ;;  %v399_v42 = vshrl.u32 %v6479_v11, 16  ;;  %9009 = vst [vmem:[#allocation8_spill] sm:$0xff] %v6502_v13 }
  0x3b   : > { %5813 = vmatmul.mubr.msk.bf16.gmra.mxu1 %vm712_vm3, %v5108_v18  ;;  %v387_v44 = vsel %vm6314_vm4, %v382_v26, %v386_v50  ;;  %v573_v45 = vor.u32 %v572_v27, %v569_v22  ;;  %v402_v4 = vshll.u32 %v6479_v11, 16  ;;  %v408_v49 = vshll.u32 %v6484_v23, 16  ;;  %v6508_v26 = vld [vmem:[%s6270_s28 + $0xa4] sm:$0x1] }
  0x3c   : > { %v392_v54 = vrot.slane %v391_v34, 4  ;;  %v582_v55 = vrot.slane %v580_v37, 4  ;;  %v588_v57 = vrot.slane %v586_v39, 5  ;;  %v401_v59 = vrot.slane %v399_v42, 4  ;;  %9010 = vst [vmem:[#allocation9_spill] sm:$0xff] %v6508_v26 }
  0x3d   : > { %v574_v0 = vrot.slane %v573_v45, 4  ;;  %v404_v2 = vrot.slane %v402_v4, 5  ;;  %v410_v3 = vrot.slane %v408_v49, 5  ;;  %v412_v50 = vshrl.u32 %v6484_v23, 16  ;;  %v6512_v34 = vld [vmem:[%s6270_s28 + $0x48] sm:$0xf] }
  0x3e   : > { %v397_v17 = vsel %vm6314_vm4, %v392_v54, %v396_v20  ;;  %v583_v22 = vor.u32 %v582_v55, %v578_v28  ;;  %v418_v18 = vshll.u32 %v6493_v48, 16  ;;  %v591_v27 = vshrl.u32 %v6498_v52, 16 }
  0x3f   : > { %v5101_v37 = vcombine.low %v387_v44, %v397_v17  ;;  %v579_v39 = vsel %vm6314_vm4, %v574_v0, %v578_v28  ;;  %v405_v42 = vor.u32 %v404_v2, %v401_v59  ;;  %v414_v45 = vrot.slane %v412_v50, 4  ;;  %v6521_v17 = vld [vmem:[%s6270_s28 + $0x4c] sm:$0xf]  ;;  %v6527_v2 = vld [vmem:[%s6270_s28 + $0x50] sm:$0x1] }
  0x40   : > { %v584_v4 = vrot.slane %v583_v22, 4  ;;  %v420_v49 = vrot.slane %v418_v18, 5  ;;  %v593_v20 = vrot.slane %v591_v27, 4  ;;  %v594_v54 = vshll.u32 %v6498_v52, 16 }
  0x41   : > { %5800 = vmatprep.mubr.msk.bf16.mxu0 %vm712_vm3, %v5101_v37  ;;  %v406_v55 = vrot.slane %v405_v42, 4  ;;  %v415_v62 = vor.u32 %v414_v45, %v410_v3  ;;  %v600_v32 = vshll.u32 %v6502_v13, 16  ;;  %v604_v44 = vshrl.u32 %v6502_v13, 16  ;;  %v6533_v42 = vld [vmem:[%s6270_s28 + $0xa8] sm:$0xf] }
  0x42   : > { %v589_v28 = vsel %vm6314_vm4, %v584_v4, %v588_v57  ;;  %v596_v59 = vrot.slane %v594_v54, 5  ;;  %v610_v0 = vshll.u32 %v6508_v26, 16  ;;  %v423_v50 = vshrl.u32 %v6512_v34, 16  ;;  %9011 = vst [vmem:[#allocation10_spill] sm:$0xff] %v6533_v42 }
  0x43   : > { %v5109_v22 = vcombine.low %v579_v39, %v589_v28  ;;  %v411_v18 = vsel %vm6314_vm4, %v406_v55, %v410_v3  ;;  %v416_v27 = vrot.slane %v415_v62, 4  ;;  %v602_v37 = vrot.slane %v600_v32, 5 }
  0x44   : > { %v597_v45 = vor.u32 %v596_v59, %v593_v20  ;;  %v606_v61 = vrot.slane %v604_v44, 4  ;;  %v612_v57 = vrot.slane %v610_v0, 5  ;;  %v425_v4 = vrot.slane %v423_v50, 4  ;;  %v6543_v44 = vld [vmem:[%s6270_s28 + $0xac] sm:$0xf] }
  0x45   : > { %5816 = vmatprep.mubr.msk.bf16.mxu1 %vm712_vm3, %v5109_v22  ;;  %v421_v54 = vsel %vm6314_vm4, %v416_v27, %v420_v49  ;;  %v426_v39 = vshll.u32 %v6512_v34, 16  ;;  %v432_v28 = vshll.u32 %v6521_v17, 16  ;;  %v436_v62 = vshrl.u32 %v6521_v17, 16  ;;  %9012 = vst [vmem:[#allocation11_spill] sm:$0xff] %v6543_v44  ;;  %v6546_v22 = vld [vmem:[%s6270_s28 + $0xb0] sm:$0x1] }
  0x46   : > { %v5102_v3 = vcombine.low %v411_v18, %v421_v54  ;;  %v598_v32 = vrot.slane %v597_v45, 4  ;;  %v607_v55 = vor.u32 %v606_v61, %v602_v37  ;;  %v442_v20 = vshll.u32 %v6527_v2, 16  ;;  %9013 = vst [vmem:[#allocation12_spill] sm:$0xff] %v6546_v22 }
  0x47   : > { %v428_v59 = vrot.slane %v426_v39, 5  ;;  %v434_v0 = vrot.slane %v432_v28, 5  ;;  %v438_v50 = vrot.slane %v436_v62, 4  ;;  %v615_v49 = vshrl.u32 %v6533_v42, 16  ;;  %v6555_v62 = vld [vmem:[%s6270_s28 + $0x54] sm:$0xf] }
  0x48   : > { %5801 = vmatmul.mubr.msk.bf16.gmra.mxu0 %vm712_vm3, %v5102_v3  ;;  %v603_v18 = vsel %vm6314_vm4, %v598_v32, %v602_v37  ;;  %v608_v27 = vrot.slane %v607_v55, 4  ;;  %v444_v61 = vrot.slane %v442_v20, 5  ;;  %v618_v45 = vshll.u32 %v6533_v42, 16  ;;  %v6562_v55 = vld [vmem:[%s6270_s28 + $0x58] sm:$0xf] }
  0x49   : > { %v429_v54 = vor.u32 %v428_v59, %v425_v4  ;;  %v439_v56 = vor.u32 %v438_v50, %v434_v0  ;;  %v617_v39 = vrot.slane %v615_v49, 4  ;;  %v624_v28 = vshll.u32 %v6543_v44, 16  ;;  %v6565_v49 = vld [vmem:[%s6270_s28 + $0x5c] sm:$0x1] }
  0x4a   : > { %v613_v3 = vsel %vm6314_vm4, %v608_v27, %v612_v57  ;;  %v620_v26 = vrot.slane %v618_v45, 5  ;;  %v628_v37 = vshrl.u32 %v6543_v44, 16  ;;  %v634_v32 = vshll.u32 %v6546_v22, 16  ;;  %v1218_v22 = vld [vmem:[%s6270_s28] sm:$0xe] }
  0x4b   : > { %v5110_v4 = vcombine.low %v603_v18, %v613_v3  ;;  %v430_v20 = vrot.slane %v429_v54, 4  ;;  %v440_v59 = vrot.slane %v439_v56, 4  ;;  %v626_v50 = vrot.slane %v624_v28, 5  ;;  %v6576_v54 = vld [vmem:[%s6270_s28 + $0xb4] sm:$0xf] }
  0x4c   : > { %v621_v42 = vor.u32 %v620_v26, %v617_v39  ;;  %v630_v52 = vrot.slane %v628_v37, 4  ;;  %v636_v13 = vrot.slane %v634_v32, 5  ;;  %v447_v57 = vshrl.u32 %v6555_v62, 16  ;;  %9014 = vst [vmem:[#allocation13_spill] sm:$0xff] %v6576_v54  ;;  %v6579_v37 = vld [vmem:[%s6270_s28 + $0xb8] sm:$0xf] }
  0x4d   : > { %5817 = vmatmul.mubr.msk.bf16.gmra.mxu1 %vm712_vm3, %v5110_v4  ;;  %v435_v27 = vsel %vm6314_vm4, %v430_v20, %v434_v0  ;;  %v445_v18 = vsel %vm6314_vm4, %v440_v59, %v444_v61  ;;  %v450_v56 = vshll.u32 %v6555_v62, 16  ;;  %v456_v45 = vshll.u32 %v6562_v55, 16  ;;  %v6584_v61 = vld [vmem:[%s6270_s28 + $0xbc] sm:$0x1] }
  0x4e   : > { %v5103_v26 = vcombine.low %v435_v27, %v445_v18  ;;  %v622_v39 = vrot.slane %v621_v42, 4  ;;  %v631_v28 = vor.u32 %v630_v52, %v626_v50  ;;  %v449_v3 = vrot.slane %v447_v57, 4 }
  0x4f   : > { %v452_v32 = vrot.slane %v450_v56, 5  ;;  %v458_v4 = vrot.slane %v456_v45, 5  ;;  %v460_v0 = vshrl.u32 %v6562_v55, 16  ;;  %v466_v20 = vshll.u32 %v6565_v49, 16 }
  0x50   : > { %5804 = vmatprep.mubr.msk.bf16.mxu0 %vm712_vm3, %v5103_v26  ;;  %v627_v59 = vsel %vm6314_vm4, %v622_v39, %v626_v50  ;;  %v632_v27 = vrot.slane %v631_v28, 4  ;;  %v639_v52 = vshrl.u32 %v6576_v54, 16  ;;  %v642_v42 = vshll.u32 %v6576_v54, 16 }
  0x51   : > { %v453_v57 = vor.u32 %v452_v32, %v449_v3  ;;  %v462_v18 = vrot.slane %v460_v0, 4  ;;  %v468_v56 = vrot.slane %v466_v20, 5  ;;  %v648_v45 = vshll.u32 %v6579_v37, 16 }
  0x52   : > { %v637_v44 = vsel %vm6314_vm4, %v632_v27, %v636_v13  ;;  %v641_v16 = vrot.slane %v639_v52, 4  ;;  %v644_v26 = vrot.slane %v642_v42, 5  ;;  %v652_v38 = vshrl.u32 %v6579_v37, 16 }
  0x53   : > { %v5111_v50 = vcombine.low %v627_v59, %v637_v44  ;;  %v454_v39 = vrot.slane %v453_v57, 4  ;;  %v463_v28 = vor.u32 %v462_v18, %v458_v4  ;;  %v650_v47 = vrot.slane %v648_v45, 5  ;;  %v1220_v57 = vld [vmem:[%s6270_s28 + $0x18] sm:$0xe] }
  0x54   : > { %v645_v54 = vor.u32 %v644_v26, %v641_v16  ;;  %v654_v3 = vrot.slane %v652_v38, 4  ;;  %v658_v32 = vshll.u32 %v6584_v61, 16  ;;  %v5161_v13 = vrot.slane %v1218_v22, 9 }
  0x55   : > { %5820 = vmatprep.mubr.msk.bf16.mxu1 %vm712_vm3, %v5111_v50  ;;  %v459_v44 = vsel %vm6314_vm4, %v454_v39, %v458_v4  ;;  %v464_v20 = vrot.slane %v463_v28, 4  ;;  %v1271_v59 = vrot.slane %v6279_v6, 5  ;;  %v5130_v38 = vcombine.low %v6307_v29, %v6310_v30 }
  0x56   : > { %v646_v16 = vrot.slane %v645_v54, 4  ;;  %v655_v27 = vor.u32 %v654_v3, %v650_v47  ;;  %v660_v52 = vrot.slane %v658_v32, 5  ;;  %v5162_v42 = vrot.slane %v1219_v51, 9 }
  0x57   : > { %v469_v18 = vsel %vm6314_vm4, %v464_v20, %v468_v56  ;;  %v1272_v22 = vsel %vm6600_vm7, %v5161_v13, %v1271_v59  ;;  %v1273_v45 = vrot.slane %v1271_v59, 4  ;;  %v9017_v4 = vrot.slane %v6310_v30, 5 }
  0x58   : > { %v5104_v50 = vcombine.low %v459_v44, %v469_v18  ;;  %v651_v54 = vsel %vm6314_vm4, %v646_v16, %v650_v47  ;;  %v656_v39 = vrot.slane %v655_v27, 4  ;;  %v5129_v51 = vcombine.low %v6276_v5, %v6279_v6  ;;  %v1221_v27 = vld [vmem:[%s6270_s28 + $0x24] sm:$0xe] }
  0x59   : > { %v1280_v26 = vrot.slane %v9017_v4, 4  ;;  %v9018_v28 = vrot.slane %v6282_v7, 5  ;;  %v9019_v3 = vmov %v9017_v4  ;;  %v5131_v13 = vcombine.low %v6349_v8, %v6356_v21  ;;  %v1223_v4 = vld [vmem:[%s6270_s28 + $0x3c] sm:$0xe] }
  0x5a   : > { %v1279_v32 = vsel %vm6600_vm7, %v5162_v42, %v9019_v3  ;;  %v5163_v44 = vrot.slane %v1220_v57, 9  ;;  %5805 = vmatmul.mubr.msk.bf16.gmra.mxu0 %vm712_vm3, %v5104_v50  ;;  %v661_v47 = vsel %vm6314_vm4, %v656_v39, %v660_v52  ;;  %v9020_v6 = vrot.slane %v6320_v41, 5  ;;  %v1222_v42 = vld [vmem:[%s6270_s28 + $0x30] sm:$0xe]  ;;  %v1224_v39 = vld [vmem:[%s6270_s28 + $0x48] sm:$0xe] }
  0x5b   : > { %v1275_v56 = vsel %vm6600_vm7, %v1273_v45, %v9018_v28  ;;  %v1285_v20 = vrot.slane %v6356_v21, 5  ;;  %v5112_v59 = vcombine.low %v651_v54, %v661_v47  ;;  %v1288_v16 = vrot.slane %v6362_v25, 5  ;;  %v1225_v47 = vld [vmem:[%s6270_s28 + $0x54] sm:$0xe]  ;;  %v6895_v21 = vld [vmem:[%s6270_s28 + $0x2c] sm:$0x1] }
  0x5c   : > { %v5178_v5 = vcombine.low %v1272_v22, %v1275_v56  ;;  %v1282_v7 = vsel %vm6600_vm7, %v1280_v26, %v9020_v6  ;;  %v1842_v52 = vsel %vm761_vm0, %v6407_v19, 0  ;;  %v1292_v18 = vrot.slane %v6401_v10, 5 }
  0x5d   : > { %v1286_v41 = vsel %vm6600_vm7, %v5163_v44, %v1285_v20  ;;  %v1287_v57 = vrot.slane %v1285_v20, 4  ;;  %5821 = vmatmul.mubr.msk.bf16.gmra.mxu1 %vm712_vm3, %v5112_v59  ;;  %v5179_v22 = vcombine.low %v1279_v32, %v1282_v7  ;;  %v2568_v25 = vsel %vm761_vm0, %v6375_v40, 0 }
  0x5e   : > { %5860 = vmatprep.mubr.msk.bf16.mxu0 %vm712_vm3, %v5178_v5  ;;  %v1299_v45 = vrot.slane %v6447_v9, 5  ;;  %5826 = vmatprep.mubr.msk.bf16.mxu1 %vm712_vm3, %v5129_v51  ;;  %v5164_v26 = vrot.slane %v1221_v27, 9  ;;  %v1295_v50 = vrot.slane %v6412_v24, 5  ;;  %v5165_v54 = vrot.slane %v1222_v42, 9  ;;  %v6667_v24 = vld [vmem:[%s8964_s1 + $0xc] sm:$0x3] }
  0x5f   : > { %v1289_v19 = vsel %vm6600_vm7, %v1287_v57, %v1288_v16  ;;  %v1294_v56 = vrot.slane %v1292_v18, 4  ;;  %v1302_v32 = vrot.slane %v6455_v33, 5  ;;  %v5166_v44 = vrot.slane %v1223_v4, 9 }
  0x60   : > { %v5180_v28 = vcombine.low %v1286_v41, %v1289_v19  ;;  %v1301_v3 = vrot.slane %v1299_v45, 4  ;;  %v1306_v40 = vrot.slane %v6484_v23, 5  ;;  %v1330_v5 = vrot.slane %v6296_v15, 5 }
  0x61   : > { %v1309_v51 = vrot.slane %v6493_v48, 5  ;;  %v5167_v6 = vrot.slane %v1224_v39, 9  ;;  %v1313_v7 = vrot.slane %v6521_v17, 5  ;;  %v5132_v33 = vcombine.low %v6393_v1, %v6401_v10  ;;  %v1226_v1 = vld [vmem:[%s6270_s28 + $0x60] sm:$0xe] }
  0x62   : > { %5861 = vmatmul.mubr.msk.bf16.vlgmr.msra.gmra.mxu0 %vm712_vm3, %v5179_v22  ;;  %v1293_v20 = vsel %vm6600_vm7, %v5164_v26, %v1292_v18  ;;  %v1308_v59 = vrot.slane %v1306_v40, 4  ;;  %v1316_v16 = vrot.slane %v6527_v2, 5  ;;  %v1296_v48 = vsel %vm6600_vm7, %v1294_v56, %v1295_v50  ;;  %v6695_v22 = vld [vmem:[%s8964_s1 + $0xa] sm:$0x3]  ;;  %v6720_v50 = vld [vmem:[%s6270_s28 + $0x6c] sm:$0xe] }
  0x63   : > { %5927 = vmatpush3.bf16.msra.mxu0 %v2568_v25  ;;  %5864 = vmatprep.mubr.msk.bf16.mxu0 %vm712_vm3, %v5180_v28  ;;  %v1300_v27 = vsel %vm6600_vm7, %v5165_v54, %v1299_v45  ;;  %v1303_v42 = vsel %vm6600_vm7, %v1301_v3, %v1302_v32  ;;  %v1315_v41 = vrot.slane %v1313_v7, 4  ;;  %v6685_v10 = vsel %vm6600_vm7, %v5166_v44, %v1306_v40  ;;  %v1229_v39 = vld [vmem:[%s6270_s28 + $0x84] sm:$0xe]  ;;  %v6749_v44 = vld [vmem:[%s6270_s28 + $0x78] sm:$0xe] }
  0x64   : > { %v6689_v2 = vsel %vm6600_vm7, %v5167_v6, %v1313_v7  ;;  %v5168_v57 = vrot.slane %v1225_v47, 9  ;;  %v1320_v18 = vrot.slane %v6562_v55, 5  ;;  %6105 = vmatprep.subr.msk.bf16.mxu0 %vm761_vm0, %v6667_v24  ;;  %v6705_v25 = vsel %vm6600_vm7, %v1308_v59, %v1309_v51  ;;  %v1230_v40 = vld [vmem:[%s6270_s28 + $0x90] sm:$0xe] }
  0x65   : > { %5827 = vmatmul.mubr.msk.bf16.vlgmr.msra.gmra.mxu1 %vm712_vm3, %v5130_v38  ;;  %v6709_v45 = vsel %vm6600_vm7, %v1315_v41, %v1316_v16  ;;  %v1323_v4 = vrot.slane %v6565_v49, 5  ;;  %v1327_v19 = vrot.slane %v6293_v14, 5  ;;  %v5181_v29 = vcombine.low %v1293_v20, %v1296_v48  ;;  %v9021_v48 = vld [vmem:[#allocation3_spill] sm:$0xff] }
  0x66   : > { %5893 = vmatpush3.bf16.msra.mxu1 %v1842_v52  ;;  %5830 = vmatprep.mubr.msk.bf16.mxu1 %vm712_vm3, %v5131_v13  ;;  %v5133_v30 = vcombine.low %v6442_v60, %v6447_v9  ;;  %v1322_v38 = vrot.slane %v1320_v18, 4  ;;  %v5169_v26 = vrot.slane %v1226_v1, 9  ;;  %v5182_v49 = vcombine.low %v1300_v27, %v1303_v42  ;;  %v1231_v42 = vld [vmem:[%s6270_s28 + $0x9c] sm:$0xe] }
  0x67   : > { %v5134_v52 = vcombine.low %v6479_v11, %v6484_v23  ;;  %v5135_v8 = vcombine.low %v6512_v34, %v6521_v17  ;;  %6104 = vmatprep.subr.msk.bf16.mxu1 %vm761_vm0, %v6695_v22  ;;  %v5183_v60 = vcombine.low %v6685_v10, %v6705_v25  ;;  %v5184_v9 = vcombine.low %v6689_v2, %v6709_v45  ;;  %v9022_v10 = vld [vmem:[#allocation5_spill] sm:$0xff]  ;;  %v9023_v2 = vld [vmem:[#allocation4_spill] sm:$0xff] }
  0x68   : > { %v1329_v54 = vrot.slane %v1327_v19, 4  ;;  %v6739_v28 = vsel %vm6600_vm7, %v5168_v57, %v1320_v18  ;;  %v6743_v56 = vsel %vm6600_vm7, %v1322_v38, %v1323_v4  ;;  %v5170_v32 = vrot.slane %v6720_v50, 9  ;;  %v1232_v18 = vld [vmem:[%s6270_s28 + $0xa8] sm:$0xe]  ;;  %v9025_v38 = vld [vmem:[#allocation8_spill] sm:$0xff] }
  0x69   : > { %v6755_v47 = vsel %vm6600_vm7, %v5169_v26, %v1327_v19  ;;  %v1334_v51 = vrot.slane %v6335_v58, 5  ;;  %v1337_v6 = vrot.slane %v6343_v63, 5  ;;  %v5172_v59 = vrot.slane %v1229_v39, 9  ;;  %v9024_v19 = vld [vmem:[#allocation6_spill] sm:$0xff]  ;;  %v9026_v26 = vld [vmem:[#allocation7_spill] sm:$0xff] }
  0x6a   : > { %5865 = vmatmul.mubr.msk.bf16.gmra.mxu0 %vm712_vm3, %v5181_v29  ;;  %v1348_v16 = vrot.slane %v6426_v43, 5  ;;  %v1351_v27 = vrot.slane %v9021_v48, 5  ;;  %v5185_v41 = vcombine.low %v6739_v28, %v6743_v56  ;;  %v6773_v63 = vsel %vm6600_vm7, %v1329_v54, %v1330_v5  ;;  %v9028_v48 = vld [vmem:[#allocation11_spill] sm:$0xff] }
  0x6b   : > { %5868 = vmatprep.mubr.msk.bf16.mxu0 %vm712_vm3, %v5182_v49  ;;  %v5171_v1 = vrot.slane %v6749_v44, 9  ;;  %v5173_v4 = vrot.slane %v1230_v40, 9  ;;  %v1355_v15 = vrot.slane %v9022_v10, 5  ;;  %v1336_v5 = vrot.slane %v1334_v51, 4  ;;  %v5275_v57 = vld [vmem:[%s6270_s28 + $0xc] sm:$0xf] }
  0x6c   : > { %v6782_v25 = vsel %vm6600_vm7, %v5172_v59, %v1348_v16  ;;  %v1350_v45 = vrot.slane %v1348_v16, 4  ;;  %v1358_v29 = vrot.slane %v9024_v19, 5  ;;  %v5174_v49 = vrot.slane %v1231_v42, 9  ;;  %v9027_v59 = vld [vmem:[#allocation9_spill] sm:$0xff]  ;;  %v9029_v42 = vld [vmem:[#allocation10_spill] sm:$0xff] }
  0x6d   : > { %5831 = vmatmul.mubr.msk.bf16.gmra.mxu1 %vm712_vm3, %v5132_v33  ;;  %v1341_v33 = vrot.slane %v6380_v46, 5  ;;  %v6796_v39 = vsel %vm6600_vm7, %v5173_v4, %v1355_v15  ;;  %v1357_v44 = vrot.slane %v1355_v15, 4  ;;  %v1362_v40 = vrot.slane %v9025_v38, 5  ;;  %v9030_v15 = vld [vmem:[#allocation12_spill] sm:$0xff] }
  0x6e   : > { %5834 = vmatprep.mubr.msk.bf16.mxu1 %vm712_vm3, %v5133_v30  ;;  %v6792_v54 = vsel %vm6600_vm7, %v1350_v45, %v1351_v27  ;;  %v1365_v16 = vrot.slane %v9027_v59, 5  ;;  %v5175_v45 = vrot.slane %v1232_v18, 9  ;;  %v1369_v4 = vrot.slane %v9028_v48, 5 }
  0x6f   : > { %v6806_v27 = vsel %vm6600_vm7, %v1357_v44, %v1358_v29  ;;  %v1372_v50 = vrot.slane %v9030_v15, 5  ;;  %v6816_v19 = vsel %vm6600_vm7, %v5174_v49, %v1362_v40  ;;  %v1364_v7 = vrot.slane %v1362_v40, 4  ;;  %v9031_v29 = vld [vmem:[#allocation13_spill] sm:$0xff]  ;;  %v9032_v15 = vld [vmem:[#allocation2_spill] sm:$0xff]  ;;  %v6831_v49 = vld [vmem:[%s6270_s28 + $0x10] sm:$0xf] }
  0x70   : > { %v6823_v18 = vsel %vm6600_vm7, %v5170_v32, %v1334_v51  ;;  %v6828_v59 = vsel %vm6600_vm7, %v5175_v45, %v1369_v4  ;;  %v1371_v30 = vrot.slane %v1369_v4, 4  ;;  %v5278_v40 = vld [vmem:[%s6270_s28 + $0x18] sm:$0xf]  ;;  %v1343_v20 = vrot.slane %v1341_v33, 4 }
  0x71   : > { %v2086_v44 = vshrl.u32 %v5275_v57, 16  ;;  %v2089_v32 = vshll.u32 %v5275_v57, 16  ;;  %v5186_v51 = vcombine.low %v6755_v47, %v6773_v63  ;;  %v6846_v45 = vsel %vm6600_vm7, %v1336_v5, %v1337_v6  ;;  %v1233_v57 = vld [vmem:[%s6270_s28 + $0xb4] sm:$0xe]  ;;  %v6867_v47 = vld [vmem:[%s6270_s28 + $0x14] sm:$0x1] }
  0x72   : > { %5869 = vmatmul.mubr.msk.bf16.gmra.mxu0 %vm712_vm3, %v5183_v60  ;;  %v1344_v60 = vrot.slane %v9032_v15, 5  ;;  %v6861_v11 = vsel %vm6600_vm7, %v5171_v1, %v1341_v33  ;;  %v2095_v6 = vshll.u32 %v6831_v49, 16  ;;  %v5279_v63 = vld [vmem:[%s6270_s28 + $0x1c] sm:$0xf]  ;;  %v2099_v17 = vshrl.u32 %v6831_v49, 16 }
  0x73   : > { %5872 = vmatprep.mubr.msk.bf16.mxu0 %vm712_vm3, %v5184_v9  ;;  %v6836_v9 = vsel %vm6600_vm7, %v1364_v7, %v1365_v16  ;;  %v6852_v7 = vsel %vm6600_vm7, %v1371_v30, %v1372_v50  ;;  %v2088_v5 = vrot.slane %v2086_v44, 4  ;;  %v2091_v34 = vrot.slane %v2089_v32, 5  ;;  %v5281_v15 = vld [vmem:[%s6270_s28 + $0x24] sm:$0xf]  ;;  %v6880_v44 = vld [vmem:[%s6270_s28 + $0x28] sm:$0xf] }
  0x74   : > { %v2110_v50 = vshrl.u32 %v5278_v40, 16  ;;  %v1345_v1 = vsel %vm6600_vm7, %v1343_v20, %v1344_v60  ;;  %v5176_v33 = vrot.slane %v1233_v57, 9  ;;  %v6875_v30 = vrot.slane %v2095_v6, 5 }
  0x75   : > { %5835 = vmatmul.mubr.msk.bf16.gmra.mxu1 %vm712_vm3, %v5134_v52  ;;  %v1376_v52 = vrot.slane %v6579_v37, 5  ;;  %v2113_v16 = vshll.u32 %v5278_v40, 16  ;;  %v1379_v23 = vrot.slane %v6584_v61, 5  ;;  %v2101_v4 = vrot.slane %v2099_v17, 4 }
  0x76   : > { %5838 = vmatprep.mubr.msk.bf16.mxu1 %vm712_vm3, %v5135_v8  ;;  %v5280_v8 = vld [vmem:[%s6270_s28 + $0x20] sm:$0x1]  ;;  %v2112_v3 = vrot.slane %v2110_v50, 4  ;;  %v2119_v13 = vshll.u32 %v5279_v63, 16  ;;  %v2105_v20 = vshll.u32 %v6867_v47, 16  ;;  %v2123_v57 = vshrl.u32 %v5279_v63, 16 }
  0x77   : > { %v1378_v32 = vrot.slane %v1376_v52, 4  ;;  %v2115_v60 = vrot.slane %v2113_v16, 5  ;;  %v5187_v61 = vcombine.low %v6823_v18, %v6846_v45  ;;  %v5188_v40 = vcombine.low %v6861_v11, %v1345_v1 }
  0x78   : > { %v2092_v6 = vor.u32 %v2091_v34, %v2088_v5  ;;  %v6891_v17 = vrot.slane %v2119_v13, 5  ;;  %v2102_v28 = vor.u32 %v2101_v4, %v6875_v30  ;;  %v2129_v50 = vshll.u32 %v5280_v8, 16  ;;  %v6918_v5 = vld [vmem:[%s6270_s28 + $0x34] sm:$0xf] }
  0x79   : > { %v2116_v56 = vor.u32 %v2115_v60, %v2112_v3  ;;  %v6903_v18 = vsel %vm6600_vm7, %v5176_v33, %v1376_v52  ;;  %v2134_v13 = vshrl.u32 %v5281_v15, 16  ;;  %v2137_v45 = vshll.u32 %v5281_v15, 16  ;;  %v5284_v52 = vld [vmem:[%s6270_s28 + $0x30] sm:$0xf] }
  0x7a   : > { %5873 = vmatmul.mubr.msk.bf16.gmra.mxu0 %vm712_vm3, %v5185_v41  ;;  %v2125_v41 = vrot.slane %v2123_v57, 4  ;;  %v2143_v11 = vshll.u32 %v6880_v44, 16  ;;  %v9034_v3 = vcombine.low %v6289_v12, %v6293_v14  ;;  %v6912_v4 = vsel %vm6600_vm7, %v1378_v32, %v1379_v23 }
  0x7b   : > { %5876 = vmatprep.mubr.msk.bf16.mxu0 %vm712_vm3, %v5186_v51  ;;  %v9033_v51 = vcombine.low %v6555_v62, %v6562_v55  ;;  %v2107_v62 = vrot.slane %v2105_v20, 5  ;;  %v2147_v63 = vshrl.u32 %v6880_v44, 16  ;;  %v2093_v34 = vrot.slane %v2092_v6, 4 }
  0x7c   : > { %v2126_v55 = vor.u32 %v2125_v41, %v6891_v17  ;;  %v2136_v8 = vrot.slane %v2134_v13, 4  ;;  %v2139_v1 = vrot.slane %v2137_v45, 5  ;;  %v6920_v33 = vrot.slane %v2143_v11, 5  ;;  %v6926_v41 = vld [vmem:[%s6270_s28 + $0x38] sm:$0x1] }
  0x7d   : > { %5839 = vmatmul.mubr.msk.bf16.gmra.mxu1 %vm712_vm3, %v9033_v51  ;;  %v2103_v12 = vrot.slane %v2102_v28, 4  ;;  %v2117_v14 = vrot.slane %v2116_v56, 4  ;;  %v2131_v16 = vrot.slane %v2129_v50, 5  ;;  %v2149_v23 = vrot.slane %v2147_v63, 4  ;;  %v5287_v13 = vld [vmem:[%s6270_s28 + $0x3c] sm:$0xf] }
  0x7e   : > { %5842 = vmatprep.mubr.msk.bf16.mxu1 %vm712_vm3, %v9034_v3  ;;  %v2127_v15 = vrot.slane %v2126_v55, 4  ;;  %v2153_v32 = vshll.u32 %v6895_v21, 16  ;;  %v2158_v20 = vshrl.u32 %v5284_v52, 16  ;;  %v2161_v60 = vshll.u32 %v5284_v52, 16 }
  0x7f   : > { %v2140_v57 = vor.u32 %v2139_v1, %v2136_v8  ;;  %v2150_v6 = vor.u32 %v2149_v23, %v6920_v33  ;;  %v2167_v28 = vshll.u32 %v6918_v5, 16  ;;  %v2171_v56 = vshrl.u32 %v6918_v5, 16  ;;  %v5290_v8 = vld [vmem:[%s6270_s28 + $0x48] sm:$0xf]  ;;  %v6953_v1 = vld [vmem:[%s6270_s28 + $0x4c] sm:$0xf] }
  0x80   : > { %v2160_v50 = vrot.slane %v2158_v20, 4  ;;  %v2163_v51 = vrot.slane %v2161_v60, 5  ;;  %v9035_v3 = vcombine.low %v6331_v53, %v6335_v58  ;;  %v5193_v55 = vcombine.low %v6903_v18, %v6912_v4 }
  0x81   : > { %v6932_v45 = vrot.slane %v2167_v28, 5  ;;  %v2173_v11 = vrot.slane %v2171_v56, 4  ;;  %v2108_v63 = vsel %vm6314_vm4, %v2103_v12, %v2107_v62  ;;  %v2122_v52 = vsel %vm6314_vm4, %v2117_v14, %v6891_v17 }
  0x82   : > { %5877 = vmatmul.mubr.msk.bf16.gmra.mxu0 %vm712_vm3, %v5187_v61  ;;  %v6935_v61 = vld [vmem:[%s6270_s28 + $0x40] sm:$0xf]  ;;  %v9036_v53 = vcombine.low %v6369_v35, %v6380_v46  ;;  %v2132_v58 = vsel %vm6314_vm4, %v2127_v15, %v2131_v16  ;;  %v2141_v23 = vrot.slane %v2140_v57, 4  ;;  %v2164_v20 = vor.u32 %v2163_v51, %v2160_v50  ;;  %v6987_v50 = vld [vmem:[%s6270_s28 + $0x44] sm:$0x1] }
  0x83   : > { %5880 = vmatprep.mubr.msk.bf16.mxu0 %vm712_vm3, %v5188_v40  ;;  %v2098_v40 = vsel %vm6314_vm4, %v2093_v34, %v6875_v30  ;;  %v2151_v30 = vrot.slane %v2150_v6, 4  ;;  %v2155_v34 = vrot.slane %v2153_v32, 5  ;;  %v2177_v62 = vshll.u32 %v6926_v41, 16  ;;  %v5293_v51 = vld [vmem:[%s6270_s28 + $0x54] sm:$0xf] }
  0x84   : > { %v2182_v12 = vshrl.u32 %v5287_v13, 16  ;;  %v2185_v17 = vshll.u32 %v5287_v13, 16  ;;  %v6964_v14 = vsel %vm761_vm0, %v6695_v22, 0  ;;  %v2174_v35 = vor.u32 %v2173_v11, %v6932_v45 }
  0x85   : > { %5843 = vmatmul.mubr.msk.bf16.gmra.mxu1 %vm712_vm3, %v9035_v3  ;;  %v2191_v46 = vshll.u32 %v6935_v61, 16  ;;  %v2195_v16 = vshrl.u32 %v6935_v61, 16  ;;  %v6969_v15 = vcombine.low %v2098_v40, %v2108_v63  ;;  %v6973_v32 = vsel %vm761_vm0, %v6667_v24, 0  ;;  %v6996_v40 = vld [vmem:[%s6270_s28 + $0x58] sm:$0xf] }
  0x86   : > { %5846 = vmatprep.mubr.msk.bf16.mxu1 %vm712_vm3, %v9036_v53  ;;  %v2206_v60 = vshrl.u32 %v5290_v8, 16  ;;  %v2209_v57 = vshll.u32 %v5290_v8, 16  ;;  %v9037_v6 = vcombine.low %v6782_v25, %v6792_v54  ;;  %v6979_v22 = vcombine.low %v2122_v52, %v2132_v58  ;;  %v7001_v8 = vld [vmem:[%s6270_s28 + $0x50] sm:$0x1] }
  0x87   : > { %v2146_v28 = vsel %vm6314_vm4, %v2141_v23, %v6920_v33  ;;  %v2156_v56 = vsel %vm6314_vm4, %v2151_v30, %v2155_v34  ;;  %v2215_v24 = vshll.u32 %v6953_v1, 16  ;;  %v9038_v25 = vcombine.low %v6796_v39, %v6806_v27  ;;  %v5296_v34 = vld [vmem:[%s6270_s28 + $0x60] sm:$0xf] }
  0x88   : > { %v2165_v54 = vrot.slane %v2164_v20, 4  ;;  %v2179_v13 = vrot.slane %v2177_v62, 5  ;;  %v2184_v11 = vrot.slane %v2182_v12, 4  ;;  %v2187_v3 = vrot.slane %v2185_v17, 5 }
  0x89   : > { %v2175_v33 = vrot.slane %v2174_v35, 4  ;;  %v6998_v63 = vrot.slane %v2191_v46, 5  ;;  %v2197_v52 = vrot.slane %v2195_v16, 4  ;;  %v2219_v53 = vshrl.u32 %v6953_v1, 16  ;;  %v7018_v35 = vld [vmem:[%s6270_s28 + $0x5c] sm:$0x1] }
  0x8a   : > { %5881 = vmatmul.mubr.msk.bf16.gmra.mxu0 %vm712_vm3, %v9037_v6  ;;  %v9039_v39 = vcombine.low %v6419_v36, %v6426_v43  ;;  %v2208_v27 = vrot.slane %v2206_v60, 4  ;;  %v2211_v58 = vrot.slane %v2209_v57, 5  ;;  %v2230_v23 = vshrl.u32 %v5293_v51, 16 }
  0x8b   : > { %5884 = vmatprep.mubr.msk.bf16.mxu0 %vm712_vm3, %v9038_v25  ;;  %v2233_v30 = vshll.u32 %v5293_v51, 16  ;;  %v9040_v20 = vcombine.low %v9023_v2, %v9022_v10  ;;  %v7013_v62 = vcombine.low %v2146_v28, %v2156_v56  ;;  %v7015_v12 = vrot.slane %v2215_v24, 5  ;;  %v7031_v28 = vld [vmem:[%s6270_s28 + $0x64] sm:$0xf] }
  0x8c   : > { %v2221_v17 = vrot.slane %v2219_v53, 4  ;;  %v2239_v36 = vshll.u32 %v6996_v40, 16  ;;  %v2201_v43 = vshll.u32 %v6987_v50, 16  ;;  %v2232_v46 = vrot.slane %v2230_v23, 4 }
  0x8d   : > { %5847 = vmatmul.mubr.msk.bf16.gmra.mxu1 %vm712_vm3, %v9039_v39  ;;  %v2235_v16 = vrot.slane %v2233_v30, 5  ;;  %v2243_v60 = vshrl.u32 %v6996_v40, 16  ;;  %v2170_v10 = vsel %vm6314_vm4, %v2165_v54, %v6932_v45  ;;  %v2180_v2 = vsel %vm6314_vm4, %v2175_v33, %v2179_v13  ;;  %v7053_v30 = vld [vmem:[%s6270_s28 + $0x68] sm:$0x1] }
  0x8e   : > { %5850 = vmatprep.mubr.msk.bf16.mxu1 %vm712_vm3, %v9040_v20  ;;  %v2188_v57 = vor.u32 %v2187_v3, %v2184_v11  ;;  %v7028_v6 = vrot.slane %v2239_v36, 5  ;;  %v2198_v56 = vor.u32 %v2197_v52, %v6998_v63  ;;  %v2212_v24 = vor.u32 %v2211_v58, %v2208_v27  ;;  %v5299_v3 = vld [vmem:[%s6270_s28 + $0x6c] sm:$0xf]  ;;  %v7050_v27 = vld [vmem:[%s6270_s28 + $0x70] sm:$0xf] }
  0x8f   : > { %v2225_v51 = vshll.u32 %v7001_v8, 16  ;;  %v2245_v25 = vrot.slane %v2243_v60, 4  ;;  %v9041_v53 = vcombine.low %v6816_v19, %v6836_v9  ;;  %v2222_v45 = vor.u32 %v2221_v17, %v7015_v12 }
  0x90   : > { %v2236_v54 = vor.u32 %v2235_v16, %v2232_v46  ;;  %v2254_v13 = vshrl.u32 %v5296_v34, 16  ;;  %v2257_v11 = vshll.u32 %v5296_v34, 16  ;;  %v9042_v33 = vcombine.low %v6828_v59, %v6852_v7  ;;  %v5302_v16 = vld [vmem:[%s6270_s28 + $0x78] sm:$0xf] }
  0x91   : > { %v2246_v52 = vor.u32 %v2245_v25, %v7028_v6  ;;  %v2249_v39 = vshll.u32 %v7018_v35, 16  ;;  %v2263_v19 = vshll.u32 %v7031_v28, 16  ;;  %v2267_v9 = vshrl.u32 %v7031_v28, 16 }
  0x92   : > { %5885 = vmatmul.mubr.msk.bf16.gmra.mxu0 %vm712_vm3, %v9041_v53  ;;  %v2189_v58 = vrot.slane %v2188_v57, 4  ;;  %v2203_v23 = vrot.slane %v2201_v43, 5  ;;  %v2256_v34 = vrot.slane %v2254_v13, 4  ;;  %v2259_v20 = vrot.slane %v2257_v11, 5 }
  0x93   : > { %5888 = vmatprep.mubr.msk.bf16.mxu0 %vm712_vm3, %v9042_v33  ;;  %v9043_v59 = vcombine.low %v9026_v26, %v9025_v38  ;;  %v7059_v7 = vcombine.low %v2170_v10, %v2180_v2  ;;  %v2199_v17 = vrot.slane %v2198_v56, 4  ;;  %v2213_v36 = vrot.slane %v2212_v24, 4  ;;  %v7069_v2 = vld [vmem:[%s6270_s28 + $0x7c] sm:$0xf] }
  0x94   : > { %v7061_v46 = vrot.slane %v2263_v19, 5  ;;  %v9044_v43 = vcombine.low %v9029_v42, %v9028_v48  ;;  %v2223_v60 = vrot.slane %v2222_v45, 4  ;;  %v2227_v57 = vrot.slane %v2225_v51, 5  ;;  %9045 = vst [vmem:[#allocation3_spill] sm:$0xff] %v7069_v2  ;;  %v5305_v19 = vld [vmem:[%s6270_s28 + $0x84] sm:$0xf] }
  0x95   : > { %5851 = vmatmul.mubr.msk.bf16.gmra.mxu1 %vm712_vm3, %v9043_v59  ;;  %v2237_v25 = vrot.slane %v2236_v54, 4  ;;  %v2269_v38 = vrot.slane %v2267_v9, 4  ;;  %v2247_v26 = vrot.slane %v2246_v52, 4  ;;  %v2251_v53 = vrot.slane %v2249_v39, 5 }
  0x96   : > { %5854 = vmatprep.mubr.msk.bf16.mxu1 %vm712_vm3, %v9044_v43  ;;  %v2260_v13 = vor.u32 %v2259_v20, %v2256_v34  ;;  %v2278_v10 = vshrl.u32 %v5299_v3, 16  ;;  %v2194_v56 = vsel %vm6314_vm4, %v2189_v58, %v6998_v63  ;;  %v2281_v24 = vshll.u32 %v5299_v3, 16  ;;  %v6149_v63 = vld [vmem:[%s6270_s28 + $0xc] sm:$0xff]   ;;  %v7103_v34 = vld [vmem:[%s6270_s28 + $0x88] sm:$0xf] }
  0x97   : > { %v2287_v48 = vshll.u32 %v7050_v27, 16  ;;  %v2291_v42 = vshrl.u32 %v7050_v27, 16  ;;  %v2204_v51 = vsel %vm6314_vm4, %v2199_v17, %v2203_v23  ;;  %v2218_v45 = vsel %vm6314_vm4, %v2213_v36, %v7015_v12  ;;  %9046 = vst [vmem:[#allocation5_spill] sm:$0xff] %v7103_v34  ;;  %v7112_v36 = vld [vmem:[%s6270_s28 + $0x74] sm:$0x1] }
  0x98   : > { %v2270_v54 = vor.u32 %v2269_v38, %v7061_v46  ;;  %v2273_v11 = vshll.u32 %v7053_v30, 16  ;;  %v2228_v3 = vsel %vm6314_vm4, %v2223_v60, %v2227_v57  ;;  %v2242_v33 = vsel %vm6314_vm4, %v2237_v25, %v7028_v6  ;;  %9048 = vst [vmem:[#allocation4_spill] sm:$0xff] %v7112_v36  ;;  %v7122_v38 = vld [vmem:[%s6270_s28 + $0x80] sm:$0x1] }
  0x99   : > { %v2302_v52 = vshrl.u32 %v5302_v16, 16  ;;  %v2305_v12 = vshll.u32 %v5302_v16, 16  ;;  %v2252_v18 = vsel %vm6314_vm4, %v2247_v26, %v2251_v53  ;;  %v2261_v4 = vrot.slane %v2260_v13, 4  ;;  %9049 = vst [vmem:[#allocation6_spill] sm:$0xff] %v7122_v38  ;;  %v7125_v26 = vld [vmem:[%s6270_s28 + $0x8c] sm:$0x1] }
  0x9a   : > { %5889 = vmatmul.mubr.msk.bf16.gmra.mxu0 %vm712_vm3, %v5193_v55  ;;  %v2280_v55 = vrot.slane %v2278_v10, 4  ;;  %v2311_v39 = vshll.u32 %v7069_v2, 16  ;;  %v2283_v9 = vrot.slane %v2281_v24, 5  ;;  %v7099_v58 = vrot.slane %v2287_v48, 5  ;;  %9050 = vst [vmem:[#allocation8_spill] sm:$0xff] %v7125_v26  ;;  %v6150_v10 = vld [vmem:[%s6270_s28 + $0x18] sm:$0xff]  }
  0x9b   : > { %5928 = vmatprep.mubr.msk.bf16.mxu0 %vm712_vm3, %v6969_v15  ;;  %v2293_v23 = vrot.slane %v2291_v42, 4  ;;  %v2315_v6 = vshrl.u32 %v7069_v2, 16  ;;  %v9047_v15 = vcombine.low %v9031_v29, %v6579_v37  ;;  %v7109_v20 = vcombine.low %v2194_v56, %v2204_v51  ;;  %v5308_v51 = vld [vmem:[%s6270_s28 + $0x90] sm:$0xf] }
  0x9c   : > { %v2271_v59 = vrot.slane %v2270_v54, 4  ;;  %v2275_v17 = vrot.slane %v2273_v11, 5  ;;  %v2304_v16 = vrot.slane %v2302_v52, 4  ;;  %v2307_v43 = vrot.slane %v2305_v12, 5 }
  0x9d   : > { %5855 = vmatmul.mubr.msk.bf16.gmra.mxu1 %vm712_vm3, %v9047_v15  ;;  %v7115_v60 = vrot.slane %v2311_v39, 5  ;;  %v2317_v57 = vrot.slane %v2315_v6, 4  ;;  %v2326_v25 = vshrl.u32 %v5305_v19, 16  ;;  %v7117_v37 = vcombine.low %v2218_v45, %v2228_v3  ;;  %v7136_v45 = vld [vmem:[%s6270_s28 + $0x94] sm:$0xf] }
  0x9e   : > { %5894 = vmatprep.mubr.msk.bf16.mxu1 %vm712_vm3, %v6149_v63  ;;  %v7119_v29 = vcombine.low %v2242_v33, %v2252_v18  ;;  %v2329_v53 = vshll.u32 %v5305_v19, 16  ;;  %v2335_v13 = vshll.u32 %v7103_v34, 16  ;;  %v2266_v56 = vsel %vm6314_vm4, %v2261_v4, %v7061_v46  ;;  %9051 = vst [vmem:[#allocation7_spill] sm:$0xff] %v7136_v45  ;;  %v7144_v33 = vld [vmem:[%s8964_s1 + $0x10] sm:$0x3]  ;;  %v6151_v46 = vld [vmem:[%s6270_s28 + $0x24] sm:$0xff]  }
  0x9f   : > { %v2284_v24 = vor.u32 %v2283_v9, %v2280_v55  ;;  %v2294_v48 = vor.u32 %v2293_v23, %v7099_v58  ;;  %v2297_v42 = vshll.u32 %v7112_v36, 16  ;;  %v2328_v54 = vrot.slane %v2326_v25, 4  ;;  %9052 = vst [vmem:[#allocation9_spill] sm:$0xff] %v7144_v33 }
  0xa0   : > { %v2331_v11 = vrot.slane %v2329_v53, 5  ;;  %v7138_v63 = vrot.slane %v2335_v13, 5  ;;  %v2339_v3 = vshrl.u32 %v7103_v34, 16  ;;  %v2276_v52 = vsel %vm6314_vm4, %v2271_v59, %v2275_v17 }
  0xa1   : > { %v2308_v12 = vor.u32 %v2307_v43, %v2304_v16  ;;  %v2318_v18 = vor.u32 %v2317_v57, %v7115_v60  ;;  %v2321_v4 = vshll.u32 %v7122_v38, 16  ;;  %v2350_v19 = vshrl.u32 %v5308_v51, 16  ;;  %v7178_v57 = vld [vmem:[%s6270_s28 + $0xa0] sm:$0xf] }
  0xa2   : > { %5929 = vmatmul.mubr.msk.bf16.vlgmr.msra.gmra.mxu0 %vm712_vm3, %v6979_v22  ;;  %v2332_v55 = vor.u32 %v2331_v11, %v2328_v54  ;;  %v2341_v39 = vrot.slane %v2339_v3, 4  ;;  %v2353_v9 = vshll.u32 %v5308_v51, 16  ;;  %v5311_v22 = vld [vmem:[%s6270_s28 + $0x9c] sm:$0xf]  ;;  %v7157_v23 = vrot.slane %v2284_v24, 4  ;;  %9054 = vst [vmem:[#allocation10_spill] sm:$0xff] %v7178_v57 }
  0xa3   : > { %5995 = vmatpush3.bf16.msra.mxu0 %v6973_v32  ;;  %5932 = vmatprep.mubr.msk.bf16.mxu0 %vm712_vm3, %v7013_v62  ;;  %v7159_v6 = vrot.slane %v2297_v42, 5  ;;  %v2345_v15 = vshll.u32 %v7125_v26, 16  ;;  %v2359_v59 = vshll.u32 %v7136_v45, 16  ;;  %v7166_v32 = vld [vmem:[%s8964_s1 + $0xe] sm:$0x3]  ;;  %v7171_v62 = vcombine.low %v2266_v56, %v2276_v52 }
  0xa4   : > { %9053 = vst [vmem:[#allocation11_spill] sm:$0xff] %v7166_v32  ;;  %6107 = vmatprep.subr.msk.bf16.mxu0 %vm761_vm0, %v7144_v33  ;;  %v7173_v17 = vrot.slane %v2294_v48, 4  ;;  %v2342_v16 = vor.u32 %v2341_v39, %v7138_v63  ;;  %v2363_v43 = vshrl.u32 %v7136_v45, 16  ;;  %v7182_v25 = vrot.slane %v2308_v12, 4  ;;  %v7191_v56 = vld [vmem:[%s6270_s28 + $0x98] sm:$0x1] }
  0xa5   : > { %5895 = vmatmul.mubr.msk.bf16.vlgmr.msra.gmra.mxu1 %vm712_vm3, %v6150_v10  ;;  %v7184_v53 = vrot.slane %v2318_v18, 4  ;;  %v7186_v13 = vrot.slane %v2321_v4, 5  ;;  %v7188_v10 = vrot.slane %v2332_v55, 4  ;;  %9055 = vst [vmem:[#allocation12_spill] sm:$0xff] %v7191_v56  ;;  %v2352_v24 = vrot.slane %v2350_v19, 4  ;;  %v6153_v19 = vld [vmem:[%s6270_s28 + $0x3c] sm:$0xff]  }
  0xa6   : > { %5961 = vmatpush3.bf16.msra.mxu1 %v6964_v14  ;;  %5898 = vmatprep.mubr.msk.bf16.mxu1 %vm712_vm3, %v6151_v46  ;;  %v2355_v48 = vrot.slane %v2353_v9, 5  ;;  %v2374_v42 = vshrl.u32 %v5311_v22, 16  ;;  %v2377_v51 = vshll.u32 %v5311_v22, 16  ;;  %v6152_v14 = vld [vmem:[%s6270_s28 + $0x30] sm:$0xff]   ;;  %v7200_v11 = vrot.slane %v2345_v15, 5 }
  0xa7   : > { %6106 = vmatprep.subr.msk.bf16.mxu1 %vm761_vm0, %v7166_v32  ;;  %v7202_v3 = vrot.slane %v2359_v59, 5  ;;  %v2383_v46 = vshll.u32 %v7178_v57, 16  ;;  %v5314_v52 = vld [vmem:[%s6270_s28 + $0xa8] sm:$0xf]  ;;  %v7206_v12 = vrot.slane %v2342_v16, 4  ;;  %v2365_v18 = vrot.slane %v2363_v43, 4 }
  0xa8   : > { %v2369_v4 = vshll.u32 %v7191_v56, 16  ;;  %v2387_v55 = vshrl.u32 %v7178_v57, 16  ;;  %v7211_v39 = vld [vmem:[%s6270_s28 + $0xac] sm:$0xf]  ;;  %v2356_v59 = vor.u32 %v2355_v48, %v2352_v24  ;;  %v7235_v16 = vld [vmem:[%s6270_s28 + $0xa4] sm:$0x1] }
  0xa9   : > { %9056 = vst [vmem:[#allocation13_spill] sm:$0xff] %v7211_v39  ;;  %9057 = vst [vmem:[#allocation2_spill] sm:$0xff] %v7235_v16  ;;  %v2376_v43 = vrot.slane %v2374_v42, 4  ;;  %v2379_v22 = vrot.slane %v2377_v51, 5  ;;  %v2398_v54 = vshrl.u32 %v5314_v52, 16  ;;  %v7237_v9 = vrot.slane %v2383_v46, 5 }
  0xaa   : > { %5933 = vmatmul.mubr.msk.bf16.gmra.mxu0 %vm712_vm3, %v7059_v7  ;;  %v2389_v32 = vrot.slane %v2387_v55, 4  ;;  %v2401_v15 = vshll.u32 %v5314_v52, 16  ;;  %v2407_v33 = vshll.u32 %v7211_v39, 16  ;;  %v5317_v57 = vld [vmem:[%s6270_s28 + $0xb4] sm:$0xf]  ;;  %v2366_v24 = vor.u32 %v2365_v18, %v7202_v3 }
  0xab   : > { %5936 = vmatprep.mubr.msk.bf16.mxu0 %vm712_vm3, %v7109_v20  ;;  %v2348_v20 = vsel %vm6314_vm4, %v7206_v12, %v7200_v11  ;;  %v7247_v48 = vrot.slane %v2369_v4, 5  ;;  %v7250_v42 = vld [vmem:[%s6270_s28 + $0xb0] sm:$0x1]  ;;  %v2400_v51 = vrot.slane %v2398_v54, 4  ;;  %v7253_v46 = vld [vmem:[%s6270_s28 + $0xb8] sm:$0xf]  ;;  %v2380_v18 = vor.u32 %v2379_v22, %v2376_v43 }
  0xac   : > { %9058 = vst [vmem:[#allocation14_spill] sm:$0xff] %v7250_v42  ;;  %9059 = vst [vmem:[#allocation15_spill] sm:$0xff] %v7253_v46  ;;  %v2403_v52 = vrot.slane %v2401_v15, 5  ;;  %v7257_v55 = vrot.slane %v2407_v33, 5  ;;  %v2411_v11 = vshrl.u32 %v7211_v39, 16  ;;  %v7260_v12 = vrot.slane %v2356_v59, 4 }
  0xad   : > { %5899 = vmatmul.mubr.msk.bf16.gmra.mxu1 %vm712_vm3, %v6152_v14  ;;  %v2393_v14 = vshll.u32 %v7235_v16, 16  ;;  %v7263_v4 = vld [vmem:[%s6270_s28 + $0xbc] sm:$0x1]  ;;  %v2422_v54 = vshrl.u32 %v5317_v57, 16  ;;  %v2425_v7 = vshll.u32 %v5317_v57, 16  ;;  %v2390_v56 = vor.u32 %v2389_v32, %v7237_v9  ;;  %v6154_v16 = vld [vmem:[%s6270_s28 + $0x48] sm:$0xff]  }
  0xae   : > { %5902 = vmatprep.mubr.msk.bf16.mxu1 %vm712_vm3, %v6153_v19  ;;  %v2413_v45 = vrot.slane %v2411_v11, 4  ;;  %v2417_v19 = vshll.u32 %v7250_v42, 16  ;;  %v2431_v15 = vshll.u32 %v7253_v46, 16  ;;  %v5320_v33 = vld [vmem:[%s6270_s28 + $0xc0] sm:$0xf]  ;;  %v2404_v26 = vor.u32 %v2403_v52, %v2400_v51  ;;  %v6155_v57 = vld [vmem:[%s6270_s28 + $0x54] sm:$0xff]  }
  0xaf   : > { %v2424_v39 = vrot.slane %v2422_v54, 4  ;;  %v2427_v34 = vrot.slane %v2425_v7, 5  ;;  %v2435_v59 = vshrl.u32 %v7253_v46, 16  ;;  %v7272_v22 = vld [vmem:[%s6270_s28 + $0xc4] sm:$0xf]  ;;  %v2367_v43 = vrot.slane %v2366_v24, 4 }
  0xb0   : > { %v2395_v32 = vrot.slane %v2393_v14, 5  ;;  %v2414_v11 = vor.u32 %v2413_v45, %v7257_v55  ;;  %v2433_v42 = vrot.slane %v2431_v15, 5  ;;  %v2441_v7 = vshll.u32 %v7263_v4, 16  ;;  %v7284_v45 = vld [vmem:[%s6270_s28 + $0xc8] sm:$0x1] }
  0xb1   : > { %v2428_v51 = vor.u32 %v2427_v34, %v2424_v39  ;;  %v2437_v52 = vrot.slane %v2435_v59, 4  ;;  %v2446_v54 = vshrl.u32 %v5320_v33, 16  ;;  %v2381_v46 = vrot.slane %v2380_v18, 4 }
  0xb2   : > { %5937 = vmatmul.mubr.msk.bf16.gmra.mxu0 %vm712_vm3, %v7117_v37  ;;  %v2391_v38 = vrot.slane %v2390_v56, 4  ;;  %v2449_v2 = vshll.u32 %v5320_v33, 16  ;;  %v2455_v37 = vshll.u32 %v7272_v22, 16  ;;  %v2405_v24 = vrot.slane %v2404_v26, 4 }
  0xb3   : > { %5940 = vmatprep.mubr.msk.bf16.mxu0 %vm712_vm3, %v7119_v29  ;;  %v2419_v14 = vrot.slane %v2417_v19, 5  ;;  %v2438_v36 = vor.u32 %v2437_v52, %v2433_v42  ;;  %v2448_v15 = vrot.slane %v2446_v54, 4  ;;  %v2415_v34 = vrot.slane %v2414_v11, 4 }
  0xb4   : > { %v2451_v29 = vrot.slane %v2449_v2, 5  ;;  %v7287_v39 = vrot.slane %v2455_v37, 5  ;;  %v2459_v56 = vshrl.u32 %v7272_v22, 16  ;;  %v9060_v26 = vsel %vm6314_vm4, %v7173_v17, %v7159_v6 }
  0xb5   : > { %5903 = vmatmul.mubr.msk.bf16.gmra.mxu1 %vm712_vm3, %v6154_v16  ;;  %v9061_v16 = vsel %vm6314_vm4, %v7157_v23, %v7099_v58  ;;  %v2429_v19 = vrot.slane %v2428_v51, 4  ;;  %v2439_v33 = vrot.slane %v2438_v36, 4  ;;  %v2443_v2 = vrot.slane %v2441_v7, 5  ;;  %v6156_v23 = vld [vmem:[%s6270_s28 + $0x60] sm:$0xff]  }
  0xb6   : > { %5906 = vmatprep.mubr.msk.bf16.mxu1 %vm712_vm3, %v6155_v57  ;;  %v5332_v18 = vcombine.low %v9061_v16, %v9060_v26  ;;  %v9062_v59 = vsel %vm6314_vm4, %v7184_v53, %v7186_v13  ;;  %v9063_v6 = vsel %vm6314_vm4, %v7182_v25, %v7115_v60  ;;  %v2452_v57 = vor.u32 %v2451_v29, %v2448_v15  ;;  %v5358_v13 = vld [vmem:[%s6270_s28 + $0x24] sm:$0xe]  ;;  %v5361_v26 = vld [vmem:[%s6270_s28 + $0x48] sm:$0xe] }
  0xb7   : > { %v5333_v17 = vcombine.low %v9063_v6, %v9062_v59  ;;  %v2461_v11 = vrot.slane %v2459_v56, 4  ;;  %v2465_v58 = vshll.u32 %v7284_v45, 16  ;;  %v9064_v36 = vsel %vm6314_vm4, %v7188_v10, %v7138_v63  ;;  %v6157_v63 = vld [vmem:[%s6270_s28 + $0x6c] sm:$0xff]   ;;  %v5362_v6 = vld [vmem:[%s6270_s28 + $0x54] sm:$0xe] }
  0xb8   : > { %v5334_v51 = vcombine.low %v9064_v36, %v2348_v20  ;;  %v2362_v53 = vsel %vm6314_vm4, %v7260_v12, %v7202_v3  ;;  %v2372_v60 = vsel %vm6314_vm4, %v2367_v43, %v7247_v48  ;;  %v2386_v25 = vsel %vm6314_vm4, %v2381_v46, %v7237_v9  ;;  %v7340_v12 = vld [vmem:[%s6270_s28 + $0xc] sm:$0xe] }
  0xb9   : > { %v2396_v10 = vsel %vm6314_vm4, %v2391_v38, %v2395_v32  ;;  %v2410_v3 = vsel %vm6314_vm4, %v2405_v24, %v7257_v55  ;;  %v2420_v20 = vsel %vm6314_vm4, %v2415_v34, %v2419_v14  ;;  %v2462_v48 = vor.u32 %v2461_v11, %v7287_v39  ;;  %v5359_v55 = vld [vmem:[%s6270_s28 + $0x30] sm:$0xe]  ;;  %v5360_v14 = vld [vmem:[%s6270_s28 + $0x3c] sm:$0xe] }
  0xba   : > { %5941 = vmatmul.mubr.msk.bf16.gmra.mxu0 %vm712_vm3, %v7171_v62  ;;  %v2434_v62 = vsel %vm6314_vm4, %v2429_v19, %v2433_v42  ;;  %v2444_v38 = vsel %vm6314_vm4, %v2439_v33, %v2443_v2  ;;  %v7347_v9 = vrot.slane %v2452_v57, 4  ;;  %v2829_v46 = vrot.slane %v6831_v49, 5  ;;  %v6158_v57 = vld [vmem:[%s6270_s28 + $0x78] sm:$0xff]  }
  0xbb   : > { %5944 = vmatprep.mubr.msk.bf16.mxu0 %vm712_vm3, %v5332_v18  ;;  %v7351_v43 = vcombine.low %v2362_v53, %v2372_v60  ;;  %v7353_v32 = vrot.slane %v2462_v48, 4  ;;  %v7355_v52 = vrot.slane %v2465_v58, 5  ;;  %v5374_v7 = vrot.slane %v5358_v13, 9  ;;  %v6159_v53 = vld [vmem:[%s6270_s28 + $0x84] sm:$0xff]   ;;  %v5363_v13 = vld [vmem:[%s6270_s28 + $0x60] sm:$0xe] }
  0xbc   : > { %v7358_v54 = vcombine.low %v2386_v25, %v2396_v10  ;;  %v7360_v42 = vcombine.low %v2410_v3, %v2420_v20  ;;  %v5372_v37 = vrot.slane %v7340_v12, 9  ;;  %v2843_v24 = vrot.slane %v6880_v44, 5  ;;  %v6165_v49 = vld [vmem:[%s6270_s28 + $0x18] sm:$0xff]  }
  0xbd   : > { %5907 = vmatmul.mubr.msk.bf16.gmra.mxu1 %vm712_vm3, %v6156_v23  ;;  %v7366_v15 = vcombine.low %v2434_v62, %v2444_v38  ;;  %v2832_v34 = vrot.slane %v6867_v47, 5  ;;  %v2846_v29 = vrot.slane %v6895_v21, 5  ;;  %v5375_v56 = vrot.slane %v5359_v55, 9  ;;  %v5365_v55 = vld [vmem:[%s6270_s28 + $0x78] sm:$0xe] }
  0xbe   : > { %5910 = vmatprep.mubr.msk.bf16.mxu1 %vm712_vm3, %v6157_v63  ;;  %v2458_v16 = vsel %vm6314_vm4, %v7347_v9, %v7287_v39  ;;  %v7377_v44 = vrot.slane %v2829_v46, 4  ;;  %v7381_v18 = vsel %vm6600_vm7, %v5374_v7, %v2843_v24  ;;  %v2845_v19 = vrot.slane %v2843_v24, 4 }
  0xbf   : > { %v2468_v21 = vsel %vm6314_vm4, %v7353_v32, %v7355_v52  ;;  %v2850_v33 = vrot.slane %v6918_v5, 5  ;;  %v2853_v2 = vrot.slane %v6926_v41, 5  ;;  %v5376_v59 = vrot.slane %v5360_v14, 9  ;;  %v6164_v52 = vld [vmem:[%s6270_s28 + $0xc0] sm:$0xff]  }
  0xc0   : > { %v7393_v11 = vsel %vm6600_vm7, %v2845_v19, %v2846_v29  ;;  %v2857_v58 = vrot.slane %v6935_v61, 5  ;;  %v2860_v23 = vrot.slane %v6987_v50, 5  ;;  %v5377_v36 = vrot.slane %v5361_v26, 9  ;;  %v5366_v19 = vld [vmem:[%s6270_s28 + $0x84] sm:$0xe] }
  0xc1   : > { %v5391_v5 = vcombine.low %v7381_v18, %v7393_v11  ;;  %v7403_v41 = vsel %vm6600_vm7, %v5375_v56, %v2850_v33  ;;  %v2852_v60 = vrot.slane %v2850_v33, 4  ;;  %v2864_v25 = vrot.slane %v6953_v1, 5 }
  0xc2   : > { %5945 = vmatmul.mubr.msk.bf16.gmra.mxu0 %vm712_vm3, %v5333_v17  ;;  %v7410_v61 = vsel %vm6600_vm7, %v5376_v59, %v2857_v58  ;;  %v2859_v50 = vrot.slane %v2857_v58, 4  ;;  %v2867_v17 = vrot.slane %v7001_v8, 5  ;;  %v5378_v63 = vrot.slane %v5362_v6, 9  ;;  %v9065_v59 = vld [vmem:[#allocation4_spill] sm:$0xff] }
  0xc3   : > { %5948 = vmatprep.mubr.msk.bf16.mxu0 %vm712_vm3, %v5334_v51  ;;  %v7415_v10 = vsel %vm6600_vm7, %v2852_v60, %v2853_v2  ;;  %v7419_v3 = vsel %vm6600_vm7, %v5377_v36, %v2864_v25  ;;  %v2866_v1 = vrot.slane %v2864_v25, 4  ;;  %v2871_v20 = vrot.slane %v6996_v40, 5  ;;  %v5364_v51 = vld [vmem:[%s6270_s28 + $0x6c] sm:$0xe]  ;;  %v6160_v58 = vld [vmem:[%s6270_s28 + $0x90] sm:$0xff]  }
  0xc4   : > { %v5392_v48 = vcombine.low %v7403_v41, %v7415_v10  ;;  %v7428_v8 = vsel %vm6600_vm7, %v2859_v50, %v2860_v23  ;;  %v2874_v62 = vrot.slane %v7018_v35, 5  ;;  %v5379_v38 = vrot.slane %v5363_v13, 9  ;;  %v9066_v36 = vld [vmem:[#allocation3_spill] sm:$0xff]  ;;  %v5367_v60 = vld [vmem:[%s6270_s28 + $0x90] sm:$0xe]  ;;  %v9067_v50 = vld [vmem:[#allocation6_spill] sm:$0xff] }
  0xc5   : > { %5911 = vmatmul.mubr.msk.bf16.gmra.mxu1 %vm712_vm3, %v6158_v57  ;;  %v5393_v40 = vcombine.low %v7410_v61, %v7428_v8  ;;  %v7437_v7 = vsel %vm6600_vm7, %v2866_v1, %v2867_v17  ;;  %v7441_v24 = vsel %vm6600_vm7, %v5378_v63, %v2871_v20  ;;  %v2873_v14 = vrot.slane %v2871_v20, 4 }
  0xc6   : > { %5914 = vmatprep.mubr.msk.bf16.mxu1 %vm712_vm3, %v6159_v53  ;;  %v5394_v35 = vcombine.low %v7419_v3, %v7437_v7  ;;  %v2878_v29 = vrot.slane %v7031_v28, 5  ;;  %v2881_v56 = vrot.slane %v7053_v30, 5  ;;  %v5380_v26 = vrot.slane %v5364_v51, 9  ;;  %v9068_v51 = vld [vmem:[#allocation5_spill] sm:$0xff]  ;;  %v5498_v3 = vld [vmem:[%s6270_s28 + $0x48] sm:$0xf] }
  0xc7   : > { %v7450_v33 = vsel %vm6600_vm7, %v2873_v14, %v2874_v62  ;;  %v2885_v2 = vrot.slane %v7050_v27, 5  ;;  %v2888_v6 = vrot.slane %v9065_v59, 5  ;;  %v5381_v57 = vrot.slane %v5365_v55, 9  ;;  %v6161_v27 = vld [vmem:[%s6270_s28 + $0x9c] sm:$0xff]   ;;  %v9076_v55 = vld [vmem:[#allocation15_spill] sm:$0xff] }
  0xc8   : > { %v5395_v23 = vcombine.low %v7441_v24, %v7450_v33  ;;  %v7459_v28 = vsel %vm6600_vm7, %v5379_v38, %v2878_v29  ;;  %v2880_v30 = vrot.slane %v2878_v29, 4  ;;  %v2892_v53 = vrot.slane %v9066_v36, 5  ;;  %v5368_v38 = vld [vmem:[%s6270_s28 + $0x9c] sm:$0xe]  ;;  %v9071_v36 = vld [vmem:[#allocation12_spill] sm:$0xff] }
  0xc9   : > { %v7468_v25 = vsel %vm6600_vm7, %v5380_v26, %v2885_v2  ;;  %v2887_v13 = vrot.slane %v2885_v2, 4  ;;  %v2895_v17 = vrot.slane %v9067_v50, 5  ;;  %v5382_v63 = vrot.slane %v5366_v19, 9  ;;  %v5369_v26 = vld [vmem:[%s6270_s28 + $0xa8] sm:$0xe] }
  0xca   : > { %5949 = vmatmul.mubr.msk.bf16.gmra.mxu0 %vm712_vm3, %v7351_v43  ;;  %v7475_v1 = vsel %vm6600_vm7, %v2880_v30, %v2881_v56  ;;  %v7479_v43 = vsel %vm6600_vm7, %v5381_v57, %v2892_v53  ;;  %v2894_v20 = vrot.slane %v2892_v53, 4  ;;  %v2899_v62 = vrot.slane %v9068_v51, 5  ;;  %v5371_v57 = vld [vmem:[%s6270_s28 + $0xc0] sm:$0xe]  ;;  %v6162_v19 = vld [vmem:[%s6270_s28 + $0xa8] sm:$0xff]  }
  0xcb   : > { %5952 = vmatprep.mubr.msk.bf16.mxu0 %vm712_vm3, %v7358_v54  ;;  %v7487_v14 = vsel %vm6600_vm7, %v2887_v13, %v2888_v6  ;;  %v9069_v54 = vld [vmem:[#allocation8_spill] sm:$0xff]  ;;  %v5383_v56 = vrot.slane %v5367_v60, 9  ;;  %v2909_v53 = vrot.slane %v9071_v36, 5  ;;  %v5384_v60 = vrot.slane %v5368_v38, 9  ;;  %v9074_v38 = vld [vmem:[#allocation13_spill] sm:$0xff] }
  0xcc   : > { %v2902_v29 = vrot.slane %v9069_v54, 5  ;;  %v7496_v2 = vsel %vm6600_vm7, %v2894_v20, %v2895_v17  ;;  %v7500_v59 = vsel %vm6600_vm7, %v5382_v63, %v2899_v62  ;;  %v2901_v6 = vrot.slane %v2899_v62, 4  ;;  %v5370_v13 = vld [vmem:[%s6270_s28 + $0xb4] sm:$0xe]  ;;  %v9072_v17 = vld [vmem:[#allocation10_spill] sm:$0xff] }
  0xcd   : > { %5915 = vmatmul.mubr.msk.bf16.gmra.mxu1 %vm712_vm3, %v6160_v58  ;;  %v9070_v58 = vld [vmem:[#allocation7_spill] sm:$0xff]  ;;  %v2913_v63 = vrot.slane %v9072_v17, 5  ;;  %v9073_v20 = vld [vmem:[#allocation2_spill] sm:$0xff]  ;;  %v5385_v62 = vrot.slane %v5369_v26, 9  ;;  %v2920_v36 = vrot.slane %v9074_v38, 5  ;;  %v5386_v26 = vrot.slane %v5370_v13, 9 }
  0xce   : > { %5918 = vmatprep.mubr.msk.bf16.mxu1 %vm712_vm3, %v6161_v27  ;;  %v2906_v30 = vrot.slane %v9070_v58, 5  ;;  %v7510_v50 = vsel %vm6600_vm7, %v2901_v6, %v2902_v29  ;;  %v2916_v51 = vrot.slane %v9073_v20, 5  ;;  %v9075_v17 = vld [vmem:[#allocation14_spill] sm:$0xff]  ;;  %v6163_v27 = vld [vmem:[%s6270_s28 + $0xb4] sm:$0xff]   ;;  %v2833_v39 = vsel %vm6600_vm7, %v7377_v44, %v2832_v34  ;;  %v7727_v7 = vld [vmem:[%s6270_s28 + $0x4c] sm:$0xf] }
  0xcf   : > { %v7525_v29 = vsel %vm6600_vm7, %v5384_v60, %v2913_v63  ;;  %v2915_v6 = vrot.slane %v2913_v63, 4  ;;  %v2923_v20 = vrot.slane %v9075_v17, 5  ;;  %v2922_v38 = vrot.slane %v2920_v36, 4  ;;  %v6182_v44 = vld [vmem:[%s6270_s28 + $0x20] sm:$0x1] }
  0xd0   : > { %v7518_v54 = vsel %vm6600_vm7, %v5383_v56, %v2906_v30  ;;  %v2908_v58 = vrot.slane %v2906_v30, 4  ;;  %v7537_v30 = vsel %vm6600_vm7, %v5385_v62, %v2920_v36  ;;  %v2927_v60 = vrot.slane %v9076_v55, 5 }
  0xd1   : > { %v5387_v63 = vrot.slane %v5371_v57, 9  ;;  %v7553_v55 = vsel %vm6600_vm7, %v2922_v38, %v2923_v20  ;;  %v2934_v57 = vrot.slane %v7272_v22, 5  ;;  %v2830_v22 = vsel %vm6600_vm7, %v5372_v37, %v2829_v46  ;;  %v6167_v38 = vld [vmem:[%s6270_s28 + $0x30] sm:$0xff]  }
  0xd2   : > { %5953 = vmatmul.mubr.msk.bf16.gmra.mxu0 %vm712_vm3, %v7360_v42  ;;  %v7533_v56 = vsel %vm6600_vm7, %v2908_v58, %v2909_v53  ;;  %v7546_v42 = vsel %vm6600_vm7, %v2915_v6, %v2916_v51  ;;  %v2930_v53 = vrot.slane %v7263_v4, 5  ;;  %v2929_v58 = vrot.slane %v2927_v60, 4 }
  0xd3   : > { %5956 = vmatprep.mubr.msk.bf16.mxu0 %vm712_vm3, %v7366_v15  ;;  %v7557_v15 = vsel %vm6600_vm7, %v5386_v26, %v2927_v60  ;;  %v2937_v51 = vrot.slane %v7284_v45, 5  ;;  %v5357_v45 = vld [vmem:[%s6270_s28 + $0x18] sm:$0xe]  ;;  %v7597_v9 = vsel %vm6600_vm7, %v5387_v63, %v2934_v57  ;;  %v2936_v46 = vrot.slane %v2934_v57, 4  ;;  %v6166_v26 = vld [vmem:[%s6270_s28 + $0x24] sm:$0xff]  }
  0xd4   : > { %v7585_v32 = vsel %vm6600_vm7, %v2929_v58, %v2930_v53  ;;  %v5373_v37 = vrot.slane %v5357_v45, 9  ;;  %v5389_v34 = vcombine.low %v2830_v22, %v2833_v39  ;;  %v9077_v60 = vld [vmem:[#allocation9_spill] sm:$0xff] }
  0xd5   : > { %5919 = vmatmul.mubr.msk.bf16.gmra.mxu1 %vm712_vm3, %v6162_v19  ;;  %v5339_v19 = vcombine.low %v2458_v16, %v2468_v21  ;;  %v7602_v47 = vsel %vm6600_vm7, %v2936_v46, %v2937_v51  ;;  %v2839_v21 = vrot.slane %v6182_v44, 5  ;;  %v4596_v53 = vsel %vm761_vm0, %v9077_v60, 0  ;;  %v5486_v63 = vld [vmem:[%s6270_s28 + $0x18] sm:$0xf]  ;;  %v5487_v57 = vld [vmem:[%s6270_s28 + $0x1c] sm:$0xf] }
  0xd6   : > { %5922 = vmatprep.mubr.msk.bf16.mxu1 %vm712_vm3, %v6163_v27  ;;  %v6181_v27 = vld [vmem:[%s6270_s28 + $0x1c] sm:$0xf]  ;;  %v5489_v51 = vld [vmem:[%s6270_s28 + $0x24] sm:$0xf]  ;;  %v3644_v45 = vshrl.u32 %v5486_v63, 16  ;;  %v3653_v39 = vshll.u32 %v5487_v57, 16 }
  0xd7   : > { %v2836_v36 = vrot.slane %v6181_v27, 5  ;;  %v3647_v27 = vshll.u32 %v5486_v63, 16  ;;  %v3668_v46 = vshrl.u32 %v5489_v51, 16  ;;  %v6169_v44 = vld [vmem:[%s6270_s28 + $0x48] sm:$0xff]   ;;  %v5567_v60 = vld [vmem:[%s6270_s28 + $0x18] sm:$0xe] }
  0xd8   : > { %v7643_v63 = vld [vmem:[%s6270_s28 + $0x2c] sm:$0x1] }
  0xd9   : > { %v2838_v16 = vrot.slane %v2836_v36, 4  ;;  %v2837_v17 = vsel %vm6600_vm7, %v5373_v37, %v2836_v36  ;;  %v7627_v36 = vld [vmem:[%s6270_s28 + $0x28] sm:$0xf]  ;;  %v6168_v37 = vld [vmem:[%s6270_s28 + $0x3c] sm:$0xff]   ;;  %v3670_v18 = vrot.slane %v3668_v46, 4 }
  0xda   : > { %5957 = vmatmul.mubr.msk.bf16.gmra.mxu0 %vm712_vm3, %v5339_v19  ;;  %v9078_v19 = vld [vmem:[#allocation11_spill] sm:$0xff] }
  0xdb   : > { %5996 = vmatprep.mubr.msk.bf16.mxu0 %vm712_vm3, %v6165_v49  ;;  %v2840_v20 = vsel %vm6600_vm7, %v2838_v16, %v2839_v21  ;;  %v4126_v22 = vsel %vm761_vm0, %v9078_v19, 0  ;;  %v3657_v49 = vshrl.u32 %v5487_v57, 16  ;;  %v3681_v16 = vshrl.u32 %v7627_v36, 16  ;;  %v5488_v21 = vld [vmem:[%s6270_s28 + $0x20] sm:$0x1] }
  0xdc   : > { %v5390_v58 = vcombine.low %v2837_v17, %v2840_v20  ;;  %v3646_v17 = vrot.slane %v3644_v45, 4  ;;  %v3649_v20 = vrot.slane %v3647_v27, 5  ;;  %v5492_v19 = vld [vmem:[%s6270_s28 + $0x30] sm:$0xf]  ;;  %v3663_v45 = vshll.u32 %v5488_v21, 16 }
  0xdd   : > { %5923 = vmatmul.mubr.msk.bf16.gmra.mxu1 %vm712_vm3, %v6164_v52  ;;  %v3671_v52 = vshll.u32 %v5489_v51, 16  ;;  %v3683_v51 = vrot.slane %v3681_v16, 4  ;;  %v5583_v27 = vrot.slane %v5567_v60, 9  ;;  %v4390_v46 = vrot.slane %v5488_v21, 5  ;;  %v5568_v16 = vld [vmem:[%s6270_s28 + $0x24] sm:$0xe] }
  0xde   : > { %5962 = vmatprep.mubr.msk.bf16.mxu1 %vm712_vm3, %v5389_v34  ;;  %v3677_v34 = vshll.u32 %v7627_v36, 16  ;;  %v6170_v21 = vld [vmem:[%s6270_s28 + $0x54] sm:$0xff]   ;;  %v3695_v10 = vshll.u32 %v5492_v19, 16  ;;  %v6171_v60 = vld [vmem:[%s6270_s28 + $0x60] sm:$0xff]  }
  0xdf   : > { %v3673_v11 = vrot.slane %v3671_v52, 5  ;;  %v3687_v52 = vshll.u32 %v7643_v63, 16 }
  0xe2   : > { %5997 = vmatmul.mubr.msk.bf16.vlgmr.msra.gmra.mxu0 %vm712_vm3, %v6166_v26  ;;  %v7639_v26 = vrot.slane %v3653_v39, 5 }
  0xe3   : > { %6063 = vmatpush3.bf16.msra.mxu0 %v4596_v53  ;;  %6000 = vmatprep.mubr.msk.bf16.mxu0 %vm712_vm3, %v6167_v38  ;;  %v3659_v38 = vrot.slane %v3657_v49, 4  ;;  %v4387_v53 = vrot.slane %v5487_v57, 5  ;;  %v7653_v57 = vld [vmem:[%s6270_s28 + $0x34] sm:$0xf] }
  0xe5   : > { %5963 = vmatmul.mubr.msk.bf16.vlgmr.msra.gmra.mxu1 %vm712_vm3, %v5390_v58  ;;  %v7648_v58 = vrot.slane %v3677_v34, 5  ;;  %v3660_v39 = vor.u32 %v3659_v38, %v7639_v26  ;;  %v4389_v49 = vrot.slane %v4387_v53, 4  ;;  %v3674_v34 = vor.u32 %v3673_v11, %v3670_v18 }
  0xe6   : > { %6029 = vmatpush3.bf16.msra.mxu1 %v4126_v22  ;;  %5966 = vmatprep.mubr.msk.bf16.mxu1 %vm712_vm3, %v5391_v5  ;;  %v7646_v5 = vpop.f32.mrf.mxu0  ;;  %v3650_v22 = vor.u32 %v3649_v20, %v3646_v17  ;;  %v3692_v17 = vshrl.u32 %v5492_v19, 16  ;;  %v3705_v38 = vshrl.u32 %v7653_v57, 16  ;;  %v7678_v61 = vsel %vm6600_vm7, %v5583_v27, %v4387_v53  ;;  %v5495_v19 = vld [vmem:[%s6270_s28 + $0x3c] sm:$0xf] }
  0xe7   : > { %v3684_v41 = vor.u32 %v3683_v51, %v7648_v58  ;;  %v3661_v8 = vrot.slane %v3660_v39, 4  ;;  %v3689_v11 = vrot.slane %v3687_v52, 5  ;;  %v5584_v51 = vrot.slane %v5568_v16, 9  ;;  %v7692_v39 = vld [vmem:[%s6270_s28 + $0x38] sm:$0x1] }
  0xe8   : > { %v7670_v20 = vpop.f32.mrf.mxu0  ;;  %v3651_v18 = vrot.slane %v3650_v22, 4  ;;  %v3675_v12 = vrot.slane %v3674_v34, 4  ;;  %v4397_v22 = vrot.slane %v7643_v63, 5  ;;  %v3707_v52 = vrot.slane %v3705_v38, 4 }
  0xe9   : > { %v3685_v27 = vrot.slane %v3684_v41, 4  ;;  %v3716_v34 = vshrl.u32 %v5495_v19, 16  ;;  %v3719_v16 = vshll.u32 %v5495_v19, 16  ;;  %v7705_v41 = vld [vmem:[%s6270_s28 + $0x40] sm:$0xf] }
  0xea   : > { %6001 = vmatmul.mubr.msk.bf16.gmra.mxu0 %vm712_vm3, %v6168_v37  ;;  %v7689_v53 = vpop.f32.mrf.mxu0  ;;  %v3656_v63 = vsel %vm6314_vm4, %v3651_v18, %v7639_v26  ;;  %v3680_v26 = vsel %vm6314_vm4, %v3675_v12, %v7648_v58  ;;  %v5569_v18 = vld [vmem:[%s6270_s28 + $0x30] sm:$0xe]  ;;  %v3725_v24 = vshll.u32 %v7705_v41, 16  ;;  %v3729_v33 = vshrl.u32 %v7705_v41, 16 }
  0xeb   : > { %6004 = vmatprep.mubr.msk.bf16.mxu0 %vm712_vm3, %v6169_v44  ;;  %v7661_v37 = vpop.f32.mrf.mxu1  ;;  %v4394_v44 = vrot.slane %v7627_v36, 5  ;;  %v3665_v36 = vrot.slane %v3663_v45, 5  ;;  %v3694_v45 = vrot.slane %v3692_v17, 4  ;;  %v3690_v58 = vsel %vm6314_vm4, %v3685_v27, %v3689_v11 }
  0xec   : > { %9079 = vst [vmem:[#allocation4_spill] sm:$0xff] %v7661_v37  ;;  %v7734_v12 = vpop.f32.mrf.mxu0  ;;  %v3721_v19 = vrot.slane %v3719_v16, 5  ;;  %v3753_v11 = vshrl.u32 %v7727_v7, 16 }
  0xed   : > { %5967 = vmatmul.mubr.msk.bf16.gmra.mxu1 %vm712_vm3, %v5392_v48  ;;  %v3701_v48 = vshll.u32 %v7653_v57, 16  ;;  %v7685_v6 = vpop.f32.mrf.mxu1  ;;  %v4396_v4 = vrot.slane %v4394_v44, 4  ;;  %v3666_v17 = vsel %vm6314_vm4, %v3661_v8, %v3665_v36  ;;  %v4401_v36 = vrot.slane %v7653_v57, 5  ;;  %v6173_v8 = vld [vmem:[%s6270_s28 + $0x78] sm:$0xff]  }
  0xee   : > { %5970 = vmatprep.mubr.msk.bf16.mxu1 %vm712_vm3, %v5393_v40  ;;  %v7682_v40 = vsel %vm6600_vm7, %v4389_v49, %v4390_v46  ;;  %9080 = vst [vmem:[#allocation3_spill] sm:$0xff] %v7685_v6  ;;  %v3697_v49 = vrot.slane %v3695_v10, 5  ;;  %v7748_v27 = vcombine.low %v3656_v63, %v3666_v17  ;;  %v7750_v57 = vcombine.low %v3680_v26, %v3690_v58  ;;  %v7764_v17 = vld [vmem:[%s6270_s28 + $0x58] sm:$0xf]  ;;  %v7770_v58 = vld [vmem:[%s6270_s28 + $0x44] sm:$0x1] }
  0xef   : > { %v7694_v46 = vrot.slane %v3701_v48, 5  ;;  %v7711_v10 = vpop.f32.mrf.mxu1  ;;  %v7718_v48 = vsel %vm6600_vm7, %v5584_v51, %v4394_v44  ;;  %v7722_v38 = vsel %vm6600_vm7, %v4396_v4, %v4397_v22  ;;  %v3718_v51 = vrot.slane %v3716_v34, 4  ;;  %v5501_v34 = vld [vmem:[%s6270_s28 + $0x54] sm:$0xf] }
  0xf0   : > { %9081 = vst [vmem:[#allocation6_spill] sm:$0xff] %v7711_v10  ;;  %v3698_v44 = vor.u32 %v3697_v49, %v3694_v45  ;;  %v3743_v22 = vshll.u32 %v5498_v3, 16  ;;  %v4403_v13 = vrot.slane %v4401_v36, 4  ;;  %v4404_v63 = vrot.slane %v7692_v39, 5  ;;  %v5570_v49 = vld [vmem:[%s6270_s28 + $0x3c] sm:$0xe] }
  0xf1   : > { %v3708_v4 = vor.u32 %v3707_v52, %v7694_v46  ;;  %v7746_v45 = vpop.f32.mrf.mxu1  ;;  %v5585_v52 = vrot.slane %v5569_v18, 9  ;;  %v3722_v18 = vor.u32 %v3721_v19, %v3718_v51  ;;  %v9084_v6 = vcombine.low %v7459_v28, %v7475_v1 }
  0xf2   : > { %6005 = vmatmul.mubr.msk.bf16.gmra.mxu0 %vm712_vm3, %v6170_v21  ;;  %v3749_v21 = vshll.u32 %v7727_v7, 16  ;;  %9082 = vst [vmem:[#allocation5_spill] sm:$0xff] %v7746_v45  ;;  %v3745_v45 = vrot.slane %v3743_v22, 5  ;;  %v3764_v51 = vshrl.u32 %v5501_v34, 16  ;;  %v3767_v19 = vshll.u32 %v5501_v34, 16 }
  0xf3   : > { %6008 = vmatprep.mubr.msk.bf16.mxu0 %vm712_vm3, %v6171_v60  ;;  %v3711_v60 = vshll.u32 %v7692_v39, 16  ;;  %v7767_v26 = vrot.slane %v3708_v4, 4  ;;  %v3755_v39 = vrot.slane %v3753_v11, 4  ;;  %v7805_v22 = vsel %vm6600_vm7, %v4403_v13, %v4404_v63 }
  0xf4   : > { %v7775_v10 = vrot.slane %v3749_v21, 5  ;;  %v9086_v21 = vcombine.low %v7468_v25, %v7487_v14  ;;  %v4408_v25 = vrot.slane %v7705_v41, 5  ;;  %v6175_v14 = vld [vmem:[%s6270_s28 + $0x90] sm:$0xff]   ;;  %v5586_v1 = vrot.slane %v5570_v49, 9  ;;  %v5504_v41 = vld [vmem:[%s6270_s28 + $0x60] sm:$0xf] }
  0xf5   : > { %5971 = vmatmul.mubr.msk.bf16.gmra.mxu1 %vm712_vm3, %v5394_v35  ;;  %v6172_v35 = vld [vmem:[%s6270_s28 + $0x6c] sm:$0xff]   ;;  %v7760_v62 = vrot.slane %v3711_v60, 5  ;;  %v3766_v37 = vrot.slane %v3764_v51, 4 }
  0xf6   : > { %5974 = vmatprep.mubr.msk.bf16.mxu1 %vm712_vm3, %v5395_v23  ;;  %v3740_v23 = vshrl.u32 %v5498_v3, 16  ;;  %v7758_v3 = vrot.slane %v3698_v44, 4  ;;  %v3731_v44 = vrot.slane %v3729_v33, 4  ;;  %v3777_v33 = vshrl.u32 %v7764_v17, 16 }
  0xf7   : > { %v7756_v16 = vpop.f32.mrf.mxu0  ;;  %v3756_v13 = vor.u32 %v3755_v39, %v7775_v10  ;;  %v4415_v39 = vrot.slane %v7727_v7, 5  ;;  %v9090_v7 = vcombine.low %v7479_v43, %v7496_v2  ;;  %v9092_v43 = vcombine.low %v7500_v59, %v7510_v50  ;;  %v6176_v2 = vld [vmem:[%s6270_s28 + $0x9c] sm:$0xff]  }
  0xf8   : > { %9083 = vst [vmem:[#allocation8_spill] sm:$0xff] %v7756_v16  ;;  %v3742_v60 = vrot.slane %v3740_v23, 4  ;;  %v6174_v23 = vld [vmem:[%s6270_s28 + $0x84] sm:$0xff]   ;;  %v7832_v16 = vld [vmem:[%s6270_s28 + $0x5c] sm:$0x1]  ;;  %v4422_v59 = vrot.slane %v7764_v17, 5 }
  0xf9   : > { %v7793_v28 = vpop.f32.mrf.mxu0 }
  0xfa   : > { %6009 = vmatmul.mubr.msk.bf16.gmra.mxu0 %vm712_vm3, %v6172_v35  ;;  %v7772_v35 = vrot.slane %v3725_v24, 5  ;;  %v3773_v24 = vshll.u32 %v7764_v17, 16  ;;  %9087 = vst [vmem:[#allocation12_spill] sm:$0xff] %v7793_v28  ;;  %v3769_v28 = vrot.slane %v3767_v19, 5 }
  0xfb   : > { %6012 = vmatprep.mubr.msk.bf16.mxu0 %vm712_vm3, %v6173_v8  ;;  %v7781_v4 = vpop.f32.mrf.mxu1  ;;  %v7784_v8 = vld [vmem:[%s6270_s28 + $0x50] sm:$0x1]  ;;  %v7825_v49 = vpop.f32.mrf.mxu0 }
  0xfc   : > { %9085 = vst [vmem:[#allocation7_spill] sm:$0xff] %v7781_v4  ;;  %v3732_v34 = vor.u32 %v3731_v44, %v7772_v35  ;;  %v7815_v4 = vrot.slane %v3722_v18, 4  ;;  %v7822_v11 = vrot.slane %v3773_v24, 5  ;;  %v3779_v44 = vrot.slane %v3777_v33, 4  ;;  %9089 = vst [vmem:[#allocation2_spill] sm:$0xff] %v7825_v49 }
  0xfd   : > { %5975 = vmatmul.mubr.msk.bf16.gmra.mxu1 %vm712_vm3, %v9084_v6  ;;  %v7801_v6 = vsel %vm6600_vm7, %v5585_v52, %v4401_v36  ;;  %v3746_v36 = vor.u32 %v3745_v45, %v3742_v60  ;;  %v3759_v52 = vshll.u32 %v7784_v8, 16  ;;  %v7820_v63 = vpop.f32.mrf.mxu1  ;;  %v4410_v18 = vrot.slane %v4408_v25, 4  ;;  %v5571_v24 = vld [vmem:[%s6270_s28 + $0x48] sm:$0xe] }
  0xfe   : > { %5978 = vmatprep.mubr.msk.bf16.mxu1 %vm712_vm3, %v9086_v21  ;;  %v3735_v21 = vshll.u32 %v7770_v58, 16  ;;  %9088 = vst [vmem:[#allocation10_spill] sm:$0xff] %v7820_v63  ;;  %v4411_v60 = vrot.slane %v7770_v58, 5  ;;  %v3733_v51 = vrot.slane %v3732_v34, 4  ;;  %v3788_v33 = vshrl.u32 %v5504_v41, 16 }
  0xff   : > { %v7838_v63 = vsel %vm6600_vm7, %v5586_v1, %v4408_v25  ;;  %v3747_v45 = vrot.slane %v3746_v36, 4  ;;  %v3757_v49 = vrot.slane %v3756_v13, 4  ;;  %v3761_v58 = vrot.slane %v3759_v52, 5  ;;  %v7853_v36 = vld [vmem:[%s6270_s28 + $0x64] sm:$0xf]  ;;  %v7860_v13 = vpop.f32.mrf.mxu0 }
 0x100   : > { %v3737_v19 = vrot.slane %v3735_v21, 5  ;;  %v3728_v34 = vsel %vm6314_vm4, %v7815_v4, %v7772_v35  ;;  %v3770_v21 = vor.u32 %v3769_v28, %v3766_v37  ;;  %v3780_v1 = vor.u32 %v3779_v44, %v7822_v11  ;;  %9093 = vst [vmem:[#allocation14_spill] sm:$0xff] %v7860_v13  ;;  %v5572_v28 = vld [vmem:[%s6270_s28 + $0x54] sm:$0xe]  ;;  %v6180_v13 = vld [vmem:[%s6270_s28 + $0xcc] sm:$0xff]  }
 0x101   : > { %v3783_v25 = vshll.u32 %v7832_v16, 16  ;;  %v7864_v52 = vsel %vm6600_vm7, %v4410_v18, %v4411_v60  ;;  %v5587_v35 = vrot.slane %v5571_v24, 9  ;;  %v4417_v37 = vrot.slane %v4415_v39, 4 }
 0x102   : > { %6013 = vmatmul.mubr.msk.bf16.gmra.mxu0 %vm712_vm3, %v6174_v23  ;;  %v3791_v23 = vshll.u32 %v5504_v41, 16  ;;  %v4418_v4 = vrot.slane %v7784_v8, 5  ;;  %v6177_v41 = vld [vmem:[%s6270_s28 + $0xa8] sm:$0xff]   ;;  %v3738_v44 = vsel %vm6314_vm4, %v3733_v51, %v3737_v19  ;;  %v3790_v50 = vrot.slane %v3788_v33, 4 }
 0x103   : > { %6016 = vmatprep.mubr.msk.bf16.mxu0 %vm712_vm3, %v6175_v14  ;;  %v7844_v14 = vpop.f32.mrf.mxu1  ;;  %v3762_v18 = vsel %vm6314_vm4, %v3757_v49, %v3761_v58  ;;  %v3797_v60 = vshll.u32 %v7853_v36, 16  ;;  %v3801_v8 = vshrl.u32 %v7853_v36, 16  ;;  %v3781_v51 = vrot.slane %v3780_v1, 4  ;;  %v7882_v33 = vld [vmem:[%s6270_s28 + $0x68] sm:$0x1] }
 0x104   : > { %9091 = vst [vmem:[#allocation13_spill] sm:$0xff] %v7844_v14  ;;  %v3771_v14 = vrot.slane %v3770_v21, 4  ;;  %v3785_v17 = vrot.slane %v3783_v25, 5  ;;  %v5588_v19 = vrot.slane %v5572_v28, 9  ;;  %v9096_v49 = vsel %vm6314_vm4, %v7767_v26, %v7760_v62  ;;  %v5507_v25 = vld [vmem:[%s6270_s28 + $0x6c] sm:$0xf] }
 0x105   : > { %5979 = vmatmul.mubr.msk.bf16.gmra.mxu1 %vm712_vm3, %v9090_v7  ;;  %v3793_v7 = vrot.slane %v3791_v23, 5  ;;  %v7879_v24 = vpop.f32.mrf.mxu1  ;;  %v7903_v21 = vsel %vm6600_vm7, %v5587_v35, %v4415_v39  ;;  %v7907_v1 = vsel %vm6600_vm7, %v4417_v37, %v4418_v4  ;;  %v7910_v62 = vcombine.low %v3728_v34, %v3738_v44  ;;  %v5573_v4 = vld [vmem:[%s6270_s28 + $0x60] sm:$0xe]  ;;  %v5513_v44 = vld [vmem:[%s6270_s28 + $0x84] sm:$0xf] }
 0x106   : > { %5982 = vmatprep.mubr.msk.bf16.mxu1 %vm712_vm3, %v9092_v43  ;;  %v3752_v43 = vsel %vm6314_vm4, %v3747_v45, %v7775_v10  ;;  %9094 = vst [vmem:[#allocation15_spill] sm:$0xff] %v7879_v24  ;;  %v9097_v45 = vsel %vm6314_vm4, %v7758_v3, %v7694_v46  ;;  %v4424_v46 = vrot.slane %v4422_v59, 4  ;;  %v4425_v3 = vrot.slane %v7832_v16, 5 }
 0x107   : > { %v7897_v23 = vcombine.low %v9097_v45, %v9096_v49  ;;  %9098 = vst [vmem:[#allocation11_spill] sm:$0xff] %v7910_v62  ;;  %v3794_v26 = vor.u32 %v3793_v7, %v3790_v50  ;;  %v7917_v28 = vcombine.low %v3752_v43, %v3762_v18  ;;  %v7919_v39 = vrot.slane %v3797_v60, 5 }
 0x108   : > { %v7885_v10 = vpop.f32.mrf.mxu0  ;;  %v7921_v35 = vrot.slane %v3801_v8, 4  ;;  %v3807_v37 = vshll.u32 %v7882_v33, 16  ;;  %v9100_v34 = vcombine.low %v7518_v54, %v7533_v56  ;;  %v3776_v50 = vsel %vm6314_vm4, %v3771_v14, %v7822_v11  ;;  %v5510_v54 = vld [vmem:[%s6270_s28 + $0x78] sm:$0xf] }
 0x109   : > { %9095 = vst [vmem:[#allocation9_spill] sm:$0xff] %v7885_v10  ;;  %9099 = vst [vmem:[#allocation16_spill] sm:$0xff] %v7917_v28  ;;  %v3786_v7 = vsel %vm6314_vm4, %v3781_v51, %v3785_v17  ;;  %v7941_v43 = vsel %vm6600_vm7, %v5588_v19, %v4422_v59  ;;  %v9102_v56 = vcombine.low %v7525_v29, %v7546_v42  ;;  %v3812_v60 = vshrl.u32 %v5507_v25, 16  ;;  %v7953_v51 = vld [vmem:[%s6270_s28 + $0x7c] sm:$0xf]  ;;  %v6179_v59 = vld [vmem:[%s6270_s28 + $0xc0] sm:$0xff]  }
 0x10a   : > { %6017 = vmatmul.mubr.msk.bf16.gmra.mxu0 %vm712_vm3, %v6176_v2  ;;  %v7915_v2 = vld [vmem:[%s6270_s28 + $0x70] sm:$0xf]  ;;  %v7948_v18 = vpop.f32.mrf.mxu0  ;;  %v3815_v8 = vshll.u32 %v5507_v25, 16  ;;  %v7958_v17 = vsel %vm6600_vm7, %v4424_v46, %v4425_v3  ;;  %v7960_v29 = vrot.slane %v3794_v26, 4  ;;  %v5589_v42 = vrot.slane %v5573_v4, 9 }
 0x10b   : > { %6020 = vmatprep.mubr.msk.bf16.mxu0 %vm712_vm3, %v6177_v41  ;;  %v6178_v41 = vld [vmem:[%s6270_s28 + $0xb4] sm:$0xff]   ;;  %9103 = vst [vmem:[#allocation18_spill] sm:$0xff] %v7948_v18  ;;  %v3821_v11 = vshll.u32 %v7915_v2, 16  ;;  %v3825_v14 = vshrl.u32 %v7915_v2, 16  ;;  %v4429_v19 = vrot.slane %v7853_v36, 5  ;;  %v7963_v49 = vcombine.low %v3776_v50, %v3786_v7 }
 0x10c   : > { %v3804_v45 = vor.u32 %v7921_v35, %v7919_v39  ;;  %v7967_v25 = vrot.slane %v3807_v37, 5  ;;  %v3836_v46 = vshrl.u32 %v5510_v54, 16  ;;  %v3839_v3 = vshll.u32 %v5510_v54, 16  ;;  %v7979_v4 = vld [vmem:[%s6270_s28 + $0x88] sm:$0xf]  ;;  %v7982_v35 = vpop.f32.mrf.mxu0 }
 0x10d   : > { %5983 = vmatmul.mubr.msk.bf16.gmra.mxu1 %vm712_vm3, %v9100_v34  ;;  %v7929_v16 = vpop.f32.mrf.mxu1  ;;  %9104 = vst [vmem:[#allocation19_spill] sm:$0xff] %v7963_v49  ;;  %v4432_v34 = vrot.slane %v7882_v33, 5  ;;  %v3845_v36 = vshll.u32 %v7953_v51, 16  ;;  %v3849_v26 = vshrl.u32 %v7953_v51, 16  ;;  %9106 = vst [vmem:[#allocation21_spill] sm:$0xff] %v7982_v35  ;;  %v3814_v33 = vrot.slane %v3812_v60, 4 }
 0x10e   : > { %9101 = vst [vmem:[#allocation17_spill] sm:$0xff] %v7929_v16  ;;  %5986 = vmatprep.mubr.msk.bf16.mxu1 %vm712_vm3, %v9102_v56  ;;  %v7971_v56 = vld [vmem:[%s6270_s28 + $0x74] sm:$0x1]  ;;  %v3817_v37 = vrot.slane %v3815_v8, 5  ;;  %v7984_v50 = vrot.slane %v3821_v11, 5  ;;  %v3827_v7 = vrot.slane %v3825_v14, 4  ;;  %v9107_v54 = vcombine.low %v7537_v30, %v7553_v55  ;;  %v8012_v49 = vpop.f32.mrf.mxu0 }
 0x10f   : > { %v7974_v58 = vpop.f32.mrf.mxu1  ;;  %v4431_v16 = vrot.slane %v4429_v19, 4  ;;  %v7997_v60 = vld [vmem:[%s6270_s28 + $0x80] sm:$0x1]  ;;  %v8000_v8 = vld [vmem:[%s6270_s28 + $0x6c] sm:$0xe]  ;;  %v3860_v11 = vshrl.u32 %v5513_v44, 16 }
 0x110   : > { %9105 = vst [vmem:[#allocation20_spill] sm:$0xff] %v7974_v58  ;;  %v7993_v58 = vsel %vm6600_vm7, %v5589_v42, %v4429_v19  ;;  %v3863_v14 = vshll.u32 %v5513_v44, 16  ;;  %v3873_v24 = vshrl.u32 %v7979_v4, 16  ;;  %v3838_v19 = vrot.slane %v3836_v46, 4  ;;  %9109 = vst [vmem:[#allocation23_spill] sm:$0xff] %v8012_v49 }
 0x111   : > { %v8008_v42 = vpop.f32.mrf.mxu1  ;;  %v3841_v35 = vrot.slane %v3839_v3, 5  ;;  %v8010_v18 = vrot.slane %v3845_v36, 5  ;;  %v3851_v10 = vrot.slane %v3849_v26, 4  ;;  %v9110_v44 = vcombine.low %v7557_v15, %v7585_v32  ;;  %v8031_v32 = vld [vmem:[%s6270_s28 + $0x8c] sm:$0x1] }
 0x112   : > { %6021 = vmatmul.mubr.msk.bf16.gmra.mxu0 %vm712_vm3, %v6178_v41  ;;  %v3831_v41 = vshll.u32 %v7971_v56, 16  ;;  %9108 = vst [vmem:[#allocation22_spill] sm:$0xff] %v8008_v42  ;;  %v3818_v30 = vor.u32 %v3817_v37, %v3814_v33  ;;  %v3828_v55 = vor.u32 %v3827_v7, %v7984_v50  ;;  %v3855_v46 = vshll.u32 %v7997_v60, 16  ;;  %v5575_v33 = vld [vmem:[%s6270_s28 + $0x78] sm:$0xe] }
 0x113   : > { %6024 = vmatprep.mubr.msk.bf16.mxu0 %vm712_vm3, %v6179_v59  ;;  %v3869_v59 = vshll.u32 %v7979_v4, 16  ;;  %v8022_v3 = vrot.slane %v3804_v45, 4  ;;  %v8026_v36 = vsel %vm6600_vm7, %v4431_v16, %v4432_v34  ;;  %v5590_v26 = vrot.slane %v8000_v8, 9  ;;  %v8036_v42 = vpop.f32.mrf.mxu1  ;;  %v5516_v8 = vld [vmem:[%s6270_s28 + $0x90] sm:$0xf] }
 0x114   : > { %v4443_v15 = vrot.slane %v7953_v51, 5  ;;  %v3862_v37 = vrot.slane %v3860_v11, 4  ;;  %v3865_v7 = vrot.slane %v3863_v14, 5  ;;  %9111 = vst [vmem:[#allocation24_spill] sm:$0xff] %v8036_v42  ;;  %v3833_v45 = vrot.slane %v3831_v41, 5 }
 0x115   : > { %5987 = vmatmul.mubr.msk.bf16.gmra.mxu1 %vm712_vm3, %v9107_v54  ;;  %v4436_v54 = vrot.slane %v7915_v2, 5  ;;  %v8034_v2 = vrot.slane %v3869_v59, 5  ;;  %v4439_v49 = vrot.slane %v7971_v56, 5  ;;  %v3842_v16 = vor.u32 %v3841_v35, %v3838_v19  ;;  %v8045_v59 = vld [vmem:[%s6270_s28 + $0x94] sm:$0xf] }
 0x116   : > { %5990 = vmatprep.mubr.msk.bf16.mxu1 %vm712_vm3, %v9110_v44  ;;  %v3875_v44 = vrot.slane %v3873_v24, 4  ;;  %v3852_v34 = vor.u32 %v3851_v10, %v8010_v18  ;;  %v3819_v51 = vrot.slane %v3818_v30, 4  ;;  %v3829_v11 = vrot.slane %v3828_v55, 4 }
 0x117   : > { %v4438_v62 = vrot.slane %v4436_v54, 4  ;;  %v3857_v14 = vrot.slane %v3855_v46, 5  ;;  %v9112_v24 = vcombine.low %v7678_v61, %v7682_v40  ;;  %v5591_v56 = vrot.slane %v5575_v33, 9 }
 0x118   : > { %v4445_v35 = vrot.slane %v4443_v15, 4  ;;  %v4446_v10 = vrot.slane %v7997_v60, 5  ;;  %v3879_v41 = vshll.u32 %v8031_v32, 16  ;;  %v3876_v30 = vor.u32 %v3875_v44, %v8034_v2 }
 0x119   : > { %v3884_v55 = vshrl.u32 %v5516_v8, 16  ;;  %v3887_v46 = vshll.u32 %v5516_v8, 16  ;;  %v9114_v61 = vcombine.low %v7597_v9, %v7602_v47  ;;  %v3843_v40 = vrot.slane %v3842_v16, 4 }
 0x11a   : > { %v8041_v28 = vpop.f32.mrf.mxu0  ;;  %6025 = vmatmul.mubr.msk.bf16.gmra.mxu0 %vm712_vm3, %v6180_v13  ;;  %v3866_v13 = vor.u32 %v3865_v7, %v3862_v37  ;;  %v3853_v33 = vrot.slane %v3852_v34, 4  ;;  %v3893_v60 = vshll.u32 %v8045_v59, 16  ;;  %v3810_v37 = vsel %vm6314_vm4, %v8022_v3, %v7967_v25 }
 0x11b   : > { %6064 = vmatprep.mubr.msk.bf16.mxu0 %vm712_vm3, %v9112_v24  ;;  %v3897_v24 = vshrl.u32 %v8045_v59, 16  ;;  %v3824_v9 = vsel %vm6314_vm4, %v3819_v51, %v7984_v50  ;;  %v8077_v47 = vsel %vm6600_vm7, %v5590_v26, %v4436_v54  ;;  %v8081_v7 = vsel %vm6600_vm7, %v4438_v62, %v4439_v49  ;;  %v5576_v54 = vld [vmem:[%s6270_s28 + $0x84] sm:$0xe]  ;;  %v9153_v31 = vld [vmem:[#allocation24_spill] sm:$0xff] }
 0x11c   : > { %v8053_v19 = vpop.f32.mrf.mxu0  ;;  %v8089_v25 = vsel %vm6600_vm7, %v5591_v56, %v4443_v15  ;;  %v8093_v50 = vsel %vm6600_vm7, %v4445_v35, %v4446_v10  ;;  %v3881_v3 = vrot.slane %v3879_v41, 5  ;;  %v3867_v62 = vrot.slane %v3866_v13, 4  ;;  %v8117_v13 = vld [vmem:[%s6270_s28 + $0x98] sm:$0x1] }
 0x11d   : > { %9113 = vst [vmem:[#allocation25_spill] sm:$0xff] %v8053_v19  ;;  %v8056_v42 = vpop.f32.mrf.mxu1  ;;  %5991 = vmatmul.mubr.msk.bf16.gmra.mxu1 %vm712_vm3, %v9114_v61  ;;  %v3877_v49 = vrot.slane %v3876_v30, 4  ;;  %v3886_v16 = vrot.slane %v3884_v55, 4  ;;  %v3889_v34 = vrot.slane %v3887_v46, 5  ;;  %v3848_v15 = vsel %vm6314_vm4, %v3843_v40, %v8010_v18  ;;  %v5519_v30 = vld [vmem:[%s6270_s28 + $0x9c] sm:$0xf] }
 0x11e   : > { %v8064_v19 = vpop.f32.mrf.mxu0  ;;  %6030 = vmatprep.mubr.msk.bf16.mxu1 %vm712_vm3, %v7748_v27  ;;  %v3834_v27 = vsel %vm6314_vm4, %v3829_v11, %v3833_v45  ;;  %v3858_v45 = vsel %vm6314_vm4, %v3853_v33, %v3857_v14  ;;  %v8105_v51 = vrot.slane %v3893_v60, 5  ;;  %v3899_v11 = vrot.slane %v3897_v24, 4  ;;  %v8148_v24 = vld [vmem:[%s6270_s28 + $0xa0] sm:$0xf] }
 0x11f   : > { %v8083_v44 = vpop.f32.mrf.mxu1  ;;  %v9115_v35 = vcombine.low %v7718_v48, %v7722_v38  ;;  %v5605_v10 = vcombine.low %v7941_v43, %v7958_v17  ;;  %v5606_v41 = vcombine.low %v7993_v58, %v8026_v36  ;;  %v5592_v18 = vrot.slane %v5576_v54, 9 }
 0x120   : > { %v8096_v26 = vpop.f32.mrf.mxu0  ;;  %v4450_v14 = vrot.slane %v7979_v4, 5  ;;  %v9116_v48 = vcombine.low %v7801_v6, %v7805_v22  ;;  %v9117_v38 = vsel %vm6314_vm4, %v7960_v29, %v7919_v39  ;;  %v8133_v61 = vcombine.low %v3824_v9, %v3834_v27  ;;  %v5577_v29 = vld [vmem:[%s6270_s28 + $0x90] sm:$0xe]  ;;  %v9124_v4 = vld [vmem:[#allocation2_spill] sm:$0xff] }
 0x121   : > { %v8098_v8 = vpop.f32.mrf.mxu1  ;;  %v8131_v46 = vcombine.low %v9117_v38, %v3810_v37  ;;  %v8139_v60 = vcombine.low %v3848_v15, %v3858_v45  ;;  %v3872_v6 = vsel %vm6314_vm4, %v3867_v62, %v8034_v2  ;;  %v3882_v22 = vsel %vm6314_vm4, %v3877_v49, %v3881_v3 }
 0x122   : > { %v5862_v56 = vpop.f32.mrf.mxu0  ;;  %6065 = vmatmul.mubr.msk.bf16.vlgmr.msra.gmra.mxu0 %vm712_vm3, %v9115_v35  ;;  %v3890_v39 = vor.u32 %v3889_v34, %v3886_v16  ;;  %v3900_v9 = vor.u32 %v3899_v11, %v8105_v51  ;;  %v3903_v27 = vshll.u32 %v8117_v13, 16  ;;  %v3908_v54 = vshrl.u32 %v5519_v30, 16 }
 0x123   : > { %v8120_v55 = vpop.f32.mrf.mxu1  ;;  %6068 = vmatprep.mubr.msk.bf16.mxu0 %vm712_vm3, %v9116_v48  ;;  %v3911_v15 = vshll.u32 %v5519_v30, 16  ;;  %v8159_v3 = vsel %vm6600_vm7, %v5592_v18, %v4450_v14  ;;  %v4452_v62 = vrot.slane %v4450_v14, 4  ;;  %v4453_v49 = vrot.slane %v8031_v32, 5 }
 0x124   : > { %v1516_v33 = vpop.f32.mrf.mxu0  ;;  %v5593_v16 = vrot.slane %v5577_v29, 9  ;;  %v4457_v34 = vrot.slane %v8045_v59, 5  ;;  %v3917_v11 = vshll.u32 %v8148_v24, 16  ;;  %v3921_v35 = vshrl.u32 %v8148_v24, 16 }
 0x125   : > { %v5828_v37 = vpop.f32.mrf.mxu1  ;;  %6031 = vmatmul.mubr.msk.bf16.vlgmr.msra.gmra.mxu1 %vm712_vm3, %v7750_v57  ;;  %v8168_v48 = vcombine.low %v3872_v6, %v3882_v22  ;;  %v8170_v18 = vrot.slane %v3890_v39, 4  ;;  %v3901_v32 = vrot.slane %v3900_v9, 4  ;;  %v3905_v38 = vrot.slane %v3903_v27, 5  ;;  %v5522_v22 = vld [vmem:[%s6270_s28 + $0xa8] sm:$0xf] }
 0x126   : > { %v1100_v45 = vadd.f32 %v5828_v37, %v7646_v5  ;;  %v5863_v2 = vpop.f32.mrf.mxu0  ;;  %6034 = vmatprep.mubr.msk.bf16.mxu1 %vm712_vm3, %v7897_v23  ;;  %v3910_v29 = vrot.slane %v3908_v54, 4  ;;  %v3913_v59 = vrot.slane %v3911_v15, 5  ;;  %v4460_v6 = vrot.slane %v8117_v13, 5  ;;  %v8196_v27 = vld [vmem:[%s6270_s28 + $0xac] sm:$0xf] }
 0x127   : > { %v1091_v57 = vpop.f32.mrf.mxu1  ;;  %v3923_v9 = vrot.slane %v3921_v35, 4  ;;  %v9121_v35 = vld [vmem:[#allocation8_spill] sm:$0xff] }
 0x128   : > { %v8165_v5 = vadd.f32 %v5862_v56, %v1100_v45  ;;  %v1092_v23 = vadd.f32 %v1091_v57, %v7670_v20  ;;  %v1519_v30 = vpop.f32.mrf.mxu0  ;;  %v9118_v45 = vcombine.low %v7838_v63, %v7864_v52  ;;  %v8181_v20 = vsel %vm6600_vm7, %v4452_v62, %v4453_v49  ;;  %v5578_v62 = vld [vmem:[%s6270_s28 + $0x9c] sm:$0xe] }
 0x129   : > { %v5829_v14 = vpop.f32.mrf.mxu1  ;;  %v4459_v63 = vrot.slane %v4457_v34, 4  ;;  %v8193_v52 = vrot.slane %v3917_v11, 5  ;;  %v4464_v49 = vrot.slane %v8148_v24, 5  ;;  %v3941_v24 = vshll.u32 %v8196_v27, 16 }
 0x12a   : > { %v8172_v37 = vadd.f32 %v1516_v33, %v1092_v23  ;;  %v1103_v40 = vadd.f32 %v5829_v14, %v7689_v53  ;;  %v5866_v56 = vpop.f32.mrf.mxu0  ;;  %6069 = vmatmul.mubr.msk.bf16.gmra.mxu0 %vm712_vm3, %v9118_v45  ;;  %v9119_v33 = vcombine.low %v7903_v21, %v7907_v1  ;;  %v8191_v53 = vsel %vm6600_vm7, %v5593_v16, %v4457_v34  ;;  %v5521_v1 = vld [vmem:[%s6270_s28 + $0xa4] sm:$0x1]  ;;  %v9120_v16 = vld [vmem:[#allocation11_spill] sm:$0xff] }
 0x12b   : > { %v1094_v39 = vpop.f32.mrf.mxu1  ;;  %v3896_v21 = vsel %vm6314_vm4, %v8170_v18, %v8105_v51  ;;  %v3932_v34 = vshrl.u32 %v5522_v22, 16  ;;  %v9122_v51 = vld [vmem:[#allocation16_spill] sm:$0xff]  ;;  %v3945_v18 = vshrl.u32 %v8196_v27, 16 }
 0x12c   : > { %6072 = vmatprep.mubr.msk.bf16.mxu0 %vm712_vm3, %v9119_v33  ;;  %v8198_v54 = vadd.f32 %v5863_v2, %v1103_v40  ;;  %v1095_v13 = vadd.f32 %v1094_v39, %v7734_v12  ;;  %v1532_v15 = vpop.f32.mrf.mxu0  ;;  %v3906_v40 = vsel %vm6314_vm4, %v3901_v32, %v3905_v38  ;;  %v3914_v2 = vor.u32 %v3913_v59, %v3910_v29  ;;  %v9123_v59 = vld [vmem:[#allocation12_spill] sm:$0xff] }
 0x12d   : > { %v5832_v57 = vpop.f32.mrf.mxu1  ;;  %6035 = vmatmul.mubr.msk.bf16.gmra.mxu1 %vm712_vm3, %v9120_v16  ;;  %v3935_v12 = vshll.u32 %v5522_v22, 16  ;;  %v8221_v39 = vsel %vm6600_vm7, %v4459_v63, %v4460_v6  ;;  %v3924_v32 = vor.u32 %v3923_v9, %v8193_v52  ;;  %v3927_v38 = vshll.u32 %v5521_v1, 16 }
 0x12e   : > { %v8212_v11 = vadd.f32 %v1519_v30, %v1095_v13  ;;  %v1116_v23 = vadd.f32 %v5832_v57, %v9121_v35  ;;  %v5867_v14 = vpop.f32.mrf.mxu0  ;;  %6038 = vmatprep.mubr.msk.bf16.mxu1 %vm712_vm3, %v9122_v51  ;;  %v5594_v30 = vrot.slane %v5578_v62, 9  ;;  %v4466_v13 = vrot.slane %v4464_v49, 4 }
 0x12f   : > { %v1107_v45 = vpop.f32.mrf.mxu1  ;;  %v4467_v57 = vrot.slane %v5521_v1, 5  ;;  %v8229_v51 = vrot.slane %v3914_v2, 4  ;;  %v3934_v6 = vrot.slane %v3932_v34, 4  ;;  %v3937_v63 = vrot.slane %v3935_v12, 5  ;;  %v8239_v1 = vld [vmem:[%s6270_s28 + $0xb0] sm:$0x1] }
 0x130   : > { %v8224_v29 = vadd.f32 %v5866_v56, %v1116_v23  ;;  %v1108_v22 = vadd.f32 %v1107_v45, %v9123_v59  ;;  %v1535_v33 = vpop.f32.mrf.mxu0  ;;  %v8241_v23 = vrot.slane %v3941_v24, 5  ;;  %v3947_v2 = vrot.slane %v3945_v18, 4  ;;  %v9125_v12 = vld [vmem:[#allocation14_spill] sm:$0xff] }
 0x131   : > { %v5833_v16 = vpop.f32.mrf.mxu1  ;;  %v8251_v43 = vrot.slane %v3924_v32, 4  ;;  %v8253_v17 = vrot.slane %v3927_v38, 5  ;;  %v8261_v58 = vsel %vm6600_vm7, %v5594_v30, %v4464_v49  ;;  %v8265_v36 = vsel %vm6600_vm7, %v4466_v13, %v4467_v57  ;;  %v8277_v30 = vld [vmem:[%s6270_s28 + $0xb8] sm:$0xf] }
 0x132   : > { %v8231_v9 = vadd.f32 %v1532_v15, %v1108_v22  ;;  %v1119_v62 = vadd.f32 %v5833_v16, %v9124_v4  ;;  %v5870_v56 = vpop.f32.mrf.mxu0  ;;  %6073 = vmatmul.mubr.msk.bf16.gmra.mxu0 %vm712_vm3, %v5605_v10  ;;  %v8247_v15 = vcombine.low %v3896_v21, %v3906_v40  ;;  %v5579_v10 = vld [vmem:[%s6270_s28 + $0xa8] sm:$0xe]  ;;  %v3938_v32 = vor.u32 %v3937_v63, %v3934_v6  ;;  %v9127_v22 = vld [vmem:[#allocation9_spill] sm:$0xff] }
 0x133   : > { %v1110_v45 = vpop.f32.mrf.mxu1  ;;  %6076 = vmatprep.mubr.msk.bf16.mxu0 %vm712_vm3, %v5606_v41  ;;  %v5525_v41 = vld [vmem:[%s6270_s28 + $0xb4] sm:$0xf]  ;;  %v9126_v40 = vld [vmem:[#allocation19_spill] sm:$0xff]  ;;  %v3951_v38 = vshll.u32 %v8239_v1, 16  ;;  %v4471_v49 = vrot.slane %v8196_v27, 5  ;;  %v3948_v16 = vor.u32 %v3947_v2, %v8241_v23  ;;  %v3930_v27 = vsel %vm6314_vm4, %v8251_v43, %v8253_v17 }
 0x134   : > { %v8256_v34 = vadd.f32 %v5867_v14, %v1119_v62  ;;  %v1111_v24 = vadd.f32 %v1110_v45, %v9125_v12  ;;  %v1548_v18 = vpop.f32.mrf.mxu0  ;;  %v5595_v62 = vrot.slane %v5579_v10, 9  ;;  %v3956_v6 = vshrl.u32 %v5525_v41, 16 }
 0x135   : > { %v5836_v21 = vpop.f32.mrf.mxu1  ;;  %6039 = vmatmul.mubr.msk.bf16.gmra.mxu1 %vm712_vm3, %v9126_v40  ;;  %v3959_v63 = vshll.u32 %v5525_v41, 16  ;;  %v3965_v2 = vshll.u32 %v8277_v30, 16  ;;  %v3969_v10 = vshrl.u32 %v8277_v30, 16  ;;  %v5528_v40 = vld [vmem:[%s6270_s28 + $0xc0] sm:$0xf]  ;;  %v3939_v4 = vrot.slane %v3938_v32, 4 }
 0x136   : > { %v8279_v59 = vadd.f32 %v1535_v33, %v1111_v24  ;;  %v1132_v13 = vadd.f32 %v5836_v21, %v9127_v22  ;;  %v5871_v57 = vpop.f32.mrf.mxu0  ;;  %6042 = vmatprep.mubr.msk.bf16.mxu1 %vm712_vm3, %v8131_v46  ;;  %v9129_v24 = vld [vmem:[#allocation18_spill] sm:$0xff]  ;;  %v3953_v43 = vrot.slane %v3951_v38, 5  ;;  %v4473_v17 = vrot.slane %v4471_v49, 4 }
 0x137   : > { %v1123_v45 = vpop.f32.mrf.mxu1  ;;  %v4474_v33 = vrot.slane %v8239_v1, 5  ;;  %v8307_v14 = vsel %vm6600_vm7, %v5595_v62, %v4471_v49  ;;  %v8310_v32 = vld [vmem:[%s6270_s28 + $0xc4] sm:$0xf]  ;;  %v9133_v1 = vcombine.low %v8089_v25, %v8093_v50  ;;  %v8322_v62 = vrot.slane %v3965_v2, 5 }
 0x138   : > { %v8291_v12 = vadd.f32 %v5870_v56, %v1132_v13  ;;  %v1124_v21 = vadd.f32 %v1123_v45, %v9129_v24  ;;  %v1551_v46 = vpop.f32.mrf.mxu0  ;;  %v9131_v56 = vld [vmem:[#allocation21_spill] sm:$0xff]  ;;  %v9132_v45 = vcombine.low %v8077_v47, %v8081_v7  ;;  %v3949_v24 = vrot.slane %v3948_v16, 4  ;;  %v9134_v16 = vld [vmem:[#allocation23_spill] sm:$0xff] }
 0x139   : > { %v5837_v22 = vpop.f32.mrf.mxu1  ;;  %v3980_v47 = vshrl.u32 %v5528_v40, 16  ;;  %v3983_v7 = vshll.u32 %v5528_v40, 16  ;;  %v3944_v25 = vsel %vm6314_vm4, %v3939_v4, %v8241_v23  ;;  %v8331_v50 = vsel %vm6600_vm7, %v4473_v17, %v4474_v33  ;;  %v5580_v40 = vld [vmem:[%s6270_s28 + $0xb4] sm:$0xe] }
 0x13a   : > { %9128 = vst [vmem:[#allocation11_spill] sm:$0xff] %v8291_v12  ;;  %v8298_v35 = vadd.f32 %v1548_v18, %v1124_v21  ;;  %v1135_v41 = vadd.f32 %v5837_v22, %v9131_v56  ;;  %v5874_v13 = vpop.f32.mrf.mxu0  ;;  %6077 = vmatmul.mubr.msk.bf16.gmra.mxu0 %vm712_vm3, %v9132_v45  ;;  %v8317_v18 = vld [vmem:[%s6270_s28 + $0xbc] sm:$0x1]  ;;  %v3958_v21 = vrot.slane %v3956_v6, 4  ;;  %v3961_v22 = vrot.slane %v3959_v63, 5 }
 0x13b   : > { %v1126_v38 = vpop.f32.mrf.mxu1  ;;  %6080 = vmatprep.mubr.msk.bf16.mxu0 %vm712_vm3, %v9133_v1  ;;  %v3993_v6 = vshrl.u32 %v8310_v32, 16  ;;  %v3975_v23 = vshll.u32 %v8317_v18, 16  ;;  %v4478_v17 = vrot.slane %v8277_v30, 5  ;;  %v9135_v1 = vld [vmem:[#allocation25_spill] sm:$0xff] }
 0x13c   : > { %9130 = vst [vmem:[#allocation8_spill] sm:$0xff] %v8298_v35  ;;  %v8319_v56 = vadd.f32 %v5871_v57, %v1135_v41  ;;  %v1127_v45 = vadd.f32 %v1126_v38, %v9134_v16  ;;  %v1564_v49 = vpop.f32.mrf.mxu0  ;;  %v3971_v35 = vrot.slane %v3969_v10, 4  ;;  %v3989_v57 = vshll.u32 %v8310_v32, 16 }
 0x13d   : > { %v5840_v12 = vpop.f32.mrf.mxu1  ;;  %6043 = vmatmul.mubr.msk.bf16.gmra.mxu1 %vm712_vm3, %v8133_v61  ;;  %v3954_v61 = vsel %vm6314_vm4, %v3949_v24, %v3953_v43  ;;  %v3962_v33 = vor.u32 %v3961_v22, %v3958_v21  ;;  %v3982_v41 = vrot.slane %v3980_v47, 4  ;;  %v3985_v38 = vrot.slane %v3983_v7, 5 }
 0x13e   : > { %v8335_v63 = vadd.f32 %v1551_v46, %v1127_v45  ;;  %v1148_v2 = vadd.f32 %v5840_v12, %v8041_v28  ;;  %v5875_v10 = vpop.f32.mrf.mxu0  ;;  %6046 = vmatprep.mubr.msk.bf16.mxu1 %vm712_vm3, %v8139_v60  ;;  %v9136_v60 = vsel %vm6314_vm4, %v8229_v51, %v8193_v52  ;;  %v3972_v24 = vor.u32 %v3971_v35, %v8322_v62 }
 0x13f   : > { %v1139_v4 = vpop.f32.mrf.mxu1  ;;  %v8353_v43 = vcombine.low %v9136_v60, %v3930_v27  ;;  %v8356_v30 = vcombine.low %v3944_v25, %v3954_v61  ;;  %v8360_v22 = vrot.slane %v3989_v57, 5  ;;  %v3995_v47 = vrot.slane %v3993_v6, 4  ;;  %v5530_v27 = vld [vmem:[%s6270_s28 + $0xc8] sm:$0x1] }
 0x140   : > { %v8345_v46 = vadd.f32 %v5874_v13, %v1148_v2  ;;  %v1140_v28 = vadd.f32 %v1139_v4, %v9135_v1  ;;  %v1567_v12 = vpop.f32.mrf.mxu0  ;;  %v5612_v13 = vcombine.low %v8307_v14, %v8331_v50  ;;  %v9137_v52 = vcombine.low %v8159_v3, %v8181_v20  ;;  %v5531_v14 = vld [vmem:[%s6270_s28 + $0xcc] sm:$0xf]  ;;  %v8381_v20 = vld [vmem:[%s6270_s28 + $0xd0] sm:$0xf]  ;;  %v5581_v4 = vld [vmem:[%s6270_s28 + $0xc0] sm:$0xe] }
 0x141   : > { %v5841_v21 = vpop.f32.mrf.mxu1  ;;  %v8369_v35 = vrot.slane %v3975_v23, 5  ;;  %v5596_v51 = vrot.slane %v5580_v40, 9  ;;  %v9138_v50 = vcombine.low %v8191_v53, %v8221_v39  ;;  %v4481_v57 = vrot.slane %v8317_v18, 5 }
 0x142   : > { %v8362_v7 = vadd.f32 %v1564_v49, %v1140_v28  ;;  %v1151_v16 = vadd.f32 %v5841_v21, %v8064_v19  ;;  %v5878_v45 = vpop.f32.mrf.mxu0  ;;  %6081 = vmatmul.mubr.msk.bf16.gmra.mxu0 %vm712_vm3, %v9137_v52  ;;  %v8377_v49 = vrot.slane %v3962_v33, 4  ;;  %v4480_v19 = vrot.slane %v4478_v17, 4 }
 0x143   : > { %v1142_v25 = vpop.f32.mrf.mxu1  ;;  %6084 = vmatprep.mubr.msk.bf16.mxu0 %vm712_vm3, %v9138_v50  ;;  %v3986_v3 = vor.u32 %v3985_v38, %v3982_v41  ;;  %v8386_v23 = vrot.slane %v3972_v24, 4  ;;  %v4485_v53 = vrot.slane %v8310_v32, 5  ;;  %v3996_v33 = vor.u32 %v3995_v47, %v8360_v22 }
 0x144   : > { %v8383_v6 = vadd.f32 %v5875_v10, %v1151_v16  ;;  %v1143_v2 = vadd.f32 %v1142_v25, %v8096_v26  ;;  %v1580_v61 = vpop.f32.mrf.mxu0  ;;  %v3999_v18 = vshll.u32 %v5530_v27, 16  ;;  %v4004_v40 = vshrl.u32 %v5531_v14, 16  ;;  %v9141_v10 = vld [vmem:[#allocation4_spill] sm:$0xff]  ;;  %v9142_v16 = vld [vmem:[#allocation3_spill] sm:$0xff] }
 0x145   : > { %v5844_v39 = vpop.f32.mrf.mxu1  ;;  %6047 = vmatmul.mubr.msk.bf16.gmra.mxu1 %vm712_vm3, %v8168_v48  ;;  %v4007_v41 = vshll.u32 %v5531_v14, 16  ;;  %v4013_v28 = vshll.u32 %v8381_v20, 16  ;;  %v4017_v32 = vshrl.u32 %v8381_v20, 16  ;;  %v4479_v48 = vsel %vm6600_vm7, %v5596_v51, %v4478_v17  ;;  %v9143_v17 = vld [vmem:[#allocation6_spill] sm:$0xff] }
 0x146   : > { %9139 = vst [vmem:[#allocation16_spill] sm:$0xff] %v8383_v6  ;;  %v8393_v38 = vadd.f32 %v1567_v12, %v1143_v2  ;;  %v1164_v1 = vadd.f32 %v5844_v39, %v9141_v10  ;;  %v5879_v26 = vpop.f32.mrf.mxu0  ;;  %6050 = vmatprep.mubr.msk.bf16.mxu1 %vm712_vm3, %v8247_v15  ;;  %v4482_v24 = vsel %vm6600_vm7, %v4480_v19, %v4481_v57  ;;  %v3987_v21 = vrot.slane %v3986_v3, 4 }
 0x147   : > { %v1155_v60 = vpop.f32.mrf.mxu1  ;;  %v5597_v12 = vrot.slane %v5581_v4, 9  ;;  %v4487_v25 = vrot.slane %v4485_v53, 4  ;;  %v4488_v15 = vrot.slane %v5530_v27, 5  ;;  %v3997_v2 = vrot.slane %v3996_v33, 4  ;;  %v5533_v33 = vld [vmem:[%s6270_s28 + $0xd4] sm:$0x1] }
 0x148   : > { %9140 = vst [vmem:[#allocation12_spill] sm:$0xff] %v8393_v38  ;;  %v8404_v47 = vadd.f32 %v5878_v45, %v1164_v1  ;;  %v1156_v52 = vadd.f32 %v1155_v60, %v9142_v16  ;;  %v1583_v14 = vpop.f32.mrf.mxu0  ;;  %v4001_v39 = vrot.slane %v3999_v18, 5  ;;  %v4006_v10 = vrot.slane %v4004_v40, 4  ;;  %v9145_v18 = vld [vmem:[#allocation5_spill] sm:$0xff] }
 0x149   : > { %v5845_v50 = vpop.f32.mrf.mxu1  ;;  %v4009_v38 = vrot.slane %v4007_v41, 5  ;;  %v9144_v45 = vcombine.low %v8261_v58, %v8265_v36  ;;  %v8414_v57 = vrot.slane %v4013_v28, 5  ;;  %v4019_v27 = vrot.slane %v4017_v32, 4 }
 0x14a   : > { %v8407_v6 = vadd.f32 %v1580_v61, %v1156_v52  ;;  %v1167_v51 = vadd.f32 %v5845_v50, %v9143_v17  ;;  %v5882_v19 = vpop.f32.mrf.mxu0  ;;  %v3968_v61 = vsel %vm6314_vm4, %v8377_v49, %v8322_v62  ;;  %v3978_v4 = vsel %vm6314_vm4, %v8386_v23, %v8369_v35  ;;  %v5582_v62 = vld [vmem:[%s6270_s28 + $0xcc] sm:$0xe] }
 0x14b   : > { %6085 = vmatmul.mubr.msk.bf16.gmra.mxu0 %vm712_vm3, %v9144_v45  ;;  %v1158_v3 = vpop.f32.mrf.mxu1  ;;  %v4492_v58 = vrot.slane %v8381_v20, 5  ;;  %v4489_v1 = vsel %vm6600_vm7, %v4487_v25, %v4488_v15  ;;  %v5613_v35 = vcombine.low %v4479_v48, %v4482_v24  ;;  %v3992_v20 = vsel %vm6314_vm4, %v3987_v21, %v8360_v22  ;;  %v9147_v25 = vld [vmem:[#allocation10_spill] sm:$0xff] }
 0x14c   : > { %6088 = vmatprep.mubr.msk.bf16.mxu0 %vm712_vm3, %v5612_v13  ;;  %v8427_v36 = vadd.f32 %v5879_v26, %v1167_v51  ;;  %v1159_v40 = vadd.f32 %v1158_v3, %v9145_v18  ;;  %v1596_v41 = vpop.f32.mrf.mxu0  ;;  %v4486_v13 = vsel %vm6600_vm7, %v5597_v12, %v4485_v53  ;;  %v4002_v23 = vsel %vm6314_vm4, %v3997_v2, %v4001_v39  ;;  %v9146_v53 = vld [vmem:[#allocation7_spill] sm:$0xff] }
 0x14d   : > { %v5848_v49 = vpop.f32.mrf.mxu1  ;;  %6051 = vmatmul.mubr.msk.bf16.gmra.mxu1 %vm712_vm3, %v8353_v43  ;;  %v4010_v26 = vor.u32 %v4009_v38, %v4006_v10  ;;  %v4020_v12 = vor.u32 %v4019_v27, %v8414_v57  ;;  %v4023_v43 = vshll.u32 %v5533_v33, 16  ;;  %v5614_v24 = vcombine.low %v4486_v13, %v4489_v1 }
 0x14e   : > { %v8442_v28 = vadd.f32 %v1583_v14, %v1159_v40  ;;  %v1180_v32 = vadd.f32 %v5848_v49, %v9146_v53  ;;  %v5883_v60 = vpop.f32.mrf.mxu0  ;;  %6054 = vmatprep.mubr.msk.bf16.mxu1 %vm712_vm3, %v8356_v30  ;;  %v5598_v16 = vrot.slane %v5582_v62, 9  ;;  %v4494_v52 = vrot.slane %v4492_v58, 4  ;;  %v9148_v30 = vld [vmem:[#allocation13_spill] sm:$0xff] }
 0x14f   : > { %v1171_v48 = vpop.f32.mrf.mxu1  ;;  %v4495_v22 = vrot.slane %v5533_v33, 5  ;;  %v5548_v50 = vcombine.low %v3968_v61, %v3978_v4  ;;  %v5549_v2 = vcombine.low %v3992_v20, %v4002_v23  ;;  %v4011_v39 = vrot.slane %v4010_v26, 4  ;;  %v9149_v33 = vld [vmem:[#allocation15_spill] sm:$0xff]  ;;  %v9150_v62 = vld [vmem:[#allocation17_spill] sm:$0xff]  ;;  %v9151_v26 = vld [vmem:[#allocation20_spill] sm:$0xff] }
 0x150   : > { %v8448_v21 = vadd.f32 %v5882_v19, %v1180_v32  ;;  %v1172_v38 = vadd.f32 %v1171_v48, %v9147_v25  ;;  %v1599_v14 = vpop.f32.mrf.mxu0  ;;  %v4021_v45 = vrot.slane %v4020_v12, 4  ;;  %v4025_v27 = vrot.slane %v4023_v43, 5  ;;  %v9152_v43 = vld [vmem:[#allocation22_spill] sm:$0xff] }
 0x151   : > { %v5849_v15 = vpop.f32.mrf.mxu1  ;;  %v4493_v19 = vsel %vm6600_vm7, %v5598_v16, %v4492_v58  ;;  %v4496_v61 = vsel %vm6600_vm7, %v4494_v52, %v4495_v22  ;;  %v4016_v13 = vsel %vm6314_vm4, %v4011_v39, %v8414_v57 }
 0x152   : > { %v8451_v10 = vadd.f32 %v1596_v41, %v1172_v38  ;;  %v1183_v17 = vadd.f32 %v5849_v15, %v9148_v30  ;;  %v5886_v51 = vpop.f32.mrf.mxu0  ;;  %v4026_v0 = vsel %vm6314_vm4, %v4021_v45, %v4025_v27 }
 0x153   : > { %6089 = vmatmul.mubr.msk.bf16.gmra.mxu0 %vm712_vm3, %v5613_v35  ;;  %v1174_v3 = vpop.f32.mrf.mxu1  ;;  %v5615_v35 = vcombine.low %v4493_v19, %v4496_v61  ;;  %v5550_v12 = vcombine.low %v4016_v13, %v4026_v0 }
 0x154   : > { %6092 = vmatprep.mubr.msk.bf16.mxu0 %vm712_vm3, %v5614_v24  ;;  %v8460_v4 = vadd.f32 %v5883_v60, %v1183_v17  ;;  %v1175_v18 = vadd.f32 %v1174_v3, %v9149_v33  ;;  %v1612_v40 = vpop.f32.mrf.mxu0 }
 0x155   : > { %v5852_v41 = vpop.f32.mrf.mxu1  ;;  %6055 = vmatmul.mubr.msk.bf16.gmra.mxu1 %vm712_vm3, %v5548_v50 }
 0x156   : > { %v8467_v1 = vadd.f32 %v1599_v14, %v1175_v18  ;;  %v1196_v49 = vadd.f32 %v5852_v41, %v9150_v62  ;;  %v5887_v58 = vpop.f32.mrf.mxu0  ;;  %6058 = vmatprep.mubr.msk.bf16.mxu1 %vm712_vm3, %v5549_v2 }
 0x157   : > { %v1187_v20 = vpop.f32.mrf.mxu1 }
 0x158   : > { %v8473_v23 = vadd.f32 %v5886_v51, %v1196_v49  ;;  %v1188_v53 = vadd.f32 %v1187_v20, %v9151_v26  ;;  %v1615_v32 = vpop.f32.mrf.mxu0 }
 0x159   : > { %v5853_v60 = vpop.f32.mrf.mxu1 }
 0x15a   : > { %v8476_v57 = vadd.f32 %v1612_v40, %v1188_v53  ;;  %v1199_v48 = vadd.f32 %v5853_v60, %v9152_v43  ;;  %v5890_v24 = vpop.f32.mrf.mxu0 }
 0x15b   : > { %6093 = vmatmul.mubr.msk.bf16.gmra.mxu0 %vm712_vm3, %v5615_v35  ;;  %v1190_v16 = vpop.f32.mrf.mxu1 }
 0x15c   : > { %v8480_v52 = vadd.f32 %v5887_v58, %v1199_v48  ;;  %v1191_v22 = vadd.f32 %v1190_v16, %v9153_v31  ;;  %v1628_v25 = vpop.f32.mrf.mxu0 }
 0x15d   : > { %v5856_v38 = vpop.f32.mrf.mxu1  ;;  %6059 = vmatmul.mubr.msk.bf16.gmra.mxu1 %vm712_vm3, %v5550_v12 }
 0x15e   : > { %v8484_v14 = vadd.f32 %v1615_v32, %v1191_v22  ;;  %v1212_v15 = vadd.f32 %v5856_v38, %v8056_v42  ;;  %v5891_v50 = vpop.f32.mrf.mxu0 }
 0x15f   : > { %v1203_v2 = vpop.f32.mrf.mxu1 }
 0x160   : > { %v8487_v39 = vadd.f32 %v5890_v24, %v1212_v15  ;;  %v1204_v30 = vadd.f32 %v1203_v2, %v8083_v44  ;;  %v1631_v17 = vpop.f32.mrf.mxu0 }
 0x161   : > { %v5857_v51 = vpop.f32.mrf.mxu1 }
 0x162   : > { %v8490_v45 = vadd.f32 %v1628_v25, %v1204_v30  ;;  %v1215_v27 = vadd.f32 %v5857_v51, %v8098_v8  ;;  %v5930_v3 = vpop.f32.mrf.mxu0  ;;  %v9154_v30 = vld [vmem:[#allocation11_spill] sm:$0xff] }
 0x163   : > { %v1206_v19 = vpop.f32.mrf.mxu1 }
 0x164   : > { %v8493_v61 = vadd.f32 %v5891_v50, %v1215_v27  ;;  %v1207_v33 = vadd.f32 %v1206_v19, %v8120_v55  ;;  %v2604_v18 = vpop.f32.mrf.mxu0 }
 0x165   : > { %v5896_v42 = vpop.f32.mrf.mxu1 }
 0x166   : > { %v8496_v40 = vadd.f32 %v1631_v17, %v1207_v33  ;;  %v2007_v41 = vadd.f32 %v5896_v42, %v8165_v5  ;;  %v5931_v13 = vpop.f32.mrf.mxu0 }
 0x167   : > { %v1878_v44 = vpop.f32.mrf.mxu1 }
 0x168   : > { %v8499_v62 = vadd.f32 %v5930_v3, %v2007_v41  ;;  %v2005_v49 = vadd.f32 %v1878_v44, %v8172_v37  ;;  %v2607_v58 = vpop.f32.mrf.mxu0  ;;  %v9155_v3 = vld [vmem:[#allocation8_spill] sm:$0xff] }
 0x169   : > { %v5897_v8 = vpop.f32.mrf.mxu1 }
 0x16a   : > { %v8502_v0 = vadd.f32 %v2604_v18, %v2005_v49  ;;  %v2008_v35 = vadd.f32 %v5897_v8, %v8198_v54  ;;  %v5934_v20 = vpop.f32.mrf.mxu0 }
 0x16b   : > { %v1881_v55 = vpop.f32.mrf.mxu1 }
 0x16c   : > { %v8505_v26 = vadd.f32 %v5931_v13, %v2008_v35  ;;  %v2006_v53 = vadd.f32 %v1881_v55, %v8212_v11  ;;  %v2620_v32 = vpop.f32.mrf.mxu0 }
 0x16d   : > { %v5900_v5 = vpop.f32.mrf.mxu1 }
 0x16e   : > { %v8508_v60 = vadd.f32 %v2607_v58, %v2006_v53  ;;  %v2011_v12 = vadd.f32 %v5900_v5, %v8224_v29  ;;  %v5935_v43 = vpop.f32.mrf.mxu0 }
 0x16f   : > { %v1894_v37 = vpop.f32.mrf.mxu1 }
 0x170   : > { %v8511_v48 = vadd.f32 %v5934_v20, %v2011_v12  ;;  %v2009_v24 = vadd.f32 %v1894_v37, %v8231_v9  ;;  %v2623_v16 = vpop.f32.mrf.mxu0 }
 0x171   : > { %v5901_v54 = vpop.f32.mrf.mxu1 }
 0x172   : > { %v8514_v31 = vadd.f32 %v2620_v32, %v2009_v24  ;;  %v2012_v22 = vadd.f32 %v5901_v54, %v8256_v34  ;;  %v5938_v25 = vpop.f32.mrf.mxu0  ;;  %v9157_v54 = vld [vmem:[#allocation12_spill] sm:$0xff] }
 0x173   : > { %v1897_v11 = vpop.f32.mrf.mxu1 }
 0x174   : > { %v8517_v38 = vadd.f32 %v5935_v43, %v2012_v22  ;;  %v2010_v15 = vadd.f32 %v1897_v11, %v8279_v59  ;;  %v2636_v50 = vpop.f32.mrf.mxu0  ;;  %v9156_v43 = vld [vmem:[#allocation16_spill] sm:$0xff] }
 0x175   : > { %v5904_v29 = vpop.f32.mrf.mxu1 }
 0x176   : > { %v8520_v2 = vadd.f32 %v2623_v16, %v2010_v15  ;;  %v2015_v17 = vadd.f32 %v5904_v29, %v9154_v30  ;;  %v5939_v51 = vpop.f32.mrf.mxu0 }
 0x177   : > { %v1910_v9 = vpop.f32.mrf.mxu1 }
 0x178   : > { %v8523_v27 = vadd.f32 %v5938_v25, %v2015_v17  ;;  %v2013_v19 = vadd.f32 %v1910_v9, %v9155_v3  ;;  %v2639_v33 = vpop.f32.mrf.mxu0 }
 0x179   : > { %v5905_v34 = vpop.f32.mrf.mxu1 }
 0x17a   : > { %v8526_v18 = vadd.f32 %v2636_v50, %v2013_v19  ;;  %v2016_v42 = vadd.f32 %v5905_v34, %v8319_v56  ;;  %v5942_v41 = vpop.f32.mrf.mxu0 }
 0x17b   : > { %v1913_v59 = vpop.f32.mrf.mxu1 }
 0x17c   : > { %v8529_v13 = vadd.f32 %v5939_v51, %v2016_v42  ;;  %v2014_v44 = vadd.f32 %v1913_v59, %v8335_v63  ;;  %v2652_v49 = vpop.f32.mrf.mxu0 }
 0x17d   : > { %v5908_v58 = vpop.f32.mrf.mxu1 }
 0x17e   : > { %v8532_v8 = vadd.f32 %v2639_v33, %v2014_v44  ;;  %v2019_v35 = vadd.f32 %v5908_v58, %v8345_v46  ;;  %v5943_v20 = vpop.f32.mrf.mxu0 }
 0x17f   : > { %v1926_v55 = vpop.f32.mrf.mxu1 }
 0x180   : > { %v8535_v53 = vadd.f32 %v5942_v41, %v2019_v35  ;;  %v2017_v32 = vadd.f32 %v1926_v55, %v8362_v7  ;;  %v2655_v5 = vpop.f32.mrf.mxu0 }
 0x181   : > { %v5909_v56 = vpop.f32.mrf.mxu1 }
 0x182   : > { %v8538_v12 = vadd.f32 %v2652_v49, %v2017_v32  ;;  %v2020_v37 = vadd.f32 %v5909_v56, %v9156_v43  ;;  %v5946_v24 = vpop.f32.mrf.mxu0 }
 0x183   : > { %v1929_v63 = vpop.f32.mrf.mxu1 }
 0x184   : > { %v8541_v16 = vadd.f32 %v5943_v20, %v2020_v37  ;;  %v2018_v22 = vadd.f32 %v1929_v63, %v9157_v54  ;;  %v2668_v25 = vpop.f32.mrf.mxu0 }
 0x185   : > { %v5912_v46 = vpop.f32.mrf.mxu1 }
 0x186   : > { %v8544_v11 = vadd.f32 %v2655_v5, %v2018_v22  ;;  %v2023_v15 = vadd.f32 %v5912_v46, %v8404_v47  ;;  %v5947_v50 = vpop.f32.mrf.mxu0 }
 0x187   : > { %v1942_v7 = vpop.f32.mrf.mxu1 }
 0x188   : > { %v8547_v29 = vadd.f32 %v5946_v24, %v2023_v15  ;;  %v2021_v30 = vadd.f32 %v1942_v7, %v8407_v6  ;;  %v2671_v17 = vpop.f32.mrf.mxu0 }
 0x189   : > { %v5913_v51 = vpop.f32.mrf.mxu1 }
 0x18a   : > { %v8550_v9 = vadd.f32 %v2668_v25, %v2021_v30  ;;  %v2024_v3 = vadd.f32 %v5913_v51, %v8427_v36  ;;  %v5950_v19 = vpop.f32.mrf.mxu0 }
 0x18b   : > { %v1945_v33 = vpop.f32.mrf.mxu1 }
 0x18c   : > { %v8553_v34 = vadd.f32 %v5947_v50, %v2024_v3  ;;  %v2022_v42 = vadd.f32 %v1945_v33, %v8442_v28  ;;  %v2684_v41 = vpop.f32.mrf.mxu0 }
 0x18d   : > { %v5916_v47 = vpop.f32.mrf.mxu1 }
 0x18e   : > { %9158 = vst [vmem:[#allocation2_spill] sm:$0xff] %v8553_v34  ;;  %v8556_v59 = vadd.f32 %v2671_v17, %v2022_v42  ;;  %v2027_v44 = vadd.f32 %v5916_v47, %v8448_v21  ;;  %v5951_v49 = vpop.f32.mrf.mxu0 }
 0x18f   : > { %v1958_v6 = vpop.f32.mrf.mxu1 }
 0x190   : > { %9159 = vst [vmem:[#allocation14_spill] sm:$0xff] %v8556_v59  ;;  %v8559_v58 = vadd.f32 %v5950_v19, %v2027_v44  ;;  %v2025_v35 = vadd.f32 %v1958_v6, %v8451_v10  ;;  %v2687_v20 = vpop.f32.mrf.mxu0 }
 0x191   : > { %v5917_v36 = vpop.f32.mrf.mxu1 }
 0x192   : > { %9160 = vst [vmem:[#allocation19_spill] sm:$0xff] %v8559_v58  ;;  %v8562_v55 = vadd.f32 %v2684_v41, %v2025_v35  ;;  %v2028_v32 = vadd.f32 %v5917_v36, %v8460_v4  ;;  %v5954_v5 = vpop.f32.mrf.mxu0 }
 0x193   : > { %v1961_v28 = vpop.f32.mrf.mxu1 }
 0x194   : > { %9161 = vst [vmem:[#allocation9_spill] sm:$0xff] %v8562_v55  ;;  %v8565_v56 = vadd.f32 %v5951_v49, %v2028_v32  ;;  %v2026_v43 = vadd.f32 %v1961_v28, %v8467_v1  ;;  %v2700_v37 = vpop.f32.mrf.mxu0 }
 0x195   : > { %v5920_v21 = vpop.f32.mrf.mxu1 }
 0x196   : > { %9162 = vst [vmem:[#allocation18_spill] sm:$0xff] %v8565_v56  ;;  %v8568_v24 = vadd.f32 %v2687_v20, %v2026_v43  ;;  %v2031_v63 = vadd.f32 %v5920_v21, %v8473_v23  ;;  %v5955_v54 = vpop.f32.mrf.mxu0 }
 0x197   : > { %v1974_v10 = vpop.f32.mrf.mxu1 }
 0x198   : > { %9163 = vst [vmem:[#allocation21_spill] sm:$0xff] %v8568_v24  ;;  %v8571_v22 = vadd.f32 %v5954_v5, %v2031_v63  ;;  %v2029_v25 = vadd.f32 %v1974_v10, %v8476_v57  ;;  %v2703_v46 = vpop.f32.mrf.mxu0 }
 0x199   : > { %v5921_v4 = vpop.f32.mrf.mxu1 }
 0x19a   : > { %9164 = vst [vmem:[#allocation23_spill] sm:$0xff] %v8571_v22  ;;  %v8574_v15 = vadd.f32 %v2700_v37, %v2029_v25  ;;  %v2032_v50 = vadd.f32 %v5921_v4, %v8480_v52  ;;  %v5958_v7 = vpop.f32.mrf.mxu0 }
 0x19b   : > { %v1977_v1 = vpop.f32.mrf.mxu1 }
 0x19c   : > { %9165 = vst [vmem:[#allocation25_spill] sm:$0xff] %v8574_v15  ;;  %v8577_v30 = vadd.f32 %v5955_v54, %v2032_v50  ;;  %v2030_v17 = vadd.f32 %v1977_v1, %v8484_v14  ;;  %v2716_v51 = vpop.f32.mrf.mxu0 }
 0x19d   : > { %v5924_v23 = vpop.f32.mrf.mxu1 }
 0x19e   : > { %9166 = vst [vmem:[#allocation4_spill] sm:$0xff] %v8577_v30  ;;  %v8580_v3 = vadd.f32 %v2703_v46, %v2030_v17  ;;  %v2035_v19 = vadd.f32 %v5924_v23, %v8487_v39  ;;  %v5959_v33 = vpop.f32.mrf.mxu0 }
 0x19f   : > { %v1990_v57 = vpop.f32.mrf.mxu1 }
 0x1a0   : > { %9167 = vst [vmem:[#allocation3_spill] sm:$0xff] %v8580_v3  ;;  %v8583_v42 = vadd.f32 %v5958_v7, %v2035_v19  ;;  %v2033_v41 = vadd.f32 %v1990_v57, %v8490_v45  ;;  %v2719_v47 = vpop.f32.mrf.mxu0 }
 0x1a1   : > { %v5925_v52 = vpop.f32.mrf.mxu1 }
 0x1a2   : > { %9168 = vst [vmem:[#allocation6_spill] sm:$0xff] %v8583_v42  ;;  %v8586_v44 = vadd.f32 %v2716_v51, %v2033_v41  ;;  %v2036_v49 = vadd.f32 %v5925_v52, %v8493_v61  ;;  %v8589_v6 = vpop.f32.mrf.mxu0 }
 0x1a3   : > { %v1993_v14 = vpop.f32.mrf.mxu1 }
 0x1a4   : > { %9169 = vst [vmem:[#allocation5_spill] sm:$0xff] %v8586_v44  ;;  %v8591_v35 = vadd.f32 %v5959_v33, %v2036_v49  ;;  %v2034_v20 = vadd.f32 %v1993_v14, %v8496_v40  ;;  %v8594_v39 = vpop.f32.mrf.mxu0 }
 0x1a5   : > { %v5964_v36 = vpop.f32.mrf.mxu1 }
 0x1a6   : > { %9170 = vst [vmem:[#allocation7_spill] sm:$0xff] %v8591_v35  ;;  %v8596_v32 = vadd.f32 %v2719_v47, %v2034_v20  ;;  %v8598_v5 = vpop.f32.mrf.mxu0 }
 0x1a7   : > { %v3074_v45 = vpop.f32.mrf.mxu1 }
 0x1a8   : > { %9171 = vst [vmem:[#allocation10_spill] sm:$0xff] %v8596_v32  ;;  %v8600_v28 = vpop.f32.mrf.mxu0 }
 0x1a9   : > { %v5965_v43 = vpop.f32.mrf.mxu1 }
 0x1aa   : > { %v8602_v37 = vpop.f32.mrf.mxu0 }
 0x1ab   : > { %v3077_v61 = vpop.f32.mrf.mxu1 }
 0x1ac   : > { %v8604_v21 = vpop.f32.mrf.mxu0 }
 0x1ad   : > { %v5968_v63 = vpop.f32.mrf.mxu1 }
 0x1ae   : > { %v8606_v54 = vpop.f32.mrf.mxu0 }
 0x1af   : > { %v3090_v40 = vpop.f32.mrf.mxu1 }
 0x1b0   : > { %v8608_v10 = vpop.f32.mrf.mxu0 }
 0x1b1   : > { %v5969_v25 = vpop.f32.mrf.mxu1 }
 0x1b2   : > { %v8610_v46 = vpop.f32.mrf.mxu0 }
 0x1b3   : > { %v3093_v4 = vpop.f32.mrf.mxu1 }
 0x1b4   : > { %v8612_v50 = vpop.f32.mrf.mxu0 }
 0x1b5   : > { %v5972_v7 = vpop.f32.mrf.mxu1 }
 0x1b6   : > { %v8614_v1 = vpop.f32.mrf.mxu0 }
 0x1b7   : > { %v3106_v17 = vpop.f32.mrf.mxu1 }
 0x1b8   : > { %v8616_v51 = vpop.f32.mrf.mxu0 }
 0x1b9   : > { %v5973_v23 = vpop.f32.mrf.mxu1 }
 0x1ba   : > { %v8618_v19 = vpop.f32.mrf.mxu0 }
 0x1bb   : > { %v8620_v33 = vpop.f32.mrf.mxu1 }
 0x1bc   : > { %v8622_v57 = vpop.f32.mrf.mxu0 }
 0x1bd   : > { %v5976_v41 = vpop.f32.mrf.mxu1 }
 0x1be   : > { %v8624_v47 = vpop.f32.mrf.mxu0 }
 0x1bf   : > { %v3122_v52 = vpop.f32.mrf.mxu1 }
 0x1c0   : > { %v8626_v49 = vpop.f32.mrf.mxu0 }
 0x1c1   : > { %v5977_v14 = vpop.f32.mrf.mxu1 }
 0x1c2   : > { %v8628_v20 = vpop.f32.mrf.mxu0 }
 0x1c3   : > { %v8630_v32 = vpop.f32.mrf.mxu1 }
 0x1c4   : > { %v8632_v35 = vpop.f32.mrf.mxu0 }
 0x1c5   : > { %9172 = vst [vmem:[#allocation13_spill] sm:$0xff] %v8632_v35  ;;  %v8634_v44 = vpop.f32.mrf.mxu1 }
 0x1c6   : > { %v8636_v42 = vpop.f32.mrf.mxu0 }
 0x1c7   : > { %9173 = vst [vmem:[#allocation15_spill] sm:$0xff] %v8636_v42  ;;  %v8638_v3 = vpop.f32.mrf.mxu1 }
 0x1c8   : > { %v8640_v30 = vpop.f32.mrf.mxu0 }
 0x1c9   : > { %9174 = vst [vmem:[#allocation17_spill] sm:$0xff] %v8640_v30  ;;  %v8642_v15 = vpop.f32.mrf.mxu1 }
 0x1ca   : > { %9175 = vst [vmem:[#allocation20_spill] sm:$0xff] %v8642_v15  ;;  %v8644_v22 = vpop.f32.mrf.mxu0 }
 0x1cb   : > { %9176 = vst [vmem:[#allocation22_spill] sm:$0xff] %v8644_v22  ;;  %v8646_v24 = vpop.f32.mrf.mxu1 }
 0x1cc   : > { %9177 = vst [vmem:[#allocation24_spill] sm:$0xff] %v8646_v24  ;;  %v8648_v56 = vpop.f32.mrf.mxu0 }
 0x1cd   : > { %9178 = vst [vmem:[#allocation11_spill] sm:$0xff] %v8648_v56  ;;  %v8650_v55 = vpop.f32.mrf.mxu1 }
 0x1ce   : > { %9179 = vst [vmem:[#allocation8_spill] sm:$0xff] %v8650_v55  ;;  %v8652_v58 = vpop.f32.mrf.mxu0 }
 0x1cf   : > { %9180 = vst [vmem:[#allocation16_spill] sm:$0xff] %v8652_v58  ;;  %v8654_v59 = vpop.f32.mrf.mxu1 }
 0x1d0   : > { %9181 = vst [vmem:[#allocation12_spill] sm:$0xff] %v8654_v59  ;;  %v8656_v34 = vpop.f32.mrf.mxu0 }
 0x1d1   : > { %9182 = vst [vmem:[#allocation26_spill] sm:$0xff] %v8656_v34  ;;  %v8658_v42 = vpop.f32.mrf.mxu1 }
 0x1d2   : > { %9183 = vst [vmem:[#allocation27_spill] sm:$0xff] %v8658_v42  ;;  %v8660_v35 = vpop.f32.mrf.mxu0 }
 0x1d3   : > { %9184 = vst [vmem:[#allocation28_spill] sm:$0xff] %v8660_v35  ;;  %v8662_v30 = vpop.f32.mrf.mxu1 }
 0x1d4   : > { %9185 = vst [vmem:[#allocation29_spill] sm:$0xff] %v8662_v30  ;;  %v8664_v15 = vpop.f32.mrf.mxu0 }
 0x1d5   : > { %9186 = vst [vmem:[#allocation30_spill] sm:$0xff] %v8664_v15  ;;  %v8666_v22 = vpop.f32.mrf.mxu1 }
 0x1d6   : > { %9187 = vst [vmem:[#allocation31_spill] sm:$0xff] %v8666_v22  ;;  %v8668_v24 = vpop.f32.mrf.mxu0 }
 0x1d7   : > { %9188 = vst [vmem:[#allocation32_spill] sm:$0xff] %v8668_v24  ;;  %v8670_v56 = vpop.f32.mrf.mxu1  ;;  %v3203_v24 = vadd.f32 %v5964_v36, %v8499_v62  ;;  %v3206_v36 = vadd.f32 %v3093_v4, %v8520_v2  ;;  %v3212_v2 = vadd.f32 %v5973_v23, %v8529_v13  ;;  %v9199_v23 = vld [vmem:[#allocation2_spill] sm:$0xff] }
 0x1d8   : > { %9189 = vst [vmem:[#allocation33_spill] sm:$0xff] %v8670_v56  ;;  %v8672_v55 = vpop.f32.mrf.mxu0  ;;  %v3201_v56 = vadd.f32 %v3074_v45, %v8502_v0 }
 0x1d9   : > { %9190 = vst [vmem:[#allocation34_spill] sm:$0xff] %v8672_v55  ;;  %v8674_v58 = vpop.f32.mrf.mxu1  ;;  %v3204_v55 = vadd.f32 %v5965_v43, %v8505_v26  ;;  %v3565_v62 = vadd.f32 %v8589_v6, %v3203_v24  ;;  %v3211_v26 = vadd.f32 %v5972_v7, %v8523_v27  ;;  %v8727_v6 = vadd.f32 %v8608_v10, %v3206_v36  ;;  %v9204_v36 = vld [vmem:[#allocation8_spill] sm:$0xff] }
 0x1da   : > { %9191 = vst [vmem:[#allocation35_spill] sm:$0xff] %v8674_v58  ;;  %v8676_v59 = vpop.f32.mrf.mxu0  ;;  %v3563_v0 = vadd.f32 %v8594_v39, %v3201_v56 }
 0x1db   : > { %9192 = vst [vmem:[#allocation36_spill] sm:$0xff] %v8676_v59  ;;  %v8678_v34 = vpop.f32.mrf.mxu1  ;;  %v3202_v59 = vadd.f32 %v3077_v61, %v8508_v60  ;;  %v8730_v13 = vadd.f32 %v8610_v46, %v3211_v26 }
 0x1dc   : > { %9193 = vst [vmem:[#allocation37_spill] sm:$0xff] %v8678_v34  ;;  %v8680_v42 = vpop.f32.mrf.mxu0  ;;  %v3207_v34 = vadd.f32 %v5968_v63, %v8511_v48  ;;  %v3566_v48 = vadd.f32 %v8598_v5, %v3204_v55  ;;  %v3210_v55 = vadd.f32 %v8620_v33, %v8532_v8 }
 0x1dd   : > { %9194 = vst [vmem:[#allocation38_spill] sm:$0xff] %v8680_v42  ;;  %v8682_v35 = vpop.f32.mrf.mxu1  ;;  %v3205_v42 = vadd.f32 %v3090_v40, %v8514_v31  ;;  %v3564_v45 = vadd.f32 %v8600_v28, %v3202_v59  ;;  %v3215_v59 = vadd.f32 %v5976_v41, %v8535_v53  ;;  %v3217_v28 = vadd.f32 %v8638_v3, %v8550_v9 }
 0x1de   : > { %9195 = vst [vmem:[#allocation39_spill] sm:$0xff] %v8682_v35  ;;  %v8684_v30 = vpop.f32.mrf.mxu0  ;;  %v3569_v31 = vadd.f32 %v8602_v37, %v3207_v34  ;;  %v3213_v34 = vadd.f32 %v3122_v52, %v8538_v12  ;;  %v3214_v12 = vadd.f32 %v8630_v32, %v8544_v11  ;;  %v8744_v37 = vld [vmem:[%s8966_s3] ss:$0 sm:$0xff]  ;;  %v8751_v32 = vadd.f32 %v8616_v51, %v3210_v55 }
 0x1df   : > { %9196 = vst [vmem:[#allocation40_spill] sm:$0xff] %v8684_v30  ;;  %v8686_v15 = vpop.f32.mrf.mxu1  ;;  %v3208_v30 = vadd.f32 %v5969_v25, %v8517_v38  ;;  %v3209_v38 = vadd.f32 %v3106_v17, %v8526_v18  ;;  %v8710_v61 = vadd.f32 %v8604_v21, %v3205_v42  ;;  %v3216_v18 = vadd.f32 %v5977_v14, %v8541_v16  ;;  %v8724_v42 = vld [vmem:[%s8965_s2] ss:$0 sm:$0xff]  ;;  %v9198_v17 = vld [vmem:[#allocation13_spill] sm:$0xff] }
 0x1e0   : > { %9197 = vst [vmem:[#allocation41_spill] sm:$0xff] %v8686_v15  ;;  %v8690_v22 = vpop.f32.mrf.mxu0  ;;  %v3219_v16 = vadd.f32 %v8634_v44, %v8547_v29  ;;  %v8747_v21 = vadd.f32 %v8614_v1, %v3212_v2  ;;  %v8754_v29 = vadd.f32 %v8618_v19, %v3215_v59  ;;  %v8757_v9 = vadd.f32 %v8622_v57, %v3213_v34  ;;  %v9200_v19 = vld [vmem:[#allocation20_spill] sm:$0xff]  ;;  %v9201_v14 = vld [vmem:[#allocation14_spill] sm:$0xff] }
 0x1e1   : > { %v8695_v58 = vpop.f32.mrf.mxu1  ;;  %v8713_v24 = vadd.f32 %v8606_v54, %v3208_v30  ;;  %v8733_v53 = vadd.f32 %v8612_v50, %v3209_v38  ;;  %v8760_v3 = vadd.f32 %v8624_v47, %v3216_v18  ;;  %v8766_v7 = vadd.f32 %v8626_v49, %v3214_v12  ;;  %v9206_v12 = vld [vmem:[#allocation17_spill] sm:$0xff] }
 0x1e2   : > { %v6066_v35 = vpop.f32.mrf.mxu0  ;;  %v8769_v1 = vadd.f32 %v8628_v20, %v3219_v16  ;;  %v8772_v51 = vadd.f32 %v9198_v17, %v3217_v28  ;;  %v3220_v33 = vadd.f32 %v9200_v19, %v9199_v23  ;;  %v9202_v20 = vld [vmem:[#allocation24_spill] sm:$0xff]  ;;  %v9208_v23 = vld [vmem:[#allocation9_spill] sm:$0xff] }
 0x1e3   : > { %v8699_v15 = vpop.f32.mrf.mxu1 }
 0x1e4   : > { %v4632_v60 = vpop.f32.mrf.mxu0 }
 0x1e5   : > { %v6032_v43 = vpop.f32.mrf.mxu1 }
 0x1e6   : > { %v4291_v56 = vadd.f32 %v6032_v43, %v3565_v62  ;;  %v6067_v27 = vpop.f32.mrf.mxu0  ;;  %v3218_v62 = vadd.f32 %v9202_v20, %v9201_v14 }
 0x1e7   : > { %v4162_v30 = vpop.f32.mrf.mxu1 }
 0x1e8   : > { %v4761_v39 = vadd.f32 %v6066_v35, %v4291_v56  ;;  %v4289_v8 = vadd.f32 %v4162_v30, %v3563_v0  ;;  %v4635_v5 = vpop.f32.mrf.mxu0  ;;  %v9203_v0 = vld [vmem:[#allocation19_spill] sm:$0xff]  ;;  %v8796_v16 = vadd.f32 %v9206_v12, %v3218_v62 }
 0x1e9   : > { %v6033_v35 = vpop.f32.mrf.mxu1  ;;  %v3223_v26 = vadd.f32 %v9204_v36, %v9203_v0 }
 0x1ea   : > { %v4800_v63 = vmul.f32 %v8724_v42, %v4761_v39  ;;  %v4759_v54 = vadd.f32 %v4632_v60, %v4289_v8  ;;  %v4292_v40 = vadd.f32 %v6033_v35, %v3566_v48  ;;  %v6070_v11 = vpop.f32.mrf.mxu0 }
 0x1eb   : > { %v4165_v44 = vpop.f32.mrf.mxu1 }
 0x1ec   : > { %v4839_v10 = vadd.f32 %v8744_v37, %v4800_v63  ;;  %v4798_v25 = vmul.f32 %v8724_v42, %v4759_v54  ;;  %v4762_v46 = vadd.f32 %v6067_v27, %v4292_v40  ;;  %v4290_v4 = vadd.f32 %v4165_v44, %v3564_v45  ;;  %v4648_v50 = vpop.f32.mrf.mxu0  ;;  %v9205_v27 = vld [vmem:[#allocation15_spill] sm:$0xff]  ;;  %v9207_v40 = vld [vmem:[#allocation22_spill] sm:$0xff] }
 0x1ed   : > { %v6036_v57 = vpop.f32.mrf.mxu1  ;;  %v8789_v55 = vadd.f32 %v9205_v27, %v3220_v33 }
 0x1ee   : > { %vm4871_vm8 = vcmp.gt.f32.partialorder %v4839_v10, 0.0  ;;  %v4903_v41 = vmul.f32 0.1, %v4839_v10  ;;  %v4837_v47 = vadd.f32 %v8744_v37, %v4798_v25  ;;  %v4801_v52 = vmul.f32 %v8724_v42, %v4762_v46  ;;  %v6071_v49 = vpop.f32.mrf.mxu0 }
 0x1ef   : > { %v4760_v60 = vadd.f32 %v4635_v5, %v4290_v4  ;;  %v4295_v48 = vadd.f32 %v6036_v57, %v3569_v31  ;;  %v4178_v45 = vpop.f32.mrf.mxu1 }
 0x1f0   : > { %v4935_v38 = vsel %vm4871_vm8, %v4839_v10, %v4903_v41  ;;  %vm4869_vm9 = vcmp.gt.f32.partialorder %v4837_v47, 0.0  ;;  %v4901_v43 = vmul.f32 0.1, %v4837_v47  ;;  %v4840_v2 = vadd.f32 %v8744_v37, %v4801_v52  ;;  %v4651_v56 = vpop.f32.mrf.mxu0 }
 0x1f1   : > { %4967 = vst [vmem:[%s8779_s25 + $0x10] sm:$0xff] %v4935_v38  ;;  %v4799_v59 = vmul.f32 %v8724_v42, %v4760_v60  ;;  %v4765_v34 = vadd.f32 %v6070_v11, %v4295_v48  ;;  %v4293_v18 = vadd.f32 %v4178_v45, %v8710_v61  ;;  %v6037_v30 = vpop.f32.mrf.mxu1  ;;  %v8802_v61 = vadd.f32 %v9207_v40, %v3223_v26  ;;  %v9210_v60 = vld [vmem:[#allocation18_spill] sm:$0xff]  ;;  %v9211_v48 = vld [vmem:[#allocation27_spill] sm:$0xff] }
 0x1f2   : > { %v4933_v39 = vsel %vm4869_vm9, %v4837_v47, %v4901_v43  ;;  %vm4872_vm10 = vcmp.gt.f32.partialorder %v4840_v2, 0.0  ;;  %v4904_v31 = vmul.f32 0.1, %v4840_v2  ;;  %v4296_v8 = vadd.f32 %v6037_v30, %v8713_v24  ;;  %v6074_v5 = vpop.f32.mrf.mxu0 }
 0x1f3   : > { %4965 = vst [vmem:[%s8779_s25] sm:$0xff] %v4933_v39  ;;  %v4838_v28 = vadd.f32 %v8744_v37, %v4799_v59  ;;  %v4804_v35 = vmul.f32 %v8724_v42, %v4765_v34  ;;  %v4763_v63 = vadd.f32 %v4648_v50, %v4293_v18  ;;  %v4181_v54 = vpop.f32.mrf.mxu1  ;;  %v9209_v50 = vld [vmem:[#allocation12_spill] sm:$0xff]  ;;  %v9212_v34 = vld [vmem:[#allocation21_spill] sm:$0xff] }
 0x1f4   : > { %v4936_v11 = vsel %vm4872_vm10, %v4840_v2, %v4904_v31  ;;  %v4766_v44 = vadd.f32 %v6071_v49, %v4296_v8  ;;  %v4294_v10 = vadd.f32 %v4181_v54, %v8727_v6  ;;  %v4664_v25 = vpop.f32.mrf.mxu0  ;;  %v3221_v19 = vadd.f32 %v9209_v50, %v9208_v23 }
 0x1f5   : > { %4968 = vst [vmem:[%s8779_s25 + $0x18] sm:$0xff] %v4936_v11  ;;  %vm4870_vm11 = vcmp.gt.f32.partialorder %v4838_v28, 0.0  ;;  %v4902_v24 = vmul.f32 0.1, %v4838_v28  ;;  %v4843_v46 = vadd.f32 %v8744_v37, %v4804_v35  ;;  %v4802_v4 = vmul.f32 %v8724_v42, %v4763_v63  ;;  %v6040_v17 = vpop.f32.mrf.mxu1  ;;  %v9214_v63 = vld [vmem:[#allocation11_spill] sm:$0xff] }
 0x1f6   : > { %v4805_v33 = vmul.f32 %v8724_v42, %v4766_v44  ;;  %v4764_v57 = vadd.f32 %v4651_v56, %v4294_v10  ;;  %v4299_v41 = vadd.f32 %v6040_v17, %v8730_v13  ;;  %v6075_v47 = vpop.f32.mrf.mxu0  ;;  %v3224_v13 = vadd.f32 %v9211_v48, %v9210_v60 }
 0x1f7   : > { %v4934_v6 = vsel %vm4870_vm11, %v4838_v28, %v4902_v24  ;;  %vm4875_vm12 = vcmp.gt.f32.partialorder %v4843_v46, 0.0  ;;  %v4907_v52 = vmul.f32 0.1, %v4843_v46  ;;  %v4841_v49 = vadd.f32 %v8744_v37, %v4802_v4  ;;  %v4194_v14 = vpop.f32.mrf.mxu1  ;;  %v9215_v4 = vld [vmem:[#allocation16_spill] sm:$0xff] }
 0x1f8   : > { %4966 = vst [vmem:[%s8779_s25 + $0x8] sm:$0xff] %v4934_v6  ;;  %v4844_v20 = vadd.f32 %v8744_v37, %v4805_v33  ;;  %v4803_v62 = vmul.f32 %v8724_v42, %v4764_v57  ;;  %v4769_v0 = vadd.f32 %v6074_v5, %v4299_v41  ;;  %v4297_v36 = vadd.f32 %v4194_v14, %v8733_v53  ;;  %v4667_v26 = vpop.f32.mrf.mxu0  ;;  %v9213_v53 = vld [vmem:[#allocation29_spill] sm:$0xff]  ;;  %v9216_v57 = vld [vmem:[#allocation26_spill] sm:$0xff] }
 0x1f9   : > { %v4939_v45 = vsel %vm4875_vm12, %v4843_v46, %v4907_v52  ;;  %vm4873_vm13 = vcmp.gt.f32.partialorder %v4841_v49, 0.0  ;;  %v4905_v38 = vmul.f32 0.1, %v4841_v49  ;;  %v6041_v43 = vpop.f32.mrf.mxu1  ;;  %v3222_v18 = vadd.f32 %v9213_v53, %v9212_v34  ;;  %v9219_v53 = vld [vmem:[#allocation25_spill] sm:$0xff] }
 0x1fa   : > { %4971 = vst [vmem:[%s8779_s25 + $0x30] sm:$0xff] %v4939_v45  ;;  %vm4876_vm14 = vcmp.gt.f32.partialorder %v4844_v20, 0.0  ;;  %v4908_v2 = vmul.f32 0.1, %v4844_v20  ;;  %v4842_v56 = vadd.f32 %v8744_v37, %v4803_v62  ;;  %v4808_v27 = vmul.f32 %v8724_v42, %v4769_v0  ;;  %v6078_v59 = vpop.f32.mrf.mxu0  ;;  %v9217_v62 = vld [vmem:[#allocation23_spill] sm:$0xff] }
 0x1fb   : > { %v4937_v30 = vsel %vm4873_vm13, %v4841_v49, %v4905_v38  ;;  %v4767_v39 = vadd.f32 %v4664_v25, %v4297_v36  ;;  %v4300_v31 = vadd.f32 %v6041_v43, %v8747_v21  ;;  %v4197_v8 = vpop.f32.mrf.mxu1  ;;  %v8828_v54 = vadd.f32 %v9214_v63, %v3221_v19  ;;  %v9218_v0 = vld [vmem:[#allocation31_spill] sm:$0xff] }
 0x1fc   : > { %4969 = vst [vmem:[%s8779_s25 + $0x20] sm:$0xff] %v4937_v30  ;;  %v4940_v5 = vsel %vm4876_vm14, %v4844_v20, %v4908_v2  ;;  %vm4874_vm15 = vcmp.gt.f32.partialorder %v4842_v56, 0.0  ;;  %v4906_v12 = vmul.f32 0.1, %v4842_v56  ;;  %v4847_v28 = vadd.f32 %v8744_v37, %v4808_v27  ;;  %v4680_v35 = vpop.f32.mrf.mxu0 }
 0x1fd   : > { %4972 = vst [vmem:[%s8779_s25 + $0x38] sm:$0xff] %v4940_v5  ;;  %v4806_v40 = vmul.f32 %v8724_v42, %v4767_v39  ;;  %v4770_v11 = vadd.f32 %v6075_v47, %v4300_v31  ;;  %v4298_v44 = vadd.f32 %v4197_v8, %v8751_v32  ;;  %v6044_v10 = vpop.f32.mrf.mxu1  ;;  %v8835_v17 = vadd.f32 %v9215_v4, %v3224_v13  ;;  %v9223_v4 = vld [vmem:[#allocation28_spill] sm:$0xff] }
 0x1fe   : > { %v4938_v21 = vsel %vm4874_vm15, %v4842_v56, %v4906_v12  ;;  %vm4879_vm0 = vcmp.gt.f32.partialorder %v4847_v28, 0.0  ;;  %v4911_v25 = vmul.f32 0.1, %v4847_v28  ;;  %v4303_v24 = vadd.f32 %v6044_v10, %v8754_v29  ;;  %v6079_v46 = vpop.f32.mrf.mxu0 }
 0x1ff   : > { %4970 = vst [vmem:[%s8779_s25 + $0x28] sm:$0xff] %v4938_v21  ;;  %v4845_v23 = vadd.f32 %v8744_v37, %v4806_v40  ;;  %v4809_v50 = vmul.f32 %v8724_v42, %v4770_v11  ;;  %v4768_v19 = vadd.f32 %v4667_v26, %v4298_v44  ;;  %v4210_v33 = vpop.f32.mrf.mxu1  ;;  %v8841_v32 = vadd.f32 %v9216_v57, %v3222_v18  ;;  %v9220_v18 = vld [vmem:[#allocation33_spill] sm:$0xff] }
 0x200   : > { %v4943_v41 = vsel %vm4879_vm0, %v4847_v28, %v4911_v25  ;;  %v4773_v47 = vadd.f32 %v6078_v59, %v4303_v24  ;;  %v4301_v6 = vadd.f32 %v4210_v33, %v8757_v9  ;;  %v4683_v52 = vpop.f32.mrf.mxu0  ;;  %v3227_v36 = vadd.f32 %v9218_v0, %v9217_v62  ;;  %v9225_v0 = vld [vmem:[#allocation32_spill] sm:$0xff] }
 0x201   : > { %4975 = vst [vmem:[%s8779_s25 + $0x50] sm:$0xff] %v4943_v41  ;;  %vm4877_vm1 = vcmp.gt.f32.partialorder %v4845_v23, 0.0  ;;  %v4909_v29 = vmul.f32 0.1, %v4845_v23  ;;  %v4848_v49 = vadd.f32 %v8744_v37, %v4809_v50  ;;  %v4807_v14 = vmul.f32 %v8724_v42, %v4768_v19  ;;  %v6045_v20 = vpop.f32.mrf.mxu1 }
 0x202   : > { %v4812_v26 = vmul.f32 %v8724_v42, %v4773_v47  ;;  %v4771_v60 = vadd.f32 %v4680_v35, %v4301_v6  ;;  %v4304_v48 = vadd.f32 %v6045_v20, %v8760_v3  ;;  %v6082_v13 = vpop.f32.mrf.mxu0  ;;  %v3225_v3 = vadd.f32 %v9220_v18, %v9219_v53  ;;  %v9221_v35 = vld [vmem:[#allocation4_spill] sm:$0xff] }
 0x203   : > { %v4941_v9 = vsel %vm4877_vm1, %v4845_v23, %v4909_v29  ;;  %vm4880_vm2 = vcmp.gt.f32.partialorder %v4848_v49, 0.0  ;;  %v4912_v45 = vmul.f32 0.1, %v4848_v49  ;;  %v4846_v38 = vadd.f32 %v8744_v37, %v4807_v14  ;;  %v4213_v43 = vpop.f32.mrf.mxu1 }
 0x204   : > { %4973 = vst [vmem:[%s8779_s25 + $0x40] sm:$0xff] %v4941_v9  ;;  %v4851_v2 = vadd.f32 %v8744_v37, %v4812_v26  ;;  %v4810_v56 = vmul.f32 %v8724_v42, %v4771_v60  ;;  %v4774_v27 = vadd.f32 %v6079_v46, %v4304_v48  ;;  %v4302_v59 = vadd.f32 %v4213_v43, %v8766_v7  ;;  %v4696_v34 = vpop.f32.mrf.mxu0  ;;  %v9222_v7 = vld [vmem:[#allocation35_spill] sm:$0xff]  ;;  %v9227_v43 = vld [vmem:[#allocation37_spill] sm:$0xff] }
 0x205   : > { %v4944_v30 = vsel %vm4880_vm2, %v4848_v49, %v4912_v45  ;;  %vm4878_vm3 = vcmp.gt.f32.partialorder %v4846_v38, 0.0  ;;  %v4910_v39 = vmul.f32 0.1, %v4846_v38  ;;  %v6048_v31 = vpop.f32.mrf.mxu1  ;;  %v3228_v63 = vadd.f32 %v9222_v7, %v9221_v35 }
 0x206   : > { %4976 = vst [vmem:[%s8779_s25 + $0x58] sm:$0xff] %v4944_v30  ;;  %vm4883_vm4 = vcmp.gt.f32.partialorder %v4851_v2, 0.0  ;;  %v4915_v8 = vmul.f32 0.1, %v4851_v2  ;;  %v4849_v5 = vadd.f32 %v8744_v37, %v4810_v56  ;;  %v4813_v12 = vmul.f32 %v8724_v42, %v4774_v27  ;;  %v6083_v28 = vpop.f32.mrf.mxu0 }
 0x207   : > { %v4942_v40 = vsel %vm4878_vm3, %v4846_v38, %v4910_v39  ;;  %v4772_v11 = vadd.f32 %v4683_v52, %v4302_v59  ;;  %v4307_v44 = vadd.f32 %v6048_v31, %v8769_v1  ;;  %v4226_v10 = vpop.f32.mrf.mxu1  ;;  %v8867_v23 = vadd.f32 %v9223_v4, %v3227_v36  ;;  %v9224_v52 = vld [vmem:[#allocation30_spill] sm:$0xff]  ;;  %v9226_v38 = vld [vmem:[#allocation3_spill] sm:$0xff] }
 0x208   : > { %4974 = vst [vmem:[%s8779_s25 + $0x48] sm:$0xff] %v4942_v40  ;;  %v4947_v21 = vsel %vm4883_vm4, %v4851_v2, %v4915_v8  ;;  %vm4881_vm5 = vcmp.gt.f32.partialorder %v4849_v5, 0.0  ;;  %v4913_v25 = vmul.f32 0.1, %v4849_v5  ;;  %v4852_v24 = vadd.f32 %v8744_v37, %v4813_v12  ;;  %v4699_v46 = vpop.f32.mrf.mxu0  ;;  %v9228_v12 = vld [vmem:[#allocation6_spill] sm:$0xff] }
 0x209   : > { %4979 = vst [vmem:[%s8779_s25 + $0x70] sm:$0xff] %v4947_v21  ;;  %v4811_v50 = vmul.f32 %v8724_v42, %v4772_v11  ;;  %v4777_v19 = vadd.f32 %v6082_v13, %v4307_v44  ;;  %v4305_v33 = vadd.f32 %v4226_v10, %v8772_v51  ;;  %v6049_v57 = vpop.f32.mrf.mxu1  ;;  %v8874_v29 = vadd.f32 %v9224_v52, %v3225_v3  ;;  %v9230_v21 = vld [vmem:[#allocation5_spill] sm:$0xff] }
 0x20a   : > { %v4945_v1 = vsel %vm4881_vm5, %v4849_v5, %v4913_v25  ;;  %vm4884_vm6 = vcmp.gt.f32.partialorder %v4852_v24, 0.0  ;;  %v4916_v41 = vmul.f32 0.1, %v4852_v24  ;;  %v4308_v47 = vadd.f32 %v6049_v57, %v8789_v55 }
 0x20b   : > { %v6086_v6 = vpop.f32.mrf.mxu0  ;;  %4977 = vst [vmem:[%s8779_s25 + $0x60] sm:$0xff] %v4945_v1  ;;  %v4850_v49 = vadd.f32 %v8744_v37, %v4811_v50  ;;  %v4816_v14 = vmul.f32 %v8724_v42, %v4777_v19  ;;  %v4775_v20 = vadd.f32 %v4696_v34, %v4305_v33  ;;  %v4229_v62 = vpop.f32.mrf.mxu1  ;;  %v8880_v51 = vadd.f32 %v9225_v0, %v3228_v63 }
 0x20c   : > { %v4948_v36 = vsel %vm4884_vm6, %v4852_v24, %v4916_v41  ;;  %v4778_v26 = vadd.f32 %v6083_v28, %v4308_v47  ;;  %v4306_v60 = vadd.f32 %v4229_v62, %v8796_v16  ;;  %v3226_v2 = vadd.f32 %v9227_v43, %v9226_v38  ;;  %v9229_v28 = vld [vmem:[#allocation39_spill] sm:$0xff]  ;;  %v9232_v41 = vld [vmem:[#allocation34_spill] sm:$0xff] }
 0x20d   : > { %v4712_v48 = vpop.f32.mrf.mxu0  ;;  %4980 = vst [vmem:[%s8779_s25 + $0x78] sm:$0xff] %v4948_v36  ;;  %vm4882_vm7 = vcmp.gt.f32.partialorder %v4850_v49, 0.0  ;;  %v4914_v55 = vmul.f32 0.1, %v4850_v49  ;;  %v4855_v13 = vadd.f32 %v8744_v37, %v4816_v14  ;;  %v4814_v9 = vmul.f32 %v8724_v42, %v4775_v20  ;;  %v6052_v45 = vpop.f32.mrf.mxu1  ;;  %v9233_v36 = vld [vmem:[#allocation36_spill] sm:$0xff] }
 0x20e   : > { %v4817_v56 = vmul.f32 %v8724_v42, %v4778_v26  ;;  %v4776_v27 = vadd.f32 %v4699_v46, %v4306_v60  ;;  %v4311_v59 = vadd.f32 %v6052_v45, %v8802_v61  ;;  %v3231_v61 = vadd.f32 %v9229_v28, %v9228_v12 }
 0x20f   : > { %v6087_v34 = vpop.f32.mrf.mxu0  ;;  %v4946_v16 = vsel %vm4882_vm7, %v4850_v49, %v4914_v55  ;;  %vm4887_vm8 = vcmp.gt.f32.partialorder %v4855_v13, 0.0  ;;  %v4919_v53 = vmul.f32 0.1, %v4855_v13  ;;  %v4853_v18 = vadd.f32 %v8744_v37, %v4814_v9  ;;  %v4242_v3 = vpop.f32.mrf.mxu1  ;;  %v9234_v9 = vld [vmem:[#allocation38_spill] sm:$0xff] }
 0x210   : > { %4978 = vst [vmem:[%s8779_s25 + $0x68] sm:$0xff] %v4946_v16  ;;  %v4856_v30 = vadd.f32 %v8744_v37, %v4817_v56  ;;  %v4815_v39 = vmul.f32 %v8724_v42, %v4776_v27  ;;  %v4781_v31 = vadd.f32 %v6086_v6, %v4311_v59  ;;  %v4309_v8 = vadd.f32 %v4242_v3, %v8828_v54  ;;  %v9231_v54 = vld [vmem:[#allocation41_spill] sm:$0xff] }
 0x211   : > { %v4715_v5 = vpop.f32.mrf.mxu0  ;;  %v4951_v35 = vsel %vm4887_vm8, %v4855_v13, %v4919_v53  ;;  %vm4885_vm9 = vcmp.gt.f32.partialorder %v4853_v18, 0.0  ;;  %v4917_v7 = vmul.f32 0.1, %v4853_v18  ;;  %v6053_v63 = vpop.f32.mrf.mxu1  ;;  %v3229_v25 = vadd.f32 %v9231_v54, %v9230_v21  ;;  %v9237_v21 = vld [vmem:[#allocation40_spill] sm:$0xff] }
 0x212   : > { %4983 = vst [vmem:[%s8779_s25 + $0x90] sm:$0xff] %v4951_v35  ;;  %vm4888_vm10 = vcmp.gt.f32.partialorder %v4856_v30, 0.0  ;;  %v4920_v40 = vmul.f32 0.1, %v4856_v30  ;;  %v4854_v11 = vadd.f32 %v8744_v37, %v4815_v39  ;;  %v4820_v44 = vmul.f32 %v8724_v42, %v4781_v31 }
 0x213   : > { %v6090_v10 = vpop.f32.mrf.mxu0  ;;  %v4949_v24 = vsel %vm4885_vm9, %v4853_v18, %v4917_v7  ;;  %v4779_v46 = vadd.f32 %v4712_v48, %v4309_v8  ;;  %v4312_v4 = vadd.f32 %v6053_v63, %v8835_v17  ;;  %v4245_v50 = vpop.f32.mrf.mxu1  ;;  %v3588_v47 = vadd.f32 %v9232_v41, %v3226_v2 }
 0x214   : > { %4981 = vst [vmem:[%s8779_s25 + $0x80] sm:$0xff] %v4949_v24  ;;  %v4952_v19 = vsel %vm4888_vm10, %v4856_v30, %v4920_v40  ;;  %vm4886_vm11 = vcmp.gt.f32.partialorder %v4854_v11, 0.0  ;;  %v4918_v33 = vmul.f32 0.1, %v4854_v11  ;;  %v4859_v57 = vadd.f32 %v8744_v37, %v4820_v44 }
 0x215   : > { %v4728_v1 = vpop.f32.mrf.mxu0  ;;  %4984 = vst [vmem:[%s8779_s25 + $0x98] sm:$0xff] %v4952_v19  ;;  %v4818_v6 = vmul.f32 %v8724_v42, %v4779_v46  ;;  %v4782_v52 = vadd.f32 %v6087_v34, %v4312_v4  ;;  %v4310_v49 = vadd.f32 %v4245_v50, %v8841_v32  ;;  %v6056_v14 = vpop.f32.mrf.mxu1  ;;  %v3593_v26 = vadd.f32 %v9233_v36, %v3231_v61  ;;  %v9235_v34 = vld [vmem:[#allocation7_spill] sm:$0xff]  ;;  %v9236_v61 = vld [vmem:[#allocation10_spill] sm:$0xff] }
 0x216   : > { %v4950_v20 = vsel %vm4886_vm11, %v4854_v11, %v4918_v33  ;;  %vm4891_vm12 = vcmp.gt.f32.partialorder %v4859_v57, 0.0  ;;  %v4923_v17 = vmul.f32 0.1, %v4859_v57  ;;  %v4315_v62 = vadd.f32 %v6056_v14, %v8867_v23 }
 0x217   : > { %v6091_v0 = vpop.f32.mrf.mxu0  ;;  %4982 = vst [vmem:[%s8779_s25 + $0x88] sm:$0xff] %v4950_v20  ;;  %v4857_v60 = vadd.f32 %v8744_v37, %v4818_v6  ;;  %v4821_v48 = vmul.f32 %v8724_v42, %v4782_v52  ;;  %v4780_v55 = vadd.f32 %v4715_v5, %v4310_v49  ;;  %v4258_v13 = vpop.f32.mrf.mxu1  ;;  %v3591_v45 = vadd.f32 %v9234_v9, %v3229_v25 }
 0x218   : > { %v4955_v32 = vsel %vm4891_vm12, %v4859_v57, %v4923_v17  ;;  %v4785_v38 = vadd.f32 %v6090_v10, %v4315_v62  ;;  %v4313_v43 = vadd.f32 %v4258_v13, %v8874_v29  ;;  %v3232_v16 = vadd.f32 %v8695_v58, %v9235_v34 }
 0x219   : > { %v4731_v2 = vpop.f32.mrf.mxu0  ;;  %4987 = vst [vmem:[%s8779_s25 + $0xb0] sm:$0xff] %v4955_v32  ;;  %vm4889_vm13 = vcmp.gt.f32.partialorder %v4857_v60, 0.0  ;;  %v4921_v23 = vmul.f32 0.1, %v4857_v60  ;;  %v4860_v56 = vadd.f32 %v8744_v37, %v4821_v48  ;;  %v4819_v27 = vmul.f32 %v8724_v42, %v4780_v55  ;;  %v6057_v59 = vpop.f32.mrf.mxu1 }
 0x21a   : > { %v4824_v53 = vmul.f32 %v8724_v42, %v4785_v38  ;;  %v4783_v18 = vadd.f32 %v4728_v1, %v4313_v43  ;;  %v4316_v3 = vadd.f32 %v6057_v59, %v8880_v51  ;;  %v3230_v35 = vadd.f32 %v8699_v15, %v9236_v61 }
 0x21b   : > { %v6094_v30 = vpop.f32.mrf.mxu0  ;;  %v4953_v29 = vsel %vm4889_vm13, %v4857_v60, %v4921_v23  ;;  %vm4892_vm14 = vcmp.gt.f32.partialorder %v4860_v56, 0.0  ;;  %v4924_v39 = vmul.f32 0.1, %v4860_v56  ;;  %v4858_v31 = vadd.f32 %v8744_v37, %v4819_v27  ;;  %v4261_v8 = vpop.f32.mrf.mxu1 }
 0x21c   : > { %4985 = vst [vmem:[%s8779_s25 + $0xa0] sm:$0xff] %v4953_v29  ;;  %v4863_v5 = vadd.f32 %v8744_v37, %v4824_v53  ;;  %v4822_v12 = vmul.f32 %v8724_v42, %v4783_v18  ;;  %v4786_v28 = vadd.f32 %v6091_v0, %v4316_v3  ;;  %v4314_v58 = vadd.f32 %v4261_v8, %v3588_v47 }
 0x21d   : > { %v4956_v51 = vsel %vm4892_vm14, %v4860_v56, %v4924_v39  ;;  %vm4890_vm15 = vcmp.gt.f32.partialorder %v4858_v31, 0.0  ;;  %v4922_v7 = vmul.f32 0.1, %v4858_v31  ;;  %v6060_v63 = vpop.f32.mrf.mxu1  ;;  %v4744_v40 = vpop.f32.mrf.mxu0  ;;  %v3594_v54 = vadd.f32 %v9237_v21, %v3232_v16 }
 0x21e   : > { %4988 = vst [vmem:[%s8779_s25 + $0xb8] sm:$0xff] %v4956_v51  ;;  %vm4895_vm0 = vcmp.gt.f32.partialorder %v4863_v5, 0.0  ;;  %v4927_v11 = vmul.f32 0.1, %v4863_v5  ;;  %v4861_v44 = vadd.f32 %v8744_v37, %v4822_v12  ;;  %v4825_v10 = vmul.f32 %v8724_v42, %v4786_v28 }
 0x21f   : > { %v4954_v25 = vsel %vm4890_vm15, %v4858_v31, %v4922_v7  ;;  %v4784_v24 = vadd.f32 %v4731_v2, %v4314_v58  ;;  %v4319_v46 = vadd.f32 %v6060_v63, %v3593_v26  ;;  %v4274_v15 = vpop.f32.mrf.mxu1  ;;  %v3592_v33 = vadd.f32 %v8690_v22, %v3230_v35  ;;  %v6095_v6 = vpop.f32.mrf.mxu0 }
 0x220   : > { %4986 = vst [vmem:[%s8779_s25 + $0xa8] sm:$0xff] %v4954_v25  ;;  %v4959_v4 = vsel %vm4895_vm0, %v4863_v5, %v4927_v11  ;;  %vm4893_vm1 = vcmp.gt.f32.partialorder %v4861_v44, 0.0  ;;  %v4925_v50 = vmul.f32 0.1, %v4861_v44  ;;  %v4864_v19 = vadd.f32 %v8744_v37, %v4825_v10 }
 0x221   : > { %4991 = vst [vmem:[%s8779_s25 + $0xd0] sm:$0xff] %v4959_v4  ;;  %v4823_v57 = vmul.f32 %v8724_v42, %v4784_v24  ;;  %v4789_v1 = vadd.f32 %v6094_v30, %v4319_v46  ;;  %v4317_v41 = vadd.f32 %v4274_v15, %v3591_v45  ;;  %v6061_v47 = vpop.f32.mrf.mxu1  ;;  %v4747_v13 = vpop.f32.mrf.mxu0 }
 0x222   : > { %v4957_v52 = vsel %vm4893_vm1, %v4861_v44, %v4925_v50  ;;  %vm4896_vm2 = vcmp.gt.f32.partialorder %v4864_v19, 0.0  ;;  %v4928_v49 = vmul.f32 0.1, %v4864_v19  ;;  %v4320_v14 = vadd.f32 %v6061_v47, %v3594_v54 }
 0x223   : > { %4989 = vst [vmem:[%s8779_s25 + $0xc0] sm:$0xff] %v4957_v52  ;;  %v4862_v20 = vadd.f32 %v8744_v37, %v4823_v57  ;;  %v4828_v17 = vmul.f32 %v8724_v42, %v4789_v1  ;;  %v4787_v62 = vadd.f32 %v4744_v40, %v4317_v41  ;;  %v4277_v0 = vpop.f32.mrf.mxu1 }
 0x224   : > { %v4960_v22 = vsel %vm4896_vm2, %v4864_v19, %v4928_v49  ;;  %v4790_v36 = vadd.f32 %v6095_v6, %v4320_v14  ;;  %v4318_v26 = vadd.f32 %v4277_v0, %v3592_v33 }
 0x225   : > { %4992 = vst [vmem:[%s8779_s25 + $0xd8] sm:$0xff] %v4960_v22  ;;  %vm4894_vm3 = vcmp.gt.f32.partialorder %v4862_v20, 0.0  ;;  %v4926_v60 = vmul.f32 0.1, %v4862_v20  ;;  %v4867_v48 = vadd.f32 %v8744_v37, %v4828_v17  ;;  %v4826_v55 = vmul.f32 %v8724_v42, %v4787_v62 }
 0x226   : > { %v4829_v9 = vmul.f32 %v8724_v42, %v4790_v36  ;;  %v4788_v45 = vadd.f32 %v4747_v13, %v4318_v26 }
 0x227   : > { %v4958_v32 = vsel %vm4894_vm3, %v4862_v20, %v4926_v60  ;;  %vm4899_vm4 = vcmp.gt.f32.partialorder %v4867_v48, 0.0  ;;  %v4931_v38 = vmul.f32 0.1, %v4867_v48  ;;  %v4865_v43 = vadd.f32 %v8744_v37, %v4826_v55 }
 0x228   : > { %4990 = vst [vmem:[%s8779_s25 + $0xc8] sm:$0xff] %v4958_v32  ;;  %v4868_v2 = vadd.f32 %v8744_v37, %v4829_v9  ;;  %v4827_v23 = vmul.f32 %v8724_v42, %v4788_v45 }
 0x229   : > { %v4963_v56 = vsel %vm4899_vm4, %v4867_v48, %v4931_v38  ;;  %vm4897_vm5 = vcmp.gt.f32.partialorder %v4865_v43, 0.0  ;;  %v4929_v27 = vmul.f32 0.1, %v4865_v43 }
 0x22a   : > { %4995 = vst [vmem:[%s8779_s25 + $0xf0] sm:$0xff] %v4963_v56  ;;  %vm4900_vm6 = vcmp.gt.f32.partialorder %v4868_v2, 0.0  ;;  %v4932_v59 = vmul.f32 0.1, %v4868_v2  ;;  %v4866_v34 = vadd.f32 %v8744_v37, %v4827_v23 }
 0x22b   : > { %v4961_v16 = vsel %vm4897_vm5, %v4865_v43, %v4929_v27 }
 0x22c   : > { %4993 = vst [vmem:[%s8779_s25 + $0xe0] sm:$0xff] %v4961_v16  ;;  %v4964_v53 = vsel %vm4900_vm6, %v4868_v2, %v4932_v59  ;;  %vm4898_vm7 = vcmp.gt.f32.partialorder %v4866_v34, 0.0  ;;  %v4930_v18 = vmul.f32 0.1, %v4866_v34 }
 0x22d   : > { %4996 = vst [vmem:[%s8779_s25 + $0xf8] sm:$0xff] %v4964_v53 }
 0x22e   : > { %v4962_v3 = vsel %vm4898_vm7, %v4866_v34, %v4930_v18 }
 0x22f   : > { %4994 = vst [vmem:[%s8779_s25 + $0xe8] sm:$0xff] %v4962_v3 }
 0x230 PF: > { %s14_s17 = sadd.s32 1, %s6205_s17   ;;  %s9238_s15 = smov %s6201_s16 }
 0x231   : > { %p11_p5 = scmp.ge.s32.totalorder %s14_s17, 4   ;;  %s9239_s16 = smov %s9241_s18 }
 0x233   :  { %13 = sbr.rel (!%p11_p5) target bundleno = 2 (0x2), region = 77 }

</bundles_post_ra>
